<compile_context>
chip_gen: v7x
topology: tpu7x:2x2x1
jax: 0.10.0
libtpu: 0.0.40
codegen_flags: <defaults>
</compile_context>

<pallas_src>
import functools

import jax
import jax.numpy as jnp
from jax import lax
from jax.experimental import pallas as pl
from jax.experimental.pallas import tpu as pltpu


def _ru8(x):
    return (x + 7) // 8 * 8


def _even_rows(v):
    """Rows 0, 2, 4, ... of v (leading dim, which must be even).

    Implemented as a free leading-dim regroup + index; the discarded rows
    never enter any arithmetic, so trailing pad rows are harmless.
    """
    r = v.reshape((v.shape[0] // 2, 2) + v.shape[1:])
    return r[:, 0]


def _conv_rows_matmul(tap_rows, w_ref, b_ref):
    """ReLU( sum_i concat_j(tap_rows[i][j]) @ W[i] + b ), f32 accumulate.

    tap_rows: 3 lists (kernel rows) of 3 f32 arrays (kernel cols), each of
    shape (m0, cw, cin) with cw % 8 == 0, so the (m0, cw, K) -> (m0*cw, K)
    fold is a layout no-op.  MXU inputs are bf16.
    """
    acc = None
    bias = b_ref[...]                                   # (1, cout) f32
    for i, taps in enumerate(tap_rows):
        a = jnp.concatenate(taps, axis=-1)              # (m0, cw, 3*cin) f32
        m0, cw, kc = a.shape
        a2 = a.reshape(m0 * cw, kc).astype(jnp.bfloat16)
        w_i = w_ref[i * kc:(i + 1) * kc, :]             # (3*cin, cout) bf16
        d = jnp.dot(a2, w_i, preferred_element_type=jnp.float32)
        acc = d if acc is None else acc + d
    return jnp.maximum(acc + bias, 0.0)                 # (m0*cw, cout) f32


def _reduction_a_kernel(xe_ref, xo_ref,
                        w1_ref, b1_ref, w2_ref, b2_ref,
                        w3_ref, b3_ref, w4_ref, b4_ref,
                        out_ref, ye_ref, yo_ref, ze_ref, zo_ref,
                        *, h, w):
    cin = xe_ref.shape[-1]                 # 384
    cmid = w2_ref.shape[-1]                # 256
    sw = xe_ref.shape[2]                   # padded phase width (>= max need)
    we = (w + 1) // 2                      # number of even columns
    wd = w // 2                            # number of odd columns
    ho = (h - 3) // 2 + 1                  # stride-2 output rows
    wo = (w - 3) // 2 + 1                  # stride-2 output cols (real)
    cwe = _ru8(we)                         # 8-aligned compute widths
    cwo = _ru8(wd)
    cws = _ru8(wo)

    # ----------------- maxpool (3x3/s2) and conv1 (3x3/s2) ------------------
    # Both use the same 9 shifted windows of the (column-phase split) input.
    pool = None
    tap_rows1 = []
    for i in range(3):                     # kernel row: input row = 2*r + i
        t0 = _even_rows(xe_ref[0, i:i + 2 * ho, 0:cws, :])       # kw=0: col 2c
        t1 = _even_rows(xo_ref[0, i:i + 2 * ho, 0:cws, :])       # kw=1: col 2c+1
        t2 = _even_rows(xe_ref[0, i:i + 2 * ho, 1:1 + cws, :])   # kw=2: col 2c+2
        tap_rows1.append([t0, t1, t2])
        for t in (t0, t1, t2):             # padded cols are 0 -> junk cols only
            pool = t if pool is None else jnp.maximum(pool, t)
    c1 = _conv_rows_matmul(tap_rows1, w1_ref, b1_ref)            # (ho*cws, 384)
    c1 = c1.reshape(ho, cws, c1.shape[-1])

    # ----------------------------- conv2 (1x1) ------------------------------
    a_e = xe_ref[0, 0:h, 0:cwe, :].reshape(h * cwe, cin).astype(jnp.bfloat16)
    a_o = xo_ref[0, 0:h, 0:cwo, :].reshape(h * cwo, cin).astype(jnp.bfloat16)
    w2 = w2_ref[...]
    b2 = b2_ref[...]
    y_e = jnp.maximum(jnp.dot(a_e, w2, preferred_element_type=jnp.float32) + b2, 0.0)
    y_o = jnp.maximum(jnp.dot(a_o, w2, preferred_element_type=jnp.float32) + b2, 0.0)

    # Zero-padded (pad=1 for conv3) copies in VMEM scratch:
    #   ye col k  <-> original even col 2k
    #   yo col m  <-> original odd  col 2m-1   (col 0 / col wd+1 are the pads)
    ye_ref[...] = jnp.zeros(ye_ref.shape, ye_ref.dtype)
    yo_ref[...] = jnp.zeros(yo_ref.shape, yo_ref.dtype)
    ye_ref[1:h + 1, 0:cwe, :] = y_e.reshape(h, cwe, cmid)
    yo_ref[1:h + 1, 1:1 + cwo, :] = y_o.reshape(h, cwo, cmid)
    # restore the right-hand zero pad column(s) that the full-width store hit
    yo_ref[1:h + 1, 1 + wd:sw, :] = jnp.zeros((h, sw - 1 - wd, cmid), jnp.float32)

    # -------------- conv3 (3x3, s1, pad 1), kept column-phase split ---------
    tap_e, tap_o = [], []
    for i in range(3):                     # padded input row = output row + i
        tap_e.append([yo_ref[i:i + h, 0:cwe, :],         # kw=0: odd col 2c-1
                      ye_ref[i:i + h, 0:cwe, :],         # kw=1: even col 2c
                      yo_ref[i:i + h, 1:1 + cwe, :]])    # kw=2: odd col 2c+1
        tap_o.append([ye_ref[i:i + h, 0:cwo, :],         # kw=0: even col 2c
                      yo_ref[i:i + h, 1:1 + cwo, :],     # kw=1: odd col 2c+1
                      ye_ref[i:i + h, 1:1 + cwo, :]])    # kw=2: even col 2c+2
    z_e = _conv_rows_matmul(tap_e, w3_ref, b3_ref)       # (h*cwe, 256)
    z_o = _conv_rows_matmul(tap_o, w3_ref, b3_ref)       # (h*cwo, 256)

    ze_ref[...] = jnp.zeros(ze_ref.shape, ze_ref.dtype)
    zo_ref[...] = jnp.zeros(zo_ref.shape, zo_ref.dtype)
    ze_ref[0:h, 0:cwe, :] = z_e.reshape(h, cwe, cmid)
    zo_ref[0:h, 0:cwo, :] = z_o.reshape(h, cwo, cmid)

    # ---------------------------- conv4 (3x3, s2) ---------------------------
    tap_rows4 = []
    for i in range(3):
        tap_rows4.append([
            _even_rows(ze_ref[i:i + 2 * ho, 0:cws, :]),          # kw=0
            _even_rows(zo_ref[i:i + 2 * ho, 0:cws, :]),          # kw=1
            _even_rows(ze_ref[i:i + 2 * ho, 1:1 + cws, :]),      # kw=2
        ])
    c4 = _conv_rows_matmul(tap_rows4, w4_ref, b4_ref)            # (ho*cws, 384)
    c4 = c4.reshape(ho, cws, c4.shape[-1])

    # ------------------ channel concat (lane-dense 1152 lanes) --------------
    out_ref[0] = jnp.concatenate([pool, c1, c4], axis=-1)


# ----------------------------- wrapper / glue --------------------------------

def init_params(key):
    ks = jax.random.split(key, 8)

    def conv_init(kw_key, kb_key, cout, cin_, kh, kw):
        fan_in = cin_ * kh * kw
        wt = jax.random.normal(kw_key, (cout, cin_, kh, kw), jnp.float32)
        wt = wt * (1.0 / jnp.sqrt(jnp.float32(fan_in)))
        b = jax.random.normal(kb_key, (cout,), jnp.float32) * 0.01
        return wt, b

    w1, b1 = conv_init(ks[0], ks[1], 384, 384, 3, 3)   # conv1: 3x3 s2
    w2, b2 = conv_init(ks[2], ks[3], 256, 384, 1, 1)   # conv2: 1x1 s1
    w3, b3 = conv_init(ks[4], ks[5], 256, 256, 3, 3)   # conv3: 3x3 s1 p1
    w4, b4 = conv_init(ks[6], ks[7], 384, 256, 3, 3)   # conv4: 3x3 s2
    return dict(w1=w1, b1=b1, w2=w2, b2=b2, w3=w3, b3=b3, w4=w4, b4=b4)


def reduction_a_forward(params, x_nchw):
    n, c, h, w = x_nchw.shape
    assert c == 384, "Reduction_A expects 384 input channels"
    assert h % 2 == 1 and w % 2 == 1 and h >= 3 and w >= 3
    ho = (h - 3) // 2 + 1
    wo = (w - 3) // 2 + 1
    we = (w + 1) // 2
    wd = w // 2
    sw = _ru8(max(we, wd + 2, wo)) + 1     # uniform padded phase width
    cws = _ru8(wo)                         # kernel's stride-2 compute width

    x = jnp.transpose(x_nchw, (0, 2, 3, 1)).astype(jnp.float32)   # NHWC
    # Column-phase split (1x bytes) + zero padding: one dummy bottom row for
    # the in-kernel stride-2 row trick, extra zero columns so all in-kernel
    # (rows, cols, C) -> (rows*cols, C) folds are 8-sublane aligned no-ops.
    xe = jnp.pad(x[:, :, 0::2, :], ((0, 0), (0, 1), (0, sw - we), (0, 0)))
    xo = jnp.pad(x[:, :, 1::2, :], ((0, 0), (0, 1), (0, sw - wd), (0, 0)))

    def wflat(wt):  # (cout, cin, kh, kw) -> (kh*kw*cin, cout), bf16 for the MXU
        cout = wt.shape[0]
        return jnp.transpose(wt, (2, 3, 1, 0)).reshape(-1, cout).astype(jnp.bfloat16)

    w1, w2, w3, w4 = (wflat(params[k]) for k in ("w1", "w2", "w3", "w4"))
    b1, b2, b3, b4 = (params[k].reshape(1, -1).astype(jnp.float32)
                      for k in ("b1", "b2", "b3", "b4"))

    kernel = functools.partial(_reduction_a_kernel, h=h, w=w)

    flops = 2 * n * (ho * wo * 9 * 384 * 384 + h * w * 384 * 256
                     + h * w * 9 * 256 * 256 + ho * wo * 9 * 256 * 384)
    bytes_accessed = ((xe.size + xo.size) * 4
                      + (w1.size + w2.size + w3.size + w4.size) * 2
                      + n * ho * cws * 1152 * 4)

    out = pl.pallas_call(
        kernel,
        out_shape=jax.ShapeDtypeStruct((n, ho, cws, 1152), jnp.float32),
        grid=(n,),
        in_specs=[
            pl.BlockSpec((1, h + 1, sw, 384), lambda b: (b, 0, 0, 0)),
            pl.BlockSpec((1, h + 1, sw, 384), lambda b: (b, 0, 0, 0)),
            pl.BlockSpec(w1.shape, lambda b: (0, 0)),
            pl.BlockSpec(b1.shape, lambda b: (0, 0)),
            pl.BlockSpec(w2.shape, lambda b: (0, 0)),
            pl.BlockSpec(b2.shape, lambda b: (0, 0)),
            pl.BlockSpec(w3.shape, lambda b: (0, 0)),
            pl.BlockSpec(b3.shape, lambda b: (0, 0)),
            pl.BlockSpec(w4.shape, lambda b: (0, 0)),
            pl.BlockSpec(b4.shape, lambda b: (0, 0)),
        ],
        out_specs=pl.BlockSpec((1, ho, cws, 1152), lambda b: (b, 0, 0, 0)),
        scratch_shapes=[
            pltpu.VMEM((h + 2, sw, 256), jnp.float32),   # conv2 out, even cols (padded)
            pltpu.VMEM((h + 2, sw, 256), jnp.float32),   # conv2 out, odd cols  (padded)
            pltpu.VMEM((h + 1, sw, 256), jnp.float32),   # conv3 out, even cols
            pltpu.VMEM((h + 1, sw, 256), jnp.float32),   # conv3 out, odd cols
        ],
        compiler_params=pltpu.CompilerParams(
            dimension_semantics=("parallel",),
            vmem_limit_bytes=48 * 1024 * 1024),
        cost_estimate=pl.CostEstimate(
            flops=flops, transcendentals=0, bytes_accessed=bytes_accessed),
    )(xe, xo, w1, b1, w2, b2, w3, b3, w4, b4)

    out = out[:, :, 0:wo, :]                       # drop alignment-pad columns
    return jnp.transpose(out, (0, 3, 1, 2))        # NHWC -> NCHW


# ------------------------------- reference -----------------------------------

def reduction_a_reference(params, x_nchw):
    """Pure-JAX reference with the same bf16-operand / f32-accumulate points."""
    x = jnp.transpose(x_nchw, (0, 2, 3, 1)).astype(jnp.float32)

    def conv(xin, wt, b, stride, pad):
        y = lax.conv_general_dilated(
            xin.astype(jnp.bfloat16),
            jnp.transpose(wt, (2, 3, 1, 0)).astype(jnp.bfloat16),
            window_strides=(stride, stride),
            padding=[(pad, pad), (pad, pad)],
            dimension_numbers=("NHWC", "HWIO", "NHWC"),
            preferred_element_type=jnp.float32)
        return jax.nn.relu(y + b)

    x1 = lax.reduce_window(x, -jnp.inf, lax.max,
                           (1, 3, 3, 1), (1, 2, 2, 1), "VALID")
    x2 = conv(x, params["w1"], params["b1"], 2, 0)
    x3 = conv(x, params["w2"], params["b2"], 1, 0)
    x3 = conv(x3, params["w3"], params["b3"], 1, 1)
    x3 = conv(x3, params["w4"], params["b4"], 2, 0)
    out = jnp.concatenate([x1, x2, x3], axis=-1)
    return jnp.transpose(out, (0, 3, 1, 2))


# ---------------------------------- main --------------------------------------

if __name__ == "__main__":
    key = jax.random.PRNGKey(0)
    k_param, k_x = jax.random.split(key)

    # Channel count is fixed at 384 by the module; keep batch & spatial small.
    x = jax.random.normal(k_x, (2, 384, 9, 9), jnp.float32)   # NCHW
    params = init_params(k_param)

    fwd = jax.jit(reduction_a_forward)
    out = jax.block_until_ready(fwd(params, x))
    assert out.shape == (2, 1152, 4, 4), out.shape

    ref = jax.block_until_ready(jax.jit(reduction_a_reference)(params, x))
    max_err = float(jnp.max(jnp.abs(out - ref)))
    assert jnp.allclose(out, ref, atol=2e-2, rtol=2e-2), max_err

    print("KERNEL_OK")
</pallas_src>

<mosaic_0001>
module attributes {stable_mosaic.version = 11 : i64} {
  func.func @_reduction_a_kernel(%arg0: i32, %arg1: memref<1x10x9x384xf32, #tpu.memory_space<vmem>>, %arg2: memref<1x10x9x384xf32, #tpu.memory_space<vmem>>, %arg3: memref<3456x384xbf16, #tpu.memory_space<vmem>>, %arg4: memref<1x384xf32, #tpu.memory_space<vmem>>, %arg5: memref<384x256xbf16, #tpu.memory_space<vmem>>, %arg6: memref<1x256xf32, #tpu.memory_space<vmem>>, %arg7: memref<2304x256xbf16, #tpu.memory_space<vmem>>, %arg8: memref<1x256xf32, #tpu.memory_space<vmem>>, %arg9: memref<2304x384xbf16, #tpu.memory_space<vmem>>, %arg10: memref<1x384xf32, #tpu.memory_space<vmem>>, %arg11: memref<1x4x8x1152xf32, #tpu.memory_space<vmem>>, %arg12: memref<11x9x256xf32, #tpu.memory_space<vmem>>, %arg13: memref<11x9x256xf32, #tpu.memory_space<vmem>>, %arg14: memref<10x9x256xf32, #tpu.memory_space<vmem>>, %arg15: memref<10x9x256xf32, #tpu.memory_space<vmem>>) attributes {dimension_semantics = [#tpu.dimension_semantics<parallel>], iteration_bounds = array<i64: 2>, scalar_prefetch = 0 : i64, scratch_operands = 4 : i64, tpu.core_type = #tpu.core_type<tc>, window_params = [{transform_indices = @transform_0, window_bounds = array<i64: 1, 10, 9, 384>}, {transform_indices = @transform_1, window_bounds = array<i64: 1, 10, 9, 384>}, {pipeline_mode = #tpu.pipeline_mode<synchronous>, transform_indices = @transform_2, window_bounds = array<i64: 3456, 384>}, {pipeline_mode = #tpu.pipeline_mode<synchronous>, transform_indices = @transform_3, window_bounds = array<i64: 1, 384>}, {pipeline_mode = #tpu.pipeline_mode<synchronous>, transform_indices = @transform_4, window_bounds = array<i64: 384, 256>}, {pipeline_mode = #tpu.pipeline_mode<synchronous>, transform_indices = @transform_5, window_bounds = array<i64: 1, 256>}, {pipeline_mode = #tpu.pipeline_mode<synchronous>, transform_indices = @transform_6, window_bounds = array<i64: 2304, 256>}, {pipeline_mode = #tpu.pipeline_mode<synchronous>, transform_indices = @transform_7, window_bounds = array<i64: 1, 256>}, {pipeline_mode = #tpu.pipeline_mode<synchronous>, transform_indices = @transform_8, window_bounds = array<i64: 2304, 384>}, {pipeline_mode = #tpu.pipeline_mode<synchronous>, transform_indices = @transform_9, window_bounds = array<i64: 1, 384>}, {transform_indices = @transform_10, window_bounds = array<i64: 1, 4, 8, 1152>}]} {
    %c0 = arith.constant 0 : index
    %c0_0 = arith.constant 0 : index
    %c0_1 = arith.constant 0 : index
    %c0_2 = arith.constant 0 : index
    %0 = vector.load %arg1[%c0, %c0_0, %c0_1, %c0_2] : memref<1x10x9x384xf32, #tpu.memory_space<vmem>>, vector<1x8x8x384xf32>
    %1 = vector.shape_cast %0 : vector<1x8x8x384xf32> to vector<8x8x384xf32>
    %2 = vector.shape_cast %1 : vector<8x8x384xf32> to vector<4x2x8x384xf32>
    %3 = vector.extract_strided_slice %2 {offsets = [0, 0, 0, 0], sizes = [4, 1, 8, 384], strides = [1, 1, 1, 1]} : vector<4x2x8x384xf32> to vector<4x1x8x384xf32>
    %4 = vector.shape_cast %3 : vector<4x1x8x384xf32> to vector<4x8x384xf32>
    %c0_3 = arith.constant 0 : index
    %c0_4 = arith.constant 0 : index
    %c0_5 = arith.constant 0 : index
    %c0_6 = arith.constant 0 : index
    %5 = vector.load %arg2[%c0_3, %c0_4, %c0_5, %c0_6] : memref<1x10x9x384xf32, #tpu.memory_space<vmem>>, vector<1x8x8x384xf32>
    %6 = vector.shape_cast %5 : vector<1x8x8x384xf32> to vector<8x8x384xf32>
    %7 = vector.shape_cast %6 : vector<8x8x384xf32> to vector<4x2x8x384xf32>
    %8 = vector.extract_strided_slice %7 {offsets = [0, 0, 0, 0], sizes = [4, 1, 8, 384], strides = [1, 1, 1, 1]} : vector<4x2x8x384xf32> to vector<4x1x8x384xf32>
    %9 = vector.shape_cast %8 : vector<4x1x8x384xf32> to vector<4x8x384xf32>
    %c0_7 = arith.constant 0 : index
    %c0_8 = arith.constant 0 : index
    %c1 = arith.constant 1 : index
    %c0_9 = arith.constant 0 : index
    %10 = vector.load %arg1[%c0_7, %c0_8, %c1, %c0_9] : memref<1x10x9x384xf32, #tpu.memory_space<vmem>>, vector<1x8x8x384xf32>
    %11 = vector.shape_cast %10 : vector<1x8x8x384xf32> to vector<8x8x384xf32>
    %12 = vector.shape_cast %11 : vector<8x8x384xf32> to vector<4x2x8x384xf32>
    %13 = vector.extract_strided_slice %12 {offsets = [0, 0, 0, 0], sizes = [4, 1, 8, 384], strides = [1, 1, 1, 1]} : vector<4x2x8x384xf32> to vector<4x1x8x384xf32>
    %14 = vector.shape_cast %13 : vector<4x1x8x384xf32> to vector<4x8x384xf32>
    %15 = arith.maximumf %4, %9 : vector<4x8x384xf32>
    %16 = arith.maximumf %15, %14 : vector<4x8x384xf32>
    %c0_10 = arith.constant 0 : index
    %c1_11 = arith.constant 1 : index
    %c0_12 = arith.constant 0 : index
    %c0_13 = arith.constant 0 : index
    %17 = vector.load %arg1[%c0_10, %c1_11, %c0_12, %c0_13] : memref<1x10x9x384xf32, #tpu.memory_space<vmem>>, vector<1x8x8x384xf32>
    %18 = vector.shape_cast %17 : vector<1x8x8x384xf32> to vector<8x8x384xf32>
    %19 = vector.shape_cast %18 : vector<8x8x384xf32> to vector<4x2x8x384xf32>
    %20 = vector.extract_strided_slice %19 {offsets = [0, 0, 0, 0], sizes = [4, 1, 8, 384], strides = [1, 1, 1, 1]} : vector<4x2x8x384xf32> to vector<4x1x8x384xf32>
    %21 = vector.shape_cast %20 : vector<4x1x8x384xf32> to vector<4x8x384xf32>
    %c0_14 = arith.constant 0 : index
    %c1_15 = arith.constant 1 : index
    %c0_16 = arith.constant 0 : index
    %c0_17 = arith.constant 0 : index
    %22 = vector.load %arg2[%c0_14, %c1_15, %c0_16, %c0_17] : memref<1x10x9x384xf32, #tpu.memory_space<vmem>>, vector<1x8x8x384xf32>
    %23 = vector.shape_cast %22 : vector<1x8x8x384xf32> to vector<8x8x384xf32>
    %24 = vector.shape_cast %23 : vector<8x8x384xf32> to vector<4x2x8x384xf32>
    %25 = vector.extract_strided_slice %24 {offsets = [0, 0, 0, 0], sizes = [4, 1, 8, 384], strides = [1, 1, 1, 1]} : vector<4x2x8x384xf32> to vector<4x1x8x384xf32>
    %26 = vector.shape_cast %25 : vector<4x1x8x384xf32> to vector<4x8x384xf32>
    %c0_18 = arith.constant 0 : index
    %c1_19 = arith.constant 1 : index
    %c1_20 = arith.constant 1 : index
    %c0_21 = arith.constant 0 : index
    %27 = vector.load %arg1[%c0_18, %c1_19, %c1_20, %c0_21] : memref<1x10x9x384xf32, #tpu.memory_space<vmem>>, vector<1x8x8x384xf32>
    %28 = vector.shape_cast %27 : vector<1x8x8x384xf32> to vector<8x8x384xf32>
    %29 = vector.shape_cast %28 : vector<8x8x384xf32> to vector<4x2x8x384xf32>
    %30 = vector.extract_strided_slice %29 {offsets = [0, 0, 0, 0], sizes = [4, 1, 8, 384], strides = [1, 1, 1, 1]} : vector<4x2x8x384xf32> to vector<4x1x8x384xf32>
    %31 = vector.shape_cast %30 : vector<4x1x8x384xf32> to vector<4x8x384xf32>
    %32 = arith.maximumf %16, %21 : vector<4x8x384xf32>
    %33 = arith.maximumf %32, %26 : vector<4x8x384xf32>
    %34 = arith.maximumf %33, %31 : vector<4x8x384xf32>
    %c0_22 = arith.constant 0 : index
    %c2 = arith.constant 2 : index
    %c0_23 = arith.constant 0 : index
    %c0_24 = arith.constant 0 : index
    %35 = vector.load %arg1[%c0_22, %c2, %c0_23, %c0_24] : memref<1x10x9x384xf32, #tpu.memory_space<vmem>>, vector<1x8x8x384xf32>
    %36 = vector.shape_cast %35 : vector<1x8x8x384xf32> to vector<8x8x384xf32>
    %37 = vector.shape_cast %36 : vector<8x8x384xf32> to vector<4x2x8x384xf32>
    %38 = vector.extract_strided_slice %37 {offsets = [0, 0, 0, 0], sizes = [4, 1, 8, 384], strides = [1, 1, 1, 1]} : vector<4x2x8x384xf32> to vector<4x1x8x384xf32>
    %39 = vector.shape_cast %38 : vector<4x1x8x384xf32> to vector<4x8x384xf32>
    %c0_25 = arith.constant 0 : index
    %c2_26 = arith.constant 2 : index
    %c0_27 = arith.constant 0 : index
    %c0_28 = arith.constant 0 : index
    %40 = vector.load %arg2[%c0_25, %c2_26, %c0_27, %c0_28] : memref<1x10x9x384xf32, #tpu.memory_space<vmem>>, vector<1x8x8x384xf32>
    %41 = vector.shape_cast %40 : vector<1x8x8x384xf32> to vector<8x8x384xf32>
    %42 = vector.shape_cast %41 : vector<8x8x384xf32> to vector<4x2x8x384xf32>
    %43 = vector.extract_strided_slice %42 {offsets = [0, 0, 0, 0], sizes = [4, 1, 8, 384], strides = [1, 1, 1, 1]} : vector<4x2x8x384xf32> to vector<4x1x8x384xf32>
    %44 = vector.shape_cast %43 : vector<4x1x8x384xf32> to vector<4x8x384xf32>
    %c0_29 = arith.constant 0 : index
    %c2_30 = arith.constant 2 : index
    %c1_31 = arith.constant 1 : index
    %c0_32 = arith.constant 0 : index
    %45 = vector.load %arg1[%c0_29, %c2_30, %c1_31, %c0_32] : memref<1x10x9x384xf32, #tpu.memory_space<vmem>>, vector<1x8x8x384xf32>
    %46 = vector.shape_cast %45 : vector<1x8x8x384xf32> to vector<8x8x384xf32>
    %47 = vector.shape_cast %46 : vector<8x8x384xf32> to vector<4x2x8x384xf32>
    %48 = vector.extract_strided_slice %47 {offsets = [0, 0, 0, 0], sizes = [4, 1, 8, 384], strides = [1, 1, 1, 1]} : vector<4x2x8x384xf32> to vector<4x1x8x384xf32>
    %49 = vector.shape_cast %48 : vector<4x1x8x384xf32> to vector<4x8x384xf32>
    %50 = arith.maximumf %34, %39 : vector<4x8x384xf32>
    %51 = arith.maximumf %50, %44 : vector<4x8x384xf32>
    %52 = arith.maximumf %51, %49 : vector<4x8x384xf32>
    %c0_33 = arith.constant 0 : index
    %c0_34 = arith.constant 0 : index
    %53 = vector.load %arg4[%c0_33, %c0_34] : memref<1x384xf32, #tpu.memory_space<vmem>>, vector<1x384xf32>
    %54 = tpu.concatenate %4, %9, %14 in 2 : vector<4x8x384xf32>, vector<4x8x384xf32>, vector<4x8x384xf32> -> vector<4x8x1152xf32>
    %55 = vector.shape_cast %54 : vector<4x8x1152xf32> to vector<32x1152xf32>
    %56 = arith.truncf %55 : vector<32x1152xf32> to vector<32x1152xbf16>
    %c0_35 = arith.constant 0 : index
    %c0_36 = arith.constant 0 : index
    %57 = vector.load %arg3[%c0_35, %c0_36] : memref<3456x384xbf16, #tpu.memory_space<vmem>>, vector<1152x384xbf16>
    %cst = arith.constant dense<0.000000e+00> : vector<32x384xf32>
    %58 = tpu.matmul %56, %57, %cst {dimension_numbers = #tpu.dot_dimension_numbers<[1], [0], [0], [1], [0, 0, 1, 1], [], []>} : vector<32x1152xbf16>, vector<1152x384xbf16>, vector<32x384xf32> -> vector<32x384xf32>
    %59 = tpu.concatenate %21, %26, %31 in 2 : vector<4x8x384xf32>, vector<4x8x384xf32>, vector<4x8x384xf32> -> vector<4x8x1152xf32>
    %60 = vector.shape_cast %59 : vector<4x8x1152xf32> to vector<32x1152xf32>
    %61 = arith.truncf %60 : vector<32x1152xf32> to vector<32x1152xbf16>
    %c1152 = arith.constant 1152 : index
    %c0_37 = arith.constant 0 : index
    %62 = vector.load %arg3[%c1152, %c0_37] : memref<3456x384xbf16, #tpu.memory_space<vmem>>, vector<1152x384xbf16>
    %cst_38 = arith.constant dense<0.000000e+00> : vector<32x384xf32>
    %63 = tpu.matmul %61, %62, %cst_38 {dimension_numbers = #tpu.dot_dimension_numbers<[1], [0], [0], [1], [0, 0, 1, 1], [], []>} : vector<32x1152xbf16>, vector<1152x384xbf16>, vector<32x384xf32> -> vector<32x384xf32>
    %64 = arith.addf %58, %63 : vector<32x384xf32>
    %65 = tpu.concatenate %39, %44, %49 in 2 : vector<4x8x384xf32>, vector<4x8x384xf32>, vector<4x8x384xf32> -> vector<4x8x1152xf32>
    %66 = vector.shape_cast %65 : vector<4x8x1152xf32> to vector<32x1152xf32>
    %67 = arith.truncf %66 : vector<32x1152xf32> to vector<32x1152xbf16>
    %c2304 = arith.constant 2304 : index
    %c0_39 = arith.constant 0 : index
    %68 = vector.load %arg3[%c2304, %c0_39] : memref<3456x384xbf16, #tpu.memory_space<vmem>>, vector<1152x384xbf16>
    %cst_40 = arith.constant dense<0.000000e+00> : vector<32x384xf32>
    %69 = tpu.matmul %67, %68, %cst_40 {dimension_numbers = #tpu.dot_dimension_numbers<[1], [0], [0], [1], [0, 0, 1, 1], [], []>} : vector<32x1152xbf16>, vector<1152x384xbf16>, vector<32x384xf32> -> vector<32x384xf32>
    %70 = arith.addf %64, %69 : vector<32x384xf32>
    %71 = vector.broadcast %53 : vector<1x384xf32> to vector<32x384xf32>
    %72 = arith.addf %70, %71 : vector<32x384xf32>
    %cst_41 = arith.constant 0.000000e+00 : f32
    %73 = vector.broadcast %cst_41 : f32 to vector<32x384xf32>
    %74 = arith.maximumf %72, %73 : vector<32x384xf32>
    %75 = vector.shape_cast %74 : vector<32x384xf32> to vector<4x8x384xf32>
    %c0_42 = arith.constant 0 : index
    %c0_43 = arith.constant 0 : index
    %c0_44 = arith.constant 0 : index
    %c0_45 = arith.constant 0 : index
    %76 = vector.load %arg1[%c0_42, %c0_43, %c0_44, %c0_45] : memref<1x10x9x384xf32, #tpu.memory_space<vmem>>, vector<1x9x8x384xf32>
    %77 = vector.shape_cast %76 : vector<1x9x8x384xf32> to vector<9x8x384xf32>
    %78 = vector.shape_cast %77 : vector<9x8x384xf32> to vector<72x384xf32>
    %79 = arith.truncf %78 : vector<72x384xf32> to vector<72x384xbf16>
    %c0_46 = arith.constant 0 : index
    %c0_47 = arith.constant 0 : index
    %c0_48 = arith.constant 0 : index
    %c0_49 = arith.constant 0 : index
    %80 = vector.load %arg2[%c0_46, %c0_47, %c0_48, %c0_49] : memref<1x10x9x384xf32, #tpu.memory_space<vmem>>, vector<1x9x8x384xf32>
    %81 = vector.shape_cast %80 : vector<1x9x8x384xf32> to vector<9x8x384xf32>
    %82 = vector.shape_cast %81 : vector<9x8x384xf32> to vector<72x384xf32>
    %83 = arith.truncf %82 : vector<72x384xf32> to vector<72x384xbf16>
    %c0_50 = arith.constant 0 : index
    %c0_51 = arith.constant 0 : index
    %84 = vector.load %arg5[%c0_50, %c0_51] : memref<384x256xbf16, #tpu.memory_space<vmem>>, vector<384x256xbf16>
    %c0_52 = arith.constant 0 : index
    %c0_53 = arith.constant 0 : index
    %85 = vector.load %arg6[%c0_52, %c0_53] : memref<1x256xf32, #tpu.memory_space<vmem>>, vector<1x256xf32>
    %cst_54 = arith.constant dense<0.000000e+00> : vector<72x256xf32>
    %86 = tpu.matmul %79, %84, %cst_54 {dimension_numbers = #tpu.dot_dimension_numbers<[1], [0], [0], [1], [0, 0, 1, 1], [], []>} : vector<72x384xbf16>, vector<384x256xbf16>, vector<72x256xf32> -> vector<72x256xf32>
    %87 = vector.broadcast %85 : vector<1x256xf32> to vector<72x256xf32>
    %88 = arith.addf %86, %87 : vector<72x256xf32>
    %cst_55 = arith.constant 0.000000e+00 : f32
    %89 = vector.broadcast %cst_55 : f32 to vector<72x256xf32>
    %90 = arith.maximumf %88, %89 : vector<72x256xf32>
    %cst_56 = arith.constant dense<0.000000e+00> : vector<72x256xf32>
    %91 = tpu.matmul %83, %84, %cst_56 {dimension_numbers = #tpu.dot_dimension_numbers<[1], [0], [0], [1], [0, 0, 1, 1], [], []>} : vector<72x384xbf16>, vector<384x256xbf16>, vector<72x256xf32> -> vector<72x256xf32>
    %92 = vector.broadcast %85 : vector<1x256xf32> to vector<72x256xf32>
    %93 = arith.addf %91, %92 : vector<72x256xf32>
    %cst_57 = arith.constant 0.000000e+00 : f32
    %94 = vector.broadcast %cst_57 : f32 to vector<72x256xf32>
    %95 = arith.maximumf %93, %94 : vector<72x256xf32>
    %cst_58 = arith.constant 0.000000e+00 : f32
    %96 = vector.broadcast %cst_58 : f32 to vector<11x9x256xf32>
    %c0_59 = arith.constant 0 : index
    %c0_60 = arith.constant 0 : index
    %c0_61 = arith.constant 0 : index
    %97 = vector.load %arg12[%c0_59, %c0_60, %c0_61] : memref<11x9x256xf32, #tpu.memory_space<vmem>>, vector<11x9x256xf32>
    tpu.vector_store %arg12[%c0_59, %c0_60, %c0_61], %96 {strides = array<i32>} : memref<11x9x256xf32, #tpu.memory_space<vmem>>, vector<11x9x256xf32>,
    %cst_62 = arith.constant 0.000000e+00 : f32
    %98 = vector.broadcast %cst_62 : f32 to vector<11x9x256xf32>
    %c0_63 = arith.constant 0 : index
    %c0_64 = arith.constant 0 : index
    %c0_65 = arith.constant 0 : index
    %99 = vector.load %arg13[%c0_63, %c0_64, %c0_65] : memref<11x9x256xf32, #tpu.memory_space<vmem>>, vector<11x9x256xf32>
    tpu.vector_store %arg13[%c0_63, %c0_64, %c0_65], %98 {strides = array<i32>} : memref<11x9x256xf32, #tpu.memory_space<vmem>>, vector<11x9x256xf32>,
    %100 = vector.shape_cast %90 : vector<72x256xf32> to vector<9x8x256xf32>
    %c1_66 = arith.constant 1 : index
    %c0_67 = arith.constant 0 : index
    %c0_68 = arith.constant 0 : index
    %101 = vector.load %arg12[%c1_66, %c0_67, %c0_68] : memref<11x9x256xf32, #tpu.memory_space<vmem>>, vector<9x8x256xf32>
    tpu.vector_store %arg12[%c1_66, %c0_67, %c0_68], %100 {strides = array<i32>} : memref<11x9x256xf32, #tpu.memory_space<vmem>>, vector<9x8x256xf32>,
    %102 = vector.shape_cast %95 : vector<72x256xf32> to vector<9x8x256xf32>
    %c1_69 = arith.constant 1 : index
    %c1_70 = arith.constant 1 : index
    %c0_71 = arith.constant 0 : index
    %103 = vector.load %arg13[%c1_69, %c1_70, %c0_71] : memref<11x9x256xf32, #tpu.memory_space<vmem>>, vector<9x8x256xf32>
    tpu.vector_store %arg13[%c1_69, %c1_70, %c0_71], %102 {strides = array<i32>} : memref<11x9x256xf32, #tpu.memory_space<vmem>>, vector<9x8x256xf32>,
    %cst_72 = arith.constant 0.000000e+00 : f32
    %104 = vector.broadcast %cst_72 : f32 to vector<9x4x256xf32>
    %c1_73 = arith.constant 1 : index
    %c5 = arith.constant 5 : index
    %c0_74 = arith.constant 0 : index
    %105 = vector.load %arg13[%c1_73, %c5, %c0_74] : memref<11x9x256xf32, #tpu.memory_space<vmem>>, vector<9x4x256xf32>
    tpu.vector_store %arg13[%c1_73, %c5, %c0_74], %104 {strides = array<i32>} : memref<11x9x256xf32, #tpu.memory_space<vmem>>, vector<9x4x256xf32>,
    %c0_75 = arith.constant 0 : index
    %c0_76 = arith.constant 0 : index
    %c0_77 = arith.constant 0 : index
    %106 = vector.load %arg13[%c0_75, %c0_76, %c0_77] : memref<11x9x256xf32, #tpu.memory_space<vmem>>, vector<9x8x256xf32>
    %c0_78 = arith.constant 0 : index
    %c0_79 = arith.constant 0 : index
    %c0_80 = arith.constant 0 : index
    %107 = vector.load %arg12[%c0_78, %c0_79, %c0_80] : memref<11x9x256xf32, #tpu.memory_space<vmem>>, vector<9x8x256xf32>
    %c0_81 = arith.constant 0 : index
    %c1_82 = arith.constant 1 : index
    %c0_83 = arith.constant 0 : index
    %108 = vector.load %arg13[%c0_81, %c1_82, %c0_83] : memref<11x9x256xf32, #tpu.memory_space<vmem>>, vector<9x8x256xf32>
    %c0_84 = arith.constant 0 : index
    %c0_85 = arith.constant 0 : index
    %c0_86 = arith.constant 0 : index
    %109 = vector.load %arg12[%c0_84, %c0_85, %c0_86] : memref<11x9x256xf32, #tpu.memory_space<vmem>>, vector<9x8x256xf32>
    %c0_87 = arith.constant 0 : index
    %c1_88 = arith.constant 1 : index
    %c0_89 = arith.constant 0 : index
    %110 = vector.load %arg13[%c0_87, %c1_88, %c0_89] : memref<11x9x256xf32, #tpu.memory_space<vmem>>, vector<9x8x256xf32>
    %c0_90 = arith.constant 0 : index
    %c1_91 = arith.constant 1 : index
    %c0_92 = arith.constant 0 : index
    %111 = vector.load %arg12[%c0_90, %c1_91, %c0_92] : memref<11x9x256xf32, #tpu.memory_space<vmem>>, vector<9x8x256xf32>
    %c1_93 = arith.constant 1 : index
    %c0_94 = arith.constant 0 : index
    %c0_95 = arith.constant 0 : index
    %112 = vector.load %arg13[%c1_93, %c0_94, %c0_95] : memref<11x9x256xf32, #tpu.memory_space<vmem>>, vector<9x8x256xf32>
    %c1_96 = arith.constant 1 : index
    %c0_97 = arith.constant 0 : index
    %c0_98 = arith.constant 0 : index
    %113 = vector.load %arg12[%c1_96, %c0_97, %c0_98] : memref<11x9x256xf32, #tpu.memory_space<vmem>>, vector<9x8x256xf32>
    %c1_99 = arith.constant 1 : index
    %c1_100 = arith.constant 1 : index
    %c0_101 = arith.constant 0 : index
    %114 = vector.load %arg13[%c1_99, %c1_100, %c0_101] : memref<11x9x256xf32, #tpu.memory_space<vmem>>, vector<9x8x256xf32>
    %c1_102 = arith.constant 1 : index
    %c0_103 = arith.constant 0 : index
    %c0_104 = arith.constant 0 : index
    %115 = vector.load %arg12[%c1_102, %c0_103, %c0_104] : memref<11x9x256xf32, #tpu.memory_space<vmem>>, vector<9x8x256xf32>
    %c1_105 = arith.constant 1 : index
    %c1_106 = arith.constant 1 : index
    %c0_107 = arith.constant 0 : index
    %116 = vector.load %arg13[%c1_105, %c1_106, %c0_107] : memref<11x9x256xf32, #tpu.memory_space<vmem>>, vector<9x8x256xf32>
    %c1_108 = arith.constant 1 : index
    %c1_109 = arith.constant 1 : index
    %c0_110 = arith.constant 0 : index
    %117 = vector.load %arg12[%c1_108, %c1_109, %c0_110] : memref<11x9x256xf32, #tpu.memory_space<vmem>>, vector<9x8x256xf32>
    %c2_111 = arith.constant 2 : index
    %c0_112 = arith.constant 0 : index
    %c0_113 = arith.constant 0 : index
    %118 = vector.load %arg13[%c2_111, %c0_112, %c0_113] : memref<11x9x256xf32, #tpu.memory_space<vmem>>, vector<9x8x256xf32>
    %c2_114 = arith.constant 2 : index
    %c0_115 = arith.constant 0 : index
    %c0_116 = arith.constant 0 : index
    %119 = vector.load %arg12[%c2_114, %c0_115, %c0_116] : memref<11x9x256xf32, #tpu.memory_space<vmem>>, vector<9x8x256xf32>
    %c2_117 = arith.constant 2 : index
    %c1_118 = arith.constant 1 : index
    %c0_119 = arith.constant 0 : index
    %120 = vector.load %arg13[%c2_117, %c1_118, %c0_119] : memref<11x9x256xf32, #tpu.memory_space<vmem>>, vector<9x8x256xf32>
    %c2_120 = arith.constant 2 : index
    %c0_121 = arith.constant 0 : index
    %c0_122 = arith.constant 0 : index
    %121 = vector.load %arg12[%c2_120, %c0_121, %c0_122] : memref<11x9x256xf32, #tpu.memory_space<vmem>>, vector<9x8x256xf32>
    %c2_123 = arith.constant 2 : index
    %c1_124 = arith.constant 1 : index
    %c0_125 = arith.constant 0 : index
    %122 = vector.load %arg13[%c2_123, %c1_124, %c0_125] : memref<11x9x256xf32, #tpu.memory_space<vmem>>, vector<9x8x256xf32>
    %c2_126 = arith.constant 2 : index
    %c1_127 = arith.constant 1 : index
    %c0_128 = arith.constant 0 : index
    %123 = vector.load %arg12[%c2_126, %c1_127, %c0_128] : memref<11x9x256xf32, #tpu.memory_space<vmem>>, vector<9x8x256xf32>
    %c0_129 = arith.constant 0 : index
    %c0_130 = arith.constant 0 : index
    %124 = vector.load %arg8[%c0_129, %c0_130] : memref<1x256xf32, #tpu.memory_space<vmem>>, vector<1x256xf32>
    %125 = tpu.concatenate %106, %107, %108 in 2 : vector<9x8x256xf32>, vector<9x8x256xf32>, vector<9x8x256xf32> -> vector<9x8x768xf32>
    %126 = vector.shape_cast %125 : vector<9x8x768xf32> to vector<72x768xf32>
    %127 = arith.truncf %126 : vector<72x768xf32> to vector<72x768xbf16>
    %c0_131 = arith.constant 0 : index
    %c0_132 = arith.constant 0 : index
    %128 = vector.load %arg7[%c0_131, %c0_132] : memref<2304x256xbf16, #tpu.memory_space<vmem>>, vector<768x256xbf16>
    %cst_133 = arith.constant dense<0.000000e+00> : vector<72x256xf32>
    %129 = tpu.matmul %127, %128, %cst_133 {dimension_numbers = #tpu.dot_dimension_numbers<[1], [0], [0], [1], [0, 0, 1, 1], [], []>} : vector<72x768xbf16>, vector<768x256xbf16>, vector<72x256xf32> -> vector<72x256xf32>
    %130 = tpu.concatenate %112, %113, %114 in 2 : vector<9x8x256xf32>, vector<9x8x256xf32>, vector<9x8x256xf32> -> vector<9x8x768xf32>
    %131 = vector.shape_cast %130 : vector<9x8x768xf32> to vector<72x768xf32>
    %132 = arith.truncf %131 : vector<72x768xf32> to vector<72x768xbf16>
    %c768 = arith.constant 768 : index
    %c0_134 = arith.constant 0 : index
    %133 = vector.load %arg7[%c768, %c0_134] : memref<2304x256xbf16, #tpu.memory_space<vmem>>, vector<768x256xbf16>
    %cst_135 = arith.constant dense<0.000000e+00> : vector<72x256xf32>
    %134 = tpu.matmul %132, %133, %cst_135 {dimension_numbers = #tpu.dot_dimension_numbers<[1], [0], [0], [1], [0, 0, 1, 1], [], []>} : vector<72x768xbf16>, vector<768x256xbf16>, vector<72x256xf32> -> vector<72x256xf32>
    %135 = arith.addf %129, %134 : vector<72x256xf32>
    %136 = tpu.concatenate %118, %119, %120 in 2 : vector<9x8x256xf32>, vector<9x8x256xf32>, vector<9x8x256xf32> -> vector<9x8x768xf32>
    %137 = vector.shape_cast %136 : vector<9x8x768xf32> to vector<72x768xf32>
    %138 = arith.truncf %137 : vector<72x768xf32> to vector<72x768xbf16>
    %c1536 = arith.constant 1536 : index
    %c0_136 = arith.constant 0 : index
    %139 = vector.load %arg7[%c1536, %c0_136] : memref<2304x256xbf16, #tpu.memory_space<vmem>>, vector<768x256xbf16>
    %cst_137 = arith.constant dense<0.000000e+00> : vector<72x256xf32>
    %140 = tpu.matmul %138, %139, %cst_137 {dimension_numbers = #tpu.dot_dimension_numbers<[1], [0], [0], [1], [0, 0, 1, 1], [], []>} : vector<72x768xbf16>, vector<768x256xbf16>, vector<72x256xf32> -> vector<72x256xf32>
    %141 = arith.addf %135, %140 : vector<72x256xf32>
    %142 = vector.broadcast %124 : vector<1x256xf32> to vector<72x256xf32>
    %143 = arith.addf %141, %142 : vector<72x256xf32>
    %cst_138 = arith.constant 0.000000e+00 : f32
    %144 = vector.broadcast %cst_138 : f32 to vector<72x256xf32>
    %145 = arith.maximumf %143, %144 : vector<72x256xf32>
    %c0_139 = arith.constant 0 : index
    %c0_140 = arith.constant 0 : index
    %146 = vector.load %arg8[%c0_139, %c0_140] : memref<1x256xf32, #tpu.memory_space<vmem>>, vector<1x256xf32>
    %147 = tpu.concatenate %109, %110, %111 in 2 : vector<9x8x256xf32>, vector<9x8x256xf32>, vector<9x8x256xf32> -> vector<9x8x768xf32>
    %148 = vector.shape_cast %147 : vector<9x8x768xf32> to vector<72x768xf32>
    %149 = arith.truncf %148 : vector<72x768xf32> to vector<72x768xbf16>
    %c0_141 = arith.constant 0 : index
    %c0_142 = arith.constant 0 : index
    %150 = vector.load %arg7[%c0_141, %c0_142] : memref<2304x256xbf16, #tpu.memory_space<vmem>>, vector<768x256xbf16>
    %cst_143 = arith.constant dense<0.000000e+00> : vector<72x256xf32>
    %151 = tpu.matmul %149, %150, %cst_143 {dimension_numbers = #tpu.dot_dimension_numbers<[1], [0], [0], [1], [0, 0, 1, 1], [], []>} : vector<72x768xbf16>, vector<768x256xbf16>, vector<72x256xf32> -> vector<72x256xf32>
    %152 = tpu.concatenate %115, %116, %117 in 2 : vector<9x8x256xf32>, vector<9x8x256xf32>, vector<9x8x256xf32> -> vector<9x8x768xf32>
    %153 = vector.shape_cast %152 : vector<9x8x768xf32> to vector<72x768xf32>
    %154 = arith.truncf %153 : vector<72x768xf32> to vector<72x768xbf16>
    %c768_144 = arith.constant 768 : index
    %c0_145 = arith.constant 0 : index
    %155 = vector.load %arg7[%c768_144, %c0_145] : memref<2304x256xbf16, #tpu.memory_space<vmem>>, vector<768x256xbf16>
    %cst_146 = arith.constant dense<0.000000e+00> : vector<72x256xf32>
    %156 = tpu.matmul %154, %155, %cst_146 {dimension_numbers = #tpu.dot_dimension_numbers<[1], [0], [0], [1], [0, 0, 1, 1], [], []>} : vector<72x768xbf16>, vector<768x256xbf16>, vector<72x256xf32> -> vector<72x256xf32>
    %157 = arith.addf %151, %156 : vector<72x256xf32>
    %158 = tpu.concatenate %121, %122, %123 in 2 : vector<9x8x256xf32>, vector<9x8x256xf32>, vector<9x8x256xf32> -> vector<9x8x768xf32>
    %159 = vector.shape_cast %158 : vector<9x8x768xf32> to vector<72x768xf32>
    %160 = arith.truncf %159 : vector<72x768xf32> to vector<72x768xbf16>
    %c1536_147 = arith.constant 1536 : index
    %c0_148 = arith.constant 0 : index
    %161 = vector.load %arg7[%c1536_147, %c0_148] : memref<2304x256xbf16, #tpu.memory_space<vmem>>, vector<768x256xbf16>
    %cst_149 = arith.constant dense<0.000000e+00> : vector<72x256xf32>
    %162 = tpu.matmul %160, %161, %cst_149 {dimension_numbers = #tpu.dot_dimension_numbers<[1], [0], [0], [1], [0, 0, 1, 1], [], []>} : vector<72x768xbf16>, vector<768x256xbf16>, vector<72x256xf32> -> vector<72x256xf32>
    %163 = arith.addf %157, %162 : vector<72x256xf32>
    %164 = vector.broadcast %146 : vector<1x256xf32> to vector<72x256xf32>
    %165 = arith.addf %163, %164 : vector<72x256xf32>
    %cst_150 = arith.constant 0.000000e+00 : f32
    %166 = vector.broadcast %cst_150 : f32 to vector<72x256xf32>
    %167 = arith.maximumf %165, %166 : vector<72x256xf32>
    %cst_151 = arith.constant 0.000000e+00 : f32
    %168 = vector.broadcast %cst_151 : f32 to vector<10x9x256xf32>
    %c0_152 = arith.constant 0 : index
    %c0_153 = arith.constant 0 : index
    %c0_154 = arith.constant 0 : index
    %169 = vector.load %arg14[%c0_152, %c0_153, %c0_154] : memref<10x9x256xf32, #tpu.memory_space<vmem>>, vector<10x9x256xf32>
    tpu.vector_store %arg14[%c0_152, %c0_153, %c0_154], %168 {strides = array<i32>} : memref<10x9x256xf32, #tpu.memory_space<vmem>>, vector<10x9x256xf32>,
    %cst_155 = arith.constant 0.000000e+00 : f32
    %170 = vector.broadcast %cst_155 : f32 to vector<10x9x256xf32>
    %c0_156 = arith.constant 0 : index
    %c0_157 = arith.constant 0 : index
    %c0_158 = arith.constant 0 : index
    %171 = vector.load %arg15[%c0_156, %c0_157, %c0_158] : memref<10x9x256xf32, #tpu.memory_space<vmem>>, vector<10x9x256xf32>
    tpu.vector_store %arg15[%c0_156, %c0_157, %c0_158], %170 {strides = array<i32>} : memref<10x9x256xf32, #tpu.memory_space<vmem>>, vector<10x9x256xf32>,
    %172 = vector.shape_cast %145 : vector<72x256xf32> to vector<9x8x256xf32>
    %c0_159 = arith.constant 0 : index
    %c0_160 = arith.constant 0 : index
    %c0_161 = arith.constant 0 : index
    %173 = vector.load %arg14[%c0_159, %c0_160, %c0_161] : memref<10x9x256xf32, #tpu.memory_space<vmem>>, vector<9x8x256xf32>
    tpu.vector_store %arg14[%c0_159, %c0_160, %c0_161], %172 {strides = array<i32>} : memref<10x9x256xf32, #tpu.memory_space<vmem>>, vector<9x8x256xf32>,
    %174 = vector.shape_cast %167 : vector<72x256xf32> to vector<9x8x256xf32>
    %c0_162 = arith.constant 0 : index
    %c0_163 = arith.constant 0 : index
    %c0_164 = arith.constant 0 : index
    %175 = vector.load %arg15[%c0_162, %c0_163, %c0_164] : memref<10x9x256xf32, #tpu.memory_space<vmem>>, vector<9x8x256xf32>
    tpu.vector_store %arg15[%c0_162, %c0_163, %c0_164], %174 {strides = array<i32>} : memref<10x9x256xf32, #tpu.memory_space<vmem>>, vector<9x8x256xf32>,
    %c0_165 = arith.constant 0 : index
    %c0_166 = arith.constant 0 : index
    %c0_167 = arith.constant 0 : index
    %176 = vector.load %arg14[%c0_165, %c0_166, %c0_167] : memref<10x9x256xf32, #tpu.memory_space<vmem>>, vector<8x8x256xf32>
    %177 = vector.shape_cast %176 : vector<8x8x256xf32> to vector<4x2x8x256xf32>
    %178 = vector.extract_strided_slice %177 {offsets = [0, 0, 0, 0], sizes = [4, 1, 8, 256], strides = [1, 1, 1, 1]} : vector<4x2x8x256xf32> to vector<4x1x8x256xf32>
    %179 = vector.shape_cast %178 : vector<4x1x8x256xf32> to vector<4x8x256xf32>
    %c0_168 = arith.constant 0 : index
    %c0_169 = arith.constant 0 : index
    %c0_170 = arith.constant 0 : index
    %180 = vector.load %arg15[%c0_168, %c0_169, %c0_170] : memref<10x9x256xf32, #tpu.memory_space<vmem>>, vector<8x8x256xf32>
    %181 = vector.shape_cast %180 : vector<8x8x256xf32> to vector<4x2x8x256xf32>
    %182 = vector.extract_strided_slice %181 {offsets = [0, 0, 0, 0], sizes = [4, 1, 8, 256], strides = [1, 1, 1, 1]} : vector<4x2x8x256xf32> to vector<4x1x8x256xf32>
    %183 = vector.shape_cast %182 : vector<4x1x8x256xf32> to vector<4x8x256xf32>
    %c0_171 = arith.constant 0 : index
    %c1_172 = arith.constant 1 : index
    %c0_173 = arith.constant 0 : index
    %184 = vector.load %arg14[%c0_171, %c1_172, %c0_173] : memref<10x9x256xf32, #tpu.memory_space<vmem>>, vector<8x8x256xf32>
    %185 = vector.shape_cast %184 : vector<8x8x256xf32> to vector<4x2x8x256xf32>
    %186 = vector.extract_strided_slice %185 {offsets = [0, 0, 0, 0], sizes = [4, 1, 8, 256], strides = [1, 1, 1, 1]} : vector<4x2x8x256xf32> to vector<4x1x8x256xf32>
    %187 = vector.shape_cast %186 : vector<4x1x8x256xf32> to vector<4x8x256xf32>
    %c1_174 = arith.constant 1 : index
    %c0_175 = arith.constant 0 : index
    %c0_176 = arith.constant 0 : index
    %188 = vector.load %arg14[%c1_174, %c0_175, %c0_176] : memref<10x9x256xf32, #tpu.memory_space<vmem>>, vector<8x8x256xf32>
    %189 = vector.shape_cast %188 : vector<8x8x256xf32> to vector<4x2x8x256xf32>
    %190 = vector.extract_strided_slice %189 {offsets = [0, 0, 0, 0], sizes = [4, 1, 8, 256], strides = [1, 1, 1, 1]} : vector<4x2x8x256xf32> to vector<4x1x8x256xf32>
    %191 = vector.shape_cast %190 : vector<4x1x8x256xf32> to vector<4x8x256xf32>
    %c1_177 = arith.constant 1 : index
    %c0_178 = arith.constant 0 : index
    %c0_179 = arith.constant 0 : index
    %192 = vector.load %arg15[%c1_177, %c0_178, %c0_179] : memref<10x9x256xf32, #tpu.memory_space<vmem>>, vector<8x8x256xf32>
    %193 = vector.shape_cast %192 : vector<8x8x256xf32> to vector<4x2x8x256xf32>
    %194 = vector.extract_strided_slice %193 {offsets = [0, 0, 0, 0], sizes = [4, 1, 8, 256], strides = [1, 1, 1, 1]} : vector<4x2x8x256xf32> to vector<4x1x8x256xf32>
    %195 = vector.shape_cast %194 : vector<4x1x8x256xf32> to vector<4x8x256xf32>
    %c1_180 = arith.constant 1 : index
    %c1_181 = arith.constant 1 : index
    %c0_182 = arith.constant 0 : index
    %196 = vector.load %arg14[%c1_180, %c1_181, %c0_182] : memref<10x9x256xf32, #tpu.memory_space<vmem>>, vector<8x8x256xf32>
    %197 = vector.shape_cast %196 : vector<8x8x256xf32> to vector<4x2x8x256xf32>
    %198 = vector.extract_strided_slice %197 {offsets = [0, 0, 0, 0], sizes = [4, 1, 8, 256], strides = [1, 1, 1, 1]} : vector<4x2x8x256xf32> to vector<4x1x8x256xf32>
    %199 = vector.shape_cast %198 : vector<4x1x8x256xf32> to vector<4x8x256xf32>
    %c2_183 = arith.constant 2 : index
    %c0_184 = arith.constant 0 : index
    %c0_185 = arith.constant 0 : index
    %200 = vector.load %arg14[%c2_183, %c0_184, %c0_185] : memref<10x9x256xf32, #tpu.memory_space<vmem>>, vector<8x8x256xf32>
    %201 = vector.shape_cast %200 : vector<8x8x256xf32> to vector<4x2x8x256xf32>
    %202 = vector.extract_strided_slice %201 {offsets = [0, 0, 0, 0], sizes = [4, 1, 8, 256], strides = [1, 1, 1, 1]} : vector<4x2x8x256xf32> to vector<4x1x8x256xf32>
    %203 = vector.shape_cast %202 : vector<4x1x8x256xf32> to vector<4x8x256xf32>
    %c2_186 = arith.constant 2 : index
    %c0_187 = arith.constant 0 : index
    %c0_188 = arith.constant 0 : index
    %204 = vector.load %arg15[%c2_186, %c0_187, %c0_188] : memref<10x9x256xf32, #tpu.memory_space<vmem>>, vector<8x8x256xf32>
    %205 = vector.shape_cast %204 : vector<8x8x256xf32> to vector<4x2x8x256xf32>
    %206 = vector.extract_strided_slice %205 {offsets = [0, 0, 0, 0], sizes = [4, 1, 8, 256], strides = [1, 1, 1, 1]} : vector<4x2x8x256xf32> to vector<4x1x8x256xf32>
    %207 = vector.shape_cast %206 : vector<4x1x8x256xf32> to vector<4x8x256xf32>
    %c2_189 = arith.constant 2 : index
    %c1_190 = arith.constant 1 : index
    %c0_191 = arith.constant 0 : index
    %208 = vector.load %arg14[%c2_189, %c1_190, %c0_191] : memref<10x9x256xf32, #tpu.memory_space<vmem>>, vector<8x8x256xf32>
    %209 = vector.shape_cast %208 : vector<8x8x256xf32> to vector<4x2x8x256xf32>
    %210 = vector.extract_strided_slice %209 {offsets = [0, 0, 0, 0], sizes = [4, 1, 8, 256], strides = [1, 1, 1, 1]} : vector<4x2x8x256xf32> to vector<4x1x8x256xf32>
    %211 = vector.shape_cast %210 : vector<4x1x8x256xf32> to vector<4x8x256xf32>
    %c0_192 = arith.constant 0 : index
    %c0_193 = arith.constant 0 : index
    %212 = vector.load %arg10[%c0_192, %c0_193] : memref<1x384xf32, #tpu.memory_space<vmem>>, vector<1x384xf32>
    %213 = tpu.concatenate %179, %183, %187 in 2 : vector<4x8x256xf32>, vector<4x8x256xf32>, vector<4x8x256xf32> -> vector<4x8x768xf32>
    %214 = vector.shape_cast %213 : vector<4x8x768xf32> to vector<32x768xf32>
    %215 = arith.truncf %214 : vector<32x768xf32> to vector<32x768xbf16>
    %c0_194 = arith.constant 0 : index
    %c0_195 = arith.constant 0 : index
    %216 = vector.load %arg9[%c0_194, %c0_195] : memref<2304x384xbf16, #tpu.memory_space<vmem>>, vector<768x384xbf16>
    %cst_196 = arith.constant dense<0.000000e+00> : vector<32x384xf32>
    %217 = tpu.matmul %215, %216, %cst_196 {dimension_numbers = #tpu.dot_dimension_numbers<[1], [0], [0], [1], [0, 0, 1, 1], [], []>} : vector<32x768xbf16>, vector<768x384xbf16>, vector<32x384xf32> -> vector<32x384xf32>
    %218 = tpu.concatenate %191, %195, %199 in 2 : vector<4x8x256xf32>, vector<4x8x256xf32>, vector<4x8x256xf32> -> vector<4x8x768xf32>
    %219 = vector.shape_cast %218 : vector<4x8x768xf32> to vector<32x768xf32>
    %220 = arith.truncf %219 : vector<32x768xf32> to vector<32x768xbf16>
    %c768_197 = arith.constant 768 : index
    %c0_198 = arith.constant 0 : index
    %221 = vector.load %arg9[%c768_197, %c0_198] : memref<2304x384xbf16, #tpu.memory_space<vmem>>, vector<768x384xbf16>
    %cst_199 = arith.constant dense<0.000000e+00> : vector<32x384xf32>
    %222 = tpu.matmul %220, %221, %cst_199 {dimension_numbers = #tpu.dot_dimension_numbers<[1], [0], [0], [1], [0, 0, 1, 1], [], []>} : vector<32x768xbf16>, vector<768x384xbf16>, vector<32x384xf32> -> vector<32x384xf32>
    %223 = arith.addf %217, %222 : vector<32x384xf32>
    %224 = tpu.concatenate %203, %207, %211 in 2 : vector<4x8x256xf32>, vector<4x8x256xf32>, vector<4x8x256xf32> -> vector<4x8x768xf32>
    %225 = vector.shape_cast %224 : vector<4x8x768xf32> to vector<32x768xf32>
    %226 = arith.truncf %225 : vector<32x768xf32> to vector<32x768xbf16>
    %c1536_200 = arith.constant 1536 : index
    %c0_201 = arith.constant 0 : index
    %227 = vector.load %arg9[%c1536_200, %c0_201] : memref<2304x384xbf16, #tpu.memory_space<vmem>>, vector<768x384xbf16>
    %cst_202 = arith.constant dense<0.000000e+00> : vector<32x384xf32>
    %228 = tpu.matmul %226, %227, %cst_202 {dimension_numbers = #tpu.dot_dimension_numbers<[1], [0], [0], [1], [0, 0, 1, 1], [], []>} : vector<32x768xbf16>, vector<768x384xbf16>, vector<32x384xf32> -> vector<32x384xf32>
    %229 = arith.addf %223, %228 : vector<32x384xf32>
    %230 = vector.broadcast %212 : vector<1x384xf32> to vector<32x384xf32>
    %231 = arith.addf %229, %230 : vector<32x384xf32>
    %cst_203 = arith.constant 0.000000e+00 : f32
    %232 = vector.broadcast %cst_203 : f32 to vector<32x384xf32>
    %233 = arith.maximumf %231, %232 : vector<32x384xf32>
    %234 = vector.shape_cast %233 : vector<32x384xf32> to vector<4x8x384xf32>
    %235 = tpu.concatenate %52, %75, %234 in 2 : vector<4x8x384xf32>, vector<4x8x384xf32>, vector<4x8x384xf32> -> vector<4x8x1152xf32>
    %c0_204 = arith.constant 0 : index
    %c0_205 = arith.constant 0 : index
    %c0_206 = arith.constant 0 : index
    %c0_207 = arith.constant 0 : index
    %236 = vector.load %arg11[%c0_204, %c0_205, %c0_206, %c0_207] : memref<1x4x8x1152xf32, #tpu.memory_space<vmem>>, vector<1x4x8x1152xf32>
    %237 = vector.shape_cast %236 : vector<1x4x8x1152xf32> to vector<4x8x1152xf32>
    %238 = vector.shape_cast %235 : vector<4x8x1152xf32> to vector<1x4x8x1152xf32>
    tpu.vector_store %arg11[%c0_204, %c0_205, %c0_206, %c0_207], %238 {strides = array<i32>} : memref<1x4x8x1152xf32, #tpu.memory_space<vmem>>, vector<1x4x8x1152xf32>,
    return
  }
  func.func @transform_0(%arg0: i32) -> (i32, i32, i32, i32) {
    %c0_i32 = arith.constant 0 : i32
    %c0_i32_0 = arith.constant 0 : i32
    %c0_i32_1 = arith.constant 0 : i32
    %c0_i32_2 = arith.constant 0 : i32
    return %arg0, %c0_i32, %c0_i32_0, %c0_i32_1 : i32, i32, i32, i32
  }
  func.func @transform_1(%arg0: i32) -> (i32, i32, i32, i32) {
    %c0_i32 = arith.constant 0 : i32
    %c0_i32_0 = arith.constant 0 : i32
    %c0_i32_1 = arith.constant 0 : i32
    %c0_i32_2 = arith.constant 0 : i32
    return %arg0, %c0_i32, %c0_i32_0, %c0_i32_1 : i32, i32, i32, i32
  }
  func.func @transform_2(%arg0: i32) -> (i32, i32) {
    %c0_i32 = arith.constant 0 : i32
    %c0_i32_0 = arith.constant 0 : i32
    %c0_i32_1 = arith.constant 0 : i32
    return %c0_i32, %c0_i32_0 : i32, i32
  }
  func.func @transform_3(%arg0: i32) -> (i32, i32) {
    %c0_i32 = arith.constant 0 : i32
    %c0_i32_0 = arith.constant 0 : i32
    %c0_i32_1 = arith.constant 0 : i32
    return %c0_i32, %c0_i32_0 : i32, i32
  }
  func.func @transform_4(%arg0: i32) -> (i32, i32) {
    %c0_i32 = arith.constant 0 : i32
    %c0_i32_0 = arith.constant 0 : i32
    %c0_i32_1 = arith.constant 0 : i32
    return %c0_i32, %c0_i32_0 : i32, i32
  }
  func.func @transform_5(%arg0: i32) -> (i32, i32) {
    %c0_i32 = arith.constant 0 : i32
    %c0_i32_0 = arith.constant 0 : i32
    %c0_i32_1 = arith.constant 0 : i32
    return %c0_i32, %c0_i32_0 : i32, i32
  }
  func.func @transform_6(%arg0: i32) -> (i32, i32) {
    %c0_i32 = arith.constant 0 : i32
    %c0_i32_0 = arith.constant 0 : i32
    %c0_i32_1 = arith.constant 0 : i32
    return %c0_i32, %c0_i32_0 : i32, i32
  }
  func.func @transform_7(%arg0: i32) -> (i32, i32) {
    %c0_i32 = arith.constant 0 : i32
    %c0_i32_0 = arith.constant 0 : i32
    %c0_i32_1 = arith.constant 0 : i32
    return %c0_i32, %c0_i32_0 : i32, i32
  }
  func.func @transform_8(%arg0: i32) -> (i32, i32) {
    %c0_i32 = arith.constant 0 : i32
    %c0_i32_0 = arith.constant 0 : i32
    %c0_i32_1 = arith.constant 0 : i32
    return %c0_i32, %c0_i32_0 : i32, i32
  }
  func.func @transform_9(%arg0: i32) -> (i32, i32) {
    %c0_i32 = arith.constant 0 : i32
    %c0_i32_0 = arith.constant 0 : i32
    %c0_i32_1 = arith.constant 0 : i32
    return %c0_i32, %c0_i32_0 : i32, i32
  }
  func.func @transform_10(%arg0: i32) -> (i32, i32, i32, i32) {
    %c0_i32 = arith.constant 0 : i32
    %c0_i32_0 = arith.constant 0 : i32
    %c0_i32_1 = arith.constant 0 : i32
    %c0_i32_2 = arith.constant 0 : i32
    return %arg0, %c0_i32, %c0_i32_0, %c0_i32_1 : i32, i32, i32, i32
  }
}

</mosaic_0001>

<bundles_post_ra>
// kernel: reduction_a_forward.1
= control target key start
LH: loop header
LB: loop body
LE: loop exit
PB: predicated region body
PF: predicated region fallthrough
CT: control target
= control target key end

     0   :  { %s21354_s13 = smov 0   ;;  %s28676_s0 = inlined_call_operand.vmem [shape: f32[2,10,9,384], index: 0, kind: input, shape index: {}]   ;;  %s28677_s1 = inlined_call_operand.vmem [shape: f32[2,10,9,384], index: 1, kind: input, shape index: {}]   ;;  %s28678_s2 = inlined_call_operand.vmem [shape: bf16[3456,384], index: 2, kind: input, shape index: {}]   ;;  %s28679_s3 = inlined_call_operand.vmem [shape: f32[1,384], index: 3, kind: input, shape index: {}]   ;;  %s28680_s4 = inlined_call_operand.vmem [shape: bf16[384,256], index: 4, kind: input, shape index: {}]   ;;  %s28681_s5 = inlined_call_operand.vmem [shape: f32[1,256], index: 5, kind: input, shape index: {}]   ;;  %s28682_s6 = inlined_call_operand.vmem [shape: bf16[2304,256], index: 6, kind: input, shape index: {}]   ;;  %s28683_s7 = inlined_call_operand.vmem [shape: f32[1,256], index: 7, kind: input, shape index: {}]   ;;  %s28684_s8 = inlined_call_operand.vmem [shape: bf16[2304,384], index: 8, kind: input, shape index: {}]   ;;  %s28685_s9 = inlined_call_operand.vmem [shape: f32[1,384], index: 9, kind: input, shape index: {}]   ;;  %s28686_s10 = inlined_call_operand.vmem [shape: f32[2,4,8,1152], index: 10, kind: output, shape index: {}]  }
   0x1 LB: > { %s16527_s14 = sadd.s32 4294967295, %s21295_s13   ;;  %p16531_p0 = scmp.ge.s32.totalorder %s21295_s13, 1  ;;  %s21295_s13 = sphi %s21354_s13, %s20_s13  }
   0x2   : > { %p322_p1 = scmp.lt.s32.totalorder %s21295_s13, 3 }
   0x4   : > { %p323_p2 = pnand %p16531_p0, %p322_p1 }
   0x6   : > { %326 = sbr.rel (%p323_p2) target bundleno = 2627 (0xa43), region = 60 }
   0xd   : > { %v19277_v0 = vld [vmem:[%s28678_s2 + $0x6c4] ss:$12 sps:$4 sm:$0xff]   ;;  %v19279_v1 = vld [vmem:[%s28678_s2 + $0x788] ss:$12 sps:$4 sm:$0xff]   ;;  %v19280_v2 = vld [vmem:[%s28678_s2 + $0x6c0] ss:$12 sps:$4 sm:$0xff]  }
   0xe   : > { %2607 = vmatprep.subr.bf16.mxu0 %v19277_v0  ;;  %18049 = vmatprep.subr.bf16.mxu1 %v19279_v1  ;;  %v19281_v3 = vld [vmem:[%s28678_s2 + $0x6c8] ss:$12 sps:$4 sm:$0xff]   ;;  %v19284_v5 = vld [vmem:[%s28678_s2 + $0x7a0] ss:$12 sps:$4 sm:$0xff]   ;;  %v19285_v6 = vld [vmem:[%s28678_s2 + $0x6d8] ss:$12 sps:$4 sm:$0xff]  }
   0xf   : > { %2608 = vmatpush1.bf16.msra.mxu0 %v19280_v2  ;;  %v19282_v4 = vld [vmem:[%s28678_s2 + $0x6dc] ss:$12 sps:$4 sm:$0xff]   ;;  %18050 = vmatpush3.bf16.msra.mxu1 %v19281_v3  ;;  %v19286_v7 = vld [vmem:[%s28678_s2 + $0x6e0] ss:$12 sps:$4 sm:$0xff]   ;;  %v19289_v9 = vld [vmem:[%s28678_s2 + $0x7b8] ss:$12 sps:$4 sm:$0xff]  }
  0x10   : > { %2609 = vmatprep.subr.bf16.mxu0 %v19282_v4  ;;  %18051 = vmatprep.subr.bf16.mxu1 %v19284_v5  ;;  %v19287_v8 = vld [vmem:[%s28678_s2 + $0x6f4] ss:$12 sps:$4 sm:$0xff]   ;;  %v19290_v10 = vld [vmem:[%s28678_s2 + $0x6f0] ss:$12 sps:$4 sm:$0xff]   ;;  %v19291_v11 = vld [vmem:[%s28678_s2 + $0x6f8] ss:$12 sps:$4 sm:$0xff]  }
  0x11   : > { %v19292_v12 = vld [vmem:[%s28678_s2 + $0x70c] ss:$12 sps:$4 sm:$0xff]   ;;  %p365_p3 = scmp.lt.s32.totalorder %s16527_s14, 1  ;;  %v19294_v13 = vld [vmem:[%s28678_s2 + $0x7d0] ss:$12 sps:$4 sm:$0xff]   ;;  %vm465_vm0 = vcmask 1046528  }
  0x12   : > { %v19295_v14 = vld [vmem:[%s28678_s2 + $0x708] ss:$12 sps:$4 sm:$0xff]   ;;  %v19296_v15 = vld [vmem:[%s28678_s2 + $0x710] ss:$12 sps:$4 sm:$0xff]   ;;  %v19300_v18 = vld [vmem:[%s28678_s2 + $0x720] ss:$12 sps:$4 sm:$0xff]  }
  0x13   : > { %2610 = vmatpush1.bf16.msra.mxu0 %v19285_v6  ;;  %18052 = vmatpush3.bf16.msra.mxu1 %v19286_v7  ;;  %v19297_v16 = vld [vmem:[%s28678_s2 + $0x724] ss:$12 sps:$4 sm:$0xff]   ;;  %v19299_v17 = vld [vmem:[%s28678_s2 + $0x7e8] ss:$12 sps:$4 sm:$0xff]   ;;  %s28762_s14 = smov (!%p365_p3, %s16527_s14), 1 }
  0x14   : > { %2611 = vmatprep.subr.bf16.mxu0 %v19287_v8  ;;  %18053 = vmatprep.subr.bf16.mxu1 %v19289_v9  ;;  %v19301_v19 = vld [vmem:[%s28678_s2 + $0x728] ss:$12 sps:$4 sm:$0xff]   ;;  %v19304_v21 = vld [vmem:[%s28678_s2 + $0x800] ss:$12 sps:$4 sm:$0xff]   ;;  %v19305_v22 = vld [vmem:[%s28678_s2 + $0x738] ss:$12 sps:$4 sm:$0xff]  }
  0x15   : > { %v19302_v20 = vld [vmem:[%s28678_s2 + $0x73c] ss:$12 sps:$4 sm:$0xff]   ;;  %v19306_v23 = vld [vmem:[%s28678_s2 + $0x740] ss:$12 sps:$4 sm:$0xff]   ;;  %s19265_s27 = smul.u32 480, %s28762_s14 }
  0x16   : > { %v19307_v24 = vld [vmem:[%s28678_s2 + $0x754] ss:$12 sps:$4 sm:$0xff]   ;;  %v19309_v25 = vld [vmem:[%s28678_s2 + $0x818] ss:$12 sps:$4 sm:$0xff]   ;;  %v19310_v26 = vld [vmem:[%s28678_s2 + $0x750] ss:$12 sps:$4 sm:$0xff]  }
  0x17   : > { %2612 = vmatpush1.bf16.msra.mxu0 %v19290_v10  ;;  %18054 = vmatpush3.bf16.msra.mxu1 %v19291_v11  ;;  %v19311_v27 = vld [vmem:[%s28678_s2 + $0x758] ss:$12 sps:$4 sm:$0xff]   ;;  %v19314_v29 = vld [vmem:[%s28678_s2 + $0x830] ss:$12 sps:$4 sm:$0xff]   ;;  %v19315_v30 = vld [vmem:[%s28678_s2 + $0x768] ss:$12 sps:$4 sm:$0xff]   ;;  %s21465_s26 = scalar_lea.vmem %s28676_s0, %s19265_s27  ;;  %s21476_s16 = scalar_lea.vmem %s28677_s1, %s19265_s27 }
  0x18   : > { %2613 = vmatprep.subr.bf16.mxu0 %v19292_v12  ;;  %18055 = vmatprep.subr.bf16.mxu1 %v19294_v13  ;;  %v19312_v28 = vld [vmem:[%s28678_s2 + $0x76c] ss:$12 sps:$4 sm:$0xff]   ;;  %v19316_v31 = vld [vmem:[%s28678_s2 + $0x770] ss:$12 sps:$4 sm:$0xff]   ;;  %v409_v38 = vld [vmem:[%s21465_s26 + $0x20] sm:$0x1] }
  0x19   : > { %v19317_v32 = vld [vmem:[%s28678_s2 + $0x784] ss:$12 sps:$4 sm:$0xff]   ;;  %v382_v33 = vld [vmem:[%s21465_s26 + $0x8] sm:$0xff]  ;;  %v415_v42 = vld [vmem:[%s21465_s26 + $0x80] sm:$0x1]  ;;  %v470_v44 = vrot.slane %v409_v38, 1 }
  0x1a   : > { %v385_v34 = vld [vmem:[%s21465_s26 + $0x68] sm:$0xff]  ;;  %v16536_v46 = vld [vmem:[%s21465_s26 + $0x38] sm:$0xff]  ;;  %v479_v47 = vrot.slane %v415_v42, 1  ;;  %v16535_v55 = vld [vmem:[%s21465_s26 + $0x30] sm:$0xff]  ;;  %s19266_s22 = smul.u32 288, %s28762_s14 }
  0x1b   : > { %2614 = vmatpush1.bf16.msra.mxu0 %v19295_v14  ;;  %18056 = vmatpush3.bf16.msra.mxu1 %v19296_v15  ;;  %v394_v35 = vld [vmem:[%s21476_s16 + $0x8] sm:$0xff]  ;;  %v16539_v48 = vld [vmem:[%s21465_s26 + $0x98] sm:$0xff]  ;;  %v16538_v56 = vld [vmem:[%s21465_s26 + $0x90] sm:$0xff] }
  0x1c   : > { %2615 = vmatprep.subr.bf16.mxu0 %v19297_v16  ;;  %18057 = vmatprep.subr.bf16.mxu1 %v19299_v17  ;;  %v397_v36 = vld [vmem:[%s21476_s16 + $0x68] sm:$0xff]  ;;  %v430_v40 = vmax.f32 %v382_v33, %v394_v35  ;;  %v1150_v50 = vpack.c.bf16 %v16539_v48, %v16536_v46  ;;  %v21505_v58 = vld [vmem:[%s21476_s16 + $0x38] sm:$0xff]  ;;  %v21507_v59 = vpack.c.bf16 %v16538_v56, %v16535_v55  ;;  %v19327_v6 = vld [vmem:[%s28678_s2 + $0x7b4] ss:$12 sps:$4 sm:$0xff]   ;;  %s22893_s24 = scalar_lea.vmem %s28686_s10, %s19266_s22 }
  0x1d   : > { %v406_v37 = vld [vmem:[%s21465_s26 + $0x8] sm:$0xfe]  ;;  %v433_v41 = vmax.f32 %v385_v34, %v397_v36  ;;  %v21513_v61 = vld [vmem:[%s21476_s16 + $0x98] sm:$0xff]  ;;  %v19337_v14 = vld [vmem:[%s28678_s2 + $0x7e4] ss:$12 sps:$4 sm:$0xff]  }
  0x1e   : > { %v412_v39 = vld [vmem:[%s21465_s26 + $0x68] sm:$0xfe]  ;;  %v469_v43 = vrot.slane %v406_v37, 1  ;;  %2904 = vmatprep.mubr.bf16.mxu1 %v1150_v50  ;;  %2639 = vmatprep.mubr.bf16.mxu0 %v1150_v50  ;;  %v19325_v3 = vld [vmem:[%s28678_s2 + $0x798] ss:$12 sps:$4 sm:$0xff]   ;;  %v16547_v37 = vld [vmem:[%s21476_s16 + $0x30] sm:$0xff] }
  0x1f   : > { %2616 = vmatpush1.bf16.msra.mxu0 %v19300_v18  ;;  %18058 = vmatpush3.bf16.msra.mxu1 %v19301_v19  ;;  %v478_v45 = vrot.slane %v412_v39, 1  ;;  %v19319_v51 = vld [vmem:[%s28678_s2 + $0x908] ss:$12 sps:$4 sm:$0xff]   ;;  %v19320_v54 = vld [vmem:[%s28678_s2 + $0x780] ss:$12 sps:$4 sm:$0xff]  }
  0x20   : > { %2617 = vmatprep.subr.bf16.mxu0 %v19302_v20  ;;  %18059 = vmatprep.subr.bf16.mxu1 %v19304_v21  ;;  %v21489_v49 = vsel %vm465_vm0, %v469_v43, %v470_v44  ;;  %v19321_v60 = vld [vmem:[%s28678_s2 + $0x848] ss:$12 sps:$4 sm:$0xff]   ;;  %v19324_v1 = vld [vmem:[%s28678_s2 + $0x920] ss:$12 sps:$4 sm:$0xff]   ;;  %v19329_v7 = vld [vmem:[%s28678_s2 + $0x938] ss:$12 sps:$4 sm:$0xff]  }
  0x21   : > { %v21495_v52 = vsel %vm465_vm0, %v478_v45, %v479_v47  ;;  %v515_v53 = vmax.f32 %v430_v40, %v21489_v49  ;;  %v19322_v63 = vld [vmem:[%s28678_s2 + $0x79c] ss:$12 sps:$4 sm:$0xff]   ;;  %v19326_v5 = vld [vmem:[%s28678_s2 + $0x860] ss:$12 sps:$4 sm:$0xff]   ;;  %v19331_v9 = vld [vmem:[%s28678_s2 + $0x878] ss:$12 sps:$4 sm:$0xff]  }
  0x22   : > { %v518_v57 = vmax.f32 %v433_v41, %v21495_v52  ;;  %v19330_v8 = vld [vmem:[%s28678_s2 + $0x7b0] ss:$12 sps:$4 sm:$0xff]   ;;  %v19332_v10 = vld [vmem:[%s28678_s2 + $0x7cc] ss:$12 sps:$4 sm:$0xff]   ;;  %v19335_v12 = vld [vmem:[%s28678_s2 + $0x7c8] ss:$12 sps:$4 sm:$0xff]  }
  0x23   : > { %2618 = vmatpush1.bf16.msra.mxu0 %v19305_v22  ;;  %18060 = vmatpush3.bf16.msra.mxu1 %v19306_v23  ;;  %v577_v62 = vmax.f32 %v515_v53, %v16536_v46  ;;  %v19334_v11 = vld [vmem:[%s28678_s2 + $0x950] ss:$12 sps:$4 sm:$0xff]   ;;  %v19339_v15 = vld [vmem:[%s28678_s2 + $0x968] ss:$12 sps:$4 sm:$0xff]   ;;  %v19340_v16 = vld [vmem:[%s28678_s2 + $0x7e0] ss:$12 sps:$4 sm:$0xff]  }
  0x24   : > { %2619 = vmatprep.subr.bf16.mxu0 %v19307_v24  ;;  %18061 = vmatprep.subr.bf16.mxu1 %v19309_v25  ;;  %v580_v0 = vmax.f32 %v518_v57, %v16539_v48  ;;  %v19336_v13 = vld [vmem:[%s28678_s2 + $0x890] ss:$12 sps:$4 sm:$0xff]   ;;  %v19341_v17 = vld [vmem:[%s28678_s2 + $0x8a8] ss:$12 sps:$4 sm:$0xff]   ;;  %v19344_v19 = vld [vmem:[%s28678_s2 + $0x980] ss:$12 sps:$4 sm:$0xff]  }
  0x25   : > { %v21523_v2 = vmax.f32 %v577_v62, %v21505_v58  ;;  %v19342_v18 = vld [vmem:[%s28678_s2 + $0x7fc] ss:$12 sps:$4 sm:$0xff]   ;;  %v19345_v20 = vld [vmem:[%s28678_s2 + $0x7f8] ss:$12 sps:$4 sm:$0xff]   ;;  %v19346_v21 = vld [vmem:[%s28678_s2 + $0x8c0] ss:$12 sps:$4 sm:$0xff]  }
  0x26   : > { %v21529_v4 = vmax.f32 %v580_v0, %v21513_v61  ;;  %v19347_v22 = vld [vmem:[%s28678_s2 + $0x814] ss:$12 sps:$4 sm:$0xff]   ;;  %v16542_v23 = vld [vmem:[%s21465_s26 + $0xf8] sm:$0xff]  ;;  %v19359_v36 = vld [vmem:[%s28678_s2 + $0x844] ss:$12 sps:$4 sm:$0xff]  }
  0x27   : > { %2620 = vmatpush1.bf16.msra.mxu0 %v19310_v26  ;;  %18062 = vmatpush3.bf16.msra.mxu1 %v19311_v27  ;;  %v16545_v24 = vld [vmem:[%s21465_s26 + $0x158] sm:$0xff]  ;;  %v19355_v34 = vld [vmem:[%s28678_s2 + $0x828] ss:$12 sps:$4 sm:$0xff]   ;;  %v16537_v41 = vld [vmem:[%s21465_s26 + $0x40] sm:$0xff] }
  0x28   : > { %2621 = vmatprep.subr.bf16.mxu0 %v19312_v28  ;;  %18063 = vmatprep.subr.bf16.mxu1 %v19314_v29  ;;  %v1159_v25 = vpack.c.bf16 %v16545_v24, %v16542_v23  ;;  %v19349_v26 = vld [vmem:[%s28678_s2 + $0x998] ss:$12 sps:$4 sm:$0xff]   ;;  %v19350_v27 = vld [vmem:[%s28678_s2 + $0x810] ss:$12 sps:$4 sm:$0xff]   ;;  %v19360_v40 = vld [vmem:[%s28678_s2 + $0xa88] ss:$12 sps:$4 sm:$0xff]  }
  0x29   : > { %v16541_v28 = vld [vmem:[%s21465_s26 + $0xf0] sm:$0xff]  ;;  %v16540_v42 = vld [vmem:[%s21465_s26 + $0xa0] sm:$0xff]  ;;  %v19364_v46 = vld [vmem:[%s28678_s2 + $0x85c] ss:$12 sps:$4 sm:$0xff]  }
  0x2a   : > { %v16544_v29 = vld [vmem:[%s21465_s26 + $0x150] sm:$0xff]  ;;  %v19357_v43 = vld [vmem:[%s28678_s2 + $0x840] ss:$12 sps:$4 sm:$0xff]   ;;  %v21623_v44 = vpack.c.bf16 %v16540_v42, %v16537_v41  ;;  %v19362_v48 = vld [vmem:[%s28678_s2 + $0x858] ss:$12 sps:$4 sm:$0xff]  }
  0x2b   : > { %2622 = vmatpush1.bf16.msra.mxu0 %v19315_v30  ;;  %18064 = vmatpush3.bf16.msra.mxu1 %v19316_v31  ;;  %v1158_v30 = vpack.c.bf16 %v16544_v29, %v16541_v28  ;;  %v19351_v31 = vld [vmem:[%s28678_s2 + $0x8d8] ss:$12 sps:$4 sm:$0xff]   ;;  %v19354_v33 = vld [vmem:[%s28678_s2 + $0x9b0] ss:$12 sps:$4 sm:$0xff]   ;;  %v19361_v45 = vld [vmem:[%s28678_s2 + $0x9c8] ss:$12 sps:$4 sm:$0xff]  }
  0x2c   : > { %2623 = vmatprep.subr.bf16.mxu0 %v19317_v32  ;;  %18077 = vmatprep.subr.bf16.mxu1 %v19319_v51  ;;  %v19352_v32 = vld [vmem:[%s28678_s2 + $0x82c] ss:$12 sps:$4 sm:$0xff]   ;;  %v19356_v35 = vld [vmem:[%s28678_s2 + $0x8f0] ss:$12 sps:$4 sm:$0xff]   ;;  %v19369_v51 = vld [vmem:[%s28678_s2 + $0x874] ss:$12 sps:$4 sm:$0xff]  }
  0x2d   : > { %v16550_v38 = vld [vmem:[%s21476_s16 + $0x90] sm:$0xff]  ;;  %v19365_v47 = vld [vmem:[%s28678_s2 + $0xaa0] ss:$12 sps:$4 sm:$0xff]   ;;  %v19370_v53 = vld [vmem:[%s28678_s2 + $0xab8] ss:$12 sps:$4 sm:$0xff]  }
  0x2e   : > { %2905 = vmatmul.mubr.bf16.vlgmr.msra.gmra.mrb[0].mxu1 %v21507_v59  ;;  %v1152_v39 = vpack.c.bf16 %v16550_v38, %v16547_v37  ;;  %v19366_v50 = vld [vmem:[%s28678_s2 + $0x9e0] ss:$12 sps:$4 sm:$0xff]   ;;  %v19371_v55 = vld [vmem:[%s28678_s2 + $0x9f8] ss:$12 sps:$4 sm:$0xff]   ;;  %v19375_v57 = vld [vmem:[%s28678_s2 + $0xad0] ss:$12 sps:$4 sm:$0xff]  }
  0x2f   : > { %2624 = vmatpush1.bf16.msra.mxu0 %v19320_v54  ;;  %18078 = vmatpush3.bf16.msra.mxu1 %v19321_v60  ;;  %v19367_v54 = vld [vmem:[%s28678_s2 + $0x870] ss:$12 sps:$4 sm:$0xff]   ;;  %v19374_v56 = vld [vmem:[%s28678_s2 + $0x88c] ss:$12 sps:$4 sm:$0xff]   ;;  %v19401_v29 = vld [vmem:[%s28678_s2 + $0xb48] ss:$12 sps:$4 sm:$0xff]  }
  0x30   : > { %2625 = vmatprep.subr.bf16.mxu0 %v19322_v63  ;;  %18079 = vmatprep.subr.bf16.mxu1 %v19324_v1  ;;  %v19376_v60 = vld [vmem:[%s28678_s2 + $0xa10] ss:$12 sps:$4 sm:$0xff]   ;;  %v19380_v63 = vld [vmem:[%s28678_s2 + $0xae8] ss:$12 sps:$4 sm:$0xff]   ;;  %v19377_v0 = vld [vmem:[%s28678_s2 + $0x8a0] ss:$12 sps:$4 sm:$0xff]  }
  0x31   : > { %2912 = vmatprep.mubr.bf16.mxu1 %v1159_v25  ;;  %v19379_v62 = vld [vmem:[%s28678_s2 + $0x8a4] ss:$12 sps:$4 sm:$0xff]   ;;  %v19381_v1 = vld [vmem:[%s28678_s2 + $0xa28] ss:$12 sps:$4 sm:$0xff]   ;;  %v19397_v28 = vld [vmem:[%s28678_s2 + $0x900] ss:$12 sps:$4 sm:$0xff]  }
  0x32   : > { %v19396_v24 = vld [vmem:[%s28678_s2 + $0xa70] ss:$12 sps:$4 sm:$0xff]   ;;  %v19412_v38 = vld [vmem:[%s28678_s2 + $0x948] ss:$12 sps:$4 sm:$0xff]   ;;  %v19417_v41 = vld [vmem:[%s28678_s2 + $0x960] ss:$12 sps:$4 sm:$0xff]  }
  0x33   : > { %2626 = vmatpush1.bf16.msra.mxu0 %v19325_v3  ;;  %18080 = vmatpush3.bf16.msra.mxu1 %v19326_v5  ;;  %v19384_v3 = vld [vmem:[%s28678_s2 + $0x8bc] ss:$12 sps:$4 sm:$0xff]   ;;  %v19382_v5 = vld [vmem:[%s28678_s2 + $0x8b8] ss:$12 sps:$4 sm:$0xff]  }
  0x34   : > { %2627 = vmatprep.subr.bf16.mxu0 %v19327_v6  ;;  %18081 = vmatprep.subr.bf16.mxu1 %v19329_v7  ;;  %v19385_v6 = vld [vmem:[%s28678_s2 + $0xb00] ss:$12 sps:$4 sm:$0xff]   ;;  %v16553_v7 = vld [vmem:[%s21476_s16 + $0xf0] sm:$0xff] }
  0x35   : > { %v19415_v37 = vld [vmem:[%s28678_s2 + $0xc50] ss:$12 sps:$4 sm:$0xff]   ;;  %v19420_v42 = vld [vmem:[%s28678_s2 + $0xc68] ss:$12 sps:$4 sm:$0xff]  }
  0x36   : > { %2913 = vmatmul.mubr.bf16.gmra.mrb[4].mxu1 %v1158_v30 }
  0x37   : > { %2628 = vmatpush1.bf16.msra.mxu0 %v19330_v8  ;;  %18082 = vmatpush3.bf16.msra.mxu1 %v19331_v9  ;;  %v16556_v8 = vld [vmem:[%s21476_s16 + $0x150] sm:$0xff]  ;;  %v19386_v9 = vld [vmem:[%s28678_s2 + $0xa40] ss:$12 sps:$4 sm:$0xff]  }
  0x38   : > { %2629 = vmatprep.subr.bf16.mxu0 %v19332_v10  ;;  %18083 = vmatprep.subr.bf16.mxu1 %v19334_v11  ;;  %v21692_v10 = vpack.c.bf16 %v16556_v8, %v16553_v7  ;;  %v16543_v11 = vld [vmem:[%s21465_s26 + $0x100] sm:$0xff] }
  0x39   : > { %2953 = vmatprep.mubr.bf16.mxu1 %v1152_v39 }
  0x3b   : > { %2630 = vmatpush1.bf16.msra.mxu0 %v19335_v12  ;;  %18084 = vmatpush3.bf16.msra.mxu1 %v19336_v13  ;;  %v16546_v12 = vld [vmem:[%s21465_s26 + $0x160] sm:$0xff] }
  0x3c   : > { %2631 = vmatprep.subr.bf16.mxu0 %v19337_v14  ;;  %18085 = vmatprep.subr.bf16.mxu1 %v19339_v15  ;;  %v19389_v13 = vld [vmem:[%s28678_s2 + $0x8d4] ss:$12 sps:$4 sm:$0xff]   ;;  %v21699_v14 = vpack.c.bf16 %v16546_v12, %v16543_v11  ;;  %v19390_v15 = vld [vmem:[%s28678_s2 + $0xb18] ss:$12 sps:$4 sm:$0xff]   ;;  %v19435_v11 = vld [vmem:[%s28678_s2 + $0xcb0] ss:$12 sps:$4 sm:$0xff]  }
  0x3f   : > { %2632 = vmatpush1.bf16.msra.mxu0 %v19340_v16  ;;  %18086 = vmatpush3.bf16.msra.mxu1 %v19341_v17  ;;  %v19387_v16 = vld [vmem:[%s28678_s2 + $0x8d0] ss:$12 sps:$4 sm:$0xff]   ;;  %v19391_v17 = vld [vmem:[%s28678_s2 + $0xa58] ss:$12 sps:$4 sm:$0xff]  }
  0x40   : > { %2633 = vmatprep.subr.bf16.mxu0 %v19342_v18  ;;  %18087 = vmatprep.subr.bf16.mxu1 %v19344_v19  ;;  %v19394_v18 = vld [vmem:[%s28678_s2 + $0x8ec] ss:$12 sps:$4 sm:$0xff]   ;;  %v19395_v19 = vld [vmem:[%s28678_s2 + $0xb30] ss:$12 sps:$4 sm:$0xff]  }
  0x43   : > { %2634 = vmatpush1.bf16.msra.mxu0 %v19345_v20  ;;  %18088 = vmatpush3.bf16.msra.mxu1 %v19346_v21  ;;  %v16549_v20 = vld [vmem:[%s21476_s16 + $0x40] sm:$0xff] }
  0x44   : > { %2635 = vmatprep.subr.bf16.mxu0 %v19347_v22  ;;  %18089 = vmatprep.subr.bf16.mxu1 %v19349_v26  ;;  %v16552_v21 = vld [vmem:[%s21476_s16 + $0xa0] sm:$0xff]  ;;  %v19392_v22 = vld [vmem:[%s28678_s2 + $0x8e8] ss:$12 sps:$4 sm:$0xff]  }
  0x45   : > { %v21723_v23 = vpack.c.bf16 %v16552_v21, %v16549_v20  ;;  %v19400_v26 = vld [vmem:[%s28678_s2 + $0xc08] ss:$12 sps:$4 sm:$0xff]  }
  0x47   : > { %2636 = vmatpush1.bf16.msra.mxu0 %v19350_v27  ;;  %18090 = vmatpush3.bf16.msra.mxu1 %v19351_v31  ;;  %v21737_v27 = vpack.c.bf16 %v21513_v61, %v21505_v58  ;;  %v19405_v58 = vld [vmem:[%s28678_s2 + $0xc20] ss:$12 sps:$4 sm:$0xff]   ;;  %v19402_v61 = vld [vmem:[%s28678_s2 + $0x918] ss:$12 sps:$4 sm:$0xff]  }
  0x48   : > { %2637 = vmatprep.subr.bf16.mxu0 %v19352_v32  ;;  %18091 = vmatprep.subr.bf16.mxu1 %v19354_v33  ;;  %v19406_v31 = vld [vmem:[%s28678_s2 + $0xb60] ss:$12 sps:$4 sm:$0xff]   ;;  %v19410_v33 = vld [vmem:[%s28678_s2 + $0xc38] ss:$12 sps:$4 sm:$0xff]  }
  0x49   : > { %v19409_v32 = vld [vmem:[%s28678_s2 + $0x934] ss:$12 sps:$4 sm:$0xff]  }
  0x4b   : > { %2638 = vmatpush1.bf16.msra.mxu0 %v19355_v34  ;;  %18092 = vmatpush3.bf16.msra.mxu1 %v19356_v35  ;;  %v19407_v34 = vld [vmem:[%s28678_s2 + $0x930] ss:$12 sps:$4 sm:$0xff]   ;;  %v19411_v35 = vld [vmem:[%s28678_s2 + $0xb78] ss:$12 sps:$4 sm:$0xff]  }
  0x4c   : > { %2660 = vmatprep.subr.bf16.mxu0 %v19359_v36  ;;  %18105 = vmatprep.subr.bf16.mxu1 %v19360_v40  ;;  %v19414_v36 = vld [vmem:[%s28678_s2 + $0x94c] ss:$12 sps:$4 sm:$0xff]   ;;  %v19419_v40 = vld [vmem:[%s28678_s2 + $0x964] ss:$12 sps:$4 sm:$0xff]  }
  0x4e   : > { %2640 = vmatmul.mubr.bf16.vlgmr.msra.gmra.mrb[0].mxu0 %v21507_v59  ;;  %2954 = vmatmul.mubr.bf16.vlgmr.msra.gmra.mrb[8].mxu1 %v21623_v44  ;;  %v19372_v59 = vld [vmem:[%s28678_s2 + $0x888] ss:$12 sps:$4 sm:$0xff]  }
  0x4f   : > { %2661 = vmatpush1.bf16.msra.mxu0 %v19357_v43  ;;  %18106 = vmatpush3.bf16.msra.mxu1 %v19361_v45  ;;  %v19421_v43 = vld [vmem:[%s28678_s2 + $0xba8] ss:$12 sps:$4 sm:$0xff]   ;;  %v16555_v45 = vld [vmem:[%s21476_s16 + $0x100] sm:$0xff] }
  0x50   : > { %2662 = vmatprep.subr.bf16.mxu0 %v19364_v46  ;;  %18107 = vmatprep.subr.bf16.mxu1 %v19365_v47  ;;  %v16558_v46 = vld [vmem:[%s21476_s16 + $0x160] sm:$0xff]  ;;  %v19424_v47 = vld [vmem:[%s28678_s2 + $0x97c] ss:$12 sps:$4 sm:$0xff]  }
  0x51   : > { %2649 = vmatprep.mubr.bf16.mxu0 %v1159_v25  ;;  %2961 = vmatprep.mubr.bf16.mxu1 %v21692_v10  ;;  %v19399_v25 = vld [vmem:[%s28678_s2 + $0x904] ss:$12 sps:$4 sm:$0xff]  }
  0x53   : > { %2663 = vmatpush1.bf16.msra.mxu0 %v19362_v48  ;;  %18108 = vmatpush3.bf16.msra.mxu1 %v19366_v50  ;;  %v21799_v48 = vpack.c.bf16 %v16558_v46, %v16555_v45  ;;  %v16554_v50 = vld [vmem:[%s21476_s16 + $0xf8] sm:$0xff]  ;;  %v19449_v45 = vld [vmem:[%s28678_s2 + $0xa08] ss:$12 sps:$4 sm:$0xff]  }
  0x54   : > { %2664 = vmatprep.subr.bf16.mxu0 %v19369_v51  ;;  %18109 = vmatprep.subr.bf16.mxu1 %v19370_v53  ;;  %v16557_v51 = vld [vmem:[%s21476_s16 + $0x158] sm:$0xff]  ;;  %v19425_v53 = vld [vmem:[%s28678_s2 + $0xc80] ss:$12 sps:$4 sm:$0xff]  }
  0x56   : > { %2650 = vmatmul.mubr.bf16.gmra.mrb[4].mxu0 %v1158_v30  ;;  %2962 = vmatmul.mubr.bf16.gmra.mrb[12].mxu1 %v21699_v14  ;;  %v19404_v30 = vld [vmem:[%s28678_s2 + $0x91c] ss:$12 sps:$4 sm:$0xff]  }
  0x57   : > { %2665 = vmatpush1.bf16.msra.mxu0 %v19367_v54  ;;  %2692 = vmatprep.mubr.bf16.mxu0 %v1152_v39  ;;  %v19416_v39 = vld [vmem:[%s28678_s2 + $0xb90] ss:$12 sps:$4 sm:$0xff]   ;;  %v21807_v54 = vpack.c.bf16 %v16557_v51, %v16554_v50 }
  0x58   : > { %18110 = vmatpush3.bf16.msra.mxu1 %v19371_v55  ;;  %2666 = vmatprep.subr.bf16.mxu0 %v19374_v56  ;;  %v19422_v55 = vld [vmem:[%s28678_s2 + $0x978] ss:$12 sps:$4 sm:$0xff]   ;;  %v19426_v56 = vld [vmem:[%s28678_s2 + $0xbc0] ss:$12 sps:$4 sm:$0xff]  }
  0x59   : > { %18111 = vmatprep.subr.bf16.mxu1 %v19375_v57  ;;  %3002 = vmatprep.mubr.bf16.mxu1 %v21723_v23  ;;  %v19429_v57 = vld [vmem:[%s28678_s2 + $0x994] ss:$12 sps:$4 sm:$0xff]  }
  0x5b   : > { %2667 = vmatpush1.bf16.msra.mxu0 %v19372_v59  ;;  %v19427_v59 = vld [vmem:[%s28678_s2 + $0x990] ss:$12 sps:$4 sm:$0xff]  }
  0x5c   : > { %18112 = vmatpush3.bf16.msra.mxu1 %v19376_v60  ;;  %2668 = vmatprep.subr.bf16.mxu0 %v19379_v62  ;;  %v19430_v60 = vld [vmem:[%s28678_s2 + $0xc98] ss:$12 sps:$4 sm:$0xff]  }
  0x5d   : > { %18113 = vmatprep.subr.bf16.mxu1 %v19380_v63  ;;  %v19431_v62 = vld [vmem:[%s28678_s2 + $0xbd8] ss:$12 sps:$4 sm:$0xff]  }
  0x5e   : > { %v19434_v63 = vld [vmem:[%s28678_s2 + $0x9ac] ss:$12 sps:$4 sm:$0xff]  }
  0x5f   : > { %2669 = vmatpush1.bf16.msra.mxu0 %v19377_v0  ;;  %v16560_v0 = vld [vmem:[%s21465_s26 + $0x38] sm:$0xfe] }
  0x60   : > { %18114 = vmatpush3.bf16.msra.mxu1 %v19381_v1  ;;  %2670 = vmatprep.subr.bf16.mxu0 %v19384_v3  ;;  %v16563_v1 = vld [vmem:[%s21465_s26 + $0x50] sm:$0x1]  ;;  %v16566_v3 = vld [vmem:[%s21465_s26 + $0x98] sm:$0xfe] }
  0x61   : > { %18115 = vmatprep.subr.bf16.mxu1 %v19385_v6  ;;  %v627_v6 = vrot.slane %v16560_v0, 1  ;;  %v628_v7 = vrot.slane %v16563_v1, 1  ;;  %v636_v8 = vrot.slane %v16566_v3, 1  ;;  %v19456_v3 = vld [vmem:[%s28678_s2 + $0xd28] ss:$12 sps:$4 sm:$0xff]  }
  0x63   : > { %2671 = vmatpush1.bf16.msra.mxu0 %v19382_v5  ;;  %v16569_v5 = vld [vmem:[%s21465_s26 + $0xb0] sm:$0x1]  ;;  %v21839_v12 = vsel %vm465_vm0, %v627_v6, %v628_v7  ;;  %v19459_v7 = vld [vmem:[%s28678_s2 + $0xa3c] ss:$12 sps:$4 sm:$0xff]  }
  0x64   : > { %18116 = vmatpush3.bf16.msra.mxu1 %v19386_v9  ;;  %2672 = vmatprep.subr.bf16.mxu0 %v19389_v13  ;;  %v637_v9 = vrot.slane %v16569_v5, 1  ;;  %v16559_v13 = vld [vmem:[%s21465_s26 + $0x30] sm:$0xfe] }
  0x65   : > { %18117 = vmatprep.subr.bf16.mxu1 %v19390_v15  ;;  %v16562_v15 = vld [vmem:[%s21465_s26 + $0x48] sm:$0x1]  ;;  %v624_v20 = vrot.slane %v16559_v13, 1 }
  0x66   : > { %v625_v21 = vrot.slane %v16562_v15, 1  ;;  %v16564_v15 = vld [vmem:[%s21465_s26 + $0x58] sm:$0x1] }
  0x67   : > { %2673 = vmatpush1.bf16.msra.mxu0 %v19387_v16  ;;  %v21844_v16 = vsel %vm465_vm0, %v636_v8, %v637_v9  ;;  %v19460_v8 = vld [vmem:[%s28678_s2 + $0xd40] ss:$12 sps:$4 sm:$0xff]  }
  0x68   : > { %18118 = vmatpush3.bf16.msra.mxu1 %v19391_v17  ;;  %2674 = vmatprep.subr.bf16.mxu0 %v19394_v18  ;;  %v16565_v18 = vld [vmem:[%s21465_s26 + $0x90] sm:$0xfe]  ;;  %v21223_v17 = vld [vmem:[%s21476_s16 + $0x8] sm:$0xff] }
  0x69   : > { %18119 = vmatprep.subr.bf16.mxu1 %v19395_v19  ;;  %v16568_v19 = vld [vmem:[%s21465_s26 + $0xa8] sm:$0x1] }
  0x6b   : > { %2675 = vmatpush1.bf16.msra.mxu0 %v19392_v22  ;;  %v19432_v22 = vld [vmem:[%s28678_s2 + $0x9a8] ss:$12 sps:$4 sm:$0xff]  }
  0x6c   : > { %18120 = vmatpush3.bf16.msra.mxu1 %v19396_v24  ;;  %2676 = vmatprep.subr.bf16.mxu0 %v19399_v25  ;;  %v19436_v24 = vld [vmem:[%s28678_s2 + $0xbf0] ss:$12 sps:$4 sm:$0xff]  }
  0x6d   : > { %18133 = vmatprep.subr.bf16.mxu1 %v19400_v26  ;;  %v21860_v26 = vpack.c.bf16 %v21844_v16, %v21839_v12 }
  0x6f   : > { %2677 = vmatpush1.bf16.msra.mxu0 %v19397_v28  ;;  %3003 = vmatmul.mubr.bf16.vlgmr.msra.gmra.mrb[16].mxu1 %v21737_v27  ;;  %v633_v28 = vrot.slane %v16565_v18, 1  ;;  %v16567_v18 = vld [vmem:[%s21465_s26 + $0xa0] sm:$0xfe] }
  0x70   : > { %18134 = vmatpush3.bf16.msra.mxu1 %v19401_v29  ;;  %2678 = vmatprep.subr.bf16.mxu0 %v19404_v30  ;;  %v634_v29 = vrot.slane %v16568_v19, 1  ;;  %v19439_v30 = vld [vmem:[%s28678_s2 + $0x9c4] ss:$12 sps:$4 sm:$0xff]   ;;  %v16570_v19 = vld [vmem:[%s21465_s26 + $0xb8] sm:$0x1] }
  0x71   : > { %18135 = vmatprep.subr.bf16.mxu1 %v19405_v58  ;;  %3010 = vmatprep.mubr.bf16.mxu1 %v21799_v48  ;;  %v21866_v58 = vsel %vm465_vm0, %v624_v20, %v625_v21  ;;  %v631_v21 = vrot.slane %v16564_v15, 1  ;;  %v19486_v15 = vld [vmem:[%s28678_s2 + $0xacc] ss:$12 sps:$4 sm:$0xff]  }
  0x73   : > { %2679 = vmatpush1.bf16.msra.mxu0 %v19402_v61  ;;  %v19440_v61 = vld [vmem:[%s28678_s2 + $0xcc8] ss:$12 sps:$4 sm:$0xff]  }
  0x74   : > { %18136 = vmatpush3.bf16.msra.mxu1 %v19406_v31  ;;  %2680 = vmatprep.subr.bf16.mxu0 %v19409_v32  ;;  %v21873_v31 = vsel %vm465_vm0, %v633_v28, %v634_v29  ;;  %v19437_v32 = vld [vmem:[%s28678_s2 + $0x9c0] ss:$12 sps:$4 sm:$0xff]   ;;  %v19457_v28 = vld [vmem:[%s28678_s2 + $0xa38] ss:$12 sps:$4 sm:$0xff]  }
  0x75   : > { %18137 = vmatprep.subr.bf16.mxu1 %v19410_v33  ;;  %v21880_v33 = vpack.c.bf16 %v21873_v31, %v21866_v58  ;;  %v19463_v29 = vld [vmem:[%s28678_s2 + $0xa54] ss:$12 sps:$4 sm:$0xff]  }
  0x77   : > { %2681 = vmatpush1.bf16.msra.mxu0 %v19407_v34  ;;  %3011 = vmatmul.mubr.bf16.gmra.mrb[20].mxu1 %v21807_v54  ;;  %v19443_v34 = vld [vmem:[%s28678_s2 + $0x9dc] ss:$12 sps:$4 sm:$0xff]  }
  0x78   : > { %18138 = vmatpush3.bf16.msra.mxu1 %v19411_v35  ;;  %2682 = vmatprep.subr.bf16.mxu0 %v19414_v36  ;;  %v19444_v35 = vld [vmem:[%s28678_s2 + $0xce0] ss:$12 sps:$4 sm:$0xff]   ;;  %v19441_v36 = vld [vmem:[%s28678_s2 + $0x9d8] ss:$12 sps:$4 sm:$0xff]  }
  0x79   : > { %18139 = vmatprep.subr.bf16.mxu1 %v19415_v37  ;;  %3051 = vmatprep.mubr.bf16.mxu1 %v21860_v26  ;;  %v19447_v37 = vld [vmem:[%s28678_s2 + $0x9f4] ss:$12 sps:$4 sm:$0xff]  }
  0x7b   : > { %2683 = vmatpush1.bf16.msra.mxu0 %v19412_v38  ;;  %v19445_v38 = vld [vmem:[%s28678_s2 + $0x9f0] ss:$12 sps:$4 sm:$0xff]  }
  0x7c   : > { %18140 = vmatpush3.bf16.msra.mxu1 %v19416_v39  ;;  %2684 = vmatprep.subr.bf16.mxu0 %v19419_v40  ;;  %v19451_v39 = vld [vmem:[%s28678_s2 + $0xa0c] ss:$12 sps:$4 sm:$0xff]   ;;  %v19452_v40 = vld [vmem:[%s28678_s2 + $0xd10] ss:$12 sps:$4 sm:$0xff]  }
  0x7d   : > { %18141 = vmatprep.subr.bf16.mxu1 %v19420_v42  ;;  %v16575_v42 = vld [vmem:[%s21465_s26 + $0x110] sm:$0x1] }
  0x7f   : > { %2685 = vmatpush1.bf16.msra.mxu0 %v19417_v41  ;;  %v16572_v41 = vld [vmem:[%s21465_s26 + $0xf8] sm:$0xfe] }
  0x80   : > { %18142 = vmatpush3.bf16.msra.mxu1 %v19421_v43  ;;  %2686 = vmatprep.subr.bf16.mxu0 %v19424_v47  ;;  %v16581_v43 = vld [vmem:[%s21465_s26 + $0x170] sm:$0x1]  ;;  %v645_v46 = vrot.slane %v16572_v41, 1  ;;  %v646_v47 = vrot.slane %v16575_v42, 1 }
  0x81   : > { %18143 = vmatprep.subr.bf16.mxu1 %v19425_v53  ;;  %v655_v51 = vrot.slane %v16581_v43, 1  ;;  %v19455_v53 = vld [vmem:[%s28678_s2 + $0xa24] ss:$12 sps:$4 sm:$0xff]  }
  0x82   : > { %v19468_v43 = vld [vmem:[%s28678_s2 + $0xd70] ss:$12 sps:$4 sm:$0xff]  }
  0x83   : > { %2687 = vmatpush1.bf16.msra.mxu0 %v19422_v55  ;;  %v16571_v55 = vld [vmem:[%s21465_s26 + $0xf0] sm:$0xfe] }
  0x84   : > { %18144 = vmatpush3.bf16.msra.mxu1 %v19426_v56  ;;  %2688 = vmatprep.subr.bf16.mxu0 %v19429_v57  ;;  %v21922_v56 = vsel %vm465_vm0, %v645_v46, %v646_v47  ;;  %v19471_v46 = vld [vmem:[%s28678_s2 + $0xa84] ss:$12 sps:$4 sm:$0xff]  }
  0x85   : > { %18145 = vmatprep.subr.bf16.mxu1 %v19430_v60  ;;  %v16577_v60 = vld [vmem:[%s21465_s26 + $0x150] sm:$0xfe] }
  0x86   : > { %v651_v1 = vrot.slane %v16577_v60, 1  ;;  %v19476_v60 = vld [vmem:[%s28678_s2 + $0xa9c] ss:$12 sps:$4 sm:$0xff]  }
  0x87   : > { %2689 = vmatpush1.bf16.msra.mxu0 %v19427_v59  ;;  %v16574_v59 = vld [vmem:[%s21465_s26 + $0x108] sm:$0x1] }
  0x88   : > { %18146 = vmatpush3.bf16.msra.mxu1 %v19431_v62  ;;  %2690 = vmatprep.subr.bf16.mxu0 %v19434_v63  ;;  %v16580_v62 = vld [vmem:[%s21465_s26 + $0x168] sm:$0x1]  ;;  %v643_v0 = vrot.slane %v16574_v59, 1 }
  0x89   : > { %18147 = vmatprep.subr.bf16.mxu1 %v19435_v11  ;;  %v652_v5 = vrot.slane %v16580_v62, 1  ;;  %v16561_v11 = vld [vmem:[%s21465_s26 + $0x40] sm:$0xfe]  ;;  %v19473_v59 = vld [vmem:[%s28678_s2 + $0x8] ss:$12 sps:$4 sm:$0xff]  }
  0x8a   : > { %v630_v20 = vrot.slane %v16561_v11, 1  ;;  %v19477_v62 = vld [vmem:[%s28678_s2 + $0xe0] ss:$12 sps:$4 sm:$0xff]   ;;  %v19483_v11 = vld [vmem:[%s28678_s2 + $0x38] ss:$12 sps:$4 sm:$0xff]  }
  0x8b   : > { %2691 = vmatpush1.bf16.msra.mxu0 %v19432_v22  ;;  %v21952_v9 = vsel %vm465_vm0, %v651_v1, %v652_v5  ;;  %v639_v22 = vrot.slane %v16567_v18, 1  ;;  %v19478_v5 = vld [vmem:[%s28678_s2 + $0x20] ss:$12 sps:$4 sm:$0xff]   ;;  %v19487_v18 = vld [vmem:[%s28678_s2 + $0x110] ss:$12 sps:$4 sm:$0xff]  }
  0x8c   : > { %18148 = vmatpush3.bf16.msra.mxu1 %v19436_v24  ;;  %2713 = vmatprep.subr.bf16.mxu0 %v19439_v30  ;;  %28709 = vst [vmem:[#allocation6_spill] sm:$0xff] %v21952_v9  ;;  %v640_v24 = vrot.slane %v16570_v19, 1  ;;  %v19464_v30 = vld [vmem:[%s28678_s2 + $0xd58] ss:$12 sps:$4 sm:$0xff]   ;;  %v19484_v19 = vld [vmem:[%s28678_s2 + $0xac8] ss:$12 sps:$4 sm:$0xff]  }
  0x8d   : > { %18667 = vmatprep.subr.bf16.mxu1 %v19440_v61 }
  0x8e   : > { %2693 = vmatmul.mubr.bf16.vlgmr.msra.gmra.mrb[0].mxu0 %v21623_v44  ;;  %v19448_v44 = vld [vmem:[%s28678_s2 + $0xcf8] ss:$12 sps:$4 sm:$0xff]  }
  0x8f   : > { %2714 = vmatpush1.bf16.msra.mxu0 %v19437_v32  ;;  %3052 = vmatmul.mubr.bf16.vlgmr.msra.gmra.mrb[24].mxu1 %v21880_v33  ;;  %v21976_v32 = vsel %vm465_vm0, %v639_v22, %v640_v24  ;;  %v19492_v22 = vld [vmem:[%s28678_s2 + $0x128] ss:$12 sps:$4 sm:$0xff]   ;;  %v19489_v24 = vld [vmem:[%s28678_s2 + $0xae0] ss:$12 sps:$4 sm:$0xff]  }
  0x90   : > { %18668 = vmatpush3.bf16.msra.mxu1 %v19440_v61  ;;  %2715 = vmatprep.subr.bf16.mxu0 %v19443_v34  ;;  %v21973_v61 = vsel %vm465_vm0, %v630_v20, %v631_v21  ;;  %28711 = vst [vmem:[#allocation8_spill] sm:$0xff] %v21976_v32  ;;  %v16573_v34 = vld [vmem:[%s21465_s26 + $0x100] sm:$0xfe]  ;;  %v19488_v20 = vld [vmem:[%s28678_s2 + $0x50] ss:$12 sps:$4 sm:$0xff]  }
  0x91   : > { %18669 = vmatprep.subr.bf16.mxu1 %v19444_v35  ;;  %2702 = vmatprep.mubr.bf16.mxu0 %v21692_v10  ;;  %v16578_v10 = vld [vmem:[%s21465_s26 + $0x158] sm:$0xfe]  ;;  %28710 = vst [vmem:[#allocation7_spill] sm:$0xff] %v21973_v61  ;;  %v19491_v21 = vld [vmem:[%s28678_s2 + $0xae4] ss:$12 sps:$4 sm:$0xff]  }
  0x92   : > { %v654_v50 = vrot.slane %v16578_v10, 1 }
  0x93   : > { %2716 = vmatpush1.bf16.msra.mxu0 %v19441_v36  ;;  %v21982_v36 = vpack.c.bf16 %v21976_v32, %v21973_v61  ;;  %v420_v32 = vld [vmem:[%s21465_s26 + $0xd8] sm:$0x1] }
  0x94   : > { %18670 = vmatpush3.bf16.msra.mxu1 %v19444_v35  ;;  %2717 = vmatprep.subr.bf16.mxu0 %v19447_v37  ;;  %v21925_v57 = vsel %vm465_vm0, %v654_v50, %v655_v51  ;;  %v16576_v35 = vld [vmem:[%s21465_s26 + $0x118] sm:$0x1]  ;;  %v16579_v37 = vld [vmem:[%s21465_s26 + $0x160] sm:$0xfe]  ;;  %v19472_v51 = vld [vmem:[%s28678_s2 + $0xc8] ss:$12 sps:$4 sm:$0xff]  }
  0x95   : > { %18671 = vmatprep.subr.bf16.mxu1 %v19448_v44  ;;  %v21933_v63 = vpack.c.bf16 %v21925_v57, %v21922_v56  ;;  %v649_v41 = vrot.slane %v16576_v35, 1  ;;  %v657_v42 = vrot.slane %v16579_v37, 1  ;;  %v19498_v35 = vld [vmem:[%s28678_s2 + $0x80] ss:$12 sps:$4 sm:$0xff]   ;;  %v426_v61 = vld [vmem:[%s21465_s26 + $0x138] sm:$0x1] }
  0x96   : > { %2703 = vmatmul.mubr.bf16.gmra.mrb[4].mxu0 %v21699_v14  ;;  %v642_v14 = vrot.slane %v16571_v55, 1  ;;  %v19501_v37 = vld [vmem:[%s28678_s2 + $0xb14] ss:$12 sps:$4 sm:$0xff]  }
  0x97   : > { %2718 = vmatpush1.bf16.msra.mxu0 %v19445_v38  ;;  %2745 = vmatprep.mubr.bf16.mxu0 %v21723_v23  ;;  %v19453_v23 = vld [vmem:[%s28678_s2 + $0xa20] ss:$12 sps:$4 sm:$0xff]   ;;  %v19461_v38 = vld [vmem:[%s28678_s2 + $0xa50] ss:$12 sps:$4 sm:$0xff]  }
  0x98   : > { %18672 = vmatpush3.bf16.msra.mxu1 %v19448_v44  ;;  %2719 = vmatprep.subr.bf16.mxu0 %v19451_v39  ;;  %v21943_v6 = vsel %vm465_vm0, %v642_v14, %v643_v0  ;;  %v16582_v44 = vld [vmem:[%s21465_s26 + $0x178] sm:$0x1]  ;;  %v21221_v14 = vld [vmem:[%s21465_s26 + $0x8] sm:$0xff] }
  0x99   : > { %18673 = vmatprep.subr.bf16.mxu1 %v19452_v40  ;;  %3059 = vmatprep.mubr.bf16.mxu1 %v21933_v63  ;;  %v21957_v13 = vpack.c.bf16 %v21952_v9, %v21943_v6  ;;  %v19467_v39 = vld [vmem:[%s28678_s2 + $0xa6c] ss:$12 sps:$4 sm:$0xff]   ;;  %v658_v10 = vrot.slane %v16582_v44, 1  ;;  %v485_v9 = vrot.slane %v420_v32, 1  ;;  %v19628_v32 = vld [vmem:[%s28678_s2 + $0x530] ss:$12 sps:$4 sm:$0xff]  }
  0x9a   : > { %v21222_v0 = vld [vmem:[%s21465_s26 + $0x68] sm:$0xff]  ;;  %v19502_v44 = vld [vmem:[%s28678_s2 + $0x158] ss:$12 sps:$4 sm:$0xff]  }
  0x9b   : > { %2720 = vmatpush1.bf16.msra.mxu0 %v19449_v45  ;;  %3060 = vmatmul.mubr.bf16.gmra.mrb[28].mxu1 %v21957_v13  ;;  %v19465_v45 = vld [vmem:[%s28678_s2 + $0xa68] ss:$12 sps:$4 sm:$0xff]   ;;  %v22006_v50 = vsel %vm465_vm0, %v657_v42, %v658_v10  ;;  %v22029_v1 = vpack.c.bf16 %v21222_v0, %v21221_v14  ;;  %v19507_v42 = vld [vmem:[%s28678_s2 + $0x170] ss:$12 sps:$4 sm:$0xff]   ;;  %v19517_v14 = vld [vmem:[%s28678_s2 + $0x260] ss:$12 sps:$4 sm:$0xff]  }
  0x9c   : > { %18674 = vmatpush3.bf16.msra.mxu1 %v19452_v40  ;;  %2721 = vmatprep.subr.bf16.mxu0 %v19455_v53  ;;  %v648_v40 = vrot.slane %v16573_v34, 1  ;;  %v19469_v53 = vld [vmem:[%s28678_s2 + $0xa80] ss:$12 sps:$4 sm:$0xff]   ;;  %v19494_v34 = vld [vmem:[%s28678_s2 + $0xaf8] ss:$12 sps:$4 sm:$0xff]  }
  0x9d   : > { %18675 = vmatprep.subr.bf16.mxu1 %v19456_v3  ;;  %18683 = vmatprep.mubr.bf16.mxu1 %v21982_v36  ;;  %v19508_v10 = vld [vmem:[%s28678_s2 + $0xb0] ss:$12 sps:$4 sm:$0xff]   ;;  %v19514_v0 = vld [vmem:[%s28678_s2 + $0xb58] ss:$12 sps:$4 sm:$0xff]  }
  0x9e   : > { %v22003_v47 = vsel %vm465_vm0, %v648_v40, %v649_v41  ;;  %v19506_v40 = vld [vmem:[%s28678_s2 + $0xb2c] ss:$12 sps:$4 sm:$0xff]   ;;  %v19504_v41 = vld [vmem:[%s28678_s2 + $0xb28] ss:$12 sps:$4 sm:$0xff]  }
  0x9f   : > { %2722 = vmatpush1.bf16.msra.mxu0 %v19453_v23  ;;  %v22016_v55 = vpack.c.bf16 %v22006_v50, %v22003_v47  ;;  %v19481_v23 = vld [vmem:[%s28678_s2 + $0xab4] ss:$12 sps:$4 sm:$0xff]  }
  0xa0   : > { %18676 = vmatpush3.bf16.msra.mxu1 %v19456_v3  ;;  %2723 = vmatprep.subr.bf16.mxu0 %v19459_v7  ;;  %v19474_v3 = vld [vmem:[%s28678_s2 + $0xa98] ss:$12 sps:$4 sm:$0xff]  }
  0xa1   : > { %18677 = vmatprep.subr.bf16.mxu1 %v19460_v8  ;;  %v19482_v7 = vld [vmem:[%s28678_s2 + $0xf8] ss:$12 sps:$4 sm:$0xff]  }
  0xa3   : > { %2724 = vmatpush1.bf16.msra.mxu0 %v19457_v28  ;;  %v19493_v28 = vld [vmem:[%s28678_s2 + $0x68] ss:$12 sps:$4 sm:$0xff]  }
  0xa4   : > { %18678 = vmatpush3.bf16.msra.mxu1 %v19460_v8  ;;  %2725 = vmatprep.subr.bf16.mxu0 %v19463_v29  ;;  %v19479_v8 = vld [vmem:[%s28678_s2 + $0xab0] ss:$12 sps:$4 sm:$0xff]  }
  0xa5   : > { %18679 = vmatprep.subr.bf16.mxu1 %v19464_v30  ;;  %v19496_v29 = vld [vmem:[%s28678_s2 + $0xafc] ss:$12 sps:$4 sm:$0xff]  }
  0xa7   : > { %2726 = vmatpush1.bf16.msra.mxu0 %v19461_v38  ;;  %v19499_v38 = vld [vmem:[%s28678_s2 + $0xb10] ss:$12 sps:$4 sm:$0xff]  }
  0xa8   : > { %18680 = vmatpush3.bf16.msra.mxu1 %v19464_v30  ;;  %2727 = vmatprep.subr.bf16.mxu0 %v19467_v39  ;;  %v19497_v30 = vld [vmem:[%s28678_s2 + $0x140] ss:$12 sps:$4 sm:$0xff]   ;;  %v19503_v39 = vld [vmem:[%s28678_s2 + $0x98] ss:$12 sps:$4 sm:$0xff]  }
  0xa9   : > { %18681 = vmatprep.subr.bf16.mxu1 %v19468_v43 }
  0xab   : > { %2728 = vmatpush1.bf16.msra.mxu0 %v19465_v45  ;;  %v22115_v45 = vld [vmem:[%s21465_s26] sm:$0xff] }
  0xac   : > { %18682 = vmatpush3.bf16.msra.mxu1 %v19468_v43  ;;  %2729 = vmatprep.subr.bf16.mxu0 %v19471_v46  ;;  %v19511_v43 = vld [vmem:[%s28678_s2 + $0xb44] ss:$12 sps:$4 sm:$0xff]  }
  0xad   : > { %18171 = vmatprep.subr.bf16.mxu1 %v19472_v51  ;;  %v22118_v46 = vld [vmem:[%s21465_s26 + $0x60] sm:$0xff]  ;;  %v19512_v51 = vld [vmem:[%s28678_s2 + $0x248] ss:$12 sps:$4 sm:$0xff]  }
  0xaf   : > { %2730 = vmatpush1.bf16.msra.mxu0 %v19469_v53  ;;  %18684 = vmatmul.mubr.bf16.vlgmr.msra.gmra.mrb[32].mxu1 %v22016_v55  ;;  %v19509_v53 = vld [vmem:[%s28678_s2 + $0xb40] ss:$12 sps:$4 sm:$0xff]  }
  0xb0   : > { %18172 = vmatpush3.bf16.msra.mxu1 %v19473_v59  ;;  %2731 = vmatprep.subr.bf16.mxu0 %v19476_v60  ;;  %v22128_v59 = vpack.c.bf16 %v22118_v46, %v22115_v45  ;;  %v19513_v60 = vld [vmem:[%s28678_s2 + $0x188] ss:$12 sps:$4 sm:$0xff]  }
  0xb1   : > { %18173 = vmatprep.subr.bf16.mxu1 %v19477_v62  ;;  %4566 = vmatprep.mubr.bf16.mxu1 %v22029_v1  ;;  %v19516_v62 = vld [vmem:[%s28678_s2 + $0xb5c] ss:$12 sps:$4 sm:$0xff]  }
  0xb3   : > { %2732 = vmatpush1.bf16.msra.mxu0 %v19474_v3  ;;  %v19518_v3 = vld [vmem:[%s28678_s2 + $0x1a0] ss:$12 sps:$4 sm:$0xff]  }
  0xb4   : > { %18174 = vmatpush3.bf16.msra.mxu1 %v19478_v5  ;;  %2733 = vmatprep.subr.bf16.mxu0 %v19481_v23  ;;  %v22147_v5 = vld [vmem:[%s21465_s26 + $0xc8] sm:$0xff] }
  0xb5   : > { %18175 = vmatprep.subr.bf16.mxu1 %v19482_v7  ;;  %v22151_v23 = vld [vmem:[%s21465_s26 + $0x128] sm:$0xff] }
  0xb6   : > { %v22158_v7 = vpack.c.bf16 %v22151_v23, %v22147_v5 }
  0xb7   : > { %2734 = vmatpush1.bf16.msra.mxu0 %v19479_v8  ;;  %v22161_v8 = vld [vmem:[%s21465_s26 + $0xc0] sm:$0xff] }
  0xb8   : > { %18176 = vmatpush3.bf16.msra.mxu1 %v19483_v11  ;;  %2735 = vmatprep.subr.bf16.mxu0 %v19486_v15  ;;  %v22164_v11 = vld [vmem:[%s21465_s26 + $0x120] sm:$0xff] }
  0xb9   : > { %18177 = vmatprep.subr.bf16.mxu1 %v19487_v18  ;;  %v19522_v15 = vld [vmem:[%s28678_s2 + $0x278] ss:$12 sps:$4 sm:$0xff]   ;;  %v19519_v18 = vld [vmem:[%s28678_s2 + $0xb70] ss:$12 sps:$4 sm:$0xff]  }
  0xbb   : > { %2736 = vmatpush1.bf16.msra.mxu0 %v19484_v19  ;;  %v19523_v19 = vld [vmem:[%s28678_s2 + $0x1b8] ss:$12 sps:$4 sm:$0xff]  }
  0xbc   : > { %18178 = vmatpush3.bf16.msra.mxu1 %v19488_v20  ;;  %2737 = vmatprep.subr.bf16.mxu0 %v19491_v21  ;;  %v22179_v20 = vpack.c.bf16 %v22164_v11, %v22161_v8  ;;  %v19527_v21 = vld [vmem:[%s28678_s2 + $0x290] ss:$12 sps:$4 sm:$0xff]  }
  0xbd   : > { %18179 = vmatprep.subr.bf16.mxu1 %v19492_v22  ;;  %v22188_v22 = vld [vmem:[%s21476_s16] sm:$0xff] }
  0xbf   : > { %2738 = vmatpush1.bf16.msra.mxu0 %v19489_v24  ;;  %v19524_v24 = vld [vmem:[%s28678_s2 + $0xb88] ss:$12 sps:$4 sm:$0xff]  }
  0xc0   : > { %18180 = vmatpush3.bf16.msra.mxu1 %v19493_v28  ;;  %2739 = vmatprep.subr.bf16.mxu0 %v19496_v29  ;;  %v22196_v28 = vld [vmem:[%s21476_s16 + $0x60] sm:$0xff]  ;;  %v425_v29 = vld [vmem:[%s21465_s26 + $0x130] sm:$0xfe] }
  0xc1   : > { %18181 = vmatprep.subr.bf16.mxu1 %v19497_v30  ;;  %v19528_v30 = vld [vmem:[%s28678_s2 + $0x1d0] ss:$12 sps:$4 sm:$0xff]  }
  0xc3   : > { %2740 = vmatpush1.bf16.msra.mxu0 %v19494_v34  ;;  %v422_v34 = vld [vmem:[%s21465_s26 + $0xe8] sm:$0x1] }
  0xc4   : > { %18182 = vmatpush3.bf16.msra.mxu1 %v19498_v35  ;;  %2741 = vmatprep.subr.bf16.mxu0 %v19501_v37  ;;  %v22210_v35 = vpack.c.bf16 %v22196_v28, %v22188_v22  ;;  %v19532_v37 = vld [vmem:[%s28678_s2 + $0x2a8] ss:$12 sps:$4 sm:$0xff]  }
  0xc5   : > { %18183 = vmatprep.subr.bf16.mxu1 %v19502_v44  ;;  %v19529_v44 = vld [vmem:[%s28678_s2 + $0xba0] ss:$12 sps:$4 sm:$0xff]  }
  0xc7   : > { %2742 = vmatpush1.bf16.msra.mxu0 %v19499_v38  ;;  %v19533_v38 = vld [vmem:[%s28678_s2 + $0x1e8] ss:$12 sps:$4 sm:$0xff]  }
  0xc8   : > { %18184 = vmatpush3.bf16.msra.mxu1 %v19503_v39  ;;  %2743 = vmatprep.subr.bf16.mxu0 %v19506_v40  ;;  %v19536_v39 = vld [vmem:[%s28678_s2 + $0xbbc] ss:$12 sps:$4 sm:$0xff]   ;;  %v19534_v40 = vld [vmem:[%s28678_s2 + $0xbb8] ss:$12 sps:$4 sm:$0xff]  }
  0xc9   : > { %18185 = vmatprep.subr.bf16.mxu1 %v19507_v42  ;;  %v19541_v42 = vld [vmem:[%s28678_s2 + $0xbd4] ss:$12 sps:$4 sm:$0xff]  }
  0xcb   : > { %2744 = vmatpush1.bf16.msra.mxu0 %v19504_v41  ;;  %v19538_v41 = vld [vmem:[%s28678_s2 + $0x200] ss:$12 sps:$4 sm:$0xff]  }
  0xcc   : > { %18186 = vmatpush3.bf16.msra.mxu1 %v19508_v10  ;;  %2766 = vmatprep.subr.bf16.mxu0 %v19511_v43  ;;  %v19542_v10 = vld [vmem:[%s28678_s2 + $0x2d8] ss:$12 sps:$4 sm:$0xff]   ;;  %v19539_v43 = vld [vmem:[%s28678_s2 + $0xbd0] ss:$12 sps:$4 sm:$0xff]  }
  0xcd   : > { %18199 = vmatprep.subr.bf16.mxu1 %v19512_v51  ;;  %v19543_v51 = vld [vmem:[%s28678_s2 + $0x218] ss:$12 sps:$4 sm:$0xff]  }
  0xce   : > { %2746 = vmatmul.mubr.bf16.vlgmr.msra.gmra.mrb[0].mxu0 %v21737_v27  ;;  %v19521_v27 = vld [vmem:[%s28678_s2 + $0xb74] ss:$12 sps:$4 sm:$0xff]  }
  0xcf   : > { %2767 = vmatpush1.bf16.msra.mxu0 %v19509_v53  ;;  %4567 = vmatmul.mubr.bf16.vlgmr.msra.gmra.mrb[36].mxu1 %v22128_v59  ;;  %v19546_v53 = vld [vmem:[%s28678_s2 + $0xbec] ss:$12 sps:$4 sm:$0xff]  }
  0xd0   : > { %18200 = vmatpush3.bf16.msra.mxu1 %v19513_v60  ;;  %2768 = vmatprep.subr.bf16.mxu0 %v19516_v62  ;;  %v19544_v60 = vld [vmem:[%s28678_s2 + $0xbe8] ss:$12 sps:$4 sm:$0xff]   ;;  %v19547_v62 = vld [vmem:[%s28678_s2 + $0x2f0] ss:$12 sps:$4 sm:$0xff]  }
  0xd1   : > { %18201 = vmatprep.subr.bf16.mxu1 %v19517_v14  ;;  %2755 = vmatprep.mubr.bf16.mxu0 %v21799_v48  ;;  %v19526_v48 = vld [vmem:[%s28678_s2 + $0xb8c] ss:$12 sps:$4 sm:$0xff]   ;;  %v19548_v14 = vld [vmem:[%s28678_s2 + $0x230] ss:$12 sps:$4 sm:$0xff]  }
  0xd2   : > { %4574 = vmatprep.mubr.bf16.mxu1 %v22158_v7 }
  0xd3   : > { %2769 = vmatpush1.bf16.msra.mxu0 %v19514_v0  ;;  %v19551_v0 = vld [vmem:[%s28678_s2 + $0xc04] ss:$12 sps:$4 sm:$0xff]  }
  0xd4   : > { %18202 = vmatpush3.bf16.msra.mxu1 %v19518_v3  ;;  %2770 = vmatprep.subr.bf16.mxu0 %v19521_v27  ;;  %v22263_v3 = vld [vmem:[%s21465_s26 + $0x10] sm:$0xff] }
  0xd5   : > { %18203 = vmatprep.subr.bf16.mxu1 %v19522_v15  ;;  %v22266_v27 = vld [vmem:[%s21465_s26 + $0x70] sm:$0xff] }
  0xd6   : > { %2756 = vmatmul.mubr.bf16.gmra.mrb[4].mxu0 %v21807_v54  ;;  %v19531_v54 = vld [vmem:[%s28678_s2 + $0xba4] ss:$12 sps:$4 sm:$0xff]   ;;  %v19552_v15 = vld [vmem:[%s28678_s2 + $0x3c8] ss:$12 sps:$4 sm:$0xff]  }
  0xd7   : > { %2771 = vmatpush1.bf16.msra.mxu0 %v19519_v18  ;;  %4575 = vmatmul.mubr.bf16.gmra.mrb[40].mxu1 %v22179_v20  ;;  %v19549_v18 = vld [vmem:[%s28678_s2 + $0xc00] ss:$12 sps:$4 sm:$0xff]  }
  0xd8   : > { %18204 = vmatpush3.bf16.msra.mxu1 %v19523_v19  ;;  %2772 = vmatprep.subr.bf16.mxu0 %v19526_v48  ;;  %v22276_v19 = vpack.c.bf16 %v22266_v27, %v22263_v3  ;;  %v19553_v48 = vld [vmem:[%s28678_s2 + $0x308] ss:$12 sps:$4 sm:$0xff]  }
  0xd9   : > { %18205 = vmatprep.subr.bf16.mxu1 %v19527_v21  ;;  %2798 = vmatprep.mubr.bf16.mxu0 %v21860_v26  ;;  %v19537_v26 = vld [vmem:[%s28678_s2 + $0x2c0] ss:$12 sps:$4 sm:$0xff]   ;;  %v19556_v21 = vld [vmem:[%s28678_s2 + $0xc1c] ss:$12 sps:$4 sm:$0xff]  }
  0xda   : > { %4615 = vmatprep.mubr.bf16.mxu1 %v22210_v35  ;;  %28712 = vst [vmem:[#allocation9_spill] sm:$0xff] %v22276_v19 }
  0xdb   : > { %2773 = vmatpush1.bf16.msra.mxu0 %v19524_v24  ;;  %v19554_v24 = vld [vmem:[%s28678_s2 + $0xc18] ss:$12 sps:$4 sm:$0xff]  }
  0xdc   : > { %18206 = vmatpush3.bf16.msra.mxu1 %v19528_v30  ;;  %2774 = vmatprep.subr.bf16.mxu0 %v19531_v54  ;;  %v19557_v30 = vld [vmem:[%s28678_s2 + $0x3e0] ss:$12 sps:$4 sm:$0xff]  }
  0xdd   : > { %18207 = vmatprep.subr.bf16.mxu1 %v19532_v37  ;;  %v19558_v54 = vld [vmem:[%s28678_s2 + $0x320] ss:$12 sps:$4 sm:$0xff]  }
  0xde   : > { %v22294_v37 = vld [vmem:[%s21476_s16 + $0xc0] sm:$0xff] }
  0xdf   : > { %2775 = vmatpush1.bf16.msra.mxu0 %v19529_v44  ;;  %v22297_v44 = vld [vmem:[%s21476_s16 + $0x120] sm:$0xff] }
  0xe0   : > { %18208 = vmatpush3.bf16.msra.mxu1 %v19533_v38  ;;  %2776 = vmatprep.subr.bf16.mxu0 %v19536_v39  ;;  %v19561_v38 = vld [vmem:[%s28678_s2 + $0xc34] ss:$12 sps:$4 sm:$0xff]  }
  0xe1   : > { %18209 = vmatprep.subr.bf16.mxu1 %v19537_v26  ;;  %v428_v26 = vld [vmem:[%s21465_s26 + $0x148] sm:$0x1] }
  0xe3   : > { %2777 = vmatpush1.bf16.msra.mxu0 %v19534_v40  ;;  %v22309_v40 = vpack.c.bf16 %v22297_v44, %v22294_v37 }
  0xe4   : > { %18210 = vmatpush3.bf16.msra.mxu1 %v19538_v41  ;;  %2778 = vmatprep.subr.bf16.mxu0 %v19541_v42  ;;  %v22312_v41 = vld [vmem:[%s21465_s26 + $0xd0] sm:$0xff] }
  0xe5   : > { %18211 = vmatprep.subr.bf16.mxu1 %v19542_v10  ;;  %28713 = vst [vmem:[#allocation10_spill] sm:$0xff] %v22309_v40  ;;  %v22315_v42 = vld [vmem:[%s21465_s26 + $0x130] sm:$0xff]  ;;  %v19562_v10 = vld [vmem:[%s28678_s2 + $0x3f8] ss:$12 sps:$4 sm:$0xff]  }
  0xe7   : > { %2779 = vmatpush1.bf16.msra.mxu0 %v19539_v43  ;;  %v19559_v43 = vld [vmem:[%s28678_s2 + $0xc30] ss:$12 sps:$4 sm:$0xff]  }
  0xe8   : > { %18212 = vmatpush3.bf16.msra.mxu1 %v19543_v51  ;;  %2780 = vmatprep.subr.bf16.mxu0 %v19546_v53  ;;  %v19563_v51 = vld [vmem:[%s28678_s2 + $0x338] ss:$12 sps:$4 sm:$0xff]   ;;  %v22329_v53 = vpack.c.bf16 %v22315_v42, %v22312_v41 }
  0xe9   : > { %18213 = vmatprep.subr.bf16.mxu1 %v19547_v62  ;;  %v19564_v62 = vld [vmem:[%s28678_s2 + $0xc48] ss:$12 sps:$4 sm:$0xff]  }
  0xea   : > { %28714 = vst [vmem:[#allocation11_spill] sm:$0xff] %v22329_v53 }
  0xeb   : > { %2781 = vmatpush1.bf16.msra.mxu0 %v19544_v60  ;;  %v19566_v60 = vld [vmem:[%s28678_s2 + $0xc4c] ss:$12 sps:$4 sm:$0xff]  }
  0xec   : > { %18214 = vmatpush3.bf16.msra.mxu1 %v19548_v14  ;;  %2782 = vmatprep.subr.bf16.mxu0 %v19551_v0  ;;  %v19567_v14 = vld [vmem:[%s28678_s2 + $0x410] ss:$12 sps:$4 sm:$0xff]  }
  0xed   : > { %18227 = vmatprep.subr.bf16.mxu1 %v19552_v15  ;;  %v22341_v0 = vld [vmem:[%s21476_s16 + $0x10] sm:$0xff] }
  0xee   : > { %v22344_v15 = vld [vmem:[%s21476_s16 + $0x70] sm:$0xff] }
  0xef   : > { %2783 = vmatpush1.bf16.msra.mxu0 %v19549_v18  ;;  %4616 = vmatmul.mubr.bf16.vlgmr.msra.gmra.mrb[44].mxu1 %v22276_v19  ;;  %v19568_v18 = vld [vmem:[%s28678_s2 + $0x350] ss:$12 sps:$4 sm:$0xff]  }
  0xf0   : > { %18228 = vmatpush3.bf16.msra.mxu1 %v19553_v48  ;;  %2784 = vmatprep.subr.bf16.mxu0 %v19556_v21  ;;  %v21224_v21 = vld [vmem:[%s21476_s16 + $0x68] sm:$0xff] }
  0xf1   : > { %18229 = vmatprep.subr.bf16.mxu1 %v19557_v30  ;;  %4623 = vmatprep.mubr.bf16.mxu1 %v22309_v40  ;;  %v19571_v30 = vld [vmem:[%s28678_s2 + $0xc64] ss:$12 sps:$4 sm:$0xff]   ;;  %v22428_v48 = vpack.c.bf16 %v21224_v21, %v21223_v17  ;;  %v19596_v40 = vld [vmem:[%s28678_s2 + $0xcdc] ss:$12 sps:$4 sm:$0xff]  }
  0xf3   : > { %2785 = vmatpush1.bf16.msra.mxu0 %v19554_v24  ;;  %v22356_v24 = vpack.c.bf16 %v22344_v15, %v22341_v0  ;;  %28716 = vst [vmem:[#allocation13_spill] sm:$0xff] %v22428_v48 }
  0xf4   : > { %18230 = vmatpush3.bf16.msra.mxu1 %v19558_v54  ;;  %2786 = vmatprep.subr.bf16.mxu0 %v19561_v38  ;;  %v19572_v54 = vld [vmem:[%s28678_s2 + $0x428] ss:$12 sps:$4 sm:$0xff]   ;;  %v19569_v38 = vld [vmem:[%s28678_s2 + $0xc60] ss:$12 sps:$4 sm:$0xff]  }
  0xf5   : > { %18231 = vmatprep.subr.bf16.mxu1 %v19562_v10  ;;  %28715 = vst [vmem:[#allocation12_spill] sm:$0xff] %v22356_v24  ;;  %v19573_v10 = vld [vmem:[%s28678_s2 + $0x368] ss:$12 sps:$4 sm:$0xff]  }
  0xf7   : > { %2787 = vmatpush1.bf16.msra.mxu0 %v19559_v43  ;;  %4624 = vmatmul.mubr.bf16.gmra.mrb[48].mxu1 %v22329_v53  ;;  %v19576_v43 = vld [vmem:[%s28678_s2 + $0xc7c] ss:$12 sps:$4 sm:$0xff]   ;;  %v499_v53 = vrot.slane %v425_v29, 1 }
  0xf8   : > { %18232 = vmatpush3.bf16.msra.mxu1 %v19563_v51  ;;  %2788 = vmatprep.subr.bf16.mxu0 %v19566_v60  ;;  %v19577_v51 = vld [vmem:[%s28678_s2 + $0x440] ss:$12 sps:$4 sm:$0xff]   ;;  %v19574_v60 = vld [vmem:[%s28678_s2 + $0xc78] ss:$12 sps:$4 sm:$0xff]  }
  0xf9   : > { %18233 = vmatprep.subr.bf16.mxu1 %v19567_v14  ;;  %4664 = vmatprep.mubr.bf16.mxu1 %v22356_v24  ;;  %v19581_v14 = vld [vmem:[%s28678_s2 + $0xc94] ss:$12 sps:$4 sm:$0xff]   ;;  %v491_v24 = vrot.slane %v422_v34, 1  ;;  %v22446_v29 = vld [vmem:[%s21476_s16 + $0x128] sm:$0xff] }
  0xfb   : > { %2789 = vmatpush1.bf16.msra.mxu0 %v19564_v62  ;;  %v19578_v62 = vld [vmem:[%s28678_s2 + $0x380] ss:$12 sps:$4 sm:$0xff]  }
  0xfc   : > { %18234 = vmatpush3.bf16.msra.mxu1 %v19568_v18  ;;  %2790 = vmatprep.subr.bf16.mxu0 %v19571_v30  ;;  %v19582_v18 = vld [vmem:[%s28678_s2 + $0x458] ss:$12 sps:$4 sm:$0xff]   ;;  %v19579_v30 = vld [vmem:[%s28678_s2 + $0xc90] ss:$12 sps:$4 sm:$0xff]  }
  0xfd   : > { %18235 = vmatprep.subr.bf16.mxu1 %v19572_v54  ;;  %v19583_v54 = vld [vmem:[%s28678_s2 + $0x398] ss:$12 sps:$4 sm:$0xff]  }
  0xff   : > { %2791 = vmatpush1.bf16.msra.mxu0 %v19569_v38  ;;  %v19586_v38 = vld [vmem:[%s28678_s2 + $0xcac] ss:$12 sps:$4 sm:$0xff]  }
 0x100   : > { %18236 = vmatpush3.bf16.msra.mxu1 %v19573_v10  ;;  %2792 = vmatprep.subr.bf16.mxu0 %v19576_v43  ;;  %v19587_v10 = vld [vmem:[%s28678_s2 + $0x470] ss:$12 sps:$4 sm:$0xff]   ;;  %v19584_v43 = vld [vmem:[%s28678_s2 + $0xca8] ss:$12 sps:$4 sm:$0xff]  }
 0x101   : > { %18237 = vmatprep.subr.bf16.mxu1 %v19577_v51  ;;  %v19588_v51 = vld [vmem:[%s28678_s2 + $0x3b0] ss:$12 sps:$4 sm:$0xff]  }
 0x103   : > { %2793 = vmatpush1.bf16.msra.mxu0 %v19574_v60  ;;  %v19591_v60 = vld [vmem:[%s28678_s2 + $0xcc4] ss:$12 sps:$4 sm:$0xff]  }
 0x104   : > { %18238 = vmatpush3.bf16.msra.mxu1 %v19578_v62  ;;  %2794 = vmatprep.subr.bf16.mxu0 %v19581_v14  ;;  %v19589_v62 = vld [vmem:[%s28678_s2 + $0xcc0] ss:$12 sps:$4 sm:$0xff]   ;;  %v19592_v14 = vld [vmem:[%s28678_s2 + $0x548] ss:$12 sps:$4 sm:$0xff]  }
 0x105   : > { %18239 = vmatprep.subr.bf16.mxu1 %v19582_v18  ;;  %v401_v18 = vld [vmem:[%s21476_s16 + $0xd0] sm:$0xff] }
 0x106   : > { %v437_v25 = vmax.f32 %v22312_v41, %v401_v18  ;;  %v19597_v41 = vld [vmem:[%s28678_s2 + $0x560] ss:$12 sps:$4 sm:$0xff]  }
 0x107   : > { %2795 = vmatpush1.bf16.msra.mxu0 %v19579_v30  ;;  %v404_v30 = vld [vmem:[%s21476_s16 + $0x130] sm:$0xff] }
 0x108   : > { %18240 = vmatpush3.bf16.msra.mxu1 %v19583_v54  ;;  %2796 = vmatprep.subr.bf16.mxu0 %v19586_v38  ;;  %v19593_v54 = vld [vmem:[%s28678_s2 + $0x488] ss:$12 sps:$4 sm:$0xff]   ;;  %v22440_v21 = vpack.c.bf16 %v404_v30, %v401_v18  ;;  %v19606_v18 = vld [vmem:[%s28678_s2 + $0xd0c] ss:$12 sps:$4 sm:$0xff]  }
 0x109   : > { %18241 = vmatprep.subr.bf16.mxu1 %v19587_v10  ;;  %v419_v38 = vld [vmem:[%s21465_s26 + $0xd0] sm:$0xfe]  ;;  %v440_v10 = vmax.f32 %v22315_v42, %v404_v30  ;;  %v500_v42 = vrot.slane %v428_v26, 1  ;;  %v22495_v30 = vpack.c.bf16 %v21495_v52, %v21489_v49 }
 0x10a   : > { %v490_v39 = vrot.slane %v419_v38, 1  ;;  %28717 = vst [vmem:[#allocation14_spill] sm:$0xff] %v22440_v21  ;;  %v22503_v38 = vld [vmem:[%s21465_s26] sm:$0xfe]  ;;  %v19608_v49 = vld [vmem:[%s28678_s2 + $0x4d0] ss:$12 sps:$4 sm:$0xff]  }
 0x10b   : > { %2797 = vmatpush1.bf16.msra.mxu0 %v19584_v43  ;;  %v22443_v43 = vld [vmem:[%s21476_s16 + $0xc8] sm:$0xff]  ;;  %v22450_v34 = vsel %vm465_vm0, %v499_v53, %v500_v42  ;;  %v19601_v53 = vld [vmem:[%s28678_s2 + $0xcf4] ss:$12 sps:$4 sm:$0xff]   ;;  %28719 = vst [vmem:[#allocation16_spill] sm:$0xff] %v22495_v30  ;;  %v19611_v52 = vld [vmem:[%s28678_s2 + $0xd24] ss:$12 sps:$4 sm:$0xff]  }
 0x10c   : > { %18242 = vmatpush3.bf16.msra.mxu1 %v19588_v51  ;;  %2819 = vmatprep.subr.bf16.mxu0 %v19591_v60  ;;  %v22438_v17 = vsel %vm465_vm0, %v490_v39, %v491_v24  ;;  %v19594_v24 = vld [vmem:[%s28678_s2 + $0xcd8] ss:$12 sps:$4 sm:$0xff]  }
 0x10d   : > { %18255 = vmatprep.subr.bf16.mxu1 %v19592_v14  ;;  %v22453_v51 = vmax.f32 %v437_v25, %v22438_v17  ;;  %v19598_v25 = vld [vmem:[%s28678_s2 + $0x4a0] ss:$12 sps:$4 sm:$0xff]   ;;  %v19602_v60 = vld [vmem:[%s28678_s2 + $0x578] ss:$12 sps:$4 sm:$0xff]   ;;  %v22485_v14 = vpack.c.bf16 %v22446_v29, %v22443_v43 }
 0x10e   : > { %2799 = vmatmul.mubr.bf16.vlgmr.msra.gmra.mrb[0].mxu0 %v21880_v33  ;;  %v22464_v33 = vmax.f32 %v440_v10, %v22450_v34  ;;  %v22506_v10 = vld [vmem:[%s21465_s26 + $0x18] sm:$0x1] }
 0x10f   : > { %2820 = vmatpush1.bf16.msra.mxu0 %v19589_v62  ;;  %4665 = vmatmul.mubr.bf16.vlgmr.msra.gmra.mrb[52].mxu1 %v22428_v48  ;;  %v19603_v62 = vld [vmem:[%s28678_s2 + $0x4b8] ss:$12 sps:$4 sm:$0xff]   ;;  %28718 = vst [vmem:[#allocation15_spill] sm:$0xff] %v22485_v14 }
 0x110   : > { %18256 = vmatpush3.bf16.msra.mxu1 %v19593_v54  ;;  %2821 = vmatprep.subr.bf16.mxu0 %v19596_v40  ;;  %v19599_v40 = vld [vmem:[%s28678_s2 + $0xcf0] ss:$12 sps:$4 sm:$0xff]   ;;  %v19604_v54 = vld [vmem:[%s28678_s2 + $0xd08] ss:$12 sps:$4 sm:$0xff]   ;;  %v414_v42 = vld [vmem:[%s21465_s26 + $0x78] sm:$0x1] }
 0x111   : > { %18257 = vmatprep.subr.bf16.mxu1 %v19597_v41  ;;  %4672 = vmatprep.mubr.bf16.mxu1 %v22440_v21  ;;  %v19612_v41 = vld [vmem:[%s28678_s2 + $0x5a8] ss:$12 sps:$4 sm:$0xff]   ;;  %v417_v48 = vld [vmem:[%s21465_s26 + $0xc0] sm:$0xfe] }
 0x112   : > { %2808 = vmatprep.mubr.bf16.mxu0 %v21933_v63  ;;  %v19607_v63 = vld [vmem:[%s28678_s2 + $0x590] ss:$12 sps:$4 sm:$0xff]   ;;  %v484_v19 = vrot.slane %v417_v48, 1 }
 0x113   : > { %2822 = vmatpush1.bf16.msra.mxu0 %v19594_v24  ;;  %v19609_v24 = vld [vmem:[%s28678_s2 + $0xd20] ss:$12 sps:$4 sm:$0xff]  }
 0x114   : > { %18258 = vmatpush3.bf16.msra.mxu1 %v19598_v25  ;;  %2823 = vmatprep.subr.bf16.mxu0 %v19601_v53  ;;  %v28690_v25 = vmov 0   ;;  %v19613_v53 = vld [vmem:[%s28678_s2 + $0x4e8] ss:$12 sps:$4 sm:$0xff]  }
 0x115   : > { %18259 = vmatprep.subr.bf16.mxu1 %v19602_v60  ;;  %v19616_v60 = vld [vmem:[%s28678_s2 + $0xd3c] ss:$12 sps:$4 sm:$0xff]  }
 0x116   : > { %2809 = vmatmul.mubr.bf16.gmra.mrb[4].mxu0 %v21957_v13  ;;  %v411_v13 = vld [vmem:[%s21465_s26 + $0x60] sm:$0xfe] }
 0x117   : > { %2824 = vmatpush1.bf16.msra.mxu0 %v19599_v40  ;;  %4673 = vmatmul.mubr.bf16.gmra.mrb[56].mxu1 %v22485_v14  ;;  %v466_v40 = vrot.slane %v22503_v38, 1  ;;  %v19618_v38 = vld [vmem:[%s28678_s2 + $0x500] ss:$12 sps:$4 sm:$0xff]  }
 0x118   : > { %18260 = vmatpush3.bf16.msra.mxu1 %v19603_v62  ;;  %2825 = vmatprep.subr.bf16.mxu0 %v19606_v18  ;;  %v467_v62 = vrot.slane %v22506_v10, 1  ;;  %v19617_v18 = vld [vmem:[%s28678_s2 + $0x5c0] ss:$12 sps:$4 sm:$0xff]  }
 0x119   : > { %18261 = vmatprep.subr.bf16.mxu1 %v19607_v63  ;;  %4713 = vmatprep.mubr.bf16.mxu1 %v22495_v30  ;;  %v475_v63 = vrot.slane %v411_v13, 1  ;;  %v19621_v10 = vld [vmem:[%s28678_s2 + $0xd54] ss:$12 sps:$4 sm:$0xff]   ;;  %v19619_v13 = vld [vmem:[%s28678_s2 + $0xd50] ss:$12 sps:$4 sm:$0xff]  }
 0x11a   : > { %2851 = vmatprep.mubr.bf16.mxu0 %v28690_v25  ;;  %v19627_v30 = vld [vmem:[%s28678_s2 + $0x5f0] ss:$12 sps:$4 sm:$0xff]  }
 0x11b   : > { %2826 = vmatpush1.bf16.msra.mxu0 %v19604_v54  ;;  %v19614_v54 = vld [vmem:[%s28678_s2 + $0xd38] ss:$12 sps:$4 sm:$0xff]  }
 0x11c   : > { %18262 = vmatpush3.bf16.msra.mxu1 %v19608_v49  ;;  %2827 = vmatprep.subr.bf16.mxu0 %v19611_v52  ;;  %v476_v49 = vrot.slane %v414_v42, 1  ;;  %v19622_v52 = vld [vmem:[%s28678_s2 + $0x5d8] ss:$12 sps:$4 sm:$0xff]   ;;  %v421_v42 = vld [vmem:[%s21465_s26 + $0xe0] sm:$0x1] }
 0x11d   : > { %18263 = vmatprep.subr.bf16.mxu1 %v19612_v41  ;;  %v418_v41 = vld [vmem:[%s21465_s26 + $0xc8] sm:$0xfe]  ;;  %v488_v39 = vrot.slane %v421_v42, 1 }
 0x11e   : > { %v487_v25 = vrot.slane %v418_v41, 1  ;;  %v423_v41 = vld [vmem:[%s21465_s26 + $0x120] sm:$0xfe]  ;;  %v22590_v48 = vsel %vm465_vm0, %v475_v63, %v476_v49  ;;  %v413_v63 = vld [vmem:[%s21465_s26 + $0x70] sm:$0xfe] }
 0x11f   : > { %2828 = vmatpush1.bf16.msra.mxu0 %v19609_v24  ;;  %v424_v24 = vld [vmem:[%s21465_s26 + $0x128] sm:$0xfe]  ;;  %v416_v49 = vld [vmem:[%s21465_s26 + $0x88] sm:$0x1] }
 0x120   : > { %18264 = vmatpush3.bf16.msra.mxu1 %v19613_v53  ;;  %2829 = vmatprep.subr.bf16.mxu0 %v19616_v60  ;;  %v19623_v53 = vld [vmem:[%s28678_s2 + $0x518] ss:$12 sps:$4 sm:$0xff]   ;;  %v427_v60 = vld [vmem:[%s21465_s26 + $0x140] sm:$0x1]  ;;  %v496_v26 = vrot.slane %v424_v24, 1  ;;  %v489_v21 = vsel %vm465_vm0, %v487_v25, %v488_v39  ;;  %v28721_v39 = vmax.f32 %v22151_v23, %v22446_v29 }
 0x121   : > { %18265 = vmatprep.subr.bf16.mxu1 %v19617_v18  ;;  %v19626_v18 = vld [vmem:[%s28678_s2 + $0xd6c] ss:$12 sps:$4 sm:$0xff]   ;;  %v497_v14 = vrot.slane %v427_v60, 1 }
 0x122   : > { %v19636_v60 = vld [vmem:[%s28678_s2 + $0x620] ss:$12 sps:$4 sm:$0xff]  }
 0x123   : > { %2830 = vmatpush1.bf16.msra.mxu0 %v19614_v54  ;;  %v498_v42 = vsel %vm465_vm0, %v496_v26, %v497_v14  ;;  %v28720_v54 = vmax.f32 %v22147_v5, %v22443_v43  ;;  %v22583_v26 = vsel %vm465_vm0, %v466_v40, %v467_v62  ;;  %v486_v5 = vsel %vm465_vm0, %v484_v19, %v485_v9  ;;  %v19632_v9 = vld [vmem:[%s28678_s2 + $0x608] ss:$12 sps:$4 sm:$0xff]   ;;  %v19629_v40 = vld [vmem:[%s28678_s2] ss:$12 sps:$4 sm:$0xff]  }
 0x124   : > { %18266 = vmatpush3.bf16.msra.mxu1 %v19618_v38  ;;  %2831 = vmatprep.subr.bf16.mxu0 %v19621_v10  ;;  %v19624_v38 = vld [vmem:[%s28678_s2 + $0xd68] ss:$12 sps:$4 sm:$0xff]   ;;  %v22580_v25 = vmax.f32 %v28721_v39, %v498_v42  ;;  %v493_v10 = vrot.slane %v423_v41, 1  ;;  %v28722_v43 = vmax.f32 %v22161_v8, %v22294_v37  ;;  %v28723_v19 = vmax.f32 %v22164_v11, %v22297_v44 }
 0x125   : > { %18267 = vmatprep.subr.bf16.mxu1 %v19622_v52  ;;  %v22571_v24 = vmax.f32 %v28720_v54, %v489_v21  ;;  %v494_v52 = vrot.slane %v426_v61, 1  ;;  %v19631_v61 = vld [vmem:[%s28678_s2 + $0x4] ss:$12 sps:$4 sm:$0xff]   ;;  %v19635_v8 = vld [vmem:[%s28678_s2 + $0x1c] ss:$12 sps:$4 sm:$0xff]   ;;  %v28724_v39 = vmax.f32 %v22263_v3, %v22341_v0  ;;  %v28726_v3 = vmov 0  }
 0x126   : > { %v22599_v29 = vmax.f32 %v28722_v43, %v486_v5  ;;  %v407_v37 = vld [vmem:[%s21465_s26 + $0x10] sm:$0xfe]  ;;  %v410_v62 = vld [vmem:[%s21465_s26 + $0x28] sm:$0x1] }
 0x127   : > { %2832 = vmatpush1.bf16.msra.mxu0 %v19619_v13  ;;  %v495_v23 = vsel %vm465_vm0, %v493_v10, %v494_v52  ;;  %v472_v11 = vrot.slane %v407_v37, 1  ;;  %v473_v44 = vrot.slane %v410_v62, 1  ;;  %v481_v13 = vrot.slane %v413_v63, 1  ;;  %v19640_v52 = vld [vmem:[%s28678_s2 + $0x638] ss:$12 sps:$4 sm:$0xff]  }
 0x128   : > { %18268 = vmatpush3.bf16.msra.mxu1 %v19623_v53  ;;  %2833 = vmatprep.subr.bf16.mxu0 %v19626_v18  ;;  %v22607_v14 = vmax.f32 %v28723_v19, %v495_v23  ;;  %v482_v53 = vrot.slane %v416_v49, 1  ;;  %v22626_v18 = vpack.c.bf16 %v498_v42, %v489_v21  ;;  %v28725_v21 = vmax.f32 %v22266_v27, %v22344_v15  ;;  %v19639_v42 = vld [vmem:[%s28678_s2 + $0x34] ss:$12 sps:$4 sm:$0xff]   ;;  %v19637_v27 = vld [vmem:[%s28678_s2 + $0x30] ss:$12 sps:$4 sm:$0xff]  }
 0x129   : > { %18269 = vmatprep.subr.bf16.mxu1 %v19627_v30  ;;  %v22618_v30 = vpack.c.bf16 %v22590_v48, %v22583_v26  ;;  %v474_v41 = vsel %vm465_vm0, %v472_v11, %v473_v44  ;;  %v22656_v0 = vpack.c.bf16 %v495_v23, %v486_v5  ;;  %v19643_v15 = vld [vmem:[%s28678_s2 + $0x4c] ss:$12 sps:$4 sm:$0xff]   ;;  %v19641_v5 = vld [vmem:[%s28678_s2 + $0x48] ss:$12 sps:$4 sm:$0xff]   ;;  %v19647_v23 = vld [vmem:[%s28678_s2 + $0x64] ss:$12 sps:$4 sm:$0xff]  }
 0x12a   : > { %v483_v54 = vsel %vm465_vm0, %v481_v13, %v482_v53  ;;  %v22638_v10 = vmax.f32 %v28724_v39, %v474_v41  ;;  %v19648_v43 = vld [vmem:[%s28678_s2 + $0x668] ss:$12 sps:$4 sm:$0xff]   ;;  %v19652_v19 = vld [vmem:[%s28678_s2 + $0x680] ss:$12 sps:$4 sm:$0xff]   ;;  %v19653_v37 = vld [vmem:[%s28678_s2 + $0x90] ss:$12 sps:$4 sm:$0xff]   ;;  %v28727_v53 = vmax.f32 %v21523_v2, %v21839_v12 }
 0x12b   : > { %2834 = vmatpush1.bf16.msra.mxu0 %v19624_v38  ;;  %v19633_v38 = vld [vmem:[%s28678_s2 + $0x18] ss:$12 sps:$4 sm:$0xff]   ;;  %v19660_v63 = vld [vmem:[%s28678_s2 + $0x6b0] ss:$12 sps:$4 sm:$0xff]   ;;  %v19657_v49 = vld [vmem:[%s28678_s2 + $0xa8] ss:$12 sps:$4 sm:$0xff]  }
 0x12c   : > { %18270 = vmatpush3.bf16.msra.mxu1 %v19628_v32  ;;  %4269 = vmatprep.subr.bf16.mxu0 %v19631_v61  ;;  %v19644_v32 = vld [vmem:[%s28678_s2 + $0x650] ss:$12 sps:$4 sm:$0xff]   ;;  %v22664_v61 = vpack.c.bf16 %v483_v54, %v474_v41  ;;  %v19659_v62 = vld [vmem:[%s28678_s2 + $0xac] ss:$12 sps:$4 sm:$0xff]   ;;  %v28728_v41 = vmax.f32 %v21529_v4, %v21844_v16  ;;  %v18065_v39 = vpop.f32.mrb[0].mxu1 }
 0x12d   : > { %18687 = vmatprep.subr.bf16.mxu1 %v19632_v9  ;;  %v16584_v11 = vld [vmem:[%s21465_s26 + $0x68] sm:$0xff]  ;;  %v19663_v13 = vld [vmem:[%s28678_s2 + $0xc4] ss:$12 sps:$4 sm:$0xff]  }
 0x12e   : > { %2852 = vmatmul.mubr.bf16.vlgmr.msra.gmra.mrb[0].mxu0 %v21982_v36  ;;  %v22643_v36 = vmax.f32 %v28725_v21, %v483_v54  ;;  %v16587_v44 = vld [vmem:[%s21465_s26 + $0xc8] sm:$0xff]  ;;  %v18066_v21 = vpop.f32.mrb[1].mxu1 }
 0x12f   : > { %4714 = vmatmul.mubr.bf16.vlgmr.msra.gmra.mrb[60].mxu1 %v22618_v30  ;;  %4270 = vmatpush1.bf16.msra.mxu0 %v19629_v40  ;;  %v19655_v40 = vld [vmem:[%s28678_s2 + $0x94] ss:$12 sps:$4 sm:$0xff]   ;;  %v22722_v54 = vmax.f32 %v28728_v41, %v16587_v44  ;;  %v22737_v12 = vadd.f32 %v18066_v21, %v18065_v39  ;;  %v18068_v16 = vpop.f32.mrb[2].mxu1 }
 0x130   : > { %18688 = vmatpush3.bf16.msra.mxu1 %v19632_v9  ;;  %4271 = vmatprep.subr.bf16.mxu0 %v19635_v8  ;;  %v19651_v9 = vld [vmem:[%s28678_s2 + $0x7c] ss:$12 sps:$4 sm:$0xff]   ;;  %v19656_v8 = vld [vmem:[%s28678_s2 + $0x698] ss:$12 sps:$4 sm:$0xff]   ;;  %v19661_v2 = vld [vmem:[%s28678_s2 + $0xc0] ss:$12 sps:$4 sm:$0xff]  }
 0x131   : > { %18689 = vmatprep.subr.bf16.mxu1 %v19636_v60  ;;  %4721 = vmatprep.mubr.bf16.mxu1 %v22626_v18  ;;  %v19665_v4 = vld [vmem:[%s28678_s2 + $0xd88] ss:$12 sps:$4 sm:$0xff]  }
 0x132   : > { %2861 = vmatprep.mubr.bf16.mxu0 %v28726_v3  ;;  %v19684_v41 = vld [vmem:[%s28678_s2 + $0xea8] ss:$12 sps:$4 sm:$0xff]  }
 0x133   : > { %4272 = vmatpush1.bf16.msra.mxu0 %v19633_v38  ;;  %v19664_v38 = vld [vmem:[%s28678_s2 + $0xe48] ss:$12 sps:$4 sm:$0xff]  }
 0x134   : > { %18690 = vmatpush3.bf16.msra.mxu1 %v19636_v60  ;;  %4273 = vmatprep.subr.bf16.mxu0 %v19639_v42  ;;  %v22717_v60 = vmax.f32 %v28727_v53, %v16584_v11  ;;  %v22729_v42 = vpack.c.bf16 %v22450_v34, %v22438_v17  ;;  %v19669_v17 = vld [vmem:[%s28678_s2 + $0xe60] ss:$12 sps:$4 sm:$0xff]   ;;  %v22745_v34 = vpack.c.bf16 %v16587_v44, %v16584_v11  ;;  %v19676_v11 = vld [vmem:[%s28678_s2 + $0x108] ss:$12 sps:$4 sm:$0xff]   ;;  %v19680_v44 = vld [vmem:[%s28678_s2 + $0xdd0] ss:$12 sps:$4 sm:$0xff]  }
 0x135   : > { %18691 = vmatprep.subr.bf16.mxu1 %v19640_v52 }
 0x136   : > { %2862 = vmatmul.mubr.bf16.gmra.mrb[4].mxu0 %v22016_v55  ;;  %v19645_v55 = vld [vmem:[%s28678_s2 + $0x60] ss:$12 sps:$4 sm:$0xff]  }
 0x137   : > { %4274 = vmatpush1.bf16.msra.mxu0 %v19637_v27  ;;  %4722 = vmatmul.mubr.bf16.gmra.mrb[64].mxu1 %v22656_v0  ;;  %v19666_v27 = vld [vmem:[%s28678_s2 + $0xd8] ss:$12 sps:$4 sm:$0xff]  }
 0x138   : > { %18692 = vmatpush3.bf16.msra.mxu1 %v19640_v52  ;;  %4275 = vmatprep.subr.bf16.mxu0 %v19643_v15  ;;  %v19668_v52 = vld [vmem:[%s28678_s2 + $0xdc] ss:$12 sps:$4 sm:$0xff]   ;;  %v18069_v15 = vpop.f32.mrb[3].mxu1 }
 0x139   : > { %18693 = vmatprep.subr.bf16.mxu1 %v19644_v32  ;;  %18703 = vmatprep.mubr.bf16.mxu1 %v22664_v61 }
 0x13a   : > { %4301 = vmatprep.mubr.bf16.mxu0 %v22029_v1  ;;  %v19649_v1 = vld [vmem:[%s28678_s2 + $0x78] ss:$12 sps:$4 sm:$0xff]  }
 0x13b   : > { %4276 = vmatpush1.bf16.msra.mxu0 %v19641_v5  ;;  %v22754_v5 = vadd.f32 %v18069_v15, %v18068_v16  ;;  %v19689_v15 = vld [vmem:[%s28678_s2 + $0xec0] ss:$12 sps:$4 sm:$0xff]  }
 0x13c   : > { %18694 = vmatpush3.bf16.msra.mxu1 %v19644_v32  ;;  %4277 = vmatprep.subr.bf16.mxu0 %v19647_v23  ;;  %v19670_v32 = vld [vmem:[%s28678_s2 + $0xda0] ss:$12 sps:$4 sm:$0xff]  }
 0x13d   : > { %18695 = vmatprep.subr.bf16.mxu1 %v19648_v43  ;;  %v19673_v23 = vld [vmem:[%s28678_s2 + $0xf4] ss:$12 sps:$4 sm:$0xff]  }
 0x13f   : > { %4278 = vmatpush1.bf16.msra.mxu0 %v19645_v55 }
 0x140   : > { %18696 = vmatpush3.bf16.msra.mxu1 %v19648_v43  ;;  %4279 = vmatprep.subr.bf16.mxu0 %v19651_v9  ;;  %v28729_v43 = vmax.f32 %v22115_v45, %v22188_v22  ;;  %v19674_v9 = vld [vmem:[%s28678_s2 + $0xe78] ss:$12 sps:$4 sm:$0xff]  }
 0x141   : > { %18697 = vmatprep.subr.bf16.mxu1 %v19652_v19  ;;  %v19675_v45 = vld [vmem:[%s28678_s2 + $0xdb8] ss:$12 sps:$4 sm:$0xff]  }
 0x142   : > { %v514_v55 = vmax.f32 %v28729_v43, %v22583_v26  ;;  %v19678_v22 = vld [vmem:[%s28678_s2 + $0x10c] ss:$12 sps:$4 sm:$0xff]  }
 0x143   : > { %4280 = vmatpush1.bf16.msra.mxu0 %v19649_v1  ;;  %v28730_v1 = vmax.f32 %v22118_v46, %v22196_v28  ;;  %v19679_v46 = vld [vmem:[%s28678_s2 + $0xe90] ss:$12 sps:$4 sm:$0xff]  }
 0x144   : > { %18698 = vmatpush3.bf16.msra.mxu1 %v19652_v19  ;;  %4281 = vmatprep.subr.bf16.mxu0 %v19655_v40  ;;  %v18071_v19 = vpop.f32.mrb[4].mxu1 }
 0x145   : > { %18699 = vmatprep.subr.bf16.mxu1 %v19656_v8  ;;  %v517_v40 = vmax.f32 %v28730_v1, %v22590_v48  ;;  %v18072_v26 = vpop.f32.mrb[5].mxu1  ;;  %v19693_v1 = vld [vmem:[%s28678_s2 + $0x154] ss:$12 sps:$4 sm:$0xff]  }
 0x146   : > { %v22784_v28 = vadd.f32 %v18072_v26, %v18071_v19  ;;  %v18074_v48 = vpop.f32.mrb[6].mxu1  ;;  %v19690_v19 = vld [vmem:[%s28678_s2 + $0xe00] ss:$12 sps:$4 sm:$0xff]  }
 0x147   : > { %4282 = vmatpush1.bf16.msra.mxu0 %v19653_v37  ;;  %v21225_v37 = vld [vmem:[%s21465_s26 + $0x30] sm:$0xff]  ;;  %v18075_v53 = vpop.f32.mrb[7].mxu1 }
 0x148   : > { %18700 = vmatpush3.bf16.msra.mxu1 %v19656_v8  ;;  %4283 = vmatprep.subr.bf16.mxu0 %v19659_v62  ;;  %v19671_v8 = vld [vmem:[%s28678_s2 + $0xf0] ss:$12 sps:$4 sm:$0xff]   ;;  %v576_v62 = vmax.f32 %v514_v55, %v21225_v37  ;;  %v22800_v21 = vadd.f32 %v18075_v53, %v18074_v48 }
 0x149   : > { %18701 = vmatprep.subr.bf16.mxu1 %v19660_v63 }
 0x14b   : > { %4284 = vmatpush1.bf16.msra.mxu0 %v19657_v49 }
 0x14c   : > { %18702 = vmatpush3.bf16.msra.mxu1 %v19660_v63  ;;  %4285 = vmatprep.subr.bf16.mxu0 %v19663_v13  ;;  %v21226_v63 = vld [vmem:[%s21465_s26 + $0x90] sm:$0xff] }
 0x14d   : > { %18293 = vmatprep.subr.bf16.mxu1 %v19664_v38  ;;  %v579_v49 = vmax.f32 %v517_v40, %v21226_v63  ;;  %v19683_v13 = vld [vmem:[%s28678_s2 + $0x124] ss:$12 sps:$4 sm:$0xff]  }
 0x14e   : > { %v21227_v38 = vld [vmem:[%s21476_s16 + $0x30] sm:$0xff] }
 0x14f   : > { %4286 = vmatpush1.bf16.msra.mxu0 %v19661_v2  ;;  %18704 = vmatmul.mubr.bf16.vlgmr.msra.gmra.mrb[32].mxu1 %v22729_v42  ;;  %v588_v39 = vmax.f32 %v576_v62, %v21227_v38  ;;  %v19681_v2 = vld [vmem:[%s28678_s2 + $0x120] ss:$12 sps:$4 sm:$0xff]  }
 0x150   : > { %18294 = vmatpush3.bf16.msra.mxu1 %v19665_v4  ;;  %4287 = vmatprep.subr.bf16.mxu0 %v19668_v52  ;;  %v21228_v4 = vld [vmem:[%s21476_s16 + $0x90] sm:$0xff]  ;;  %v16586_v62 = vld [vmem:[%s21465_s26 + $0xc0] sm:$0xff] }
 0x151   : > { %18295 = vmatprep.subr.bf16.mxu1 %v19669_v17  ;;  %6534 = vmatprep.mubr.bf16.mxu1 %v22745_v34  ;;  %v591_v16 = vmax.f32 %v579_v49, %v21228_v4  ;;  %v19685_v52 = vld [vmem:[%s28678_s2 + $0xde8] ss:$12 sps:$4 sm:$0xff]   ;;  %v18093_v17 = vpop.f32.mrb[8].mxu1  ;;  %v672_v43 = vmax.f32 %v588_v39, %v21866_v58  ;;  %v19694_v58 = vld [vmem:[%s28678_s2 + $0xed8] ss:$12 sps:$4 sm:$0xff]  }
 0x152   : > { %v22857_v38 = vld [vmem:[%s21476_s16 + $0xc0] sm:$0xff] }
 0x153   : > { %4288 = vmatpush1.bf16.msra.mxu0 %v19666_v27  ;;  %v19688_v27 = vld [vmem:[%s28678_s2 + $0x13c] ss:$12 sps:$4 sm:$0xff]   ;;  %v675_v40 = vmax.f32 %v591_v16, %v21873_v31  ;;  %v16607_v39 = vld [vmem:[%s21465_s26 + $0x60] sm:$0xfe] }
 0x154   : > { %18296 = vmatpush3.bf16.msra.mxu1 %v19670_v32  ;;  %4289 = vmatprep.subr.bf16.mxu0 %v19673_v23  ;;  %v18094_v32 = vpop.f32.mrb[9].mxu1  ;;  %v19686_v23 = vld [vmem:[%s28678_s2 + $0x138] ss:$12 sps:$4 sm:$0xff]   ;;  %v19691_v31 = vld [vmem:[%s28678_s2 + $0x150] ss:$12 sps:$4 sm:$0xff]  }
 0x155   : > { %18297 = vmatprep.subr.bf16.mxu1 %v19674_v9  ;;  %v18095_v55 = vadd.f32 %v18094_v32, %v18093_v17  ;;  %v18096_v9 = vpop.f32.mrb[10].mxu1  ;;  %v737_v48 = vmax.f32 %v675_v40, %v16586_v62  ;;  %v16613_v17 = vld [vmem:[%s21465_s26 + $0xc0] sm:$0xfe]  ;;  %v782_v32 = vrot.slane %v16607_v39, 1  ;;  %v19704_v40 = vld [vmem:[%s28678_s2 + $0xfc8] ss:$12 sps:$4 sm:$0xff]  }
 0x156   : > { %v19708_v39 = vld [vmem:[%s28678_s2 + $0x19c] ss:$12 sps:$4 sm:$0xff]  }
 0x157   : > { %4290 = vmatpush1.bf16.msra.mxu0 %v19671_v8  ;;  %v18097_v8 = vpop.f32.mrb[11].mxu1 }
 0x158   : > { %18298 = vmatpush3.bf16.msra.mxu1 %v19675_v45  ;;  %4291 = vmatprep.subr.bf16.mxu0 %v19678_v22  ;;  %v22830_v45 = vadd.f32 %v18095_v55, %v22737_v12  ;;  %v16583_v22 = vld [vmem:[%s21465_s26 + $0x60] sm:$0xff]  ;;  %v18098_v26 = vadd.f32 %v18097_v8, %v18096_v9  ;;  %v18099_v37 = vpop.f32.mrb[12].mxu1 }
 0x159   : > { %18299 = vmatprep.subr.bf16.mxu1 %v19679_v46  ;;  %v734_v46 = vmax.f32 %v672_v43, %v16583_v22  ;;  %v19695_v12 = vld [vmem:[%s28678_s2 + $0xe18] ss:$12 sps:$4 sm:$0xff]   ;;  %v18100_v49 = vpop.f32.mrb[13].mxu1  ;;  %v791_v43 = vrot.slane %v16613_v17, 1 }
 0x15a   : > { %v22838_v63 = vadd.f32 %v18098_v26, %v22754_v5  ;;  %v19699_v5 = vld [vmem:[%s28678_s2 + $0xef0] ss:$12 sps:$4 sm:$0xff]   ;;  %v18102_v53 = vpop.f32.mrb[14].mxu1  ;;  %v22882_v26 = vld [vmem:[%s21465_s26 + $0x128] sm:$0xff] }
 0x15b   : > { %4292 = vmatpush1.bf16.msra.mxu0 %v19676_v11  ;;  %v19698_v11 = vld [vmem:[%s28678_s2 + $0x16c] ss:$12 sps:$4 sm:$0xff]   ;;  %v18103_v16 = vpop.f32.mrb[15].mxu1 }
 0x15c   : > { %18300 = vmatpush3.bf16.msra.mxu1 %v19680_v44  ;;  %4293 = vmatprep.subr.bf16.mxu0 %v19683_v13  ;;  %v22851_v44 = vld [vmem:[%s21476_s16 + $0x60] sm:$0xff]  ;;  %v18101_v13 = vadd.f32 %v18100_v49, %v18099_v37 }
 0x15d   : > { %18301 = vmatprep.subr.bf16.mxu1 %v19684_v41  ;;  %v19696_v41 = vld [vmem:[%s28678_s2 + $0x168] ss:$12 sps:$4 sm:$0xff]   ;;  %v746_v4 = vmax.f32 %v734_v46, %v22851_v44 }
 0x15e   : > { %v22869_v9 = vadd.f32 %v18101_v13, %v22784_v28  ;;  %v19701_v28 = vld [vmem:[%s28678_s2 + $0x180] ss:$12 sps:$4 sm:$0xff]   ;;  %v19705_v13 = vld [vmem:[%s28678_s2 + $0xf08] ss:$12 sps:$4 sm:$0xff]  }
 0x15f   : > { %4294 = vmatpush1.bf16.msra.mxu0 %v19681_v2  ;;  %v16610_v2 = vld [vmem:[%s21465_s26 + $0x78] sm:$0x1] }
 0x160   : > { %18302 = vmatpush3.bf16.msra.mxu1 %v19685_v52  ;;  %4295 = vmatprep.subr.bf16.mxu0 %v19688_v27  ;;  %v19700_v52 = vld [vmem:[%s28678_s2 + $0xe30] ss:$12 sps:$4 sm:$0xff]   ;;  %v16616_v27 = vld [vmem:[%s21465_s26 + $0xd8] sm:$0x1] }
 0x161   : > { %18303 = vmatprep.subr.bf16.mxu1 %v19689_v15  ;;  %v749_v15 = vmax.f32 %v737_v48, %v22857_v38  ;;  %v792_v55 = vrot.slane %v16616_v27, 1 }
 0x163   : > { %4296 = vmatpush1.bf16.msra.mxu0 %v19686_v23  ;;  %v783_v23 = vrot.slane %v16610_v2, 1  ;;  %v793_v37 = vsel %vm465_vm0, %v791_v43, %v792_v55 }
 0x164   : > { %18304 = vmatpush3.bf16.msra.mxu1 %v19690_v19  ;;  %4297 = vmatprep.subr.bf16.mxu0 %v19693_v1  ;;  %v18104_v19 = vadd.f32 %v18103_v16, %v18102_v53  ;;  %v19703_v1 = vld [vmem:[%s28678_s2 + $0x184] ss:$12 sps:$4 sm:$0xff]   ;;  %v833_v48 = vmax.f32 %v749_v15, %v793_v37  ;;  %v19713_v16 = vld [vmem:[%s28678_s2 + $0x1b4] ss:$12 sps:$4 sm:$0xff]  }
 0x165   : > { %18305 = vmatprep.subr.bf16.mxu1 %v19694_v58  ;;  %v784_v8 = vsel %vm465_vm0, %v782_v32, %v783_v23  ;;  %v18121_v58 = vpop.f32.mrb[16].mxu1  ;;  %v19711_v32 = vld [vmem:[%s28678_s2 + $0x1b0] ss:$12 sps:$4 sm:$0xff]   ;;  %v19715_v23 = vld [vmem:[%s28678_s2 + $0xf38] ss:$12 sps:$4 sm:$0xff]  }
 0x166   : > { %v830_v46 = vmax.f32 %v746_v4, %v784_v8  ;;  %v22898_v49 = vadd.f32 %v18104_v19, %v22800_v21  ;;  %16433 = vst [vmem:[%s22893_s24 + $0x48] sm:$0xff] %v833_v48  ;;  %v19706_v21 = vld [vmem:[%s28678_s2 + $0x198] ss:$12 sps:$4 sm:$0xff]   ;;  %v19710_v4 = vld [vmem:[%s28678_s2 + $0xf20] ss:$12 sps:$4 sm:$0xff]  }
 0x167   : > { %4298 = vmatpush1.bf16.msra.mxu0 %v19691_v31  ;;  %v22886_v31 = vld [vmem:[%s21465_s26 + $0x188] sm:$0xff] }
 0x168   : > { %18306 = vmatpush3.bf16.msra.mxu1 %v19695_v12  ;;  %4299 = vmatprep.subr.bf16.mxu0 %v19698_v11  ;;  %v22895_v12 = vpack.c.bf16 %v793_v37, %v784_v8  ;;  %v18122_v11 = vpop.f32.mrb[17].mxu1  ;;  %16424 = vst [vmem:[%s22893_s24] sm:$0xff] %v830_v46  ;;  %v19718_v19 = vld [vmem:[%s28678_s2 + $0x1cc] ss:$12 sps:$4 sm:$0xff]   ;;  %v19725_v46 = vld [vmem:[%s28678_s2 + $0xf68] ss:$12 sps:$4 sm:$0xff]  }
 0x169   : > { %18307 = vmatprep.subr.bf16.mxu1 %v19699_v5  ;;  %v22900_v5 = vpack.c.bf16 %v16586_v62, %v16583_v22  ;;  %v18123_v53 = vadd.f32 %v18122_v11, %v18121_v58  ;;  %v19709_v22 = vld [vmem:[%s28678_s2 + $0xfe0] ss:$12 sps:$4 sm:$0xff]   ;;  %v22918_v62 = vpack.c.bf16 %v22886_v31, %v22882_v26  ;;  %v18124_v2 = vpop.f32.mrb[18].mxu1 }
 0x16a   : > { %v18125_v17 = vpop.f32.mrb[19].mxu1  ;;  %v19721_v37 = vld [vmem:[%s28678_s2 + $0x1e0] ss:$12 sps:$4 sm:$0xff]  }
 0x16b   : > { %4300 = vmatpush1.bf16.msra.mxu0 %v19696_v41  ;;  %v22921_v41 = vadd.f32 %v18123_v53, %v22830_v45  ;;  %v22935_v45 = vld [vmem:[%s21465_s26 + $0x180] sm:$0xff]  ;;  %v18126_v27 = vadd.f32 %v18125_v17, %v18124_v2  ;;  %v18127_v15 = vpop.f32.mrb[20].mxu1 }
 0x16c   : > { %18308 = vmatpush3.bf16.msra.mxu1 %v19700_v52  ;;  %4322 = vmatprep.subr.bf16.mxu0 %v19703_v1  ;;  %v22932_v52 = vld [vmem:[%s21465_s26 + $0x120] sm:$0xff]  ;;  %v18128_v1 = vpop.f32.mrb[21].mxu1 }
 0x16d   : > { %18321 = vmatprep.subr.bf16.mxu1 %v19704_v40  ;;  %v22950_v43 = vpack.c.bf16 %v22935_v45, %v22932_v52  ;;  %v3008_v55 = vadd.f32 %v18126_v27, %v22838_v63  ;;  %v22961_v40 = vpack.c.bf16 %v22857_v38, %v22851_v44  ;;  %v18129_v8 = vadd.f32 %v18128_v1, %v18127_v15  ;;  %v19716_v63 = vld [vmem:[%s28678_s2 + $0x1c8] ss:$12 sps:$4 sm:$0xff]   ;;  %v19720_v44 = vld [vmem:[%s28678_s2 + $0xf50] ss:$12 sps:$4 sm:$0xff]   ;;  %v19734_v15 = vld [vmem:[%s28678_s2 + $0x1058] ss:$12 sps:$4 sm:$0xff]  }
 0x16e   : > { %4302 = vmatmul.mubr.bf16.vlgmr.msra.gmra.mrb[0].mxu0 %v22128_v59  ;;  %v19714_v59 = vld [vmem:[%s28678_s2 + $0xff8] ss:$12 sps:$4 sm:$0xff]   ;;  %v19724_v38 = vld [vmem:[%s28678_s2 + $0x1028] ss:$12 sps:$4 sm:$0xff]  }
 0x16f   : > { %4323 = vmatpush1.bf16.msra.mxu0 %v19701_v28  ;;  %6535 = vmatmul.mubr.bf16.vlgmr.msra.gmra.mrb[68].mxu1 %v22900_v5  ;;  %v3013_v58 = vadd.f32 %v18129_v8, %v22869_v9  ;;  %v18130_v28 = vpop.f32.mrb[22].mxu1  ;;  %v19735_v1 = vld [vmem:[%s28678_s2 + $0xf98] ss:$12 sps:$4 sm:$0xff]  }
 0x170   : > { %18322 = vmatpush3.bf16.msra.mxu1 %v19705_v13  ;;  %4324 = vmatprep.subr.bf16.mxu0 %v19708_v39  ;;  %v18131_v9 = vpop.f32.mrb[23].mxu1  ;;  %v19728_v13 = vld [vmem:[%s28678_s2 + $0x1fc] ss:$12 sps:$4 sm:$0xff]  }
 0x171   : > { %18323 = vmatprep.subr.bf16.mxu1 %v19709_v22  ;;  %6542 = vmatprep.mubr.bf16.mxu1 %v22918_v62  ;;  %v18132_v48 = vadd.f32 %v18131_v9, %v18130_v28  ;;  %v18149_v11 = vpop.f32.mrb[24].mxu1  ;;  %v19739_v28 = vld [vmem:[%s28678_s2 + $0x1070] ss:$12 sps:$4 sm:$0xff]  }
 0x172   : > { %4311 = vmatprep.mubr.bf16.mxu0 %v22158_v7  ;;  %v19719_v7 = vld [vmem:[%s28678_s2 + $0x1010] ss:$12 sps:$4 sm:$0xff]   ;;  %v18150_v53 = vpop.f32.mrb[25].mxu1 }
 0x173   : > { %4325 = vmatpush1.bf16.msra.mxu0 %v19706_v21  ;;  %v3016_v39 = vadd.f32 %v18132_v48, %v22898_v49  ;;  %v18152_v21 = vpop.f32.mrb[26].mxu1  ;;  %v18151_v22 = vadd.f32 %v18150_v53, %v18149_v11  ;;  %v19733_v49 = vld [vmem:[%s28678_s2 + $0x214] ss:$12 sps:$4 sm:$0xff]  }
 0x174   : > { %18324 = vmatpush3.bf16.msra.mxu1 %v19710_v4  ;;  %4326 = vmatprep.subr.bf16.mxu0 %v19713_v16  ;;  %v18153_v2 = vpop.f32.mrb[27].mxu1  ;;  %v19726_v4 = vld [vmem:[%s28678_s2 + $0x1f8] ss:$12 sps:$4 sm:$0xff]  }
 0x175   : > { %18325 = vmatprep.subr.bf16.mxu1 %v19714_v59  ;;  %v18154_v16 = vadd.f32 %v18153_v2, %v18152_v21  ;;  %v18155_v17 = vpop.f32.mrb[28].mxu1  ;;  %v19730_v59 = vld [vmem:[%s28678_s2 + $0xf80] ss:$12 sps:$4 sm:$0xff]   ;;  %v23003_v27 = vadd.f32 %v18151_v22, %v22921_v41 }
 0x176   : > { %4312 = vmatmul.mubr.bf16.gmra.mrb[4].mxu0 %v22179_v20  ;;  %v19723_v20 = vld [vmem:[%s28678_s2 + $0x1e4] ss:$12 sps:$4 sm:$0xff]   ;;  %v19741_v2 = vld [vmem:[%s28678_s2 + $0x240] ss:$12 sps:$4 sm:$0xff]  }
 0x177   : > { %4327 = vmatpush1.bf16.msra.mxu0 %v19711_v32  ;;  %6543 = vmatmul.mubr.bf16.gmra.mrb[72].mxu1 %v22950_v43  ;;  %v23008_v32 = vadd.f32 %v18154_v16, %v3008_v55  ;;  %v19738_v55 = vld [vmem:[%s28678_s2 + $0x22c] ss:$12 sps:$4 sm:$0xff]   ;;  %v21229_v11 = vld [vmem:[%s21465_s26 + $0x100] sm:$0xff] }
 0x178   : > { %18326 = vmatpush3.bf16.msra.mxu1 %v19715_v23  ;;  %4328 = vmatprep.subr.bf16.mxu0 %v19718_v19  ;;  %v18156_v23 = vpop.f32.mrb[29].mxu1  ;;  %v19731_v19 = vld [vmem:[%s28678_s2 + $0x210] ss:$12 sps:$4 sm:$0xff]   ;;  %v21230_v53 = vld [vmem:[%s21465_s26 + $0x160] sm:$0xff] }
 0x179   : > { %18327 = vmatprep.subr.bf16.mxu1 %v19719_v7  ;;  %6583 = vmatprep.mubr.bf16.mxu1 %v22961_v40  ;;  %v18157_v7 = vadd.f32 %v18156_v23, %v18155_v17  ;;  %v18158_v41 = vpop.f32.mrb[30].mxu1  ;;  %v23049_v21 = vld [vmem:[%s21476_s16 + $0x120] sm:$0xff] }
 0x17a   : > { %4354 = vmatprep.mubr.bf16.mxu0 %v22210_v35  ;;  %v19729_v35 = vld [vmem:[%s28678_s2 + $0x1040] ss:$12 sps:$4 sm:$0xff]   ;;  %v18159_v8 = vpop.f32.mrb[31].mxu1 }
 0x17b   : > { %4329 = vmatpush1.bf16.msra.mxu0 %v19716_v63  ;;  %v19736_v63 = vld [vmem:[%s28678_s2 + $0x228] ss:$12 sps:$4 sm:$0xff]   ;;  %v18160_v9 = vadd.f32 %v18159_v8, %v18158_v41  ;;  %v23052_v22 = vld [vmem:[%s21476_s16 + $0x180] sm:$0xff] }
 0x17c   : > { %18328 = vmatpush3.bf16.msra.mxu1 %v19720_v44  ;;  %4330 = vmatprep.subr.bf16.mxu0 %v19723_v20  ;;  %v23025_v44 = vadd.f32 %v18157_v7, %v3013_v58  ;;  %v19740_v20 = vld [vmem:[%s28678_s2 + $0xfb0] ss:$12 sps:$4 sm:$0xff]   ;;  %v19749_v16 = vld [vmem:[%s28678_s2 + $0x1160] ss:$12 sps:$4 sm:$0xff]   ;;  %v23075_v17 = vpack.c.bf16 %v23052_v22, %v23049_v21  ;;  %v19754_v8 = vld [vmem:[%s28678_s2 + $0x1178] ss:$12 sps:$4 sm:$0xff]  }
 0x17d   : > { %18329 = vmatprep.subr.bf16.mxu1 %v19724_v38  ;;  %v19743_v38 = vld [vmem:[%s28678_s2 + $0x244] ss:$12 sps:$4 sm:$0xff]   ;;  %v23042_v48 = vadd.f32 %v18160_v9, %v3016_v39 }
 0x17e   : > { %v23037_v58 = vld [vmem:[%s21465_s26 + $0x70] sm:$0xff]  ;;  %v19755_v9 = vld [vmem:[%s28678_s2 + $0x10b8] ss:$12 sps:$4 sm:$0xff]  }
 0x17f   : > { %4331 = vmatpush1.bf16.msra.mxu0 %v19721_v37  ;;  %v19744_v37 = vld [vmem:[%s28678_s2 + $0x1148] ss:$12 sps:$4 sm:$0xff]  }
 0x180   : > { %18330 = vmatpush3.bf16.msra.mxu1 %v19725_v46  ;;  %4332 = vmatprep.subr.bf16.mxu0 %v19728_v13  ;;  %v23040_v46 = vld [vmem:[%s21465_s26 + $0xd0] sm:$0xff]  ;;  %v584_v13 = vmax.f32 %v22453_v51, %v21229_v11 }
 0x181   : > { %18331 = vmatprep.subr.bf16.mxu1 %v19729_v35  ;;  %v587_v35 = vmax.f32 %v22464_v33, %v21230_v53  ;;  %v23059_v39 = vpack.c.bf16 %v23040_v46, %v23037_v58  ;;  %v19745_v51 = vld [vmem:[%s28678_s2 + $0x1088] ss:$12 sps:$4 sm:$0xff]   ;;  %v19759_v11 = vld [vmem:[%s28678_s2 + $0x1190] ss:$12 sps:$4 sm:$0xff]  }
 0x182   : > { %v19748_v33 = vld [vmem:[%s28678_s2 + $0x25c] ss:$12 sps:$4 sm:$0xff]   ;;  %v16591_v7 = vld [vmem:[%s21465_s26 + $0x130] sm:$0xff] }
 0x183   : > { %4333 = vmatpush1.bf16.msra.mxu0 %v19726_v4  ;;  %v19746_v4 = vld [vmem:[%s28678_s2 + $0x258] ss:$12 sps:$4 sm:$0xff]   ;;  %v16594_v41 = vld [vmem:[%s21465_s26 + $0x190] sm:$0xff] }
 0x184   : > { %18332 = vmatpush3.bf16.msra.mxu1 %v19730_v59  ;;  %4334 = vmatprep.subr.bf16.mxu0 %v19733_v49  ;;  %v21231_v59 = vld [vmem:[%s21476_s16 + $0x100] sm:$0xff] }
 0x185   : > { %18333 = vmatprep.subr.bf16.mxu1 %v19734_v15  ;;  %v596_v49 = vmax.f32 %v584_v13, %v21231_v59  ;;  %v21232_v15 = vld [vmem:[%s21476_s16 + $0x160] sm:$0xff]  ;;  %v21234_v59 = vld [vmem:[%s21465_s26 + $0x158] sm:$0xff] }
 0x186   : > { %v599_v23 = vmax.f32 %v587_v35, %v21232_v15  ;;  %v21235_v15 = vld [vmem:[%s21465_s26 + $0xf0] sm:$0xff] }
 0x187   : > { %4335 = vmatpush1.bf16.msra.mxu0 %v19731_v19  ;;  %v19750_v19 = vld [vmem:[%s28678_s2 + $0x10a0] ss:$12 sps:$4 sm:$0xff]  }
 0x188   : > { %18334 = vmatpush3.bf16.msra.mxu1 %v19735_v1  ;;  %4336 = vmatprep.subr.bf16.mxu0 %v19738_v55  ;;  %v19753_v1 = vld [vmem:[%s28678_s2 + $0x274] ss:$12 sps:$4 sm:$0xff]   ;;  %v19751_v55 = vld [vmem:[%s28678_s2 + $0x270] ss:$12 sps:$4 sm:$0xff]  }
 0x189   : > { %18335 = vmatprep.subr.bf16.mxu1 %v19739_v28  ;;  %v683_v28 = vmax.f32 %v599_v23, %v22006_v50  ;;  %v19756_v50 = vld [vmem:[%s28678_s2 + $0x288] ss:$12 sps:$4 sm:$0xff]   ;;  %v582_v23 = vmax.f32 %v22599_v29, %v21235_v15 }
 0x18b   : > { %4337 = vmatpush1.bf16.msra.mxu0 %v19736_v63  ;;  %v680_v63 = vmax.f32 %v596_v49, %v22003_v47  ;;  %v19758_v47 = vld [vmem:[%s28678_s2 + $0x28c] ss:$12 sps:$4 sm:$0xff]   ;;  %v745_v53 = vmax.f32 %v683_v28, %v16594_v41  ;;  %v586_v49 = vmax.f32 %v22580_v25, %v21234_v59  ;;  %v16627_v25 = vld [vmem:[%s21465_s26 + $0x190] sm:$0xfe] }
 0x18c   : > { %18336 = vmatpush3.bf16.msra.mxu1 %v19740_v20  ;;  %4338 = vmatprep.subr.bf16.mxu0 %v19743_v38  ;;  %v23098_v20 = vld [vmem:[%s21476_s16 + $0x70] sm:$0xff]  ;;  %v21237_v59 = vld [vmem:[%s21476_s16 + $0xf8] sm:$0xff] }
 0x18d   : > { %18349 = vmatprep.subr.bf16.mxu1 %v19744_v37  ;;  %v23101_v38 = vld [vmem:[%s21476_s16 + $0xd0] sm:$0xff]  ;;  %v23106_v37 = vpack.c.bf16 %v16594_v41, %v16591_v7  ;;  %v742_v13 = vmax.f32 %v680_v63, %v16591_v7 }
 0x18e   : > { %v23119_v35 = vpack.c.bf16 %v23101_v38, %v23098_v20  ;;  %v21236_v7 = vld [vmem:[%s21465_s26 + $0x150] sm:$0xff] }
 0x18f   : > { %4339 = vmatpush1.bf16.msra.mxu0 %v19741_v2  ;;  %6584 = vmatmul.mubr.bf16.vlgmr.msra.gmra.mrb[76].mxu1 %v23059_v39  ;;  %v19760_v2 = vld [vmem:[%s28678_s2 + $0x10d0] ss:$12 sps:$4 sm:$0xff]   ;;  %v585_v41 = vmax.f32 %v22607_v14, %v21236_v7  ;;  %v19761_v14 = vld [vmem:[%s28678_s2 + $0x2a0] ss:$12 sps:$4 sm:$0xff]  }
 0x190   : > { %18350 = vmatpush3.bf16.msra.mxu1 %v19745_v51  ;;  %4340 = vmatprep.subr.bf16.mxu0 %v19748_v33  ;;  %v19763_v51 = vld [vmem:[%s28678_s2 + $0x2a4] ss:$12 sps:$4 sm:$0xff]   ;;  %v21233_v33 = vld [vmem:[%s21465_s26 + $0xf8] sm:$0xff] }
 0x191   : > { %18351 = vmatprep.subr.bf16.mxu1 %v19749_v16  ;;  %6591 = vmatprep.mubr.bf16.mxu1 %v23075_v17  ;;  %v19764_v16 = vld [vmem:[%s28678_s2 + $0x11a8] ss:$12 sps:$4 sm:$0xff]  }
 0x193   : > { %4341 = vmatpush1.bf16.msra.mxu0 %v19746_v4  ;;  %v583_v4 = vmax.f32 %v22571_v24, %v21233_v33  ;;  %v23141_v24 = vld [vmem:[%s21476_s16 + $0x190] sm:$0xff] }
 0x194   : > { %18352 = vmatpush3.bf16.msra.mxu1 %v19750_v19  ;;  %4342 = vmatprep.subr.bf16.mxu0 %v19753_v1  ;;  %v23138_v19 = vld [vmem:[%s21476_s16 + $0x130] sm:$0xff]  ;;  %v757_v63 = vmax.f32 %v745_v53, %v23141_v24  ;;  %v19768_v53 = vld [vmem:[%s28678_s2 + $0x2bc] ss:$12 sps:$4 sm:$0xff]  }
 0x195   : > { %18353 = vmatprep.subr.bf16.mxu1 %v19754_v8  ;;  %v16621_v1 = vld [vmem:[%s21465_s26 + $0x130] sm:$0xfe]  ;;  %v16630_v8 = vld [vmem:[%s21465_s26 + $0x1a8] sm:$0x1]  ;;  %v754_v29 = vmax.f32 %v742_v13, %v23138_v19  ;;  %v595_v15 = vmax.f32 %v583_v4, %v21237_v59  ;;  %v21238_v13 = vld [vmem:[%s21476_s16 + $0x158] sm:$0xff] }
 0x196   : > { %v806_v28 = vrot.slane %v16621_v1, 1  ;;  %v816_v33 = vrot.slane %v16630_v8, 1  ;;  %v598_v7 = vmax.f32 %v586_v49, %v21238_v13  ;;  %v19766_v1 = vld [vmem:[%s28678_s2 + $0x2b8] ss:$12 sps:$4 sm:$0xff]   ;;  %v23195_v59 = vld [vmem:[%s21476_s16 + $0xc8] sm:$0xff] }
 0x197   : > { %4343 = vmatpush1.bf16.msra.mxu0 %v19751_v55  ;;  %6592 = vmatmul.mubr.bf16.gmra.mrb[80].mxu1 %v23106_v37  ;;  %v16624_v55 = vld [vmem:[%s21465_s26 + $0x148] sm:$0x1] }
 0x198   : > { %18354 = vmatpush3.bf16.msra.mxu1 %v19755_v9  ;;  %4344 = vmatprep.subr.bf16.mxu0 %v19758_v47  ;;  %v807_v9 = vrot.slane %v16624_v55, 1  ;;  %v815_v47 = vrot.slane %v16627_v25, 1  ;;  %v21239_v25 = vld [vmem:[%s21476_s16 + $0xf0] sm:$0xff] }
 0x199   : > { %18355 = vmatprep.subr.bf16.mxu1 %v19759_v11  ;;  %6632 = vmatprep.mubr.bf16.mxu1 %v23119_v35  ;;  %v19765_v11 = vld [vmem:[%s28678_s2 + $0x10e8] ss:$12 sps:$4 sm:$0xff]   ;;  %v594_v8 = vmax.f32 %v582_v23, %v21239_v25  ;;  %v679_v23 = vmax.f32 %v595_v15, %v21922_v56  ;;  %v16617_v15 = vld [vmem:[%s21465_s26 + $0xe0] sm:$0x1] }
 0x19a   : > { %v817_v4 = vsel %vm465_vm0, %v815_v47, %v816_v33  ;;  %v23189_v47 = vld [vmem:[%s21476_s16 + $0x68] sm:$0xff]  ;;  %v19771_v33 = vld [vmem:[%s28678_s2 + $0x2d0] ss:$12 sps:$4 sm:$0xff]  }
 0x19b   : > { %4345 = vmatpush1.bf16.msra.mxu0 %v19756_v50  ;;  %v808_v50 = vsel %vm465_vm0, %v806_v28, %v807_v9  ;;  %v841_v49 = vmax.f32 %v757_v63, %v817_v4  ;;  %v21240_v28 = vld [vmem:[%s21476_s16 + $0x150] sm:$0xff]  ;;  %v19774_v63 = vld [vmem:[%s28678_s2 + $0x11d8] ss:$12 sps:$4 sm:$0xff]   ;;  %v678_v13 = vmax.f32 %v594_v8, %v21943_v6  ;;  %v16614_v56 = vld [vmem:[%s21465_s26 + $0xc8] sm:$0xfe]  ;;  %v741_v25 = vmax.f32 %v679_v23, %v22882_v26 }
 0x19c   : > { %18356 = vmatpush3.bf16.msra.mxu1 %v19760_v2  ;;  %4346 = vmatprep.subr.bf16.mxu0 %v19763_v51  ;;  %v19769_v2 = vld [vmem:[%s28678_s2 + $0x11c0] ss:$12 sps:$4 sm:$0xff]   ;;  %v838_v51 = vmax.f32 %v754_v29, %v808_v50  ;;  %v23171_v55 = vpack.c.bf16 %v817_v4, %v808_v50  ;;  %v597_v9 = vmax.f32 %v585_v41, %v21240_v28  ;;  %v19779_v26 = vld [vmem:[%s28678_s2 + $0x11f0] ss:$12 sps:$4 sm:$0xff]  }
 0x19d   : > { %18357 = vmatprep.subr.bf16.mxu1 %v19764_v16  ;;  %v19770_v16 = vld [vmem:[%s28678_s2 + $0x1100] ss:$12 sps:$4 sm:$0xff]   ;;  %16453 = vst [vmem:[%s22893_s24 + $0xe8] sm:$0xff] %v841_v49  ;;  %v682_v41 = vmax.f32 %v598_v7, %v21925_v57  ;;  %v747_v57 = vmax.f32 %v22717_v60, %v23189_v47  ;;  %v795_v49 = vrot.slane %v16617_v15, 1  ;;  %v19775_v60 = vld [vmem:[%s28678_s2 + $0x1118] ss:$12 sps:$4 sm:$0xff]  }
 0x19e   : > { %v19773_v29 = vld [vmem:[%s28678_s2 + $0x2d4] ss:$12 sps:$4 sm:$0xff]   ;;  %16444 = vst [vmem:[%s22893_s24 + $0xa0] sm:$0xff] %v838_v51 }
 0x19f   : > { %4347 = vmatpush1.bf16.msra.mxu0 %v19761_v14  ;;  %v16608_v14 = vld [vmem:[%s21465_s26 + $0x68] sm:$0xfe]  ;;  %v28731_v50 = vld [vmem:[#allocation6_spill] sm:$0xff]  ;;  %v23209_v6 = vmax.f32 %v682_v41, %v22886_v31 }
 0x1a0   : > { %18358 = vmatpush3.bf16.msra.mxu1 %v19765_v11  ;;  %4348 = vmatprep.subr.bf16.mxu0 %v19768_v53  ;;  %v681_v4 = vmax.f32 %v597_v9, %v28731_v50  ;;  %v16611_v51 = vld [vmem:[%s21465_s26 + $0x80] sm:$0x1]  ;;  %v750_v11 = vmax.f32 %v22722_v54, %v23195_v59  ;;  %v785_v7 = vrot.slane %v16608_v14, 1  ;;  %v19778_v54 = vld [vmem:[%s28678_s2 + $0x2ec] ss:$12 sps:$4 sm:$0xff]   ;;  %v23241_v14 = vmax.f32 %v678_v13, %v22932_v52 }
 0x1a1   : > { %18359 = vmatprep.subr.bf16.mxu1 %v19769_v2  ;;  %v786_v53 = vrot.slane %v16611_v51, 1  ;;  %v794_v2 = vrot.slane %v16614_v56, 1  ;;  %v19780_v9 = vld [vmem:[%s28678_s2 + $0x1130] ss:$12 sps:$4 sm:$0xff]   ;;  %v19784_v51 = vld [vmem:[%s28678_s2 + $0x12c8] ss:$12 sps:$4 sm:$0xff]  }
 0x1a2   : > { %v18187_v28 = vpop.f32.mrb[36].mxu1  ;;  %v23244_v50 = vmax.f32 %v681_v4, %v22935_v45  ;;  %v23250_v56 = vld [vmem:[%s21476_s16 + $0x188] sm:$0xff] }
 0x1a3   : > { %4349 = vmatpush1.bf16.msra.mxu0 %v19766_v1  ;;  %v19776_v1 = vld [vmem:[%s28678_s2 + $0x2e8] ss:$12 sps:$4 sm:$0xff]   ;;  %v23224_v31 = vsel %vm465_vm0, %v785_v7, %v786_v53  ;;  %v23227_v8 = vsel %vm465_vm0, %v794_v2, %v795_v49  ;;  %v18188_v41 = vpop.f32.mrb[37].mxu1  ;;  %v756_v52 = vmax.f32 %v23209_v6, %v23250_v56  ;;  %v19781_v4 = vld [vmem:[%s28678_s2 + $0x300] ss:$12 sps:$4 sm:$0xff]  }
 0x1a4   : > { %18360 = vmatpush3.bf16.msra.mxu1 %v19770_v16  ;;  %4350 = vmatprep.subr.bf16.mxu0 %v19773_v29  ;;  %v19783_v16 = vld [vmem:[%s28678_s2 + $0x304] ss:$12 sps:$4 sm:$0xff]   ;;  %v23236_v29 = vld [vmem:[%s21476_s16 + $0x128] sm:$0xff]  ;;  %v834_v23 = vmax.f32 %v750_v11, %v23227_v8  ;;  %v18189_v15 = vadd.f32 %v18188_v41, %v18187_v28  ;;  %v16629_v11 = vld [vmem:[%s21465_s26 + $0x1a0] sm:$0x1] }
 0x1a5   : > { %18361 = vmatprep.subr.bf16.mxu1 %v19774_v63  ;;  %v831_v63 = vmax.f32 %v747_v57, %v23224_v31  ;;  %v753_v57 = vmax.f32 %v741_v25, %v23236_v29  ;;  %v16620_v45 = vld [vmem:[%s21465_s26 + $0x128] sm:$0xfe]  ;;  %v21241_v25 = vld [vmem:[%s21465_s26 + $0x40] sm:$0xff] }
 0x1a6   : > { %16434 = vst [vmem:[%s22893_s24 + $0x50] sm:$0xff] %v834_v23  ;;  %v16626_v13 = vld [vmem:[%s21465_s26 + $0x188] sm:$0xfe]  ;;  %v803_v7 = vrot.slane %v16620_v45, 1  ;;  %v23265_v49 = vadd.f32 %v18189_v15, %v23003_v27  ;;  %v578_v6 = vmax.f32 %v22638_v10, %v21241_v25  ;;  %v752_v27 = vmax.f32 %v23241_v14, %v23049_v21  ;;  %v16619_v41 = vld [vmem:[%s21465_s26 + $0x120] sm:$0xfe] }
 0x1a7   : > { %4351 = vmatpush1.bf16.msra.mxu0 %v19771_v33  ;;  %16425 = vst [vmem:[%s22893_s24 + $0x8] sm:$0xff] %v831_v63  ;;  %v16623_v33 = vld [vmem:[%s21465_s26 + $0x140] sm:$0x1]  ;;  %v812_v2 = vrot.slane %v16626_v13, 1  ;;  %v19788_v28 = vld [vmem:[%s28678_s2 + $0x31c] ss:$12 sps:$4 sm:$0xff]   ;;  %v755_v23 = vmax.f32 %v23244_v50, %v23052_v22  ;;  %v23283_v10 = vpack.c.bf16 %v23195_v59, %v23189_v47  ;;  %v23301_v50 = vpack.c.bf16 %v23141_v24, %v23138_v19 }
 0x1a8   : > { %18362 = vmatpush3.bf16.msra.mxu1 %v19775_v60  ;;  %4352 = vmatprep.subr.bf16.mxu0 %v19778_v54  ;;  %v804_v53 = vrot.slane %v16623_v33, 1  ;;  %v21242_v60 = vld [vmem:[%s21465_s26 + $0xa0] sm:$0xff]  ;;  %v813_v63 = vrot.slane %v16629_v11, 1  ;;  %v16622_v15 = vld [vmem:[%s21465_s26 + $0x138] sm:$0x1]  ;;  %v800_v14 = vrot.slane %v16619_v41, 1 }
 0x1a9   : > { %18363 = vmatprep.subr.bf16.mxu1 %v19779_v26  ;;  %v581_v54 = vmax.f32 %v22643_v36, %v21242_v60  ;;  %v19785_v26 = vld [vmem:[%s28678_s2 + $0x1208] ss:$12 sps:$4 sm:$0xff]   ;;  %v16625_v45 = vld [vmem:[%s21465_s26 + $0x180] sm:$0xfe]  ;;  %v801_v47 = vrot.slane %v16622_v15, 1  ;;  %v18190_v19 = vpop.f32.mrb[38].mxu1 }
 0x1aa   : > { %v23286_v36 = vsel %vm465_vm0, %v803_v7, %v804_v53  ;;  %v23292_v21 = vsel %vm465_vm0, %v812_v2, %v813_v63  ;;  %v19789_v59 = vld [vmem:[%s28678_s2 + $0x12e0] ss:$12 sps:$4 sm:$0xff]   ;;  %v28732_v53 = vld [vmem:[#allocation9_spill] sm:$0xff]  ;;  %v18191_v60 = vpop.f32.mrb[39].mxu1 }
 0x1ab   : > { %4353 = vmatpush1.bf16.msra.mxu0 %v19776_v1  ;;  %v837_v22 = vmax.f32 %v753_v57, %v23286_v36  ;;  %v16628_v1 = vld [vmem:[%s21465_s26 + $0x198] sm:$0x1]  ;;  %v21243_v13 = vld [vmem:[%s21476_s16 + $0x40] sm:$0xff]  ;;  %v23312_v2 = vsel %vm465_vm0, %v800_v14, %v801_v47  ;;  %v18192_v63 = vadd.f32 %v18191_v60, %v18190_v19  ;;  %v28733_v41 = vld [vmem:[#allocation7_spill] sm:$0xff] }
 0x1ac   : > { %18364 = vmatpush3.bf16.msra.mxu1 %v19780_v9  ;;  %4375 = vmatprep.subr.bf16.mxu0 %v19783_v16  ;;  %v840_v9 = vmax.f32 %v756_v52, %v23292_v21  ;;  %v809_v16 = vrot.slane %v16625_v45, 1  ;;  %v810_v33 = vrot.slane %v16628_v1, 1  ;;  %v590_v57 = vmax.f32 %v578_v6, %v21243_v13  ;;  %v21244_v11 = vld [vmem:[%s21476_s16 + $0xa0] sm:$0xff]  ;;  %v18193_v45 = vpop.f32.mrb[40].mxu1  ;;  %v28736_v13 = vld [vmem:[#allocation11_spill] sm:$0xff] }
 0x1ad   : > { %18377 = vmatprep.subr.bf16.mxu1 %v19784_v51  ;;  %v593_v7 = vmax.f32 %v581_v54, %v21244_v11  ;;  %v19786_v51 = vld [vmem:[%s28678_s2 + $0x318] ss:$12 sps:$4 sm:$0xff]   ;;  %16443 = vst [vmem:[%s22893_s24 + $0x98] sm:$0xff] %v837_v22  ;;  %v19790_v24 = vld [vmem:[%s28678_s2 + $0x1220] ss:$12 sps:$4 sm:$0xff]   ;;  %v836_v25 = vmax.f32 %v752_v27, %v23312_v2  ;;  %v23344_v1 = vpack.c.bf16 %v23250_v56, %v23236_v29  ;;  %v18194_v47 = vpop.f32.mrb[41].mxu1 }
 0x1ae   : > { %4355 = vmatmul.mubr.bf16.vlgmr.msra.gmra.mrb[0].mxu0 %v28732_v53  ;;  %16452 = vst [vmem:[%s22893_s24 + $0xe0] sm:$0xff] %v840_v9  ;;  %v23320_v52 = vsel %vm465_vm0, %v809_v16, %v810_v33  ;;  %v19793_v6 = vld [vmem:[%s28678_s2 + $0x334] ss:$12 sps:$4 sm:$0xff]   ;;  %v19794_v54 = vld [vmem:[%s28678_s2 + $0x12f8] ss:$12 sps:$4 sm:$0xff]   ;;  %v674_v27 = vmax.f32 %v590_v57, %v28733_v41  ;;  %v23347_v14 = vadd.f32 %v18192_v63, %v23008_v32  ;;  %v18196_v56 = vpop.f32.mrb[42].mxu1 }
 0x1af   : > { %4376 = vmatpush1.bf16.msra.mxu0 %v19781_v4  ;;  %6633 = vmatmul.mubr.bf16.vlgmr.msra.gmra.mrb[84].mxu1 %v23283_v10  ;;  %v839_v4 = vmax.f32 %v755_v23, %v23320_v52  ;;  %16442 = vst [vmem:[%s22893_s24 + $0x90] sm:$0xff] %v836_v25  ;;  %v28735_v15 = vld [vmem:[#allocation10_spill] sm:$0xff]  ;;  %v19791_v23 = vld [vmem:[%s28678_s2 + $0x330] ss:$12 sps:$4 sm:$0xff]   ;;  %v18195_v9 = vadd.f32 %v18194_v47, %v18193_v45  ;;  %v19796_v11 = vld [vmem:[%s28678_s2 + $0x348] ss:$12 sps:$4 sm:$0xff]  }
 0x1b0   : > { %18378 = vmatpush3.bf16.msra.mxu1 %v19785_v26  ;;  %4377 = vmatprep.subr.bf16.mxu0 %v19788_v28  ;;  %v28734_v26 = vld [vmem:[#allocation8_spill] sm:$0xff]  ;;  %v19795_v22 = vld [vmem:[%s28678_s2 + $0x1238] ss:$12 sps:$4 sm:$0xff]   ;;  %v23357_v29 = vpack.c.bf16 %v23227_v8, %v23224_v31  ;;  %v736_v32 = vmax.f32 %v674_v27, %v23037_v58  ;;  %v18197_v31 = vpop.f32.mrb[43].mxu1  ;;  %v19801_v8 = vld [vmem:[%s28678_s2 + $0x360] ss:$12 sps:$4 sm:$0xff]  }
 0x1b1   : > { %18379 = vmatprep.subr.bf16.mxu1 %v19789_v59  ;;  %6640 = vmatprep.mubr.bf16.mxu1 %v23301_v50  ;;  %v677_v28 = vmax.f32 %v593_v7, %v28734_v26  ;;  %16451 = vst [vmem:[%s22893_s24 + $0xd8] sm:$0xff] %v839_v4  ;;  %v19798_v59 = vld [vmem:[%s28678_s2 + $0x34c] ss:$12 sps:$4 sm:$0xff]   ;;  %v19799_v16 = vld [vmem:[%s28678_s2 + $0x1310] ss:$12 sps:$4 sm:$0xff]   ;;  %v23363_v57 = vadd.f32 %v18195_v9, %v23025_v44 }
 0x1b2   : > { %4364 = vmatprep.mubr.bf16.mxu0 %v28735_v15  ;;  %v19800_v58 = vld [vmem:[%s28678_s2 + $0x1250] ss:$12 sps:$4 sm:$0xff]   ;;  %v19804_v7 = vld [vmem:[%s28678_s2 + $0x1328] ss:$12 sps:$4 sm:$0xff]  }
 0x1b3   : > { %4378 = vmatpush1.bf16.msra.mxu0 %v19786_v51  ;;  %v739_v33 = vmax.f32 %v677_v28, %v23040_v46  ;;  %v19803_v44 = vld [vmem:[%s28678_s2 + $0x364] ss:$12 sps:$4 sm:$0xff]   ;;  %v18198_v46 = vadd.f32 %v18197_v31, %v18196_v56  ;;  %v748_v51 = vmax.f32 %v736_v32, %v23098_v20  ;;  %v19805_v20 = vld [vmem:[%s28678_s2 + $0x1268] ss:$12 sps:$4 sm:$0xff]  }
 0x1b4   : > { %18380 = vmatpush3.bf16.msra.mxu1 %v19790_v24  ;;  %4379 = vmatprep.subr.bf16.mxu0 %v19793_v6  ;;  %v16609_v53 = vld [vmem:[%s21465_s26 + $0x70] sm:$0xfe]  ;;  %v16612_v24 = vld [vmem:[%s21465_s26 + $0x88] sm:$0x1]  ;;  %v19815_v32 = vld [vmem:[%s28678_s2 + $0x1298] ss:$12 sps:$4 sm:$0xff]  }
 0x1b5   : > { %18381 = vmatprep.subr.bf16.mxu1 %v19794_v54  ;;  %v751_v19 = vmax.f32 %v739_v33, %v23101_v38  ;;  %v16615_v25 = vld [vmem:[%s21465_s26 + $0xd0] sm:$0xfe]  ;;  %v16618_v6 = vld [vmem:[%s21465_s26 + $0xe8] sm:$0x1]  ;;  %v23390_v60 = vadd.f32 %v18198_v46, %v23042_v48  ;;  %v788_v54 = vrot.slane %v16609_v53, 1  ;;  %v789_v63 = vrot.slane %v16612_v24, 1 }
 0x1b6   : > { %4365 = vmatmul.mubr.bf16.gmra.mrb[4].mxu0 %v28736_v13  ;;  %v28737_v4 = vld [vmem:[#allocation12_spill] sm:$0xff]  ;;  %v797_v41 = vrot.slane %v16615_v25, 1  ;;  %v798_v27 = vrot.slane %v16618_v6, 1  ;;  %v19808_v38 = vld [vmem:[%s28678_s2 + $0x37c] ss:$12 sps:$4 sm:$0xff]  }
 0x1b7   : > { %4380 = vmatpush1.bf16.msra.mxu0 %v19791_v23  ;;  %6641 = vmatmul.mubr.bf16.gmra.mrb[88].mxu1 %v23344_v1  ;;  %v19809_v48 = vld [vmem:[%s28678_s2 + $0x1340] ss:$12 sps:$4 sm:$0xff]   ;;  %v23402_v26 = vsel %vm465_vm0, %v788_v54, %v789_v63  ;;  %v19806_v23 = vld [vmem:[%s28678_s2 + $0x378] ss:$12 sps:$4 sm:$0xff]   ;;  %v19819_v31 = vld [vmem:[%s28678_s2 + $0x1370] ss:$12 sps:$4 sm:$0xff]   ;;  %v23464_v63 = vpack.c.bf16 %v23292_v21, %v23286_v36 }
 0x1b8   : > { %18382 = vmatpush3.bf16.msra.mxu1 %v19795_v22  ;;  %4381 = vmatprep.subr.bf16.mxu0 %v19798_v59  ;;  %v23405_v28 = vsel %vm465_vm0, %v797_v41, %v798_v27  ;;  %v832_v15 = vmax.f32 %v748_v51, %v23402_v26  ;;  %v19810_v22 = vld [vmem:[%s28678_s2 + $0x1280] ss:$12 sps:$4 sm:$0xff]   ;;  %v19814_v59 = vld [vmem:[%s28678_s2 + $0x1358] ss:$12 sps:$4 sm:$0xff]   ;;  %v19827_v6 = vld [vmem:[%s28678_s2 + $0x3dc] ss:$12 sps:$4 sm:$0xff]  }
 0x1b9   : > { %18383 = vmatprep.subr.bf16.mxu1 %v19799_v16  ;;  %6681 = vmatprep.mubr.bf16.mxu1 %v23357_v29  ;;  %v835_v45 = vmax.f32 %v751_v19, %v23405_v28  ;;  %v19813_v47 = vld [vmem:[%s28678_s2 + $0x394] ss:$12 sps:$4 sm:$0xff]   ;;  %v19811_v16 = vld [vmem:[%s28678_s2 + $0x390] ss:$12 sps:$4 sm:$0xff]   ;;  %v19818_v33 = vld [vmem:[%s28678_s2 + $0x3ac] ss:$12 sps:$4 sm:$0xff]  }
 0x1ba   : > { %4407 = vmatprep.mubr.bf16.mxu0 %v28737_v4  ;;  %16426 = vst [vmem:[%s22893_s24 + $0x10] sm:$0xff] %v832_v15  ;;  %v19823_v53 = vld [vmem:[%s28678_s2 + $0x3c4] ss:$12 sps:$4 sm:$0xff]   ;;  %v19821_v24 = vld [vmem:[%s28678_s2 + $0x3c0] ss:$12 sps:$4 sm:$0xff]   ;;  %v23488_v15 = vpack.c.bf16 %v23320_v52, %v23312_v2 }
 0x1bb   : > { %4382 = vmatpush1.bf16.msra.mxu0 %v19796_v11  ;;  %16435 = vst [vmem:[%s22893_s24 + $0x58] sm:$0xff] %v835_v45  ;;  %v19828_v54 = vld [vmem:[%s28678_s2 + $0x13a0] ss:$12 sps:$4 sm:$0xff]   ;;  %v19832_v21 = vld [vmem:[%s28678_s2 + $0x13b8] ss:$12 sps:$4 sm:$0xff]  }
 0x1bc   : > { %18384 = vmatpush3.bf16.msra.mxu1 %v19800_v58  ;;  %4383 = vmatprep.subr.bf16.mxu0 %v19803_v44  ;;  %v19836_v45 = vld [vmem:[%s28678_s2 + $0x13d0] ss:$12 sps:$4 sm:$0xff]   ;;  %v19833_v2 = vld [vmem:[%s28678_s2 + $0x408] ss:$12 sps:$4 sm:$0xff]  }
 0x1bd   : > { %18385 = vmatprep.subr.bf16.mxu1 %v19804_v7  ;;  %v19820_v7 = vld [vmem:[%s28678_s2 + $0x12b0] ss:$12 sps:$4 sm:$0xff]  }
 0x1be   : > { %v19839_v52 = vld [vmem:[%s28678_s2 + $0x424] ss:$12 sps:$4 sm:$0xff]  }
 0x1bf   : > { %4384 = vmatpush1.bf16.msra.mxu0 %v19801_v8  ;;  %v19816_v8 = vld [vmem:[%s28678_s2 + $0x3a8] ss:$12 sps:$4 sm:$0xff]  }
 0x1c0   : > { %18386 = vmatpush3.bf16.msra.mxu1 %v19805_v20  ;;  %4385 = vmatprep.subr.bf16.mxu0 %v19808_v38  ;;  %v19825_v38 = vld [vmem:[%s28678_s2 + $0x3d8] ss:$12 sps:$4 sm:$0xff]  }
 0x1c1   : > { %18387 = vmatprep.subr.bf16.mxu1 %v19809_v48  ;;  %v19831_v48 = vld [vmem:[%s28678_s2 + $0x3f4] ss:$12 sps:$4 sm:$0xff]  }
 0x1c2   : > { %v18215_v9 = vpop.f32.mrb[44].mxu1 }
 0x1c3   : > { %4386 = vmatpush1.bf16.msra.mxu0 %v19806_v23  ;;  %v18216_v56 = vpop.f32.mrb[45].mxu1  ;;  %v23498_v23 = vpack.c.bf16 %v23405_v28, %v23402_v26  ;;  %v19837_v26 = vld [vmem:[%s28678_s2 + $0x420] ss:$12 sps:$4 sm:$0xff]   ;;  %v19843_v28 = vld [vmem:[%s28678_s2 + $0x43c] ss:$12 sps:$4 sm:$0xff]  }
 0x1c4   : > { %18388 = vmatpush3.bf16.msra.mxu1 %v19810_v22  ;;  %4387 = vmatprep.subr.bf16.mxu0 %v19813_v47  ;;  %v18217_v13 = vadd.f32 %v18216_v56, %v18215_v9  ;;  %v18218_v11 = vpop.f32.mrb[46].mxu1  ;;  %v19840_v22 = vld [vmem:[%s28678_s2 + $0x13e8] ss:$12 sps:$4 sm:$0xff]   ;;  %v19844_v47 = vld [vmem:[%s28678_s2 + $0x1400] ss:$12 sps:$4 sm:$0xff]  }
 0x1c5   : > { %18389 = vmatprep.subr.bf16.mxu1 %v19814_v59  ;;  %v18219_v58 = vpop.f32.mrb[47].mxu1  ;;  %v19841_v59 = vld [vmem:[%s28678_s2 + $0x438] ss:$12 sps:$4 sm:$0xff]   ;;  %v19847_v9 = vld [vmem:[%s28678_s2 + $0x454] ss:$12 sps:$4 sm:$0xff]  }
 0x1c6   : > { %v23436_v44 = vadd.f32 %v23265_v49, %v18217_v13  ;;  %v18220_v46 = vadd.f32 %v18219_v58, %v18218_v11  ;;  %v19824_v49 = vld [vmem:[%s28678_s2 + $0x1388] ss:$12 sps:$4 sm:$0xff]   ;;  %v19851_v13 = vld [vmem:[%s28678_s2 + $0x46c] ss:$12 sps:$4 sm:$0xff]   ;;  %v19852_v11 = vld [vmem:[%s28678_s2 + $0x1430] ss:$12 sps:$4 sm:$0xff]  }
 0x1c7   : > { %4388 = vmatpush1.bf16.msra.mxu0 %v19811_v16  ;;  %v19848_v16 = vld [vmem:[%s28678_s2 + $0x1418] ss:$12 sps:$4 sm:$0xff]  }
 0x1c8   : > { %18390 = vmatpush3.bf16.msra.mxu1 %v19815_v32  ;;  %4389 = vmatprep.subr.bf16.mxu0 %v19818_v33  ;;  %v23448_v51 = vadd.f32 %v23347_v14, %v18220_v46  ;;  %v19845_v32 = vld [vmem:[%s28678_s2 + $0x450] ss:$12 sps:$4 sm:$0xff]  }
 0x1c9   : > { %18391 = vmatprep.subr.bf16.mxu1 %v19819_v31 }
 0x1ca   : > { %v18221_v19 = vpop.f32.mrb[48].mxu1 }
 0x1cb   : > { %4390 = vmatpush1.bf16.msra.mxu0 %v19816_v8  ;;  %v18222_v25 = vpop.f32.mrb[49].mxu1 }
 0x1cc   : > { %18392 = vmatpush3.bf16.msra.mxu1 %v19820_v7  ;;  %4391 = vmatprep.subr.bf16.mxu0 %v19823_v53  ;;  %v18223_v14 = vadd.f32 %v18222_v25, %v18221_v19  ;;  %v18224_v4 = vpop.f32.mrb[50].mxu1  ;;  %v19849_v53 = vld [vmem:[%s28678_s2 + $0x468] ss:$12 sps:$4 sm:$0xff]  }
 0x1cd   : > { %18707 = vmatprep.subr.bf16.mxu1 %v19824_v49  ;;  %v18225_v41 = vpop.f32.mrb[51].mxu1  ;;  %v19858_v25 = vld [vmem:[%s28678_s2 + $0x49c] ss:$12 sps:$4 sm:$0xff]  }
 0x1ce   : > { %v23467_v27 = vadd.f32 %v23363_v57, %v18223_v14  ;;  %v18226_v20 = vadd.f32 %v18225_v41, %v18224_v4  ;;  %v19829_v57 = vld [vmem:[%s28678_s2 + $0x3f0] ss:$12 sps:$4 sm:$0xff]  }
 0x1cf   : > { %6682 = vmatmul.mubr.bf16.vlgmr.msra.gmra.mrb[92].mxu1 %v22895_v12  ;;  %4392 = vmatpush1.bf16.msra.mxu0 %v19821_v24  ;;  %v28738_v41 = vld [vmem:[#allocation13_spill] sm:$0xff] }
 0x1d0   : > { %18708 = vmatpush3.bf16.msra.mxu1 %v19824_v49  ;;  %4393 = vmatprep.subr.bf16.mxu0 %v19827_v6  ;;  %v23477_v36 = vadd.f32 %v23390_v60, %v18226_v20  ;;  %v19835_v60 = vld [vmem:[%s28678_s2 + $0x40c] ss:$12 sps:$4 sm:$0xff]   ;;  %v19855_v49 = vld [vmem:[%s28678_s2 + $0x484] ss:$12 sps:$4 sm:$0xff]  }
 0x1d1   : > { %18709 = vmatprep.subr.bf16.mxu1 %v19828_v54  ;;  %6689 = vmatprep.mubr.bf16.mxu1 %v23464_v63 }
 0x1d3   : > { %4394 = vmatpush1.bf16.msra.mxu0 %v19825_v38  ;;  %v19856_v38 = vld [vmem:[%s28678_s2 + $0x498] ss:$12 sps:$4 sm:$0xff]  }
 0x1d4   : > { %18710 = vmatpush3.bf16.msra.mxu1 %v19828_v54  ;;  %4395 = vmatprep.subr.bf16.mxu0 %v19831_v48  ;;  %v19861_v48 = vld [vmem:[%s28678_s2 + $0x4b4] ss:$12 sps:$4 sm:$0xff]  }
 0x1d5   : > { %18711 = vmatprep.subr.bf16.mxu1 %v19832_v21 }
 0x1d7   : > { %6690 = vmatmul.mubr.bf16.gmra.mrb[96].mxu1 %v23488_v15  ;;  %4396 = vmatpush1.bf16.msra.mxu0 %v19829_v57  ;;  %v28739_v57 = vld [vmem:[#allocation14_spill] sm:$0xff] }
 0x1d8   : > { %18712 = vmatpush3.bf16.msra.mxu1 %v19832_v21  ;;  %4397 = vmatprep.subr.bf16.mxu0 %v19835_v60  ;;  %v19864_v60 = vld [vmem:[%s28678_s2 + $0x4cc] ss:$12 sps:$4 sm:$0xff]  }
 0x1d9   : > { %18713 = vmatprep.subr.bf16.mxu1 %v19836_v45  ;;  %18723 = vmatprep.mubr.bf16.mxu1 %v23498_v23 }
 0x1db   : > { %4398 = vmatpush1.bf16.msra.mxu0 %v19833_v2  ;;  %v19867_v2 = vld [vmem:[%s28678_s2 + $0x4e4] ss:$12 sps:$4 sm:$0xff]  }
 0x1dc   : > { %18714 = vmatpush3.bf16.msra.mxu1 %v19836_v45  ;;  %4399 = vmatprep.subr.bf16.mxu0 %v19839_v52  ;;  %v28740_v45 = vld [vmem:[#allocation15_spill] sm:$0xff]  ;;  %v28741_v52 = vld [vmem:[#allocation16_spill] sm:$0xff] }
 0x1dd   : > { %18715 = vmatprep.subr.bf16.mxu1 %v19840_v22 }
 0x1df   : > { %4400 = vmatpush1.bf16.msra.mxu0 %v19837_v26  ;;  %v19870_v26 = vld [vmem:[%s28678_s2 + $0x4fc] ss:$12 sps:$4 sm:$0xff]  }
 0x1e0   : > { %18716 = vmatpush3.bf16.msra.mxu1 %v19840_v22  ;;  %4401 = vmatprep.subr.bf16.mxu0 %v19843_v28  ;;  %v19865_v22 = vld [vmem:[%s28678_s2 + $0x4e0] ss:$12 sps:$4 sm:$0xff]   ;;  %v19868_v28 = vld [vmem:[%s28678_s2 + $0x4f8] ss:$12 sps:$4 sm:$0xff]  }
 0x1e1   : > { %18717 = vmatprep.subr.bf16.mxu1 %v19844_v47 }
 0x1e2   : > { %v18243_v56 = vpop.f32.mrb[52].mxu1 }
 0x1e3   : > { %4402 = vmatpush1.bf16.msra.mxu0 %v19841_v59  ;;  %v18244_v33 = vpop.f32.mrb[53].mxu1 }
 0x1e4   : > { %18718 = vmatpush3.bf16.msra.mxu1 %v19844_v47  ;;  %4403 = vmatprep.subr.bf16.mxu0 %v19847_v9  ;;  %v18245_v31 = vadd.f32 %v18244_v33, %v18243_v56  ;;  %v18246_v58 = vpop.f32.mrb[54].mxu1  ;;  %v19873_v47 = vld [vmem:[%s28678_s2 + $0x514] ss:$12 sps:$4 sm:$0xff]   ;;  %v19876_v56 = vld [vmem:[%s28678_s2 + $0x52c] ss:$12 sps:$4 sm:$0xff]  }
 0x1e5   : > { %18719 = vmatprep.subr.bf16.mxu1 %v19848_v16  ;;  %v18247_v46 = vpop.f32.mrb[55].mxu1 }
 0x1e6   : > { %v18735_v8 = vadd.f32 %v23436_v44, %v18245_v31  ;;  %v18248_v7 = vadd.f32 %v18247_v46, %v18246_v58  ;;  %v19853_v44 = vld [vmem:[%s28678_s2 + $0x480] ss:$12 sps:$4 sm:$0xff]   ;;  %v19874_v58 = vld [vmem:[%s28678_s2 + $0x528] ss:$12 sps:$4 sm:$0xff]   ;;  %v19879_v46 = vld [vmem:[%s28678_s2 + $0x544] ss:$12 sps:$4 sm:$0xff]  }
 0x1e7   : > { %4404 = vmatpush1.bf16.msra.mxu0 %v19845_v32 }
 0x1e8   : > { %18720 = vmatpush3.bf16.msra.mxu1 %v19848_v16  ;;  %4405 = vmatprep.subr.bf16.mxu0 %v19851_v13  ;;  %v18747_v19 = vadd.f32 %v23448_v51, %v18248_v7  ;;  %v19871_v16 = vld [vmem:[%s28678_s2 + $0x510] ss:$12 sps:$4 sm:$0xff]  }
 0x1e9   : > { %18721 = vmatprep.subr.bf16.mxu1 %v19852_v11 }
 0x1ea   : > { %v18249_v24 = vpop.f32.mrb[56].mxu1 }
 0x1eb   : > { %4406 = vmatpush1.bf16.msra.mxu0 %v19849_v53  ;;  %v18250_v6 = vpop.f32.mrb[57].mxu1 }
 0x1ec   : > { %18722 = vmatpush3.bf16.msra.mxu1 %v19852_v11  ;;  %4428 = vmatprep.subr.bf16.mxu0 %v19855_v49  ;;  %v18251_v14 = vadd.f32 %v18250_v6, %v18249_v24  ;;  %v18252_v4 = vpop.f32.mrb[58].mxu1  ;;  %v19882_v49 = vld [vmem:[%s28678_s2 + $0x55c] ss:$12 sps:$4 sm:$0xff]  }
 0x1ed   : > { %v18253_v54 = vpop.f32.mrb[59].mxu1 }
 0x1ee   : > { %4408 = vmatmul.mubr.bf16.vlgmr.msra.gmra.mrb[0].mxu0 %v28738_v41  ;;  %v18729_v51 = vadd.f32 %v23467_v27, %v18251_v14  ;;  %v18254_v20 = vadd.f32 %v18253_v54, %v18252_v4  ;;  %v19859_v27 = vld [vmem:[%s28678_s2 + $0x4b0] ss:$12 sps:$4 sm:$0xff]   ;;  %v19880_v4 = vld [vmem:[%s28678_s2 + $0x558] ss:$12 sps:$4 sm:$0xff]   ;;  %v19885_v54 = vld [vmem:[%s28678_s2 + $0x574] ss:$12 sps:$4 sm:$0xff]  }
 0x1ef   : > { %18724 = vmatmul.mubr.bf16.vlgmr.msra.gmra.mrb[32].mxu1 %v23171_v55  ;;  %4429 = vmatpush1.bf16.msra.mxu0 %v19853_v44 }
 0x1f0   : > { %4430 = vmatprep.subr.bf16.mxu0 %v19858_v25  ;;  %v18741_v21 = vadd.f32 %v23477_v36, %v18254_v20  ;;  %4417 = vmatprep.mubr.bf16.mxu0 %v28739_v57  ;;  %v19862_v36 = vld [vmem:[%s28678_s2 + $0x4c8] ss:$12 sps:$4 sm:$0xff]   ;;  %v19883_v20 = vld [vmem:[%s28678_s2 + $0x570] ss:$12 sps:$4 sm:$0xff]  }
 0x1f1   : > { %7296 = vmatprep.mubr.bf16.mxu1 %v28726_v3  ;;  %v19894_v57 = vld [vmem:[%s28678_s2 + $0x5bc] ss:$12 sps:$4 sm:$0xff]  }
 0x1f3   : > { %4431 = vmatpush1.bf16.msra.mxu0 %v19856_v38  ;;  %v19886_v38 = vld [vmem:[%s28678_s2 + $0x588] ss:$12 sps:$4 sm:$0xff]  }
 0x1f4   : > { %4432 = vmatprep.subr.bf16.mxu0 %v19861_v48  ;;  %v19891_v48 = vld [vmem:[%s28678_s2 + $0x5a4] ss:$12 sps:$4 sm:$0xff]  }
 0x1f6   : > { %4418 = vmatmul.mubr.bf16.gmra.mrb[4].mxu0 %v28740_v45  ;;  %v19895_v45 = vld [vmem:[%s28678_s2 + $0x5d0] ss:$12 sps:$4 sm:$0xff]  }
 0x1f7   : > { %4433 = vmatpush1.bf16.msra.mxu0 %v19859_v27  ;;  %4460 = vmatprep.mubr.bf16.mxu0 %v28741_v52  ;;  %v19892_v27 = vld [vmem:[%s28678_s2 + $0x5b8] ss:$12 sps:$4 sm:$0xff]  }
 0x1f8   : > { %4434 = vmatprep.subr.bf16.mxu0 %v19864_v60  ;;  %v19897_v60 = vld [vmem:[%s28678_s2 + $0x5d4] ss:$12 sps:$4 sm:$0xff]   ;;  %v19903_v52 = vld [vmem:[%s28678_s2 + $0x604] ss:$12 sps:$4 sm:$0xff]  }
 0x1fb   : > { %4435 = vmatpush1.bf16.msra.mxu0 %v19862_v36  ;;  %v19900_v36 = vld [vmem:[%s28678_s2 + $0x5ec] ss:$12 sps:$4 sm:$0xff]  }
 0x1fc   : > { %4436 = vmatprep.subr.bf16.mxu0 %v19867_v2  ;;  %v19898_v2 = vld [vmem:[%s28678_s2 + $0x5e8] ss:$12 sps:$4 sm:$0xff]  }
 0x1ff   : > { %4437 = vmatpush1.bf16.msra.mxu0 %v19865_v22  ;;  %v19901_v22 = vld [vmem:[%s28678_s2 + $0x600] ss:$12 sps:$4 sm:$0xff]  }
 0x200   : > { %4438 = vmatprep.subr.bf16.mxu0 %v19870_v26  ;;  %v19906_v26 = vld [vmem:[%s28678_s2 + $0x61c] ss:$12 sps:$4 sm:$0xff]  }
 0x202   : > { %v18271_v59 = vpop.f32.mrb[60].mxu1 }
 0x203   : > { %v18272_v9 = vpop.f32.mrb[61].mxu1  ;;  %4439 = vmatpush1.bf16.msra.mxu0 %v19868_v28  ;;  %v23667_v28 = vld [vmem:[%s28680_s4 + $0x104] ss:$8 sps:$4 sm:$0xff]  }
 0x204   : > { %v18273_v32 = vadd.f32 %v18272_v9, %v18271_v59  ;;  %v18274_v33 = vpop.f32.mrb[62].mxu1  ;;  %4440 = vmatprep.subr.bf16.mxu0 %v19873_v47  ;;  %v23672_v47 = vld [vmem:[%s28680_s4 + $0x100] ss:$8 sps:$4 sm:$0xff]   ;;  %7264 = vmatprep.subr.bf16.mxu1 %v23667_v28  ;;  %v19904_v59 = vld [vmem:[%s28678_s2 + $0x618] ss:$12 sps:$4 sm:$0xff]  }
 0x205   : > { %v18275_v13 = vpop.f32.mrb[63].mxu1  ;;  %7265 = vmatpush1.bf16.msra.mxu1 %v23672_v47  ;;  %v23683_v9 = vld [vmem:[%s28680_s4 + $0x114] ss:$8 sps:$4 sm:$0xff]  }
 0x206   : > { %v23596_v11 = vadd.f32 %v18735_v8, %v18273_v32  ;;  %v18276_v31 = vadd.f32 %v18275_v13, %v18274_v33  ;;  %v19877_v8 = vld [vmem:[%s28678_s2 + $0x540] ss:$12 sps:$4 sm:$0xff]   ;;  %7266 = vmatprep.subr.bf16.mxu1 %v23683_v9  ;;  %v23718_v13 = vld [vmem:[%s28680_s4 + $0x134] ss:$8 sps:$4 sm:$0xff]  }
 0x207   : > { %4441 = vmatpush1.bf16.msra.mxu0 %v19871_v16  ;;  %v23689_v16 = vld [vmem:[%s28680_s4 + $0x110] ss:$8 sps:$4 sm:$0xff]   ;;  %v23710_v33 = vld [vmem:[%s28680_s4 + $0x120] ss:$8 sps:$4 sm:$0xff]  }
 0x208   : > { %v23604_v7 = vadd.f32 %v18747_v19, %v18276_v31  ;;  %4442 = vmatprep.subr.bf16.mxu0 %v19876_v56  ;;  %v23699_v56 = vld [vmem:[%s28680_s4 + $0x124] ss:$8 sps:$4 sm:$0xff]   ;;  %v19910_v31 = vld [vmem:[%s28678_s2 + $0x648] ss:$12 sps:$4 sm:$0xff]  }
 0x209   : > { %7267 = vmatpush1.bf16.msra.mxu1 %v23689_v16  ;;  %v19912_v32 = vld [vmem:[%s28678_s2 + $0x64c] ss:$12 sps:$4 sm:$0xff]  }
 0x20a   : > { %v18277_v53 = vpop.f32.mrb[64].mxu1  ;;  %7268 = vmatprep.subr.bf16.mxu1 %v23699_v56 }
 0x20b   : > { %4443 = vmatpush1.bf16.msra.mxu0 %v19874_v58  ;;  %v18278_v24 = vpop.f32.mrb[65].mxu1  ;;  %v19915_v58 = vld [vmem:[%s28678_s2 + $0x664] ss:$12 sps:$4 sm:$0xff]  }
 0x20c   : > { %4444 = vmatprep.subr.bf16.mxu0 %v19879_v46  ;;  %v18279_v44 = vadd.f32 %v18278_v24, %v18277_v53  ;;  %v18280_v25 = vpop.f32.mrb[66].mxu1  ;;  %v23737_v46 = vld [vmem:[%s28680_s4 + $0x144] ss:$8 sps:$4 sm:$0xff]  }
 0x20d   : > { %v18281_v6 = vpop.f32.mrb[67].mxu1  ;;  %7269 = vmatpush1.bf16.msra.mxu1 %v23710_v33  ;;  %v19913_v53 = vld [vmem:[%s28678_s2 + $0x660] ss:$12 sps:$4 sm:$0xff]   ;;  %v19916_v24 = vld [vmem:[%s28678_s2 + $0x678] ss:$12 sps:$4 sm:$0xff]  }
 0x20e   : > { %v23612_v14 = vadd.f32 %v18729_v51, %v18279_v44  ;;  %v18282_v19 = vadd.f32 %v18281_v6, %v18280_v25  ;;  %v19888_v51 = vld [vmem:[%s28678_s2 + $0x58c] ss:$12 sps:$4 sm:$0xff]   ;;  %7270 = vmatprep.subr.bf16.mxu1 %v23718_v13  ;;  %v23758_v44 = vld [vmem:[%s28680_s4 + $0x154] ss:$8 sps:$4 sm:$0xff]  }
 0x20f   : > { %4445 = vmatpush1.bf16.msra.mxu0 %v19877_v8  ;;  %v19918_v8 = vld [vmem:[%s28678_s2 + $0x67c] ss:$12 sps:$4 sm:$0xff]   ;;  %v19921_v25 = vld [vmem:[%s28678_s2 + $0x694] ss:$12 sps:$4 sm:$0xff]   ;;  %v23766_v6 = vld [vmem:[%s28680_s4 + $0x150] ss:$8 sps:$4 sm:$0xff]  }
 0x210   : > { %4446 = vmatprep.subr.bf16.mxu0 %v19882_v49  ;;  %v23620_v41 = vadd.f32 %v18741_v21, %v18282_v19  ;;  %v19889_v21 = vld [vmem:[%s28678_s2 + $0x5a0] ss:$12 sps:$4 sm:$0xff]   ;;  %v19919_v19 = vld [vmem:[%s28678_s2 + $0x690] ss:$12 sps:$4 sm:$0xff]  }
 0x211   : > { %v23748_v49 = vld [vmem:[%s28680_s4 + $0x140] ss:$8 sps:$4 sm:$0xff]  }
 0x213   : > { %4447 = vmatpush1.bf16.msra.mxu0 %v19880_v4 }
 0x214   : > { %4448 = vmatprep.subr.bf16.mxu0 %v19885_v54  ;;  %v23776_v54 = vld [vmem:[%s28680_s4 + $0x164] ss:$8 sps:$4 sm:$0xff]  }
 0x217   : > { %4449 = vmatpush1.bf16.msra.mxu0 %v19883_v20  ;;  %v19924_v20 = vld [vmem:[%s28678_s2 + $0x6ac] ss:$12 sps:$4 sm:$0xff]  }
 0x218   : > { %4450 = vmatprep.subr.bf16.mxu0 %v19888_v51 }
 0x21b   : > { %4451 = vmatpush1.bf16.msra.mxu0 %v19886_v38  ;;  %v23784_v38 = vld [vmem:[%s28680_s4 + $0x160] ss:$8 sps:$4 sm:$0xff]  }
 0x21c   : > { %4452 = vmatprep.subr.bf16.mxu0 %v19891_v48 }
 0x21f   : > { %4453 = vmatpush1.bf16.msra.mxu0 %v19889_v21 }
 0x220   : > { %4454 = vmatprep.subr.bf16.mxu0 %v19894_v57 }
 0x223   : > { %4455 = vmatpush1.bf16.msra.mxu0 %v19892_v27 }
 0x224   : > { %4456 = vmatprep.subr.bf16.mxu0 %v19897_v60  ;;  %v23795_v60 = vld [vmem:[%s28680_s4 + $0x174] ss:$8 sps:$4 sm:$0xff]  }
 0x227   : > { %4457 = vmatpush1.bf16.msra.mxu0 %v19895_v45  ;;  %v19922_v45 = vld [vmem:[%s28678_s2 + $0x6a8] ss:$12 sps:$4 sm:$0xff]  }
 0x228   : > { %4458 = vmatprep.subr.bf16.mxu0 %v19900_v36  ;;  %v19927_v36 = vld [vmem:[%s28678_s2 + $0xd84] ss:$12 sps:$4 sm:$0xff]  }
 0x22b   : > { %4459 = vmatpush1.bf16.msra.mxu0 %v19898_v2  ;;  %v23806_v2 = vld [vmem:[%s28680_s4 + $0x170] ss:$8 sps:$4 sm:$0xff]  }
 0x22c   : > { %4481 = vmatprep.subr.bf16.mxu0 %v19903_v52 }
 0x22e   : > { %4461 = vmatmul.mubr.bf16.vlgmr.msra.gmra.mrb[0].mxu0 %v22618_v30  ;;  %v19909_v30 = vld [vmem:[%s28678_s2 + $0x634] ss:$12 sps:$4 sm:$0xff]  }
 0x22f   : > { %4482 = vmatpush1.bf16.msra.mxu0 %v19901_v22  ;;  %4470 = vmatprep.mubr.bf16.mxu0 %v22626_v18  ;;  %v19907_v18 = vld [vmem:[%s28678_s2 + $0x630] ss:$12 sps:$4 sm:$0xff]   ;;  %v20053_v22 = vld [vmem:[%s28680_s4 + $0x4] ss:$8 sps:$4 sm:$0xff]  }
 0x230   : > { %4483 = vmatprep.subr.bf16.mxu0 %v19906_v26  ;;  %v6801_v26 = vld [vmem:[%s21465_s26 + $0x10] sm:$0xff] }
 0x233   : > { %4484 = vmatpush1.bf16.msra.mxu0 %v19904_v59  ;;  %v19925_v59 = vld [vmem:[%s28678_s2 + $0xd80] ss:$12 sps:$4 sm:$0xff]  }
 0x234   : > { %4485 = vmatprep.subr.bf16.mxu0 %v19909_v30 }
 0x236   : > { %4471 = vmatmul.mubr.bf16.gmra.mrb[4].mxu0 %v22656_v0  ;;  %v23730_v0 = vld [vmem:[%s28680_s4 + $0x130] ss:$8 sps:$4 sm:$0xff]  }
 0x237   : > { %4486 = vmatpush1.bf16.msra.mxu0 %v19907_v18  ;;  %4513 = vmatprep.mubr.bf16.mxu0 %v28726_v3  ;;  %v6804_v18 = vld [vmem:[%s21465_s26 + $0x40] sm:$0xff] }
 0x238   : > { %4487 = vmatprep.subr.bf16.mxu0 %v19912_v32  ;;  %7271 = vmatpush1.bf16.msra.mxu1 %v23730_v0  ;;  %v19930_v32 = vld [vmem:[%s28678_s2 + $0xd9c] ss:$12 sps:$4 sm:$0xff]  }
 0x239   : > { %7272 = vmatprep.subr.bf16.mxu1 %v23737_v46 }
 0x23b   : > { %4488 = vmatpush1.bf16.msra.mxu0 %v19910_v31 }
 0x23c   : > { %4489 = vmatprep.subr.bf16.mxu0 %v19915_v58  ;;  %7273 = vmatpush1.bf16.msra.mxu1 %v23748_v49 }
 0x23d   : > { %7274 = vmatprep.subr.bf16.mxu1 %v23758_v44 }
 0x23f   : > { %4490 = vmatpush1.bf16.msra.mxu0 %v19913_v53  ;;  %v20051_v53 = vld [vmem:[%s28680_s4] ss:$8 sps:$4 sm:$0xff]  }
 0x240   : > { %4491 = vmatprep.subr.bf16.mxu0 %v19918_v8  ;;  %7275 = vmatpush1.bf16.msra.mxu1 %v23766_v6  ;;  %v6828_v8 = vpack.c.bf16 %v6804_v18, %v6801_v26  ;;  %v20069_v26 = vld [vmem:[%s28680_s4 + $0x30] ss:$8 sps:$4 sm:$0xff]   ;;  %v20083_v18 = vld [vmem:[%s28680_s4 + $0x54] ss:$8 sps:$4 sm:$0xff]  }
 0x241   : > { %7276 = vmatprep.subr.bf16.mxu1 %v23776_v54 }
 0x242   : > { %v18309_v4 = vpop.f32.mrb[68].mxu1 }
 0x243   : > { %4492 = vmatpush1.bf16.msra.mxu0 %v19916_v24  ;;  %v18310_v51 = vpop.f32.mrb[69].mxu1 }
 0x244   : > { %4493 = vmatprep.subr.bf16.mxu0 %v19921_v25  ;;  %v23786_v48 = vadd.f32 %v18310_v51, %v18309_v4  ;;  %v18312_v21 = vpop.f32.mrb[70].mxu1  ;;  %7277 = vmatpush1.bf16.msra.mxu1 %v23784_v38  ;;  %v19928_v4 = vld [vmem:[%s28678_s2 + $0xd98] ss:$12 sps:$4 sm:$0xff]  }
 0x245   : > { %v18313_v57 = vpop.f32.mrb[71].mxu1  ;;  %7278 = vmatprep.subr.bf16.mxu1 %v23795_v60  ;;  %v20065_v51 = vld [vmem:[%s28680_s4 + $0x24] ss:$8 sps:$4 sm:$0xff]  }
 0x246   : > { %v23790_v27 = vadd.f32 %v18313_v57, %v18312_v21  ;;  %v19931_v21 = vld [vmem:[%s28678_s2 + $0xdb0] ss:$12 sps:$4 sm:$0xff]   ;;  %v19936_v57 = vld [vmem:[%s28678_s2 + $0xdcc] ss:$12 sps:$4 sm:$0xff]  }
 0x247   : > { %4494 = vmatpush1.bf16.msra.mxu0 %v19919_v19  ;;  %v20059_v19 = vld [vmem:[%s28680_s4 + $0x14] ss:$8 sps:$4 sm:$0xff]  }
 0x248   : > { %4495 = vmatprep.subr.bf16.mxu0 %v19924_v20  ;;  %7279 = vmatpush1.bf16.msra.mxu1 %v23806_v2  ;;  %v19933_v20 = vld [vmem:[%s28678_s2 + $0xdb4] ss:$12 sps:$4 sm:$0xff]  }
 0x249   : > { %7363 = vmatprep.subr.bf16.mxu1 %v20053_v22  ;;  %v19939_v22 = vld [vmem:[%s28678_s2 + $0xde4] ss:$12 sps:$4 sm:$0xff]  }
 0x24a   : > { %v18315_v52 = vpop.f32.mrb[72].mxu1 }
 0x24b   : > { %4496 = vmatpush1.bf16.msra.mxu0 %v19922_v45  ;;  %v18316_v30 = vpop.f32.mrb[73].mxu1  ;;  %7297 = vmatmul.mubr.bf16.vlgmr.msra.gmra.mrb[100].mxu1 %v6828_v8  ;;  %v20063_v45 = vld [vmem:[%s28680_s4 + $0x20] ss:$8 sps:$4 sm:$0xff]  }
 0x24c   : > { %6237 = vmatprep.subr.bf16.mxu0 %v19927_v36  ;;  %v23821_v31 = vadd.f32 %v18316_v30, %v18315_v52  ;;  %v18318_v58 = vpop.f32.mrb[74].mxu1  ;;  %7364 = vmatpush1.bf16.msra.mxu1 %v20051_v53  ;;  %v20071_v36 = vld [vmem:[%s28680_s4 + $0x34] ss:$8 sps:$4 sm:$0xff]   ;;  %v20075_v30 = vld [vmem:[%s28680_s4 + $0x40] ss:$8 sps:$4 sm:$0xff]  }
 0x24d   : > { %v18319_v24 = vpop.f32.mrb[75].mxu1  ;;  %7365 = vmatprep.subr.bf16.mxu1 %v20059_v19  ;;  %7306 = vmatprep.mubr.bf16.mxu1 %v28726_v3  ;;  %v19934_v52 = vld [vmem:[%s28678_s2 + $0xdc8] ss:$12 sps:$4 sm:$0xff]   ;;  %v20081_v53 = vld [vmem:[%s28680_s4 + $0x50] ss:$8 sps:$4 sm:$0xff]  }
 0x24e   : > { %4514 = vmatmul.mubr.bf16.vlgmr.msra.gmra.mrb[0].mxu0 %v22664_v61  ;;  %v23827_v25 = vadd.f32 %v18319_v24, %v18318_v58  ;;  %v20057_v61 = vld [vmem:[%s28680_s4 + $0x10] ss:$8 sps:$4 sm:$0xff]   ;;  %v19945_v58 = vld [vmem:[%s28678_s2 + $0xe14] ss:$12 sps:$4 sm:$0xff]   ;;  %v20089_v24 = vld [vmem:[%s28680_s4 + $0x64] ss:$8 sps:$4 sm:$0xff]  }
 0x24f   : > { %6238 = vmatpush1.bf16.msra.mxu0 %v19925_v59  ;;  %4523 = vmatprep.mubr.bf16.mxu0 %v28726_v3  ;;  %v19937_v59 = vld [vmem:[%s28678_s2 + $0xde0] ss:$12 sps:$4 sm:$0xff]   ;;  %v19943_v19 = vld [vmem:[%s28678_s2 + $0xe10] ss:$12 sps:$4 sm:$0xff]  }
 0x250   : > { %6239 = vmatprep.subr.bf16.mxu0 %v19930_v32  ;;  %7366 = vmatpush1.bf16.msra.mxu1 %v20057_v61  ;;  %v19940_v32 = vld [vmem:[%s28678_s2 + $0xdf8] ss:$12 sps:$4 sm:$0xff]  }
 0x251   : > { %7367 = vmatprep.subr.bf16.mxu1 %v20065_v51 }
 0x253   : > { %6240 = vmatpush1.bf16.msra.mxu0 %v19928_v4  ;;  %v19948_v4 = vld [vmem:[%s28678_s2 + $0xe2c] ss:$12 sps:$4 sm:$0xff]  }
 0x254   : > { %6241 = vmatprep.subr.bf16.mxu0 %v19933_v20  ;;  %7368 = vmatpush1.bf16.msra.mxu1 %v20063_v45 }
 0x255   : > { %7369 = vmatprep.subr.bf16.mxu1 %v20071_v36 }
 0x256   : > { %4524 = vmatmul.mubr.bf16.gmra.mrb[4].mxu0 %v22729_v42  ;;  %v20077_v42 = vld [vmem:[%s28680_s4 + $0x44] ss:$8 sps:$4 sm:$0xff]  }
 0x257   : > { %6242 = vmatpush1.bf16.msra.mxu0 %v19931_v21  ;;  %6269 = vmatprep.mubr.bf16.mxu0 %v22745_v34  ;;  %v19942_v34 = vld [vmem:[%s28678_s2 + $0xdfc] ss:$12 sps:$4 sm:$0xff]  }
 0x258   : > { %6243 = vmatprep.subr.bf16.mxu0 %v19936_v57  ;;  %7370 = vmatpush1.bf16.msra.mxu1 %v20069_v26  ;;  %v20087_v21 = vld [vmem:[%s28680_s4 + $0x60] ss:$8 sps:$4 sm:$0xff]   ;;  %v19951_v26 = vld [vmem:[%s28678_s2 + $0xe44] ss:$12 sps:$4 sm:$0xff]  }
 0x259   : > { %7371 = vmatprep.subr.bf16.mxu1 %v20077_v42  ;;  %v20093_v42 = vld [vmem:[%s28680_s4 + $0x70] ss:$8 sps:$4 sm:$0xff]  }
 0x25b   : > { %6244 = vmatpush1.bf16.msra.mxu0 %v19934_v52  ;;  %v20095_v52 = vld [vmem:[%s28680_s4 + $0x74] ss:$8 sps:$4 sm:$0xff]  }
 0x25c   : > { %6245 = vmatprep.subr.bf16.mxu0 %v19939_v22  ;;  %7372 = vmatpush1.bf16.msra.mxu1 %v20075_v30  ;;  %v19946_v22 = vld [vmem:[%s28678_s2 + $0xe28] ss:$12 sps:$4 sm:$0xff]  }
 0x25d   : > { %7373 = vmatprep.subr.bf16.mxu1 %v20083_v18 }
 0x25f   : > { %6246 = vmatpush1.bf16.msra.mxu0 %v19937_v59  ;;  %v6807_v59 = vld [vmem:[%s21465_s26 + $0x70] sm:$0xff] }
 0x260   : > { %6247 = vmatprep.subr.bf16.mxu0 %v19942_v34  ;;  %7374 = vmatpush1.bf16.msra.mxu1 %v20081_v53  ;;  %v6810_v34 = vld [vmem:[%s21465_s26 + $0xa0] sm:$0xff] }
 0x261   : > { %7375 = vmatprep.subr.bf16.mxu1 %v20089_v24  ;;  %v6831_v18 = vpack.c.bf16 %v6810_v34, %v6807_v59  ;;  %v19955_v59 = vld [vmem:[%s28678_s2 + $0xe70] ss:$12 sps:$4 sm:$0xff]   ;;  %v20111_v34 = vld [vmem:[%s28680_s4 + $0xa0] ss:$8 sps:$4 sm:$0xff]  }
 0x262   : > { %v18337_v8 = vpop.f32.mrb[76].mxu1 }
 0x263   : > { %6248 = vmatpush1.bf16.msra.mxu0 %v19940_v32  ;;  %v18338_v20 = vpop.f32.mrb[77].mxu1  ;;  %v20101_v32 = vld [vmem:[%s28680_s4 + $0x84] ss:$8 sps:$4 sm:$0xff]   ;;  %7307 = vmatmul.mubr.bf16.gmra.mrb[104].mxu1 %v6831_v18  ;;  %v19958_v18 = vld [vmem:[%s28678_s2 + $0xe88] ss:$12 sps:$4 sm:$0xff]  }
 0x264   : > { %6249 = vmatprep.subr.bf16.mxu0 %v19945_v58  ;;  %v18339_v61 = vadd.f32 %v18338_v20, %v18337_v8  ;;  %v18340_v51 = vpop.f32.mrb[78].mxu1  ;;  %7376 = vmatpush1.bf16.msra.mxu1 %v20087_v21  ;;  %v19949_v58 = vld [vmem:[%s28678_s2 + $0xe40] ss:$12 sps:$4 sm:$0xff]   ;;  %v19952_v21 = vld [vmem:[%s28678_s2 + $0xe58] ss:$12 sps:$4 sm:$0xff]  }
 0x265   : > { %v18341_v57 = vpop.f32.mrb[79].mxu1  ;;  %7377 = vmatprep.subr.bf16.mxu1 %v20095_v52  ;;  %7316 = vmatprep.mubr.bf16.mxu1 %v28726_v3  ;;  %v6813_v52 = vld [vmem:[%s21465_s26 + $0xd0] sm:$0xff] }
 0x266   : > { %v23906_v45 = vadd.f32 %v18339_v61, %v23786_v48  ;;  %v18342_v36 = vadd.f32 %v18341_v57, %v18340_v51  ;;  %v20107_v51 = vld [vmem:[%s28680_s4 + $0x94] ss:$8 sps:$4 sm:$0xff]  }
 0x267   : > { %6250 = vmatpush1.bf16.msra.mxu0 %v19943_v19  ;;  %v20099_v19 = vld [vmem:[%s28680_s4 + $0x80] ss:$8 sps:$4 sm:$0xff]  }
 0x268   : > { %6251 = vmatprep.subr.bf16.mxu0 %v19948_v4  ;;  %v23921_v48 = vadd.f32 %v18342_v36, %v23790_v27  ;;  %v19954_v27 = vld [vmem:[%s28678_s2 + $0xe5c] ss:$12 sps:$4 sm:$0xff]   ;;  %7378 = vmatpush1.bf16.msra.mxu1 %v20093_v42  ;;  %v19957_v57 = vld [vmem:[%s28678_s2 + $0xe74] ss:$12 sps:$4 sm:$0xff]   ;;  %v20113_v42 = vld [vmem:[%s28680_s4 + $0xa4] ss:$8 sps:$4 sm:$0xff]  }
 0x269   : > { %7379 = vmatprep.subr.bf16.mxu1 %v20101_v32  ;;  %v19963_v32 = vld [vmem:[%s28678_s2 + $0xea4] ss:$12 sps:$4 sm:$0xff]  }
 0x26a   : > { %v18343_v30 = vpop.f32.mrb[80].mxu1 }
 0x26b   : > { %6252 = vmatpush1.bf16.msra.mxu0 %v19946_v22  ;;  %v18344_v53 = vpop.f32.mrb[81].mxu1  ;;  %v6816_v22 = vld [vmem:[%s21465_s26 + $0x100] sm:$0xff] }
 0x26c   : > { %6253 = vmatprep.subr.bf16.mxu0 %v19951_v26  ;;  %v18345_v8 = vadd.f32 %v18344_v53, %v18343_v30  ;;  %v18346_v24 = vpop.f32.mrb[82].mxu1  ;;  %7380 = vmatpush1.bf16.msra.mxu1 %v20099_v19  ;;  %v6834_v26 = vpack.c.bf16 %v6816_v22, %v6813_v52  ;;  %v20119_v30 = vld [vmem:[%s28680_s4 + $0xb4] ss:$8 sps:$4 sm:$0xff]   ;;  %v6822_v53 = vld [vmem:[%s21465_s26 + $0x160] sm:$0xff] }
 0x26d   : > { %v18347_v4 = vpop.f32.mrb[83].mxu1  ;;  %7381 = vmatprep.subr.bf16.mxu1 %v20107_v51  ;;  %v19961_v19 = vld [vmem:[%s28678_s2 + $0xea0] ss:$12 sps:$4 sm:$0xff]   ;;  %v20131_v51 = vld [vmem:[%s28680_s4 + $0xd4] ss:$8 sps:$4 sm:$0xff]  }
 0x26e   : > { %v23938_v20 = vadd.f32 %v18345_v8, %v23821_v31  ;;  %v18348_v61 = vadd.f32 %v18347_v4, %v18346_v24  ;;  %v20105_v31 = vld [vmem:[%s28680_s4 + $0x90] ss:$8 sps:$4 sm:$0xff]   ;;  %7317 = vmatmul.mubr.bf16.gmra.mrb[108].mxu1 %v6834_v26  ;;  %v20125_v24 = vld [vmem:[%s28680_s4 + $0xc4] ss:$8 sps:$4 sm:$0xff]   ;;  %v19966_v4 = vld [vmem:[%s28678_s2 + $0xebc] ss:$12 sps:$4 sm:$0xff]  }
 0x26f   : > { %6254 = vmatpush1.bf16.msra.mxu0 %v19949_v58  ;;  %7326 = vmatprep.mubr.bf16.mxu1 %v28726_v3  ;;  %v20117_v58 = vld [vmem:[%s28680_s4 + $0xb0] ss:$8 sps:$4 sm:$0xff]  }
 0x270   : > { %6255 = vmatprep.subr.bf16.mxu0 %v19954_v27  ;;  %v23954_v36 = vadd.f32 %v18348_v61, %v23827_v25  ;;  %v19960_v25 = vld [vmem:[%s28678_s2 + $0xe8c] ss:$12 sps:$4 sm:$0xff]   ;;  %7382 = vmatpush1.bf16.msra.mxu1 %v20105_v31  ;;  %v6819_v27 = vld [vmem:[%s21465_s26 + $0x130] sm:$0xff]  ;;  %v20123_v61 = vld [vmem:[%s28680_s4 + $0xc0] ss:$8 sps:$4 sm:$0xff]  }
 0x271   : > { %7383 = vmatprep.subr.bf16.mxu1 %v20113_v42  ;;  %v6837_v8 = vpack.c.bf16 %v6822_v53, %v6819_v27  ;;  %v20129_v31 = vld [vmem:[%s28680_s4 + $0xd0] ss:$8 sps:$4 sm:$0xff]   ;;  %v20137_v42 = vld [vmem:[%s28680_s4 + $0xe4] ss:$8 sps:$4 sm:$0xff]  }
 0x272   : > { %v6825_v52 = vld [vmem:[%s21465_s26 + $0x190] sm:$0xff] }
 0x273   : > { %6256 = vmatpush1.bf16.msra.mxu0 %v19952_v21  ;;  %v19964_v21 = vld [vmem:[%s28678_s2 + $0xeb8] ss:$12 sps:$4 sm:$0xff]   ;;  %v6840_v26 = vpack.c.bf16 %v6825_v52, %v6825_v52 }
 0x274   : > { %6257 = vmatprep.subr.bf16.mxu0 %v19957_v57  ;;  %7384 = vmatpush1.bf16.msra.mxu1 %v20111_v34  ;;  %v19969_v57 = vld [vmem:[%s28678_s2 + $0xed4] ss:$12 sps:$4 sm:$0xff]  }
 0x275   : > { %7385 = vmatprep.subr.bf16.mxu1 %v20119_v30 }
 0x276   : > { %7327 = vmatmul.mubr.bf16.gmra.mrb[112].mxu1 %v6837_v8  ;;  %v20143_v8 = vld [vmem:[%s28680_s4 + $0xf4] ss:$8 sps:$4 sm:$0xff]  }
 0x277   : > { %6258 = vmatpush1.bf16.msra.mxu0 %v19955_v59  ;;  %7336 = vmatprep.mubr.bf16.mxu1 %v28726_v3  ;;  %v19967_v59 = vld [vmem:[%s28678_s2 + $0xed0] ss:$12 sps:$4 sm:$0xff]  }
 0x278   : > { %6259 = vmatprep.subr.bf16.mxu0 %v19960_v25  ;;  %7386 = vmatpush1.bf16.msra.mxu1 %v20117_v58  ;;  %v19972_v25 = vld [vmem:[%s28678_s2 + $0xeec] ss:$12 sps:$4 sm:$0xff]  }
 0x279   : > { %7387 = vmatprep.subr.bf16.mxu1 %v20125_v24  ;;  %v19970_v24 = vld [vmem:[%s28678_s2 + $0xee8] ss:$12 sps:$4 sm:$0xff]  }
 0x27b   : > { %6260 = vmatpush1.bf16.msra.mxu0 %v19958_v18 }
 0x27c   : > { %6261 = vmatprep.subr.bf16.mxu0 %v19963_v32  ;;  %7388 = vmatpush1.bf16.msra.mxu1 %v20123_v61  ;;  %v20135_v32 = vld [vmem:[%s28680_s4 + $0xe0] ss:$8 sps:$4 sm:$0xff]  }
 0x27d   : > { %7389 = vmatprep.subr.bf16.mxu1 %v20131_v51  ;;  %v6842_v61 = vld [vmem:[%s21476_s16 + $0x8] sm:$0xff]  ;;  %v6845_v51 = vld [vmem:[%s21476_s16 + $0x38] sm:$0xff] }
 0x27e   : > { %7337 = vmatmul.mubr.bf16.gmra.mrb[116].mxu1 %v6840_v26  ;;  %v19978_v26 = vld [vmem:[%s28678_s2 + $0xf1c] ss:$12 sps:$4 sm:$0xff]  }
 0x27f   : > { %6262 = vmatpush1.bf16.msra.mxu0 %v19961_v19  ;;  %v19975_v19 = vld [vmem:[%s28678_s2 + $0xf04] ss:$12 sps:$4 sm:$0xff]  }
 0x280   : > { %6263 = vmatprep.subr.bf16.mxu0 %v19966_v4  ;;  %7390 = vmatpush1.bf16.msra.mxu1 %v20129_v31  ;;  %v20141_v4 = vld [vmem:[%s28680_s4 + $0xf0] ss:$8 sps:$4 sm:$0xff]  }
 0x281   : > { %7391 = vmatprep.subr.bf16.mxu1 %v20137_v42  ;;  %v6844_v31 = vld [vmem:[%s21476_s16 + $0x30] sm:$0xff] }
 0x282   : > { %v18365_v22 = vpop.f32.mrb[84].mxu1 }
 0x283   : > { %6264 = vmatpush1.bf16.msra.mxu0 %v19964_v21  ;;  %v18366_v34 = vpop.f32.mrb[85].mxu1  ;;  %v6869_v21 = vpack.c.bf16 %v6845_v51, %v6842_v61  ;;  %v6857_v61 = vld [vmem:[%s21476_s16 + $0xf8] sm:$0xff]  ;;  %v6853_v51 = vld [vmem:[%s21476_s16 + $0xc0] sm:$0xff] }
 0x284   : > { %6265 = vmatprep.subr.bf16.mxu0 %v19969_v57  ;;  %v18367_v30 = vadd.f32 %v18366_v34, %v18365_v22  ;;  %v18368_v18 = vpop.f32.mrb[86].mxu1  ;;  %7392 = vmatpush1.bf16.msra.mxu1 %v20135_v32  ;;  %v6841_v57 = vld [vmem:[%s21476_s16] sm:$0xff] }
 0x285   : > { %v18369_v58 = vpop.f32.mrb[87].mxu1  ;;  %7393 = vmatprep.subr.bf16.mxu1 %v20143_v8  ;;  %v19973_v22 = vld [vmem:[%s28678_s2 + $0xf00] ss:$12 sps:$4 sm:$0xff]   ;;  %7395 = vmatprep.mubr.bf16.mxu1 %v6869_v21  ;;  %v19976_v32 = vld [vmem:[%s28678_s2 + $0xf18] ss:$12 sps:$4 sm:$0xff]  }
 0x286   : > { %v24024_v27 = vadd.f32 %v18367_v30, %v23906_v45  ;;  %v18370_v53 = vadd.f32 %v18369_v58, %v18368_v18  ;;  %v19981_v58 = vld [vmem:[%s28678_s2 + $0xf34] ss:$12 sps:$4 sm:$0xff]  }
 0x287   : > { %6266 = vmatpush1.bf16.msra.mxu0 %v19967_v59  ;;  %v6847_v8 = vld [vmem:[%s21476_s16 + $0x60] sm:$0xff] }
 0x288   : > { %6267 = vmatprep.subr.bf16.mxu0 %v19972_v25  ;;  %v24039_v45 = vadd.f32 %v18370_v53, %v23921_v48  ;;  %7394 = vmatpush1.bf16.msra.mxu1 %v20141_v4  ;;  %v6868_v25 = vpack.c.bf16 %v6844_v31, %v6841_v57  ;;  %v6854_v4 = vld [vmem:[%s21476_s16 + $0xc8] sm:$0xff]  ;;  %v6863_v31 = vld [vmem:[%s21476_s16 + $0x158] sm:$0xff] }
 0x289   : > { %7444 = vmatprep.subr.bf16.mxu1 %v23667_v28  ;;  %v6860_v57 = vld [vmem:[%s21476_s16 + $0x128] sm:$0xff] }
 0x28a   : > { %v18371_v52 = vpop.f32.mrb[88].mxu1 }
 0x28b   : > { %6268 = vmatpush1.bf16.msra.mxu0 %v19970_v24  ;;  %v18372_v42 = vpop.f32.mrb[89].mxu1  ;;  %7396 = vmatmul.mubr.bf16.vlgmr.msra.gmra.mrb[120].mxu1 %v6868_v25  ;;  %v6850_v24 = vld [vmem:[%s21476_s16 + $0x90] sm:$0xff] }
 0x28c   : > { %6290 = vmatprep.subr.bf16.mxu0 %v19975_v19  ;;  %v18373_v48 = vadd.f32 %v18372_v42, %v18371_v52  ;;  %v18374_v59 = vpop.f32.mrb[90].mxu1  ;;  %7445 = vmatpush1.bf16.msra.mxu1 %v23672_v47  ;;  %v6871_v19 = vpack.c.bf16 %v6850_v24, %v6847_v8  ;;  %v19982_v47 = vld [vmem:[%s28678_s2 + $0xf48] ss:$12 sps:$4 sm:$0xff]   ;;  %v6878_v52 = vpack.c.bf16 %v6863_v31, %v6860_v57  ;;  %v19991_v42 = vld [vmem:[%s28678_s2 + $0xf90] ss:$12 sps:$4 sm:$0xff]  }
 0x28d   : > { %v18375_v34 = vpop.f32.mrb[91].mxu1  ;;  %7446 = vmatprep.subr.bf16.mxu1 %v23683_v9  ;;  %v19987_v9 = vld [vmem:[%s28678_s2 + $0xf64] ss:$12 sps:$4 sm:$0xff]   ;;  %v20026_v57 = vld [vmem:[%s28678_s2 + $0x103c] ss:$12 sps:$4 sm:$0xff]  }
 0x28e   : > { %6270 = vmatmul.mubr.bf16.vlgmr.msra.gmra.mrb[0].mxu0 %v22900_v5  ;;  %v24054_v30 = vadd.f32 %v18373_v48, %v23938_v20  ;;  %v18376_v18 = vadd.f32 %v18375_v34, %v18374_v59  ;;  %v6848_v5 = vld [vmem:[%s21476_s16 + $0x68] sm:$0xff]  ;;  %v6851_v20 = vld [vmem:[%s21476_s16 + $0x98] sm:$0xff]  ;;  %v842_v31 = vld [vmem:[%s28679_s3] sm:$0x7] }
 0x28f   : > { %6291 = vmatpush1.bf16.msra.mxu0 %v19973_v22  ;;  %6279 = vmatprep.mubr.bf16.mxu0 %v22918_v62  ;;  %v6872_v53 = vpack.c.bf16 %v6851_v20, %v6848_v5  ;;  %v19979_v62 = vld [vmem:[%s28678_s2 + $0xf30] ss:$12 sps:$4 sm:$0xff]   ;;  %v6859_v22 = vld [vmem:[%s21476_s16 + $0x120] sm:$0xff]  ;;  %v19996_v48 = vld [vmem:[%s28678_s2 + $0xfac] ss:$12 sps:$4 sm:$0xff]  }
 0x290   : > { %6292 = vmatprep.subr.bf16.mxu0 %v19978_v26  ;;  %v24064_v28 = vadd.f32 %v18376_v18, %v23954_v36  ;;  %v19984_v36 = vld [vmem:[%s28678_s2 + $0xf4c] ss:$12 sps:$4 sm:$0xff]   ;;  %7447 = vmatpush1.bf16.msra.mxu1 %v23689_v16  ;;  %v6875_v16 = vpack.c.bf16 %v6857_v61, %v6854_v4  ;;  %v6862_v26 = vld [vmem:[%s21476_s16 + $0x150] sm:$0xff] }
 0x291   : > { %7405 = vmatprep.mubr.bf16.mxu1 %v6872_v53  ;;  %7448 = vmatprep.subr.bf16.mxu1 %v23699_v56  ;;  %v19985_v56 = vld [vmem:[%s28678_s2 + $0xf60] ss:$12 sps:$4 sm:$0xff]  }
 0x292   : > { %v6865_v53 = vld [vmem:[%s21476_s16 + $0x180] sm:$0xff] }
 0x293   : > { %6293 = vmatpush1.bf16.msra.mxu0 %v19976_v32  ;;  %7406 = vmatmul.mubr.bf16.gmra.mrb[124].mxu1 %v6871_v19  ;;  %v19994_v32 = vld [vmem:[%s28678_s2 + $0xfa8] ss:$12 sps:$4 sm:$0xff]  }
 0x294   : > { %6294 = vmatprep.subr.bf16.mxu0 %v19981_v58  ;;  %7449 = vmatpush1.bf16.msra.mxu1 %v23710_v33  ;;  %v19988_v33 = vld [vmem:[%s28678_s2 + $0xf78] ss:$12 sps:$4 sm:$0xff]  }
 0x295   : > { %7450 = vmatprep.subr.bf16.mxu1 %v23718_v13  ;;  %7415 = vmatprep.mubr.bf16.mxu1 %v6875_v16  ;;  %v19993_v13 = vld [vmem:[%s28678_s2 + $0xf94] ss:$12 sps:$4 sm:$0xff]   ;;  %v19999_v58 = vld [vmem:[%s28678_s2 + $0xfc4] ss:$12 sps:$4 sm:$0xff]  }
 0x296   : > { %6280 = vmatmul.mubr.bf16.gmra.mrb[4].mxu0 %v22950_v43  ;;  %v6856_v43 = vld [vmem:[%s21476_s16 + $0xf0] sm:$0xff] }
 0x297   : > { %6295 = vmatpush1.bf16.msra.mxu0 %v19979_v62  ;;  %6322 = vmatprep.mubr.bf16.mxu0 %v22961_v40  ;;  %v19990_v40 = vld [vmem:[%s28678_s2 + $0xf7c] ss:$12 sps:$4 sm:$0xff]   ;;  %v6874_v21 = vpack.c.bf16 %v6856_v43, %v6853_v51  ;;  %v6760_v43 = vlaneseq }
 0x298   : > { %6296 = vmatprep.subr.bf16.mxu0 %v19984_v36  ;;  %7451 = vmatpush1.bf16.msra.mxu1 %v23730_v0  ;;  %v20006_v51 = vld [vmem:[%s28678_s2 + $0xff0] ss:$12 sps:$4 sm:$0xff]  }
 0x299   : > { %7452 = vmatprep.subr.bf16.mxu1 %v23737_v46 }
 0x29b   : > { %6297 = vmatpush1.bf16.msra.mxu0 %v19982_v47  ;;  %7416 = vmatmul.mubr.bf16.gmra.mrb[128].mxu1 %v6874_v21  ;;  %v20000_v47 = vld [vmem:[%s28678_s2 + $0xfd8] ss:$12 sps:$4 sm:$0xff]   ;;  %v6849_v21 = vld [vmem:[%s21476_s16 + $0x70] sm:$0xff] }
 0x29c   : > { %6298 = vmatprep.subr.bf16.mxu0 %v19987_v9  ;;  %7453 = vmatpush1.bf16.msra.mxu1 %v23748_v49  ;;  %v6877_v49 = vpack.c.bf16 %v6862_v26, %v6859_v22  ;;  %v20008_v9 = vld [vmem:[%s28678_s2 + $0xff4] ss:$12 sps:$4 sm:$0xff]   ;;  %v20024_v26 = vld [vmem:[%s28678_s2 + $0x1038] ss:$12 sps:$4 sm:$0xff]  }
 0x29d   : > { %7454 = vmatprep.subr.bf16.mxu1 %v23758_v44  ;;  %7425 = vmatprep.mubr.bf16.mxu1 %v6878_v52 }
 0x29f   : > { %6299 = vmatpush1.bf16.msra.mxu0 %v19985_v56  ;;  %v20012_v56 = vld [vmem:[%s28678_s2 + $0x1008] ss:$12 sps:$4 sm:$0xff]  }
 0x2a0   : > { %6300 = vmatprep.subr.bf16.mxu0 %v19990_v40  ;;  %7455 = vmatpush1.bf16.msra.mxu1 %v23766_v6  ;;  %v6866_v6 = vld [vmem:[%s21476_s16 + $0x188] sm:$0xff]  ;;  %v24172_v40 = vshrl.u32 %v6760_v43, 7  ;;  %v20078_v43 = vld [vmem:[%s28678_s2 + $0x1110] ss:$12 sps:$4 sm:$0xff]  }
 0x2a1   : > { %7456 = vmatprep.subr.bf16.mxu1 %v23776_v54 }
 0x2a2   : > { %v18393_v0 = vpop.f32.mrb[92].mxu1  ;;  %28742 = vst [vmem:[#allocation6_spill] sm:$0xff] %v24172_v40  ;;  %v28700_v22 = vsub.s32 2, %v24172_v40 }
 0x2a3   : > { %v18394_v46 = vpop.f32.mrb[93].mxu1  ;;  %6301 = vmatpush1.bf16.msra.mxu0 %v19988_v33  ;;  %7426 = vmatmul.mubr.bf16.gmra.mrb[132].mxu1 %v6877_v49  ;;  %v6852_v33 = vld [vmem:[%s21476_s16 + $0xa0] sm:$0xff] }
 0x2a4   : > { %v18395_v59 = vadd.f32 %v18394_v46, %v18393_v0  ;;  %v18396_v25 = vpop.f32.mrb[94].mxu1  ;;  %6302 = vmatprep.subr.bf16.mxu0 %v19993_v13  ;;  %7457 = vmatpush1.bf16.msra.mxu1 %v23784_v38  ;;  %v20018_v13 = vld [vmem:[%s28678_s2 + $0x1020] ss:$12 sps:$4 sm:$0xff]   ;;  %v6873_v52 = vpack.c.bf16 %v6852_v33, %v6849_v21  ;;  %v6771_v46 = vrot.slane %v842_v31, %v28700_v22  ;;  %v20092_v21 = vld [vmem:[%s28678_s2 + $0x1144] ss:$12 sps:$4 sm:$0xff]  }
 0x2a5   : > { %v18397_v34 = vpop.f32.mrb[95].mxu1  ;;  %7458 = vmatprep.subr.bf16.mxu1 %v23795_v60  ;;  %v20032_v0 = vld [vmem:[%s28678_s2 + $0x1054] ss:$12 sps:$4 sm:$0xff]  }
 0x2a6   : > { %v6684_v44 = vadd.f32 %v18395_v59, %v24024_v27  ;;  %v18398_v18 = vadd.f32 %v18397_v34, %v18396_v25  ;;  %v6881_v27 = vpack.c.bf16 %v6866_v6, %v6866_v6  ;;  %v20030_v34 = vld [vmem:[%s28678_s2 + $0x1050] ss:$12 sps:$4 sm:$0xff]   ;;  %v20090_v33 = vld [vmem:[%s28678_s2 + $0x1140] ss:$12 sps:$4 sm:$0xff]  }
 0x2a7   : > { %6303 = vmatpush1.bf16.msra.mxu0 %v19991_v42  ;;  %v6855_v42 = vld [vmem:[%s21476_s16 + $0xd0] sm:$0xff] }
 0x2a8   : > { %v6687_v5 = vadd.f32 %v18398_v18, %v24039_v45  ;;  %6304 = vmatprep.subr.bf16.mxu0 %v19996_v48  ;;  %v24131_v20 = vadd.f32 %v23596_v11, %v6684_v44  ;;  %v19997_v45 = vld [vmem:[%s28678_s2 + $0xfc0] ss:$12 sps:$4 sm:$0xff]   ;;  %v20002_v11 = vld [vmem:[%s28678_s2 + $0xfdc] ss:$12 sps:$4 sm:$0xff]   ;;  %7435 = vmatprep.mubr.bf16.mxu1 %v6881_v27 }
 0x2a9   : > { %7459 = vmatpush1.bf16.msra.mxu1 %v23806_v2  ;;  %v6843_v2 = vld [vmem:[%s21476_s16 + $0x10] sm:$0xff]  ;;  %v6858_v48 = vld [vmem:[%s21476_s16 + $0x100] sm:$0xff]  ;;  %v20038_v44 = vld [vmem:[%s28678_s2 + $0x106c] ss:$12 sps:$4 sm:$0xff]  }
 0x2aa   : > { %v18399_v54 = vpop.f32.mrb[96].mxu1  ;;  %v24137_v8 = vadd.f32 %v23604_v7, %v6687_v5  ;;  %v6880_v7 = vpack.c.bf16 %v6865_v53, %v6865_v53  ;;  %v20104_v31 = vld [vmem:[%s28678_s2 + $0x1174] ss:$12 sps:$4 sm:$0xff]  }
 0x2ab   : > { %v18400_v24 = vpop.f32.mrb[97].mxu1  ;;  %6305 = vmatpush1.bf16.msra.mxu0 %v19994_v32 }
 0x2ac   : > { %v18401_v62 = vadd.f32 %v18400_v24, %v18399_v54  ;;  %v18402_v38 = vpop.f32.mrb[98].mxu1  ;;  %6306 = vmatprep.subr.bf16.mxu0 %v19999_v58  ;;  %7436 = vmatmul.mubr.bf16.gmra.mrb[136].mxu1 %v6880_v7  ;;  %v6876_v58 = vpack.c.bf16 %v6858_v48, %v6855_v42  ;;  %v20114_v42 = vld [vmem:[%s28678_s2 + $0x11a0] ss:$12 sps:$4 sm:$0xff]   ;;  %v20122_v48 = vld [vmem:[%s28678_s2 + $0x11bc] ss:$12 sps:$4 sm:$0xff]  }
 0x2ad   : > { %v18403_v36 = vpop.f32.mrb[99].mxu1  ;;  %7476 = vmatprep.mubr.bf16.mxu1 %v28726_v3 }
 0x2ae   : > { %v6692_v60 = vadd.f32 %v18401_v62, %v24054_v30  ;;  %v18404_v19 = vadd.f32 %v18403_v36, %v18402_v38  ;;  %v6846_v30 = vld [vmem:[%s21476_s16 + $0x40] sm:$0xff] }
 0x2af   : > { %6307 = vmatpush1.bf16.msra.mxu0 %v19997_v45  ;;  %v6864_v36 = vld [vmem:[%s21476_s16 + $0x160] sm:$0xff] }
 0x2b0   : > { %v6695_v4 = vadd.f32 %v18404_v19, %v24064_v28  ;;  %6308 = vmatprep.subr.bf16.mxu0 %v20002_v11  ;;  %v18731_v61 = vadd.f32 %v23612_v14, %v6692_v60  ;;  %v20014_v28 = vld [vmem:[%s28678_s2 + $0x100c] ss:$12 sps:$4 sm:$0xff]   ;;  %v6870_v14 = vpack.c.bf16 %v6846_v30, %v6843_v2  ;;  %v20044_v11 = vld [vmem:[%s28678_s2 + $0x1084] ss:$12 sps:$4 sm:$0xff]  }
 0x2b1   : > { %v20042_v19 = vld [vmem:[%s28678_s2 + $0x1080] ss:$12 sps:$4 sm:$0xff]   ;;  %v6867_v2 = vld [vmem:[%s21476_s16 + $0x190] sm:$0xff] }
 0x2b2   : > { %v18743_v16 = vadd.f32 %v23620_v41, %v6695_v4  ;;  %v20020_v41 = vld [vmem:[%s28678_s2 + $0x1024] ss:$12 sps:$4 sm:$0xff]   ;;  %v20062_v30 = vld [vmem:[%s28678_s2 + $0x10cc] ss:$12 sps:$4 sm:$0xff]  }
 0x2b3   : > { %6309 = vmatpush1.bf16.msra.mxu0 %v20000_v47  ;;  %v20050_v47 = vld [vmem:[%s28678_s2 + $0x109c] ss:$12 sps:$4 sm:$0xff]   ;;  %v20048_v4 = vld [vmem:[%s28678_s2 + $0x1098] ss:$12 sps:$4 sm:$0xff]  }
 0x2b4   : > { %6310 = vmatprep.subr.bf16.mxu0 %v20008_v9  ;;  %7477 = vmatmul.mubr.bf16.vlgmr.msra.gmra.mrb[120].mxu1 %v6870_v14  ;;  %v20072_v14 = vld [vmem:[%s28678_s2 + $0x10f8] ss:$12 sps:$4 sm:$0xff]  }
 0x2b5   : > { %7486 = vmatprep.mubr.bf16.mxu1 %v28726_v3 }
 0x2b7   : > { %6311 = vmatpush1.bf16.msra.mxu0 %v20006_v51  ;;  %v20068_v51 = vld [vmem:[%s28678_s2 + $0x10e4] ss:$12 sps:$4 sm:$0xff]  }
 0x2b8   : > { %6312 = vmatprep.subr.bf16.mxu0 %v20014_v28  ;;  %v20066_v28 = vld [vmem:[%s28678_s2 + $0x10e0] ss:$12 sps:$4 sm:$0xff]  }
 0x2bb   : > { %6313 = vmatpush1.bf16.msra.mxu0 %v20012_v56  ;;  %v20086_v56 = vld [vmem:[%s28678_s2 + $0x112c] ss:$12 sps:$4 sm:$0xff]  }
 0x2bc   : > { %6314 = vmatprep.subr.bf16.mxu0 %v20020_v41  ;;  %7487 = vmatmul.mubr.bf16.gmra.mrb[124].mxu1 %v6873_v52  ;;  %v20084_v41 = vld [vmem:[%s28678_s2 + $0x1128] ss:$12 sps:$4 sm:$0xff]   ;;  %v20102_v52 = vld [vmem:[%s28678_s2 + $0x1170] ss:$12 sps:$4 sm:$0xff]  }
 0x2bd   : > { %7496 = vmatprep.mubr.bf16.mxu1 %v28726_v3 }
 0x2bf   : > { %6315 = vmatpush1.bf16.msra.mxu0 %v20018_v13  ;;  %v20098_v13 = vld [vmem:[%s28678_s2 + $0x115c] ss:$12 sps:$4 sm:$0xff]  }
 0x2c0   : > { %6316 = vmatprep.subr.bf16.mxu0 %v20026_v57  ;;  %v20096_v57 = vld [vmem:[%s28678_s2 + $0x1158] ss:$12 sps:$4 sm:$0xff]  }
 0x2c2   : > { %v18725_v59 = vpop.f32.mrb[32].mxu1 }
 0x2c3   : > { %v18732_v25 = vadd.f32 %v18731_v61, %v18725_v59  ;;  %v6732_v49 = vpop.f32.mrb[33].mxu1  ;;  %6317 = vmatpush1.bf16.msra.mxu0 %v20024_v26  ;;  %v20056_v61 = vld [vmem:[%s28678_s2 + $0x10b4] ss:$12 sps:$4 sm:$0xff]   ;;  %v20110_v26 = vld [vmem:[%s28678_s2 + $0x118c] ss:$12 sps:$4 sm:$0xff]  }
 0x2c4   : > { %v18738_v18 = vadd.f32 %v24131_v20, %v6732_v49  ;;  %v18726_v32 = vpop.f32.mrb[34].mxu1  ;;  %6318 = vmatprep.subr.bf16.mxu0 %v20032_v0  ;;  %v20036_v20 = vld [vmem:[%s28678_s2 + $0x1068] ss:$12 sps:$4 sm:$0xff]   ;;  %7497 = vmatmul.mubr.bf16.gmra.mrb[128].mxu1 %v6876_v58  ;;  %v20120_v59 = vld [vmem:[%s28678_s2 + $0x11b8] ss:$12 sps:$4 sm:$0xff]  }
 0x2c5   : > { %v6783_v5 = vadd.f32 %v18732_v25, %v6771_v46  ;;  %v18744_v6 = vadd.f32 %v18743_v16, %v18726_v32  ;;  %v6735_v27 = vpop.f32.mrb[35].mxu1  ;;  %7506 = vmatprep.mubr.bf16.mxu1 %v28726_v3  ;;  %v6882_v16 = vpack.c.bf16 %v6867_v2, %v6867_v2  ;;  %v20108_v0 = vld [vmem:[%s28678_s2 + $0x1188] ss:$12 sps:$4 sm:$0xff]   ;;  %v20126_v49 = vld [vmem:[%s28678_s2 + $0x11d0] ss:$12 sps:$4 sm:$0xff]  }
 0x2c6   : > { %v6777_v53 = vadd.f32 %v18738_v18, %v6771_v46  ;;  %v18750_v54 = vadd.f32 %v24137_v8, %v6735_v27  ;;  %v6861_v8 = vld [vmem:[%s21476_s16 + $0x130] sm:$0xff]  ;;  %v20138_v32 = vld [vmem:[%s28678_s2 + $0x1200] ss:$12 sps:$4 sm:$0xff]   ;;  %v20146_v58 = vld [vmem:[%s28678_s2 + $0x121c] ss:$12 sps:$4 sm:$0xff]  }
 0x2c7   : > { %v6795_v24 = vmax.f32 %v6783_v5, 0.0  ;;  %v6786_v45 = vadd.f32 %v18744_v6, %v6771_v46  ;;  %6319 = vmatpush1.bf16.msra.mxu0 %v20030_v34  ;;  %v6879_v9 = vpack.c.bf16 %v6864_v36, %v6861_v8  ;;  %v20128_v25 = vld [vmem:[%s28678_s2 + $0x11d4] ss:$12 sps:$4 sm:$0xff]   ;;  %v20134_v34 = vld [vmem:[%s28678_s2 + $0x11ec] ss:$12 sps:$4 sm:$0xff]  }
 0x2c8   : > { %v6789_v62 = vmax.f32 %v6777_v53, 0.0  ;;  %v6780_v38 = vadd.f32 %v18750_v54, %v6771_v46  ;;  %6320 = vmatprep.subr.bf16.mxu0 %v20038_v44  ;;  %v20116_v46 = vld [vmem:[%s28678_s2 + $0x11a4] ss:$12 sps:$4 sm:$0xff]   ;;  %v20132_v44 = vld [vmem:[%s28678_s2 + $0x11e8] ss:$12 sps:$4 sm:$0xff]  }
 0x2c9   : > { %16447 = vst [vmem:[%s22893_s24 + $0xb8] sm:$0xff] %v6795_v24  ;;  %v6798_v7 = vmax.f32 %v6786_v45, 0.0  ;;  %v20140_v18 = vld [vmem:[%s28678_s2 + $0x1204] ss:$12 sps:$4 sm:$0xff]   ;;  %v20149_v6 = vld [vmem:[%s28678_s2 + $0x1234] ss:$12 sps:$4 sm:$0xff]  }
 0x2ca   : > { %16429 = vst [vmem:[%s22893_s24 + $0x28] sm:$0xff] %v6789_v62  ;;  %v6792_v60 = vmax.f32 %v6780_v38, 0.0  ;;  %v20144_v5 = vld [vmem:[%s28678_s2 + $0x1218] ss:$12 sps:$4 sm:$0xff]   ;;  %v20147_v27 = vld [vmem:[%s28678_s2 + $0x1230] ss:$12 sps:$4 sm:$0xff]  }
 0x2cb   : > { %16456 = vst [vmem:[%s22893_s24 + $0x100] sm:$0xff] %v6798_v7  ;;  %6321 = vmatpush1.bf16.msra.mxu0 %v20036_v20  ;;  %v20152_v53 = vld [vmem:[%s28678_s2 + $0x124c] ss:$12 sps:$4 sm:$0xff]   ;;  %v20155_v54 = vld [vmem:[%s28678_s2 + $0x1264] ss:$12 sps:$4 sm:$0xff]  }
 0x2cc   : > { %16438 = vst [vmem:[%s22893_s24 + $0x70] sm:$0xff] %v6792_v60  ;;  %6343 = vmatprep.subr.bf16.mxu0 %v20044_v11  ;;  %7507 = vmatmul.mubr.bf16.gmra.mrb[132].mxu1 %v6879_v9  ;;  %v20158_v24 = vld [vmem:[%s28678_s2 + $0x127c] ss:$12 sps:$4 sm:$0xff]   ;;  %v20156_v45 = vld [vmem:[%s28678_s2 + $0x1278] ss:$12 sps:$4 sm:$0xff]  }
 0x2cd   : > { %7516 = vmatprep.mubr.bf16.mxu1 %v28726_v3  ;;  %v20164_v20 = vld [vmem:[%s28678_s2 + $0x12ac] ss:$12 sps:$4 sm:$0xff]   ;;  %v20162_v11 = vld [vmem:[%s28678_s2 + $0x12a8] ss:$12 sps:$4 sm:$0xff]   ;;  %v20167_v62 = vld [vmem:[%s28678_s2 + $0x12c4] ss:$12 sps:$4 sm:$0xff]  }
 0x2ce   : > { %6323 = vmatmul.mubr.bf16.vlgmr.msra.gmra.mrb[0].mxu0 %v23059_v39  ;;  %v20054_v39 = vld [vmem:[%s28678_s2 + $0x10b0] ss:$12 sps:$4 sm:$0xff]   ;;  %v20165_v38 = vld [vmem:[%s28678_s2 + $0x12c0] ss:$12 sps:$4 sm:$0xff]   ;;  %v20168_v8 = vld [vmem:[%s28678_s2 + $0x12d8] ss:$12 sps:$4 sm:$0xff]  }
 0x2cf   : > { %6344 = vmatpush1.bf16.msra.mxu0 %v20042_v19  ;;  %6332 = vmatprep.mubr.bf16.mxu0 %v23075_v17  ;;  %v20060_v17 = vld [vmem:[%s28678_s2 + $0x10c8] ss:$12 sps:$4 sm:$0xff]   ;;  %v20171_v60 = vld [vmem:[%s28678_s2 + $0x12f0] ss:$12 sps:$4 sm:$0xff]   ;;  %v20176_v19 = vld [vmem:[%s28678_s2 + $0x130c] ss:$12 sps:$4 sm:$0xff]  }
 0x2d0   : > { %6345 = vmatprep.subr.bf16.mxu0 %v20050_v47  ;;  %v20170_v7 = vld [vmem:[%s28678_s2 + $0x12dc] ss:$12 sps:$4 sm:$0xff]   ;;  %v20173_v36 = vld [vmem:[%s28678_s2 + $0x12f4] ss:$12 sps:$4 sm:$0xff]   ;;  %v20179_v9 = vld [vmem:[%s28678_s2 + $0x1324] ss:$12 sps:$4 sm:$0xff]  }
 0x2d1   : > { %v20174_v47 = vld [vmem:[%s28678_s2 + $0x1308] ss:$12 sps:$4 sm:$0xff]   ;;  %v20180_v2 = vld [vmem:[%s28678_s2 + $0x1338] ss:$12 sps:$4 sm:$0xff]  }
 0x2d3   : > { %6346 = vmatpush1.bf16.msra.mxu0 %v20048_v4  ;;  %v20177_v4 = vld [vmem:[%s28678_s2 + $0x1320] ss:$12 sps:$4 sm:$0xff]  }
 0x2d4   : > { %6347 = vmatprep.subr.bf16.mxu0 %v20056_v61  ;;  %7517 = vmatmul.mubr.bf16.gmra.mrb[136].mxu1 %v6882_v16  ;;  %v20182_v61 = vld [vmem:[%s28678_s2 + $0x133c] ss:$12 sps:$4 sm:$0xff]   ;;  %v20188_v16 = vld [vmem:[%s28678_s2 + $0x136c] ss:$12 sps:$4 sm:$0xff]  }
 0x2d6   : > { %6333 = vmatmul.mubr.bf16.gmra.mrb[4].mxu0 %v23106_v37  ;;  %v20074_v37 = vld [vmem:[%s28678_s2 + $0x10fc] ss:$12 sps:$4 sm:$0xff]  }
 0x2d7   : > { %6348 = vmatpush1.bf16.msra.mxu0 %v20054_v39  ;;  %6375 = vmatprep.mubr.bf16.mxu0 %v23119_v35  ;;  %v20080_v35 = vld [vmem:[%s28678_s2 + $0x1114] ss:$12 sps:$4 sm:$0xff]  }
 0x2d8   : > { %6349 = vmatprep.subr.bf16.mxu0 %v20062_v30  ;;  %v20185_v39 = vld [vmem:[%s28678_s2 + $0x1354] ss:$12 sps:$4 sm:$0xff]   ;;  %v20183_v30 = vld [vmem:[%s28678_s2 + $0x1350] ss:$12 sps:$4 sm:$0xff]  }
 0x2db   : > { %6350 = vmatpush1.bf16.msra.mxu0 %v20060_v17  ;;  %v20186_v17 = vld [vmem:[%s28678_s2 + $0x1368] ss:$12 sps:$4 sm:$0xff]  }
 0x2dc   : > { %6351 = vmatprep.subr.bf16.mxu0 %v20068_v51  ;;  %v20191_v51 = vld [vmem:[%s28678_s2 + $0x1384] ss:$12 sps:$4 sm:$0xff]  }
 0x2df   : > { %6352 = vmatpush1.bf16.msra.mxu0 %v20066_v28  ;;  %v20189_v28 = vld [vmem:[%s28678_s2 + $0x1380] ss:$12 sps:$4 sm:$0xff]  }
 0x2e0   : > { %6353 = vmatprep.subr.bf16.mxu0 %v20074_v37  ;;  %v24427_v37 = vld [vmem:[%s28678_s2 + $0x139c] ss:$12 sps:$4 sm:$0xff]  }
 0x2e3   : > { %6354 = vmatpush1.bf16.msra.mxu0 %v20072_v14 }
 0x2e4   : > { %6355 = vmatprep.subr.bf16.mxu0 %v20080_v35  ;;  %v24435_v35 = vld [vmem:[%s28682_s6 + $0x300] ss:$8 sps:$4 sm:$0xff]  }
 0x2e7   : > { %6356 = vmatpush1.bf16.msra.mxu0 %v20078_v43  ;;  %v24440_v43 = vld [vmem:[%s28682_s6 + $0x304] ss:$8 sps:$4 sm:$0xff]  }
 0x2e8   : > { %6357 = vmatprep.subr.bf16.mxu0 %v20086_v56  ;;  %v24445_v56 = vld [vmem:[%s28678_s2 + $0x1398] ss:$12 sps:$4 sm:$0xff]   ;;  %9052 = vmatprep.subr.bf16.mxu1 %v24440_v43  ;;  %v24728_v43 = vld [vmem:[%s28682_s6 + $0x3a0] ss:$8 sps:$4 sm:$0xff]  }
 0x2e9   : > { %9053 = vmatpush1.bf16.msra.mxu1 %v24435_v35 }
 0x2eb   : > { %6358 = vmatpush1.bf16.msra.mxu0 %v20084_v41  ;;  %v24453_v41 = vld [vmem:[%s28682_s6 + $0x314] ss:$8 sps:$4 sm:$0xff]  }
 0x2ec   : > { %6359 = vmatprep.subr.bf16.mxu0 %v20092_v21  ;;  %v21298_v21 = vmov 0.0   ;;  %9054 = vmatprep.subr.bf16.mxu1 %v24453_v41  ;;  %v24736_v41 = vld [vmem:[%s28682_s6 + $0x3b4] ss:$8 sps:$4 sm:$0xff]  }
 0x2ed   : > { %7591 = vst [vmem:[#allocation3 + $0x20] sm:$0xff] %v21298_v21  ;;  %7593 = vst [vmem:[#allocation3 + $0x30] sm:$0x1] %v21298_v21 }
 0x2ee   : > { %7543 = vst [vmem:[#allocation2] sm:$0xff] %v21298_v21  ;;  %7544 = vst [vmem:[#allocation2 + $0x8] sm:$0xff] %v21298_v21 }
 0x2ef   : > { %6360 = vmatpush1.bf16.msra.mxu0 %v20090_v33  ;;  %7545 = vst [vmem:[#allocation2 + $0x10] sm:$0x1] %v21298_v21  ;;  %7546 = vst [vmem:[#allocation2 + $0x18] sm:$0x1] %v21298_v21 }
 0x2f0   : > { %6361 = vmatprep.subr.bf16.mxu0 %v20098_v13  ;;  %7549 = vst [vmem:[#allocation2 + $0x30] sm:$0x1] %v21298_v21  ;;  %7550 = vst [vmem:[#allocation2 + $0x38] sm:$0x1] %v21298_v21 }
 0x2f1   : > { %7553 = vst [vmem:[#allocation2 + $0x50] sm:$0x1] %v21298_v21  ;;  %7554 = vst [vmem:[#allocation2 + $0x58] sm:$0x1] %v21298_v21 }
 0x2f2   : > { %7557 = vst [vmem:[#allocation2 + $0x70] sm:$0x1] %v21298_v21  ;;  %7558 = vst [vmem:[#allocation2 + $0x78] sm:$0x1] %v21298_v21 }
 0x2f3   : > { %6362 = vmatpush1.bf16.msra.mxu0 %v20096_v57  ;;  %7561 = vst [vmem:[#allocation2 + $0x90] sm:$0x1] %v21298_v21  ;;  %7562 = vst [vmem:[#allocation2 + $0x98] sm:$0x1] %v21298_v21  ;;  %v20216_v57 = vld [vmem:[%s28682_s6 + $0x310] ss:$8 sps:$4 sm:$0xff]  }
 0x2f4   : > { %6363 = vmatprep.subr.bf16.mxu0 %v20104_v31  ;;  %7565 = vst [vmem:[#allocation2 + $0xb0] sm:$0x1] %v21298_v21  ;;  %7566 = vst [vmem:[#allocation2 + $0xb8] sm:$0x1] %v21298_v21  ;;  %v20221_v31 = vld [vmem:[%s28682_s6 + $0x324] ss:$8 sps:$4 sm:$0xff]   ;;  %9055 = vmatpush1.bf16.msra.mxu1 %v20216_v57 }
 0x2f5   : > { %7569 = vst [vmem:[#allocation2 + $0xd0] sm:$0x1] %v21298_v21  ;;  %7570 = vst [vmem:[#allocation2 + $0xd8] sm:$0x1] %v21298_v21  ;;  %9056 = vmatprep.subr.bf16.mxu1 %v20221_v31  ;;  %v24747_v57 = vld [vmem:[%s28682_s6 + $0x3b0] ss:$8 sps:$4 sm:$0xff]  }
 0x2f6   : > { %7573 = vst [vmem:[#allocation2 + $0xf0] sm:$0x1] %v21298_v21  ;;  %7574 = vst [vmem:[#allocation2 + $0xf8] sm:$0x1] %v21298_v21  ;;  %v21251_v31 = vld [vmem:[%s28680_s4 + $0x34] ss:$8 sps:$4 sm:$0xff]  }
 0x2f7   : > { %6364 = vmatpush1.bf16.msra.mxu0 %v20102_v52  ;;  %7577 = vst [vmem:[#allocation2 + $0x110] sm:$0x1] %v21298_v21  ;;  %7578 = vst [vmem:[#allocation2 + $0x118] sm:$0x1] %v21298_v21 }
 0x2f8   : > { %6365 = vmatprep.subr.bf16.mxu0 %v20110_v26  ;;  %7581 = vst [vmem:[#allocation2 + $0x130] sm:$0x1] %v21298_v21  ;;  %7582 = vst [vmem:[#allocation2 + $0x138] sm:$0x1] %v21298_v21  ;;  %v20195_v26 = vld [vmem:[%s28678_s2 + $0x13b0] ss:$12 sps:$4 sm:$0xff]  }
 0x2f9   : > { %7583 = vst [vmem:[#allocation2 + $0x140] sm:$0xff] %v21298_v21  ;;  %7584 = vst [vmem:[#allocation2 + $0x148] sm:$0xff] %v21298_v21 }
 0x2fa   : > { %7585 = vst [vmem:[#allocation2 + $0x150] sm:$0x1] %v21298_v21  ;;  %7586 = vst [vmem:[#allocation2 + $0x158] sm:$0x1] %v21298_v21 }
 0x2fb   : > { %6366 = vmatpush1.bf16.msra.mxu0 %v20108_v0  ;;  %7587 = vst [vmem:[#allocation3] sm:$0xff] %v21298_v21  ;;  %7588 = vst [vmem:[#allocation3 + $0x8] sm:$0xff] %v21298_v21 }
 0x2fc   : > { %6367 = vmatprep.subr.bf16.mxu0 %v20116_v46  ;;  %7589 = vst [vmem:[#allocation3 + $0x10] sm:$0x1] %v21298_v21  ;;  %7590 = vst [vmem:[#allocation3 + $0x18] sm:$0x1] %v21298_v21  ;;  %v20200_v46 = vld [vmem:[%s28678_s2 + $0x13cc] ss:$12 sps:$4 sm:$0xff]  }
 0x2fd   : > { %7592 = vst [vmem:[#allocation3 + $0x28] sm:$0xff] %v21298_v21  ;;  %7594 = vst [vmem:[#allocation3 + $0x38] sm:$0x1] %v21298_v21 }
 0x2fe   : > { %7595 = vst [vmem:[#allocation3 + $0x40] sm:$0xff] %v21298_v21  ;;  %7596 = vst [vmem:[#allocation3 + $0x48] sm:$0xff] %v21298_v21 }
 0x2ff   : > { %6368 = vmatpush1.bf16.msra.mxu0 %v20114_v42  ;;  %7597 = vst [vmem:[#allocation3 + $0x50] sm:$0x1] %v21298_v21  ;;  %7598 = vst [vmem:[#allocation3 + $0x58] sm:$0x1] %v21298_v21 }
 0x300   : > { %6369 = vmatprep.subr.bf16.mxu0 %v20122_v48  ;;  %7599 = vst [vmem:[#allocation3 + $0x60] sm:$0xff] %v21298_v21  ;;  %7600 = vst [vmem:[#allocation3 + $0x68] sm:$0xff] %v21298_v21  ;;  %v20219_v48 = vld [vmem:[%s28682_s6 + $0x320] ss:$8 sps:$4 sm:$0xff]  }
 0x301   : > { %7601 = vst [vmem:[#allocation3 + $0x70] sm:$0x1] %v21298_v21  ;;  %7602 = vst [vmem:[#allocation3 + $0x78] sm:$0x1] %v21298_v21  ;;  %9057 = vmatpush1.bf16.msra.mxu1 %v20219_v48  ;;  %v21253_v48 = vld [vmem:[%s28680_s4 + $0x44] ss:$8 sps:$4 sm:$0xff]  }
 0x302   : > { %7603 = vst [vmem:[#allocation3 + $0x80] sm:$0xff] %v21298_v21  ;;  %7604 = vst [vmem:[#allocation3 + $0x88] sm:$0xff] %v21298_v21 }
 0x303   : > { %6370 = vmatpush1.bf16.msra.mxu0 %v20120_v59  ;;  %7605 = vst [vmem:[#allocation3 + $0x90] sm:$0x1] %v21298_v21  ;;  %7606 = vst [vmem:[#allocation3 + $0x98] sm:$0x1] %v21298_v21 }
 0x304   : > { %6371 = vmatprep.subr.bf16.mxu0 %v20128_v25  ;;  %7607 = vst [vmem:[#allocation3 + $0xa0] sm:$0xff] %v21298_v21  ;;  %7608 = vst [vmem:[#allocation3 + $0xa8] sm:$0xff] %v21298_v21  ;;  %v20224_v25 = vld [vmem:[%s28682_s6 + $0x334] ss:$8 sps:$4 sm:$0xff]  }
 0x305   : > { %7609 = vst [vmem:[#allocation3 + $0xb0] sm:$0x1] %v21298_v21  ;;  %7610 = vst [vmem:[#allocation3 + $0xb8] sm:$0x1] %v21298_v21  ;;  %9058 = vmatprep.subr.bf16.mxu1 %v20224_v25  ;;  %v24773_v25 = vld [vmem:[%s28682_s6 + $0x3d4] ss:$8 sps:$4 sm:$0xff]  }
 0x306   : > { %7611 = vst [vmem:[#allocation3 + $0xc0] sm:$0xff] %v21298_v21  ;;  %7612 = vst [vmem:[#allocation3 + $0xc8] sm:$0xff] %v21298_v21 }
 0x307   : > { %6372 = vmatpush1.bf16.msra.mxu0 %v20126_v49  ;;  %7613 = vst [vmem:[#allocation3 + $0xd0] sm:$0x1] %v21298_v21  ;;  %7614 = vst [vmem:[#allocation3 + $0xd8] sm:$0x1] %v21298_v21 }
 0x308   : > { %6373 = vmatprep.subr.bf16.mxu0 %v20134_v34  ;;  %7615 = vst [vmem:[#allocation3 + $0xe0] sm:$0xff] %v21298_v21  ;;  %7616 = vst [vmem:[#allocation3 + $0xe8] sm:$0xff] %v21298_v21  ;;  %v20198_v34 = vld [vmem:[%s28678_s2 + $0x13c8] ss:$12 sps:$4 sm:$0xff]  }
 0x309   : > { %7617 = vst [vmem:[#allocation3 + $0xf0] sm:$0x1] %v21298_v21  ;;  %7618 = vst [vmem:[#allocation3 + $0xf8] sm:$0x1] %v21298_v21 }
 0x30a   : > { %7619 = vst [vmem:[#allocation3 + $0x100] sm:$0xff] %v21298_v21  ;;  %7620 = vst [vmem:[#allocation3 + $0x108] sm:$0xff] %v21298_v21 }
 0x30b   : > { %6374 = vmatpush1.bf16.msra.mxu0 %v20132_v44  ;;  %7621 = vst [vmem:[#allocation3 + $0x110] sm:$0x1] %v21298_v21  ;;  %7622 = vst [vmem:[#allocation3 + $0x118] sm:$0x1] %v21298_v21 }
 0x30c   : > { %6396 = vmatprep.subr.bf16.mxu0 %v20140_v18  ;;  %7623 = vst [vmem:[#allocation3 + $0x120] sm:$0xff] %v21298_v21  ;;  %7624 = vst [vmem:[#allocation3 + $0x128] sm:$0xff] %v21298_v21 }
 0x30d   : > { %7625 = vst [vmem:[#allocation3 + $0x130] sm:$0x1] %v21298_v21  ;;  %7626 = vst [vmem:[#allocation3 + $0x138] sm:$0x1] %v21298_v21 }
 0x30e   : > { %6376 = vmatmul.mubr.bf16.vlgmr.msra.gmra.mrb[0].mxu0 %v23283_v10  ;;  %v20150_v10 = vld [vmem:[%s28678_s2 + $0x1248] ss:$12 sps:$4 sm:$0xff]   ;;  %7627 = vst [vmem:[#allocation3 + $0x140] sm:$0xff] %v21298_v21  ;;  %7628 = vst [vmem:[#allocation3 + $0x148] sm:$0xff] %v21298_v21 }
 0x30f   : > { %6397 = vmatpush1.bf16.msra.mxu0 %v20138_v32  ;;  %6385 = vmatprep.mubr.bf16.mxu0 %v23301_v50  ;;  %v20153_v50 = vld [vmem:[%s28678_s2 + $0x1260] ss:$12 sps:$4 sm:$0xff]   ;;  %7629 = vst [vmem:[#allocation3 + $0x150] sm:$0x1] %v21298_v21  ;;  %7630 = vst [vmem:[#allocation3 + $0x158] sm:$0x1] %v21298_v21 }
 0x310   : > { %6398 = vmatprep.subr.bf16.mxu0 %v20146_v58  ;;  %12179 = vst [vmem:[#allocation4 + $0x10] sm:$0x1] %v21298_v21  ;;  %12180 = vst [vmem:[#allocation4 + $0x18] sm:$0x1] %v21298_v21  ;;  %v20222_v32 = vld [vmem:[%s28682_s6 + $0x330] ss:$8 sps:$4 sm:$0xff]  }
 0x311   : > { %12183 = vst [vmem:[#allocation4 + $0x30] sm:$0x1] %v21298_v21  ;;  %12184 = vst [vmem:[#allocation4 + $0x38] sm:$0x1] %v21298_v21  ;;  %9059 = vmatpush1.bf16.msra.mxu1 %v20222_v32  ;;  %v21255_v32 = vld [vmem:[%s28680_s4 + $0x54] ss:$8 sps:$4 sm:$0xff]  }
 0x312   : > { %12187 = vst [vmem:[#allocation4 + $0x50] sm:$0x1] %v21298_v21  ;;  %12188 = vst [vmem:[#allocation4 + $0x58] sm:$0x1] %v21298_v21 }
 0x313   : > { %6399 = vmatpush1.bf16.msra.mxu0 %v20144_v5  ;;  %12191 = vst [vmem:[#allocation4 + $0x70] sm:$0x1] %v21298_v21  ;;  %12192 = vst [vmem:[#allocation4 + $0x78] sm:$0x1] %v21298_v21  ;;  %v24603_v5 = vld [vmem:[%s28682_s6 + $0x344] ss:$8 sps:$4 sm:$0xff]  }
 0x314   : > { %6400 = vmatprep.subr.bf16.mxu0 %v20149_v6  ;;  %12195 = vst [vmem:[#allocation4 + $0x90] sm:$0x1] %v21298_v21  ;;  %12196 = vst [vmem:[#allocation4 + $0x98] sm:$0x1] %v21298_v21  ;;  %9060 = vmatprep.subr.bf16.mxu1 %v24603_v5 }
 0x315   : > { %12199 = vst [vmem:[#allocation4 + $0xb0] sm:$0x1] %v21298_v21  ;;  %12200 = vst [vmem:[#allocation4 + $0xb8] sm:$0x1] %v21298_v21 }
 0x316   : > { %6386 = vmatmul.mubr.bf16.gmra.mrb[4].mxu0 %v23344_v1  ;;  %v20161_v1 = vld [vmem:[%s28678_s2 + $0x1294] ss:$12 sps:$4 sm:$0xff]   ;;  %12203 = vst [vmem:[#allocation4 + $0xd0] sm:$0x1] %v21298_v21  ;;  %12204 = vst [vmem:[#allocation4 + $0xd8] sm:$0x1] %v21298_v21 }
 0x317   : > { %6401 = vmatpush1.bf16.msra.mxu0 %v20147_v27  ;;  %6428 = vmatprep.mubr.bf16.mxu0 %v23357_v29  ;;  %v20159_v29 = vld [vmem:[%s28678_s2 + $0x1290] ss:$12 sps:$4 sm:$0xff]   ;;  %12207 = vst [vmem:[#allocation4 + $0xf0] sm:$0x1] %v21298_v21  ;;  %12208 = vst [vmem:[#allocation4 + $0xf8] sm:$0x1] %v21298_v21 }
 0x318   : > { %6402 = vmatprep.subr.bf16.mxu0 %v20152_v53  ;;  %12211 = vst [vmem:[#allocation4 + $0x110] sm:$0x1] %v21298_v21  ;;  %12212 = vst [vmem:[#allocation4 + $0x118] sm:$0x1] %v21298_v21  ;;  %v20201_v27 = vld [vmem:[%s28678_s2 + $0x13e0] ss:$12 sps:$4 sm:$0xff]  }
 0x31b   : > { %6403 = vmatpush1.bf16.msra.mxu0 %v20150_v10  ;;  %v20206_v10 = vld [vmem:[%s28678_s2 + $0x13fc] ss:$12 sps:$4 sm:$0xff]  }
 0x31c   : > { %6404 = vmatprep.subr.bf16.mxu0 %v20155_v54 }
 0x31e   : > { %v24430_v14 = vpop.f32.mrb[100].mxu1 }
 0x31f   : > { %6405 = vmatpush1.bf16.msra.mxu0 %v20153_v50  ;;  %v20204_v50 = vld [vmem:[%s28678_s2 + $0x13f8] ss:$12 sps:$4 sm:$0xff]  }
 0x320   : > { %6406 = vmatprep.subr.bf16.mxu0 %v20158_v24  ;;  %v24623_v24 = vld [vmem:[%s28682_s6 + $0x340] ss:$8 sps:$4 sm:$0xff]  }
 0x321   : > { %9061 = vmatpush1.bf16.msra.mxu1 %v24623_v24 }
 0x323   : > { %6407 = vmatpush1.bf16.msra.mxu0 %v20156_v45  ;;  %v24628_v45 = vld [vmem:[%s28682_s6 + $0x354] ss:$8 sps:$4 sm:$0xff]  }
 0x324   : > { %6408 = vmatprep.subr.bf16.mxu0 %v20161_v1  ;;  %9062 = vmatprep.subr.bf16.mxu1 %v24628_v45 }
 0x327   : > { %6409 = vmatpush1.bf16.msra.mxu0 %v20159_v29  ;;  %v20209_v29 = vld [vmem:[%s28678_s2 + $0x1414] ss:$12 sps:$4 sm:$0xff]  }
 0x328   : > { %6410 = vmatprep.subr.bf16.mxu0 %v20164_v20 }
 0x32b   : > { %6411 = vmatpush1.bf16.msra.mxu0 %v20162_v11  ;;  %v24641_v11 = vld [vmem:[%s28682_s6 + $0x350] ss:$8 sps:$4 sm:$0xff]  }
 0x32c   : > { %6412 = vmatprep.subr.bf16.mxu0 %v20167_v62  ;;  %9063 = vmatpush1.bf16.msra.mxu1 %v24641_v11 }
 0x32f   : > { %6413 = vmatpush1.bf16.msra.mxu0 %v20165_v38  ;;  %v24648_v38 = vld [vmem:[%s28682_s6 + $0x364] ss:$8 sps:$4 sm:$0xff]  }
 0x330   : > { %6414 = vmatprep.subr.bf16.mxu0 %v20170_v7  ;;  %9064 = vmatprep.subr.bf16.mxu1 %v24648_v38 }
 0x333   : > { %6415 = vmatpush1.bf16.msra.mxu0 %v20168_v8  ;;  %v20207_v8 = vld [vmem:[%s28678_s2 + $0x1410] ss:$12 sps:$4 sm:$0xff]  }
 0x334   : > { %6416 = vmatprep.subr.bf16.mxu0 %v20173_v36 }
 0x337   : > { %6417 = vmatpush1.bf16.msra.mxu0 %v20171_v60  ;;  %v20212_v60 = vld [vmem:[%s28678_s2 + $0x142c] ss:$12 sps:$4 sm:$0xff]  }
 0x338   : > { %6418 = vmatprep.subr.bf16.mxu0 %v20176_v19  ;;  %v24661_v19 = vld [vmem:[%s28682_s6 + $0x360] ss:$8 sps:$4 sm:$0xff]  }
 0x339   : > { %9065 = vmatpush1.bf16.msra.mxu1 %v24661_v19 }
 0x33b   : > { %6419 = vmatpush1.bf16.msra.mxu0 %v20174_v47  ;;  %v24666_v47 = vld [vmem:[%s28682_s6 + $0x374] ss:$8 sps:$4 sm:$0xff]  }
 0x33c   : > { %6420 = vmatprep.subr.bf16.mxu0 %v20179_v9  ;;  %v20210_v9 = vld [vmem:[%s28678_s2 + $0x1428] ss:$12 sps:$4 sm:$0xff]   ;;  %9066 = vmatprep.subr.bf16.mxu1 %v24666_v47 }
 0x33f   : > { %6421 = vmatpush1.bf16.msra.mxu0 %v20177_v4  ;;  %v24676_v4 = vld [vmem:[%s28682_s6 + $0x370] ss:$8 sps:$4 sm:$0xff]  }
 0x340   : > { %6422 = vmatprep.subr.bf16.mxu0 %v20182_v61  ;;  %v24681_v61 = vld [vmem:[%s28682_s6 + $0x384] ss:$8 sps:$4 sm:$0xff]   ;;  %9067 = vmatpush1.bf16.msra.mxu1 %v24676_v4 }
 0x341   : > { %9068 = vmatprep.subr.bf16.mxu1 %v24681_v61 }
 0x343   : > { %6423 = vmatpush1.bf16.msra.mxu0 %v20180_v2  ;;  %v24688_v2 = vld [vmem:[%s28682_s6 + $0x380] ss:$8 sps:$4 sm:$0xff]  }
 0x344   : > { %6424 = vmatprep.subr.bf16.mxu0 %v20185_v39  ;;  %v21245_v39 = vld [vmem:[%s28680_s4 + $0x4] ss:$8 sps:$4 sm:$0xff]   ;;  %9069 = vmatpush1.bf16.msra.mxu1 %v24688_v2 }
 0x347   : > { %6425 = vmatpush1.bf16.msra.mxu0 %v20183_v30  ;;  %v24696_v30 = vld [vmem:[%s28682_s6 + $0x394] ss:$8 sps:$4 sm:$0xff]  }
 0x348   : > { %6426 = vmatprep.subr.bf16.mxu0 %v20188_v16  ;;  %v6800_v16 = vld [vmem:[%s21465_s26 + $0x8] sm:$0xff]  ;;  %9070 = vmatprep.subr.bf16.mxu1 %v24696_v30 }
 0x34b   : > { %6427 = vmatpush1.bf16.msra.mxu0 %v20186_v17  ;;  %v6803_v17 = vld [vmem:[%s21465_s26 + $0x38] sm:$0xff] }
 0x34c   : > { %6449 = vmatprep.subr.bf16.mxu0 %v20191_v51  ;;  %v21246_v51 = vld [vmem:[%s28680_s4] ss:$8 sps:$4 sm:$0xff]   ;;  %v6827_v35 = vpack.c.bf16 %v6803_v17, %v6800_v16  ;;  %v21259_v17 = vld [vmem:[%s28680_s4 + $0x74] ss:$8 sps:$4 sm:$0xff]  }
 0x34e   : > { %6429 = vmatmul.mubr.bf16.vlgmr.msra.gmra.mrb[0].mxu0 %v22895_v12  ;;  %v24448_v12 = vpop.f32.mrb[101].mxu1 }
 0x34f   : > { %6450 = vmatpush1.bf16.msra.mxu0 %v20189_v28  ;;  %6438 = vmatprep.mubr.bf16.mxu0 %v23464_v63  ;;  %v20197_v63 = vld [vmem:[%s28678_s2 + $0x13b4] ss:$12 sps:$4 sm:$0xff]   ;;  %v24547_v33 = vpop.f32.mrb[102].mxu1  ;;  %v24710_v28 = vld [vmem:[%s28682_s6 + $0x390] ss:$8 sps:$4 sm:$0xff]  }
 0x350   : > { %6451 = vmatprep.subr.bf16.mxu0 %v24427_v37  ;;  %v24550_v13 = vpop.f32.mrb[103].mxu1  ;;  %v24718_v37 = vld [vmem:[%s28682_s6 + $0x3a4] ss:$8 sps:$4 sm:$0xff]   ;;  %9071 = vmatpush1.bf16.msra.mxu1 %v24710_v28 }
 0x351   : > { %v24560_v52 = vpop.f32.mrb[104].mxu1  ;;  %9072 = vmatprep.subr.bf16.mxu1 %v24718_v37 }
 0x352   : > { %v24566_v0 = vpop.f32.mrb[105].mxu1 }
 0x353   : > { %6452 = vmatpush1.bf16.msra.mxu0 %v24445_v56  ;;  %v24571_v42 = vpop.f32.mrb[106].mxu1  ;;  %v21249_v56 = vld [vmem:[%s28680_s4 + $0x24] ss:$8 sps:$4 sm:$0xff]  }
 0x354   : > { %6453 = vmatprep.subr.bf16.mxu0 %v20197_v63  ;;  %v24576_v59 = vpop.f32.mrb[107].mxu1  ;;  %v21250_v63 = vld [vmem:[%s28680_s4 + $0x20] ss:$8 sps:$4 sm:$0xff]   ;;  %9073 = vmatpush1.bf16.msra.mxu1 %v24728_v43 }
 0x355   : > { %v24582_v49 = vpop.f32.mrb[108].mxu1  ;;  %9074 = vmatprep.subr.bf16.mxu1 %v24736_v41 }
 0x356   : > { %6439 = vmatmul.mubr.bf16.gmra.mrb[4].mxu0 %v23488_v15  ;;  %v24588_v44 = vpop.f32.mrb[109].mxu1  ;;  %v20203_v15 = vld [vmem:[%s28678_s2 + $0x13e4] ss:$12 sps:$4 sm:$0xff]  }
 0x357   : > { %6454 = vmatpush1.bf16.msra.mxu0 %v20195_v26  ;;  %6481 = vmatprep.mubr.bf16.mxu0 %v28726_v3  ;;  %v24593_v18 = vpop.f32.mrb[110].mxu1  ;;  %v21252_v26 = vld [vmem:[%s28680_s4 + $0x30] ss:$8 sps:$4 sm:$0xff]  }
 0x358   : > { %6455 = vmatprep.subr.bf16.mxu0 %v20200_v46  ;;  %v24598_v58 = vpop.f32.mrb[111].mxu1  ;;  %v24765_v46 = vld [vmem:[%s28682_s6 + $0x3c0] ss:$8 sps:$4 sm:$0xff]   ;;  %9075 = vmatpush1.bf16.msra.mxu1 %v24747_v57 }
 0x359   : > { %v24605_v6 = vpop.f32.mrb[112].mxu1 }
 0x35a   : > { %v24610_v53 = vpop.f32.mrb[113].mxu1 }
 0x35b   : > { %6456 = vmatpush1.bf16.msra.mxu0 %v20198_v34  ;;  %v24615_v54 = vpop.f32.mrb[114].mxu1  ;;  %v21254_v34 = vld [vmem:[%s28680_s4 + $0x40] ss:$8 sps:$4 sm:$0xff]  }
 0x35c   : > { %6457 = vmatprep.subr.bf16.mxu0 %v20203_v15  ;;  %v24630_v1 = vpop.f32.mrb[115].mxu1  ;;  %v24783_v15 = vld [vmem:[%s28682_s6 + $0x3d0] ss:$8 sps:$4 sm:$0xff]  }
 0x35d   : > { %28743 = vst [vmem:[#allocation9_spill] sm:$0xff] %v24630_v1  ;;  %v24636_v20 = vpop.f32.mrb[116].mxu1 }
 0x35e   : > { %28744 = vst [vmem:[#allocation7_spill] sm:$0xff] %v24636_v20  ;;  %v24643_v62 = vpop.f32.mrb[117].mxu1 }
 0x35f   : > { %6458 = vmatpush1.bf16.msra.mxu0 %v20201_v27  ;;  %28745 = vst [vmem:[#allocation8_spill] sm:$0xff] %v24643_v62  ;;  %v7342_v7 = vpop.f32.mrb[118].mxu1  ;;  %v24791_v27 = vld [vmem:[%s28682_s6 + $0x3e4] ss:$8 sps:$4 sm:$0xff]  }
 0x360   : > { %6459 = vmatprep.subr.bf16.mxu0 %v20206_v10  ;;  %v7343_v36 = vpop.f32.mrb[119].mxu1  ;;  %v6931_v10 = vld [vmem:[%s28681_s5] sm:$0x3]  ;;  %v24807_v7 = vsub.s32 0, %v24172_v40 }
 0x361   : > { %v24815_v36 = vld [vmem:[%s28682_s6 + $0x3f4] ss:$8 sps:$4 sm:$0xff]  }
 0x362   : > { %28746 = vst [vmem:[#allocation10_spill] sm:$0xff] %v24807_v7  ;;  %v24831_v16 = vrot.slane %v6931_v10, %v24807_v7 }
 0x363   : > { %6460 = vmatpush1.bf16.msra.mxu0 %v20204_v50  ;;  %v21256_v50 = vld [vmem:[%s28680_s4 + $0x50] ss:$8 sps:$4 sm:$0xff]  }
 0x364   : > { %6461 = vmatprep.subr.bf16.mxu0 %v20209_v29  ;;  %v24804_v29 = vld [vmem:[%s28682_s6 + $0x3e0] ss:$8 sps:$4 sm:$0xff]  }
 0x367   : > { %6462 = vmatpush1.bf16.msra.mxu0 %v20207_v8  ;;  %v21257_v8 = vld [vmem:[%s28680_s4 + $0x64] ss:$8 sps:$4 sm:$0xff]  }
 0x368   : > { %6463 = vmatprep.subr.bf16.mxu0 %v20212_v60  ;;  %v24818_v60 = vsub.s32 1, %v24172_v40  ;;  %v6809_v40 = vld [vmem:[%s21465_s26 + $0x98] sm:$0xff] }
 0x36a   : > { %28747 = vst [vmem:[#allocation11_spill] sm:$0xff] %v24818_v60 }
 0x36b   : > { %6464 = vmatpush1.bf16.msra.mxu0 %v20210_v9  ;;  %v21258_v9 = vld [vmem:[%s28680_s4 + $0x60] ss:$8 sps:$4 sm:$0xff]  }
 0x36c   : > { %7183 = vmatprep.subr.bf16.mxu0 %v21245_v39  ;;  %v24828_v39 = vld [vmem:[%s28682_s6 + $0x3f0] ss:$8 sps:$4 sm:$0xff]  }
 0x36e   : > { %6482 = vmatmul.mubr.bf16.vlgmr.msra.gmra.mrb[0].mxu0 %v23498_v23  ;;  %v21247_v23 = vld [vmem:[%s28680_s4 + $0x14] ss:$8 sps:$4 sm:$0xff]  }
 0x36f   : > { %7184 = vmatpush1.bf16.msra.mxu0 %v21246_v51  ;;  %6491 = vmatprep.mubr.bf16.mxu0 %v28726_v3  ;;  %v21248_v3 = vld [vmem:[%s28680_s4 + $0x10] ss:$8 sps:$4 sm:$0xff]   ;;  %v24837_v51 = vrot.slane %v6931_v10, %v24818_v60  ;;  %v21262_v10 = vld [vmem:[%s28680_s4 + $0x80] ss:$8 sps:$4 sm:$0xff]  }
 0x370   : > { %7185 = vmatprep.subr.bf16.mxu0 %v21247_v23  ;;  %v21260_v23 = vld [vmem:[%s28680_s4 + $0x70] ss:$8 sps:$4 sm:$0xff]  }
 0x373   : > { %7186 = vmatpush1.bf16.msra.mxu0 %v21248_v3 }
 0x374   : > { %7187 = vmatprep.subr.bf16.mxu0 %v21249_v56 }
 0x376   : > { %6492 = vmatmul.mubr.bf16.gmra.mrb[4].mxu0 %v23171_v55  ;;  %v24755_v55 = vld [vmem:[%s28682_s6 + $0x3c4] ss:$8 sps:$4 sm:$0xff]  }
 0x377   : > { %7188 = vmatpush1.bf16.msra.mxu0 %v21250_v63  ;;  %7215 = vmatprep.mubr.bf16.mxu0 %v6827_v35  ;;  %v21261_v35 = vld [vmem:[%s28680_s4 + $0x84] ss:$8 sps:$4 sm:$0xff]  }
 0x378   : > { %7189 = vmatprep.subr.bf16.mxu0 %v21251_v31  ;;  %9076 = vmatprep.subr.bf16.mxu1 %v24755_v55 }
 0x379   : > { %9077 = vmatpush1.bf16.msra.mxu1 %v24765_v46 }
 0x37a   : > { %9078 = vmatprep.subr.bf16.mxu1 %v24773_v25 }
 0x37b   : > { %7190 = vmatpush1.bf16.msra.mxu0 %v21252_v26 }
 0x37c   : > { %7191 = vmatprep.subr.bf16.mxu0 %v21253_v48 }
 0x37d   : > { %9079 = vmatpush1.bf16.msra.mxu1 %v24783_v15 }
 0x37e   : > { %9080 = vmatprep.subr.bf16.mxu1 %v24791_v27 }
 0x37f   : > { %7192 = vmatpush1.bf16.msra.mxu0 %v21254_v34 }
 0x380   : > { %7193 = vmatprep.subr.bf16.mxu0 %v21255_v32 }
 0x381   : > { %9081 = vmatpush1.bf16.msra.mxu1 %v24804_v29 }
 0x382   : > { %9082 = vmatprep.subr.bf16.mxu1 %v24815_v36 }
 0x383   : > { %7194 = vmatpush1.bf16.msra.mxu0 %v21256_v50 }
 0x384   : > { %7195 = vmatprep.subr.bf16.mxu0 %v21257_v8 }
 0x385   : > { %9083 = vmatpush1.bf16.msra.mxu1 %v24828_v39 }
 0x387   : > { %7196 = vmatpush1.bf16.msra.mxu0 %v21258_v9  ;;  %v7478_v3 = vpop.f32.mrb[120].mxu1  ;;  %v21263_v9 = vld [vmem:[%s28680_s4 + $0x94] ss:$8 sps:$4 sm:$0xff]  }
 0x388   : > { %7197 = vmatprep.subr.bf16.mxu0 %v21259_v17  ;;  %v18787_v56 = vadd.f32 %v7478_v3, %v24831_v16  ;;  %v7480_v63 = vpop.f32.mrb[121].mxu1 }
 0x389   : > { %v18788_v31 = vadd.f32 %v7480_v63, %v24837_v51  ;;  %v7482_v26 = vpop.f32.mrb[122].mxu1  ;;  %v21264_v63 = vld [vmem:[%s28680_s4 + $0x90] ss:$8 sps:$4 sm:$0xff]  }
 0x38a   : > { %v7525_v48 = vmax.f32 %v18787_v56, 0.0  ;;  %v18789_v34 = vadd.f32 %v7482_v26, %v24831_v16  ;;  %v7484_v32 = vpop.f32.mrb[123].mxu1 }
 0x38b   : > { %7198 = vmatpush1.bf16.msra.mxu0 %v21260_v23  ;;  %v7526_v50 = vmax.f32 %v18788_v31, 0.0  ;;  %v18790_v8 = vadd.f32 %v7484_v32, %v24837_v51 }
 0x38c   : > { %7199 = vmatprep.subr.bf16.mxu0 %v21261_v35  ;;  %v7668_v17 = vrot.slane %v7525_v48, 7  ;;  %v7527_v23 = vmax.f32 %v18789_v34, 0.0  ;;  %v21265_v48 = vld [vmem:[%s28680_s4 + $0xa4] ss:$8 sps:$4 sm:$0xff]  }
 0x38d   : > { %v7669_v3 = vrot.slane %v7526_v50, 7  ;;  %v7528_v35 = vmax.f32 %v18790_v8, 0.0 }
 0x38e   : > { %7705 = vst [vmem:[#allocation3 + $0x20] sm:$0xfe] %v7668_v17  ;;  %7707 = vst [vmem:[#allocation3 + $0x30] sm:$0x1] %v7668_v17  ;;  %v7670_v56 = vrot.slane %v7527_v23, 7 }
 0x38f   : > { %7200 = vmatpush1.bf16.msra.mxu0 %v21262_v10  ;;  %7741 = vst [vmem:[#allocation3 + $0x20] sm:$0xe0] %v21298_v21  ;;  %7743 = vst [vmem:[#allocation3 + $0x30] sm:$0x1] %v21298_v21  ;;  %v7671_v31 = vrot.slane %v7528_v35, 7  ;;  %v7488_v26 = vpop.f32.mrb[124].mxu1 }
 0x390   : > { %7201 = vmatprep.subr.bf16.mxu0 %v21263_v9  ;;  %7706 = vst [vmem:[#allocation3 + $0x28] sm:$0xfe] %v7669_v3  ;;  %7708 = vst [vmem:[#allocation3 + $0x38] sm:$0x1] %v7669_v3  ;;  %v18791_v34 = vadd.f32 %v7488_v26, %v24831_v16  ;;  %v7490_v32 = vpop.f32.mrb[125].mxu1 }
 0x391   : > { %7742 = vst [vmem:[#allocation3 + $0x28] sm:$0xe0] %v21298_v21  ;;  %7744 = vst [vmem:[#allocation3 + $0x38] sm:$0x1] %v21298_v21  ;;  %v18792_v10 = vadd.f32 %v7490_v32, %v24837_v51  ;;  %v7492_v50 = vpop.f32.mrb[126].mxu1 }
 0x392   : > { %7709 = vst [vmem:[#allocation3 + $0x40] sm:$0xfe] %v7670_v56  ;;  %7711 = vst [vmem:[#allocation3 + $0x50] sm:$0x1] %v7670_v56  ;;  %v7529_v8 = vmax.f32 %v18791_v34, 0.0  ;;  %v18793_v9 = vadd.f32 %v7492_v50, %v24831_v16  ;;  %v7494_v17 = vpop.f32.mrb[127].mxu1 }
 0x393   : > { %7202 = vmatpush1.bf16.msra.mxu0 %v21264_v63  ;;  %7745 = vst [vmem:[#allocation3 + $0x40] sm:$0xe0] %v21298_v21  ;;  %7747 = vst [vmem:[#allocation3 + $0x50] sm:$0x1] %v21298_v21  ;;  %v21266_v23 = vld [vmem:[%s28680_s4 + $0xa0] ss:$8 sps:$4 sm:$0xff]   ;;  %v18794_v35 = vadd.f32 %v7494_v17, %v24837_v51 }
 0x394   : > { %7203 = vmatprep.subr.bf16.mxu0 %v21265_v48  ;;  %7710 = vst [vmem:[#allocation3 + $0x48] sm:$0xfe] %v7671_v31  ;;  %7712 = vst [vmem:[#allocation3 + $0x58] sm:$0x1] %v7671_v31  ;;  %v7530_v3 = vmax.f32 %v18792_v10, 0.0  ;;  %v7672_v63 = vrot.slane %v7529_v8, 7 }
 0x395   : > { %7746 = vst [vmem:[#allocation3 + $0x48] sm:$0xe0] %v21298_v21  ;;  %7748 = vst [vmem:[#allocation3 + $0x58] sm:$0x1] %v21298_v21  ;;  %v21267_v56 = vld [vmem:[%s28680_s4 + $0xb4] ss:$8 sps:$4 sm:$0xff]  }
 0x396   : > { %v7531_v31 = vmax.f32 %v18793_v9, 0.0  ;;  %v7673_v26 = vrot.slane %v7530_v3, 7  ;;  %v7532_v48 = vmax.f32 %v18794_v35, 0.0  ;;  %7713 = vst [vmem:[#allocation3 + $0x60] sm:$0xfe] %v7672_v63  ;;  %v7885_v32 = vld [vmem:[#allocation3 + $0x20] sm:$0xff] }
 0x397   : > { %7204 = vmatpush1.bf16.msra.mxu0 %v21266_v23  ;;  %7715 = vst [vmem:[#allocation3 + $0x70] sm:$0x1] %v7672_v63  ;;  %v21268_v50 = vld [vmem:[%s28680_s4 + $0xb0] ss:$8 sps:$4 sm:$0xff]   ;;  %7749 = vst [vmem:[#allocation3 + $0x60] sm:$0xe0] %v21298_v21 }
 0x398   : > { %7205 = vmatprep.subr.bf16.mxu0 %v21267_v56  ;;  %v7674_v34 = vrot.slane %v7531_v31, 7  ;;  %7751 = vst [vmem:[#allocation3 + $0x70] sm:$0x1] %v21298_v21  ;;  %7714 = vst [vmem:[#allocation3 + $0x68] sm:$0xfe] %v7673_v26  ;;  %v7675_v10 = vrot.slane %v7532_v48, 7 }
 0x399   : > { %7716 = vst [vmem:[#allocation3 + $0x78] sm:$0x1] %v7673_v26  ;;  %v7498_v8 = vpop.f32.mrb[128].mxu1  ;;  %v7886_v9 = vld [vmem:[#allocation3 + $0x28] sm:$0xff]  ;;  %7750 = vst [vmem:[#allocation3 + $0x68] sm:$0xe0] %v21298_v21 }
 0x39a   : > { %v21269_v17 = vld [vmem:[%s28680_s4 + $0xc4] ss:$8 sps:$4 sm:$0xff]   ;;  %7752 = vst [vmem:[#allocation3 + $0x78] sm:$0x1] %v21298_v21  ;;  %7717 = vst [vmem:[#allocation3 + $0x80] sm:$0xfe] %v7674_v34  ;;  %v18795_v23 = vadd.f32 %v7498_v8, %v24831_v16 }
 0x39b   : > { %7206 = vmatpush1.bf16.msra.mxu0 %v21268_v50  ;;  %7719 = vst [vmem:[#allocation3 + $0x90] sm:$0x1] %v7674_v34  ;;  %v7500_v3 = vpop.f32.mrb[129].mxu1  ;;  %v7887_v35 = vld [vmem:[#allocation3 + $0x40] sm:$0xff]  ;;  %7718 = vst [vmem:[#allocation3 + $0x88] sm:$0xfe] %v7675_v10 }
 0x39c   : > { %7207 = vmatprep.subr.bf16.mxu0 %v21269_v17  ;;  %v24893_v56 = vld [vmem:[#allocation2] sm:$0xff]  ;;  %7720 = vst [vmem:[#allocation3 + $0x98] sm:$0x1] %v7675_v10  ;;  %v18796_v63 = vadd.f32 %v7500_v3, %v24837_v51  ;;  %v7502_v31 = vpop.f32.mrb[130].mxu1  ;;  %v7888_v26 = vld [vmem:[#allocation3 + $0x48] sm:$0xff]  ;;  %v8446_v48 = vpack.c.bf16 %v7887_v35, %v7885_v32  ;;  %v7533_v21 = vmax.f32 %v18795_v23, 0.0 }
 0x39d   : > { %7753 = vst [vmem:[#allocation3 + $0x80] sm:$0xe0] %v24893_v56  ;;  %7755 = vst [vmem:[#allocation3 + $0x90] sm:$0x1] %v24893_v56  ;;  %v18797_v34 = vadd.f32 %v7502_v31, %v24831_v16  ;;  %v7504_v50 = vpop.f32.mrb[131].mxu1  ;;  %v8447_v8 = vpack.c.bf16 %v7888_v26, %v7886_v9 }
 0x39e   : > { %7754 = vst [vmem:[#allocation3 + $0x88] sm:$0xe0] %v24893_v56  ;;  %7756 = vst [vmem:[#allocation3 + $0x98] sm:$0x1] %v24893_v56  ;;  %v21271_v17 = vld [vmem:[%s28680_s4 + $0xc0] ss:$8 sps:$4 sm:$0xff]   ;;  %v18798_v3 = vadd.f32 %v7504_v50, %v24837_v51 }
 0x39f   : > { %7208 = vmatpush1.bf16.msra.mxu0 %v21271_v17  ;;  %v7534_v10 = vmax.f32 %v18796_v63, 0.0  ;;  %v21272_v32 = vld [vmem:[%s28680_s4 + $0xd4] ss:$8 sps:$4 sm:$0xff]   ;;  %v7676_v35 = vrot.slane %v7533_v21, 7  ;;  %v7535_v22 = vmax.f32 %v18797_v34, 0.0  ;;  %9084 = vmatprep.mubr.bf16.mxu1 %v8447_v8  ;;  %v7889_v26 = vld [vmem:[#allocation3 + $0x60] sm:$0xff] }
 0x3a0   : > { %7209 = vmatprep.subr.bf16.mxu0 %v21272_v32  ;;  %v7536_v31 = vmax.f32 %v18798_v3, 0.0  ;;  %9085 = vmatmul.mubr.bf16.vlgmr.msra.gmra.mrb[140].mxu1 %v8446_v48  ;;  %v21273_v63 = vld [vmem:[%s28680_s4 + $0xd0] ss:$8 sps:$4 sm:$0xff]   ;;  %v7508_v34 = vpop.f32.mrb[132].mxu1  ;;  %v7890_v50 = vld [vmem:[#allocation3 + $0x68] sm:$0xff] }
 0x3a1   : > { %v7677_v23 = vrot.slane %v7534_v10, 7  ;;  %7721 = vst [vmem:[#allocation3 + $0xa0] sm:$0xfe] %v7676_v35  ;;  %7723 = vst [vmem:[#allocation3 + $0xb0] sm:$0x1] %v7676_v35  ;;  %v7678_v9 = vrot.slane %v7535_v22, 7  ;;  %v18799_v22 = vadd.f32 %v7508_v34, %v24831_v16 }
 0x3a2   : > { %7757 = vst [vmem:[#allocation3 + $0xa0] sm:$0xe0] %v24893_v56  ;;  %7759 = vst [vmem:[#allocation3 + $0xb0] sm:$0x1] %v24893_v56  ;;  %v7679_v21 = vrot.slane %v7536_v31, 7  ;;  %v7510_v8 = vpop.f32.mrb[133].mxu1 }
 0x3a3   : > { %7210 = vmatpush1.bf16.msra.mxu0 %v21273_v63  ;;  %7722 = vst [vmem:[#allocation3 + $0xa8] sm:$0xfe] %v7677_v23  ;;  %7724 = vst [vmem:[#allocation3 + $0xb8] sm:$0x1] %v7677_v23  ;;  %v21274_v48 = vld [vmem:[%s28680_s4 + $0xe4] ss:$8 sps:$4 sm:$0xff]   ;;  %v18800_v10 = vadd.f32 %v7510_v8, %v24837_v51 }
 0x3a4   : > { %7211 = vmatprep.subr.bf16.mxu0 %v21274_v48  ;;  %7758 = vst [vmem:[#allocation3 + $0xa8] sm:$0xe0] %v24893_v56  ;;  %7760 = vst [vmem:[#allocation3 + $0xb8] sm:$0x1] %v24893_v56  ;;  %v7891_v17 = vld [vmem:[#allocation3 + $0x80] sm:$0xff]  ;;  %v7512_v3 = vpop.f32.mrb[134].mxu1 }
 0x3a5   : > { %7725 = vst [vmem:[#allocation3 + $0xc0] sm:$0xfe] %v7678_v9  ;;  %7727 = vst [vmem:[#allocation3 + $0xd0] sm:$0x1] %v7678_v9  ;;  %v7892_v32 = vld [vmem:[#allocation3 + $0x88] sm:$0xff]  ;;  %v8452_v35 = vpack.c.bf16 %v7891_v17, %v7889_v26  ;;  %v7537_v23 = vmax.f32 %v18799_v22, 0.0  ;;  %v18801_v31 = vadd.f32 %v7512_v3, %v24831_v16 }
 0x3a6   : > { %7761 = vst [vmem:[#allocation3 + $0xc0] sm:$0xe0] %v24893_v56  ;;  %7763 = vst [vmem:[#allocation3 + $0xd0] sm:$0x1] %v24893_v56  ;;  %v7514_v9 = vpop.f32.mrb[135].mxu1  ;;  %v8453_v63 = vpack.c.bf16 %v7892_v32, %v7890_v50  ;;  %v6799_v34 = vld [vmem:[%s21465_s26] sm:$0xff] }
 0x3a7   : > { %7726 = vst [vmem:[#allocation3 + $0xc8] sm:$0xfe] %v7679_v21  ;;  %7728 = vst [vmem:[#allocation3 + $0xd8] sm:$0x1] %v7679_v21  ;;  %v21275_v21 = vld [vmem:[%s28680_s4 + $0xe0] ss:$8 sps:$4 sm:$0xff]   ;;  %v18802_v26 = vadd.f32 %v7514_v9, %v24837_v51 }
 0x3a8   : > { %7762 = vst [vmem:[#allocation3 + $0xc8] sm:$0xe0] %v24893_v56  ;;  %7764 = vst [vmem:[#allocation3 + $0xd8] sm:$0x1] %v24893_v56  ;;  %7212 = vmatpush1.bf16.msra.mxu0 %v21275_v21  ;;  %v6802_v48 = vld [vmem:[%s21465_s26 + $0x30] sm:$0xff]  ;;  %v7538_v8 = vmax.f32 %v18800_v10, 0.0  ;;  %9094 = vmatprep.mubr.bf16.mxu1 %v8453_v63 }
 0x3a9   : > { %v21276_v17 = vld [vmem:[%s28680_s4 + $0xf4] ss:$8 sps:$4 sm:$0xff]   ;;  %v6806_v22 = vld [vmem:[%s21465_s26 + $0x68] sm:$0xff]  ;;  %v7680_v3 = vrot.slane %v7537_v23, 7  ;;  %v7539_v62 = vmax.f32 %v18801_v31, 0.0  ;;  %v7540_v32 = vmax.f32 %v18802_v26, 0.0  ;;  %9095 = vmatmul.mubr.bf16.gmra.mrb[144].mxu1 %v8452_v35  ;;  %v6826_v20 = vpack.c.bf16 %v6802_v48, %v6799_v34 }
 0x3aa   : > { %7213 = vmatprep.subr.bf16.mxu0 %v21276_v17  ;;  %v7681_v50 = vrot.slane %v7538_v8, 7  ;;  %v7893_v10 = vld [vmem:[#allocation3 + $0xa0] sm:$0xff]  ;;  %v21277_v9 = vld [vmem:[%s28680_s4 + $0xf0] ss:$8 sps:$4 sm:$0xff]   ;;  %v6830_v1 = vpack.c.bf16 %v6809_v40, %v6806_v22  ;;  %v7518_v31 = vpop.f32.mrb[136].mxu1 }
 0x3ab   : > { %7729 = vst [vmem:[#allocation3 + $0xe0] sm:$0xfe] %v7680_v3  ;;  %7731 = vst [vmem:[#allocation3 + $0xf0] sm:$0x1] %v7680_v3  ;;  %v7682_v21 = vrot.slane %v7539_v62, 7  ;;  %v7683_v23 = vrot.slane %v7540_v32, 7  ;;  %v18803_v62 = vadd.f32 %v7518_v31, %v24831_v16 }
 0x3ac   : > { %7214 = vmatpush1.bf16.msra.mxu0 %v21277_v9  ;;  %7765 = vst [vmem:[#allocation3 + $0xe0] sm:$0xe0] %v24893_v56  ;;  %7767 = vst [vmem:[#allocation3 + $0xf0] sm:$0x1] %v24893_v56  ;;  %v7894_v35 = vld [vmem:[#allocation3 + $0xa8] sm:$0xff]  ;;  %v7520_v63 = vpop.f32.mrb[137].mxu1 }
 0x3ad   : > { %7730 = vst [vmem:[#allocation3 + $0xe8] sm:$0xfe] %v7681_v50  ;;  %7732 = vst [vmem:[#allocation3 + $0xf8] sm:$0x1] %v7681_v50  ;;  %v7895_v34 = vld [vmem:[#allocation3 + $0xc0] sm:$0xff]  ;;  %v18804_v48 = vadd.f32 %v7520_v63, %v24837_v51  ;;  %v7522_v17 = vpop.f32.mrb[138].mxu1 }
 0x3ae   : > { %7766 = vst [vmem:[#allocation3 + $0xe8] sm:$0xe0] %v24893_v56  ;;  %7768 = vst [vmem:[#allocation3 + $0xf8] sm:$0x1] %v24893_v56  ;;  %v21278_v40 = vld [vmem:[%s28682_s6 + $0x304] ss:$8 sps:$4 sm:$0xff]   ;;  %v8458_v26 = vpack.c.bf16 %v7895_v34, %v7893_v10 }
 0x3af   : > { %7733 = vst [vmem:[#allocation3 + $0x100] sm:$0xfe] %v7682_v21  ;;  %7735 = vst [vmem:[#allocation3 + $0x110] sm:$0x1] %v7682_v21  ;;  %11276 = vmatprep.subr.bf16.mxu0 %v21278_v40  ;;  %v7896_v8 = vld [vmem:[#allocation3 + $0xc8] sm:$0xff]  ;;  %7216 = vmatmul.mubr.bf16.vlgmr.msra.gmra.mrb[8].mxu0 %v6826_v20  ;;  %v7541_v22 = vmax.f32 %v18803_v62, 0.0 }
 0x3b0   : > { %7769 = vst [vmem:[#allocation3 + $0x100] sm:$0xe0] %v24893_v56  ;;  %7771 = vst [vmem:[#allocation3 + $0x110] sm:$0x1] %v24893_v56  ;;  %v8459_v3 = vpack.c.bf16 %v7896_v8, %v7894_v35  ;;  %v7523_v50 = vpop.f32.mrb[139].mxu1  ;;  %7225 = vmatprep.mubr.bf16.mxu0 %v6830_v1  ;;  %v6805_v32 = vld [vmem:[%s21465_s26 + $0x60] sm:$0xff] }
 0x3b1   : > { %7734 = vst [vmem:[#allocation3 + $0x108] sm:$0xfe] %v7683_v23  ;;  %7736 = vst [vmem:[#allocation3 + $0x118] sm:$0x1] %v7683_v23  ;;  %v6808_v21 = vld [vmem:[%s21465_s26 + $0x90] sm:$0xff]  ;;  %v7542_v9 = vmax.f32 %v18804_v48, 0.0 }
 0x3b2   : > { %7770 = vst [vmem:[#allocation3 + $0x108] sm:$0xe0] %v24893_v56  ;;  %7772 = vst [vmem:[#allocation3 + $0x118] sm:$0x1] %v24893_v56  ;;  %v21279_v23 = vld [vmem:[%s28682_s6 + $0x300] ss:$8 sps:$4 sm:$0xff]   ;;  %9104 = vmatprep.mubr.bf16.mxu1 %v8459_v3  ;;  %v6829_v1 = vpack.c.bf16 %v6808_v21, %v6805_v32 }
 0x3b3   : > { %11277 = vmatpush1.bf16.msra.mxu0 %v21279_v23  ;;  %v6812_v31 = vld [vmem:[%s21465_s26 + $0xc8] sm:$0xff]  ;;  %v6815_v10 = vld [vmem:[%s21465_s26 + $0xf8] sm:$0xff]  ;;  %v7684_v63 = vrot.slane %v7541_v22, 7  ;;  %v7685_v35 = vrot.slane %v7542_v9, 7  ;;  %9105 = vmatmul.mubr.bf16.gmra.mrb[148].mxu1 %v8458_v26  ;;  %v7897_v62 = vld [vmem:[#allocation3 + $0xe0] sm:$0xff] }
 0x3b4   : > { %v21280_v20 = vld [vmem:[%s28682_s6 + $0x314] ss:$8 sps:$4 sm:$0xff]   ;;  %v6833_v34 = vpack.c.bf16 %v6815_v10, %v6812_v31  ;;  %v21281_v48 = vld [vmem:[%s28682_s6 + $0x310] ss:$8 sps:$4 sm:$0xff]   ;;  %v21282_v26 = vld [vmem:[%s28682_s6 + $0x324] ss:$8 sps:$4 sm:$0xff]  }
 0x3b5   : > { %11278 = vmatprep.subr.bf16.mxu0 %v21280_v20  ;;  %7737 = vst [vmem:[#allocation3 + $0x120] sm:$0xfe] %v7684_v63  ;;  %7739 = vst [vmem:[#allocation3 + $0x130] sm:$0x1] %v7684_v63  ;;  %v7898_v40 = vld [vmem:[#allocation3 + $0xe8] sm:$0xff]  ;;  %v6811_v50 = vld [vmem:[%s21465_s26 + $0xc0] sm:$0xff] }
 0x3b6   : > { %7773 = vst [vmem:[#allocation3 + $0x120] sm:$0xe0] %v24893_v56  ;;  %7775 = vst [vmem:[#allocation3 + $0x130] sm:$0x1] %v24893_v56  ;;  %v6814_v32 = vld [vmem:[%s21465_s26 + $0xf0] sm:$0xff]  ;;  %v6818_v9 = vld [vmem:[%s21465_s26 + $0x128] sm:$0xff] }
 0x3b7   : > { %7738 = vst [vmem:[#allocation3 + $0x128] sm:$0xfe] %v7685_v35  ;;  %7740 = vst [vmem:[#allocation3 + $0x138] sm:$0x1] %v7685_v35  ;;  %11279 = vmatpush1.bf16.msra.mxu0 %v21281_v48  ;;  %v7899_v8 = vld [vmem:[#allocation3 + $0x100] sm:$0xff]  ;;  %v6832_v31 = vpack.c.bf16 %v6814_v32, %v6811_v50  ;;  %v6824_v48 = vld [vmem:[%s21465_s26 + $0x188] sm:$0xff] }
 0x3b8   : > { %7774 = vst [vmem:[#allocation3 + $0x128] sm:$0xe0] %v24893_v56  ;;  %7776 = vst [vmem:[#allocation3 + $0x138] sm:$0x1] %v24893_v56  ;;  %11280 = vmatprep.subr.bf16.mxu0 %v21282_v26  ;;  %v8464_v22 = vpack.c.bf16 %v7899_v8, %v7897_v62  ;;  %7226 = vmatmul.mubr.bf16.gmra.mrb[12].mxu0 %v6829_v1  ;;  %v21283_v21 = vld [vmem:[%s28682_s6 + $0x320] ss:$8 sps:$4 sm:$0xff]   ;;  %v6839_v26 = vpack.c.bf16 %v6824_v48, %v6824_v48 }
 0x3b9   : > { %v7900_v17 = vld [vmem:[#allocation3 + $0x108] sm:$0xff]  ;;  %7235 = vmatprep.mubr.bf16.mxu0 %v6833_v34  ;;  %v6821_v56 = vld [vmem:[%s21465_s26 + $0x158] sm:$0xff]  ;;  %v6817_v34 = vld [vmem:[%s21465_s26 + $0x120] sm:$0xff] }
 0x3ba   : > { %v8465_v3 = vpack.c.bf16 %v7900_v17, %v7898_v40  ;;  %v21284_v23 = vld [vmem:[%s28682_s6 + $0x334] ss:$8 sps:$4 sm:$0xff]   ;;  %v6836_v10 = vpack.c.bf16 %v6821_v56, %v6818_v9  ;;  %v21285_v20 = vld [vmem:[%s28682_s6 + $0x330] ss:$8 sps:$4 sm:$0xff]   ;;  %v25162_v50 = vld [vmem:[%s28682_s6 + $0x4c0] ss:$8 sps:$4 sm:$0xff]  }
 0x3bb   : > { %11281 = vmatpush1.bf16.msra.mxu0 %v21283_v21  ;;  %v6820_v40 = vld [vmem:[%s21465_s26 + $0x150] sm:$0xff]  ;;  %v25181_v9 = vld [vmem:[%s28682_s6 + $0x4e4] ss:$8 sps:$4 sm:$0xff]   ;;  %v25186_v56 = vld [vmem:[%s28682_s6 + $0x4e0] ss:$8 sps:$4 sm:$0xff]  }
 0x3bc   : > { %9114 = vmatprep.mubr.bf16.mxu1 %v8465_v3  ;;  %11282 = vmatprep.subr.bf16.mxu0 %v21284_v23  ;;  %v6835_v8 = vpack.c.bf16 %v6820_v40, %v6817_v34  ;;  %v25157_v3 = vld [vmem:[%s28682_s6 + $0x4c4] ss:$8 sps:$4 sm:$0xff]   ;;  %v25169_v32 = vld [vmem:[%s28682_s6 + $0x4d4] ss:$8 sps:$4 sm:$0xff]   ;;  %v25174_v21 = vld [vmem:[%s28682_s6 + $0x4d0] ss:$8 sps:$4 sm:$0xff]  }
 0x3bd   : > { %9115 = vmatmul.mubr.bf16.gmra.mrb[152].mxu1 %v8464_v22  ;;  %v7901_v1 = vld [vmem:[#allocation3 + $0x120] sm:$0xff]  ;;  %v25150_v22 = vld [vmem:[%s28682_s6 + $0x4b0] ss:$8 sps:$4 sm:$0xff]   ;;  %v25193_v23 = vld [vmem:[%s28682_s6 + $0x4f4] ss:$8 sps:$4 sm:$0xff]  }
 0x3be   : > { %v8470_v62 = vpack.c.bf16 %v7901_v1, %v7901_v1  ;;  %28748 = vst [vmem:[#allocation12_spill] sm:$0xff] %v25193_v23 }
 0x3bf   : > { %v7902_v63 = vld [vmem:[#allocation3 + $0x128] sm:$0xff]  ;;  %11283 = vmatpush1.bf16.msra.mxu0 %v21285_v20 }
 0x3c0   : > { %v8471_v35 = vpack.c.bf16 %v7902_v63, %v7902_v63  ;;  %11284 = vmatprep.subr.bf16.mxu0 %v24603_v5  ;;  %7236 = vmatmul.mubr.bf16.gmra.mrb[16].mxu0 %v6832_v31  ;;  %v6823_v5 = vld [vmem:[%s21465_s26 + $0x180] sm:$0xff]  ;;  %v25198_v31 = vld [vmem:[%s28682_s6 + $0x4f0] ss:$8 sps:$4 sm:$0xff]  }
 0x3c1   : > { %7245 = vmatprep.mubr.bf16.mxu0 %v6836_v10  ;;  %v6838_v17 = vpack.c.bf16 %v6823_v5, %v6823_v5  ;;  %28749 = vst [vmem:[#allocation13_spill] sm:$0xff] %v25198_v31  ;;  %v25205_v10 = vld [vmem:[%s28682_s6 + $0x504] ss:$8 sps:$4 sm:$0xff]   ;;  %v21286_v63 = vld [vmem:[%s28679_s3] sm:$0x7] }
 0x3c2   : > { %9124 = vmatprep.mubr.bf16.mxu1 %v8471_v35  ;;  %28750 = vst [vmem:[#allocation14_spill] sm:$0xff] %v25205_v10  ;;  %v6763_v20 = vrot.slane %v21286_v63, %v24807_v7  ;;  %v6767_v35 = vrot.slane %v21286_v63, %v24818_v60 }
 0x3c3   : > { %11285 = vmatpush1.bf16.msra.mxu0 %v24623_v24  ;;  %v20263_v24 = vld [vmem:[%s28682_s6 + $0x404] ss:$8 sps:$4 sm:$0xff]  }
 0x3c4   : > { %11286 = vmatprep.subr.bf16.mxu0 %v24628_v45  ;;  %v25004_v45 = vld [vmem:[%s28682_s6 + $0x400] ss:$8 sps:$4 sm:$0xff]   ;;  %9133 = vmatprep.subr.bf16.mxu1 %v20263_v24 }
 0x3c5   : > { %9125 = vmatmul.mubr.bf16.gmra.mrb[156].mxu1 %v8470_v62 }
 0x3c6   : > { %9134 = vmatpush1.bf16.msra.mxu1 %v25004_v45 }
 0x3c7   : > { %11287 = vmatpush1.bf16.msra.mxu0 %v24641_v11  ;;  %v25011_v11 = vld [vmem:[%s28682_s6 + $0x414] ss:$8 sps:$4 sm:$0xff]  }
 0x3c8   : > { %11288 = vmatprep.subr.bf16.mxu0 %v24648_v38  ;;  %7246 = vmatmul.mubr.bf16.gmra.mrb[20].mxu0 %v6835_v8  ;;  %v25017_v38 = vld [vmem:[%s28682_s6 + $0x410] ss:$8 sps:$4 sm:$0xff]  }
 0x3c9   : > { %7255 = vmatprep.mubr.bf16.mxu0 %v6839_v26  ;;  %9135 = vmatprep.subr.bf16.mxu1 %v25011_v11 }
 0x3ca   : > { %9136 = vmatpush1.bf16.msra.mxu1 %v25017_v38 }
 0x3cb   : > { %11289 = vmatpush1.bf16.msra.mxu0 %v24661_v19  ;;  %v25022_v19 = vld [vmem:[%s28682_s6 + $0x424] ss:$8 sps:$4 sm:$0xff]  }
 0x3cc   : > { %11290 = vmatprep.subr.bf16.mxu0 %v24666_v47  ;;  %v25029_v47 = vld [vmem:[%s28682_s6 + $0x420] ss:$8 sps:$4 sm:$0xff]   ;;  %9137 = vmatprep.subr.bf16.mxu1 %v25022_v19 }
 0x3ce   : > { %9138 = vmatpush1.bf16.msra.mxu1 %v25029_v47 }
 0x3cf   : > { %11291 = vmatpush1.bf16.msra.mxu0 %v24676_v4  ;;  %v25036_v4 = vld [vmem:[%s28682_s6 + $0x434] ss:$8 sps:$4 sm:$0xff]  }
 0x3d0   : > { %11292 = vmatprep.subr.bf16.mxu0 %v24681_v61  ;;  %7256 = vmatmul.mubr.bf16.gmra.mrb[24].mxu0 %v6838_v17  ;;  %v25043_v61 = vld [vmem:[%s28682_s6 + $0x430] ss:$8 sps:$4 sm:$0xff]  }
 0x3d1   : > { %9139 = vmatprep.subr.bf16.mxu1 %v25036_v4 }
 0x3d2   : > { %9140 = vmatpush1.bf16.msra.mxu1 %v25043_v61 }
 0x3d3   : > { %11293 = vmatpush1.bf16.msra.mxu0 %v24688_v2  ;;  %v25050_v2 = vld [vmem:[%s28682_s6 + $0x444] ss:$8 sps:$4 sm:$0xff]  }
 0x3d4   : > { %11294 = vmatprep.subr.bf16.mxu0 %v24696_v30  ;;  %v25057_v30 = vld [vmem:[%s28682_s6 + $0x440] ss:$8 sps:$4 sm:$0xff]   ;;  %9141 = vmatprep.subr.bf16.mxu1 %v25050_v2 }
 0x3d6   : > { %9142 = vmatpush1.bf16.msra.mxu1 %v25057_v30 }
 0x3d7   : > { %11295 = vmatpush1.bf16.msra.mxu0 %v24710_v28  ;;  %v25064_v28 = vld [vmem:[%s28682_s6 + $0x454] ss:$8 sps:$4 sm:$0xff]  }
 0x3d8   : > { %11296 = vmatprep.subr.bf16.mxu0 %v24718_v37  ;;  %v25071_v37 = vld [vmem:[%s28682_s6 + $0x450] ss:$8 sps:$4 sm:$0xff]   ;;  %9143 = vmatprep.subr.bf16.mxu1 %v25064_v28 }
 0x3da   : > { %9144 = vmatpush1.bf16.msra.mxu1 %v25071_v37 }
 0x3db   : > { %11297 = vmatpush1.bf16.msra.mxu0 %v24728_v43  ;;  %v25078_v43 = vld [vmem:[%s28682_s6 + $0x464] ss:$8 sps:$4 sm:$0xff]  }
 0x3dc   : > { %11298 = vmatprep.subr.bf16.mxu0 %v24736_v41  ;;  %v25085_v41 = vld [vmem:[%s28682_s6 + $0x460] ss:$8 sps:$4 sm:$0xff]   ;;  %9145 = vmatprep.subr.bf16.mxu1 %v25078_v43 }
 0x3de   : > { %9146 = vmatpush1.bf16.msra.mxu1 %v25085_v41 }
 0x3df   : > { %11299 = vmatpush1.bf16.msra.mxu0 %v24747_v57  ;;  %v25092_v57 = vld [vmem:[%s28682_s6 + $0x474] ss:$8 sps:$4 sm:$0xff]  }
 0x3e0   : > { %11300 = vmatprep.subr.bf16.mxu0 %v24755_v55  ;;  %v25099_v55 = vld [vmem:[%s28682_s6 + $0x470] ss:$8 sps:$4 sm:$0xff]   ;;  %9147 = vmatprep.subr.bf16.mxu1 %v25092_v57 }
 0x3e2   : > { %9148 = vmatpush1.bf16.msra.mxu1 %v25099_v55 }
 0x3e3   : > { %11301 = vmatpush1.bf16.msra.mxu0 %v24765_v46  ;;  %v25106_v46 = vld [vmem:[%s28682_s6 + $0x484] ss:$8 sps:$4 sm:$0xff]  }
 0x3e4   : > { %11302 = vmatprep.subr.bf16.mxu0 %v24773_v25  ;;  %v25113_v25 = vld [vmem:[%s28682_s6 + $0x480] ss:$8 sps:$4 sm:$0xff]   ;;  %9149 = vmatprep.subr.bf16.mxu1 %v25106_v46 }
 0x3e6   : > { %9150 = vmatpush1.bf16.msra.mxu1 %v25113_v25 }
 0x3e7   : > { %11303 = vmatpush1.bf16.msra.mxu0 %v24783_v15  ;;  %v25120_v15 = vld [vmem:[%s28682_s6 + $0x494] ss:$8 sps:$4 sm:$0xff]  }
 0x3e8   : > { %11304 = vmatprep.subr.bf16.mxu0 %v24791_v27  ;;  %v25126_v27 = vld [vmem:[%s28682_s6 + $0x490] ss:$8 sps:$4 sm:$0xff]   ;;  %9151 = vmatprep.subr.bf16.mxu1 %v25120_v15 }
 0x3ea   : > { %9152 = vmatpush1.bf16.msra.mxu1 %v25126_v27 }
 0x3eb   : > { %11305 = vmatpush1.bf16.msra.mxu0 %v24804_v29  ;;  %v25132_v29 = vld [vmem:[%s28682_s6 + $0x4a4] ss:$8 sps:$4 sm:$0xff]  }
 0x3ec   : > { %11306 = vmatprep.subr.bf16.mxu0 %v24815_v36  ;;  %v25138_v36 = vld [vmem:[%s28682_s6 + $0x4a0] ss:$8 sps:$4 sm:$0xff]   ;;  %9153 = vmatprep.subr.bf16.mxu1 %v25132_v29 }
 0x3ee   : > { %9154 = vmatpush1.bf16.msra.mxu1 %v25138_v36 }
 0x3ef   : > { %11307 = vmatpush1.bf16.msra.mxu0 %v24828_v39  ;;  %v25145_v39 = vld [vmem:[%s28682_s6 + $0x4b4] ss:$8 sps:$4 sm:$0xff]  }
 0x3f0   : > { %11357 = vmatprep.subr.bf16.mxu0 %v20263_v24  ;;  %9155 = vmatprep.subr.bf16.mxu1 %v25145_v39 }
 0x3f2   : > { %9156 = vmatpush1.bf16.msra.mxu1 %v25150_v22 }
 0x3f3   : > { %9157 = vmatprep.subr.bf16.mxu1 %v25157_v3 }
 0x3f6   : > { %9158 = vmatpush1.bf16.msra.mxu1 %v25162_v50 }
 0x3f7   : > { %9159 = vmatprep.subr.bf16.mxu1 %v25169_v32 }
 0x3fa   : > { %9160 = vmatpush1.bf16.msra.mxu1 %v25174_v21 }
 0x3fb   : > { %9161 = vmatprep.subr.bf16.mxu1 %v25181_v9 }
 0x3fe   : > { %9162 = vmatpush1.bf16.msra.mxu1 %v25186_v56 }
 0x3ff   : > { %9163 = vmatprep.subr.bf16.mxu1 %v25193_v23 }
 0x402   : > { %9164 = vmatpush1.bf16.msra.mxu1 %v25198_v31 }
 0x403   : > { %9214 = vmatprep.subr.bf16.mxu1 %v25205_v10 }
 0x441   : > { %v6483_v1 = vpop.f32.mrb[0].mxu0 }
 0x442   : > { %v6775_v62 = vadd.f32 %v6763_v20, %v6483_v1  ;;  %v6485_v34 = vpop.f32.mrb[1].mxu0 }
 0x443   : > { %v6776_v40 = vadd.f32 %v6767_v35, %v6485_v34  ;;  %v6487_v48 = vpop.f32.mrb[2].mxu0 }
 0x444   : > { %v6787_v8 = vmax.f32 %v6775_v62, 0.0  ;;  %v6778_v26 = vadd.f32 %v6763_v20, %v6487_v48  ;;  %v6489_v5 = vpop.f32.mrb[3].mxu0 }
 0x445   : > { %v6788_v17 = vmax.f32 %v6776_v40, 0.0  ;;  %v6779_v24 = vadd.f32 %v6767_v35, %v6489_v5 }
 0x446   : > { %16427 = vst [vmem:[%s22893_s24 + $0x18] sm:$0xff] %v6787_v8  ;;  %v6790_v10 = vmax.f32 %v6778_v26, 0.0 }
 0x447   : > { %16428 = vst [vmem:[%s22893_s24 + $0x20] sm:$0xff] %v6788_v17  ;;  %v6791_v7 = vmax.f32 %v6779_v24, 0.0 }
 0x448   : > { %16436 = vst [vmem:[%s22893_s24 + $0x60] sm:$0xff] %v6790_v10 }
 0x449   : > { %16437 = vst [vmem:[%s22893_s24 + $0x68] sm:$0xff] %v6791_v7  ;;  %v6493_v63 = vpop.f32.mrb[4].mxu0 }
 0x44a   : > { %v6781_v1 = vadd.f32 %v6763_v20, %v6493_v63  ;;  %v6495_v60 = vpop.f32.mrb[5].mxu0 }
 0x44b   : > { %v6782_v34 = vadd.f32 %v6767_v35, %v6495_v60  ;;  %v6497_v31 = vpop.f32.mrb[6].mxu0 }
 0x44c   : > { %v6793_v62 = vmax.f32 %v6781_v1, 0.0  ;;  %v6784_v48 = vadd.f32 %v6763_v20, %v6497_v31  ;;  %v6499_v23 = vpop.f32.mrb[7].mxu0 }
 0x44d   : > { %v6794_v40 = vmax.f32 %v6782_v34, 0.0  ;;  %v6785_v5 = vadd.f32 %v6767_v35, %v6499_v23 }
 0x44e   : > { %16445 = vst [vmem:[%s22893_s24 + $0xa8] sm:$0xff] %v6793_v62  ;;  %v6796_v8 = vmax.f32 %v6784_v48, 0.0 }
 0x44f   : > { %16446 = vst [vmem:[%s22893_s24 + $0xb0] sm:$0xff] %v6794_v40  ;;  %v6797_v26 = vmax.f32 %v6785_v5, 0.0 }
 0x450   : > { %16454 = vst [vmem:[%s22893_s24 + $0xf0] sm:$0xff] %v6796_v8 }
 0x451   : > { %16455 = vst [vmem:[%s22893_s24 + $0xf8] sm:$0xff] %v6797_v26 }
 0x482   : > { %v7217_v10 = vpop.f32.mrb[8].mxu0 }
 0x483   : > { %v7218_v7 = vadd.f32 %v7217_v10, %v24831_v16  ;;  %v7219_v17 = vpop.f32.mrb[9].mxu0 }
 0x484   : > { %v7220_v24 = vadd.f32 %v7219_v17, %v24837_v51  ;;  %v7221_v63 = vpop.f32.mrb[10].mxu0 }
 0x485   : > { %v7299_v60 = vadd.f32 %v24430_v14, %v7218_v7  ;;  %v7222_v31 = vadd.f32 %v7221_v63, %v24831_v16  ;;  %v7223_v20 = vpop.f32.mrb[11].mxu0 }
 0x486   : > { %v7301_v23 = vadd.f32 %v24448_v12, %v7220_v24  ;;  %v7224_v35 = vadd.f32 %v7223_v20, %v24837_v51 }
 0x487   : > { %v7345_v1 = vmax.f32 %v7299_v60, 0.0  ;;  %v7303_v34 = vadd.f32 %v24547_v33, %v7222_v31  ;;  %v25234_v33 = vld [vmem:[%s28682_s6 + $0x500] ss:$8 sps:$4 sm:$0xff]   ;;  %v25241_v60 = vld [vmem:[%s28682_s6 + $0x514] ss:$8 sps:$4 sm:$0xff]  }
 0x488   : > { %v7346_v62 = vmax.f32 %v7301_v23, 0.0  ;;  %v7305_v48 = vadd.f32 %v24550_v13, %v7224_v35 }
 0x489   : > { %7632 = vst [vmem:[#allocation2 + $0x20] sm:$0xff] %v7345_v1  ;;  %v7347_v40 = vmax.f32 %v7303_v34, 0.0 }
 0x48a   : > { %7633 = vst [vmem:[#allocation2 + $0x28] sm:$0xff] %v7346_v62  ;;  %v7348_v5 = vmax.f32 %v7305_v48, 0.0 }
 0x48b   : > { %v7227_v8 = vpop.f32.mrb[12].mxu0  ;;  %7634 = vst [vmem:[#allocation2 + $0x40] sm:$0xff] %v7347_v40  ;;  %v8448_v10 = vpack.c.bf16 %v7347_v40, %v7345_v1 }
 0x48c   : > { %v7228_v14 = vadd.f32 %v7227_v8, %v24831_v16  ;;  %v7229_v26 = vpop.f32.mrb[13].mxu0  ;;  %7635 = vst [vmem:[#allocation2 + $0x48] sm:$0xff] %v7348_v5  ;;  %v8449_v17 = vpack.c.bf16 %v7348_v5, %v7346_v62 }
 0x48d   : > { %v7230_v12 = vadd.f32 %v7229_v26, %v24837_v51  ;;  %v7231_v7 = vpop.f32.mrb[14].mxu0 }
 0x48e   : > { %v7309_v13 = vadd.f32 %v24560_v52, %v7228_v14  ;;  %v7232_v24 = vadd.f32 %v7231_v7, %v24831_v16  ;;  %v7233_v63 = vpop.f32.mrb[15].mxu0  ;;  %9165 = vmatprep.mubr.bf16.mxu1 %v8449_v17  ;;  %11308 = vmatprep.mubr.bf16.mxu0 %v8449_v17  ;;  %v25268_v14 = vld [vmem:[%s28682_s6 + $0x520] ss:$8 sps:$4 sm:$0xff]   ;;  %v25277_v7 = vld [vmem:[%s28682_s6 + $0x534] ss:$8 sps:$4 sm:$0xff]  }
 0x48f   : > { %v7311_v31 = vadd.f32 %v24566_v0, %v7230_v12  ;;  %v7234_v20 = vadd.f32 %v7233_v63, %v24837_v51  ;;  %9166 = vmatmul.mubr.bf16.vlgmr.msra.gmra.mrb[140].mxu1 %v8448_v10  ;;  %11309 = vmatmul.mubr.bf16.vlgmr.msra.gmra.mrb[28].mxu0 %v8448_v10  ;;  %v25252_v0 = vld [vmem:[%s28682_s6 + $0x510] ss:$8 sps:$4 sm:$0xff]  }
 0x490   : > { %v7349_v23 = vmax.f32 %v7309_v13, 0.0  ;;  %v7313_v35 = vadd.f32 %v24571_v42, %v7232_v24  ;;  %9215 = vmatpush1.bf16.msra.mxu1 %v25234_v33  ;;  %11358 = vmatpush1.bf16.msra.mxu0 %v25004_v45  ;;  %v25259_v42 = vld [vmem:[%s28682_s6 + $0x524] ss:$8 sps:$4 sm:$0xff]  }
 0x491   : > { %v7350_v52 = vmax.f32 %v7311_v31, 0.0  ;;  %v7315_v1 = vadd.f32 %v24576_v59, %v7234_v20  ;;  %9216 = vmatprep.subr.bf16.mxu1 %v25241_v60  ;;  %11359 = vmatprep.subr.bf16.mxu0 %v25011_v11 }
 0x492   : > { %7636 = vst [vmem:[#allocation2 + $0x60] sm:$0xff] %v7349_v23  ;;  %v7351_v34 = vmax.f32 %v7313_v35, 0.0 }
 0x493   : > { %7637 = vst [vmem:[#allocation2 + $0x68] sm:$0xff] %v7350_v52  ;;  %v7352_v59 = vmax.f32 %v7315_v1, 0.0  ;;  %v7237_v62 = vpop.f32.mrb[16].mxu0 }
 0x494   : > { %7638 = vst [vmem:[#allocation2 + $0x80] sm:$0xff] %v7351_v34  ;;  %v7238_v45 = vadd.f32 %v7237_v62, %v24831_v16  ;;  %v7239_v48 = vpop.f32.mrb[17].mxu0  ;;  %v8454_v40 = vpack.c.bf16 %v7351_v34, %v7349_v23  ;;  %9217 = vmatpush1.bf16.msra.mxu1 %v25252_v0  ;;  %11360 = vmatpush1.bf16.msra.mxu0 %v25017_v38 }
 0x495   : > { %7639 = vst [vmem:[#allocation2 + $0x88] sm:$0xff] %v7352_v59  ;;  %v7240_v5 = vadd.f32 %v7239_v48, %v24837_v51  ;;  %v7241_v8 = vpop.f32.mrb[18].mxu0  ;;  %v8455_v11 = vpack.c.bf16 %v7352_v59, %v7350_v52  ;;  %9218 = vmatprep.subr.bf16.mxu1 %v25259_v42  ;;  %11361 = vmatprep.subr.bf16.mxu0 %v25022_v19 }
 0x496   : > { %v7319_v26 = vadd.f32 %v24582_v49, %v7238_v45  ;;  %v7242_v10 = vadd.f32 %v7241_v8, %v24831_v16  ;;  %v7243_v12 = vpop.f32.mrb[19].mxu0  ;;  %v25308_v45 = vld [vmem:[%s28682_s6 + $0x540] ss:$8 sps:$4 sm:$0xff]   ;;  %v25317_v8 = vld [vmem:[%s28682_s6 + $0x554] ss:$8 sps:$4 sm:$0xff]  }
 0x497   : > { %v7321_v17 = vadd.f32 %v24588_v44, %v7240_v5  ;;  %v7244_v13 = vadd.f32 %v7243_v12, %v24837_v51  ;;  %9175 = vmatprep.mubr.bf16.mxu1 %v8455_v11  ;;  %11318 = vmatprep.mubr.bf16.mxu0 %v8455_v11  ;;  %v25292_v44 = vld [vmem:[%s28682_s6 + $0x530] ss:$8 sps:$4 sm:$0xff]  }
 0x498   : > { %v25279_v38 = vpop.f32.mrb[156].mxu1  ;;  %v7353_v24 = vmax.f32 %v7319_v26, 0.0  ;;  %v7323_v63 = vadd.f32 %v24593_v18, %v7242_v10  ;;  %9176 = vmatmul.mubr.bf16.gmra.mrb[144].mxu1 %v8454_v40  ;;  %11319 = vmatmul.mubr.bf16.gmra.mrb[32].mxu0 %v8454_v40  ;;  %v25299_v18 = vld [vmem:[%s28682_s6 + $0x544] ss:$8 sps:$4 sm:$0xff]   ;;  %v28751_v12 = vld [vmem:[#allocation9_spill] sm:$0xff] }
 0x499   : > { %v25283_v49 = vpop.f32.mrb[157].mxu1  ;;  %v7354_v31 = vmax.f32 %v7321_v17, 0.0  ;;  %v7325_v20 = vadd.f32 %v24598_v58, %v7244_v13  ;;  %9219 = vmatpush1.bf16.msra.mxu1 %v25268_v14  ;;  %11362 = vmatpush1.bf16.msra.mxu0 %v25029_v47 }
 0x49a   : > { %v9130_v19 = vpop.f32.mrb[158].mxu1  ;;  %7640 = vst [vmem:[#allocation2 + $0xa0] sm:$0xff] %v7353_v24  ;;  %v7355_v35 = vmax.f32 %v7323_v63, 0.0  ;;  %9220 = vmatprep.subr.bf16.mxu1 %v25277_v7  ;;  %11363 = vmatprep.subr.bf16.mxu0 %v25036_v4 }
 0x49b   : > { %v9131_v23 = vpop.f32.mrb[159].mxu1  ;;  %7641 = vst [vmem:[#allocation2 + $0xa8] sm:$0xff] %v7354_v31  ;;  %v7356_v58 = vmax.f32 %v7325_v20, 0.0  ;;  %v7247_v47 = vpop.f32.mrb[20].mxu0  ;;  %v7924_v20 = vld [vmem:[#allocation3 + $0x38] sm:$0x1] }
 0x49c   : > { %7642 = vst [vmem:[#allocation2 + $0xc0] sm:$0xff] %v7355_v35  ;;  %v7248_v52 = vadd.f32 %v7247_v47, %v24831_v16  ;;  %v7249_v1 = vpop.f32.mrb[21].mxu0  ;;  %v8460_v34 = vpack.c.bf16 %v7355_v35, %v7353_v24  ;;  %v25344_v35 = vld [vmem:[%s28682_s6 + $0x560] ss:$8 sps:$4 sm:$0xff]  }
 0x49d   : > { %7643 = vst [vmem:[#allocation2 + $0xc8] sm:$0xff] %v7356_v58  ;;  %v7250_v59 = vadd.f32 %v7249_v1, %v24837_v51  ;;  %v7251_v62 = vpop.f32.mrb[22].mxu0  ;;  %9221 = vmatpush1.bf16.msra.mxu1 %v25292_v44  ;;  %11364 = vmatpush1.bf16.msra.mxu0 %v25043_v61  ;;  %v8461_v4 = vpack.c.bf16 %v7356_v58, %v7354_v31  ;;  %v7922_v31 = vld [vmem:[#allocation3 + $0x28] sm:$0xfe] }
 0x49e   : > { %v7329_v48 = vadd.f32 %v24605_v6, %v7248_v52  ;;  %v7252_v40 = vadd.f32 %v7251_v62, %v24831_v16  ;;  %v7253_v5 = vpop.f32.mrb[23].mxu0  ;;  %9222 = vmatprep.subr.bf16.mxu1 %v25299_v18  ;;  %11365 = vmatprep.subr.bf16.mxu0 %v25050_v2  ;;  %v7926_v58 = vld [vmem:[#allocation3 + $0x48] sm:$0xfe] }
 0x49f   : > { %v7331_v61 = vadd.f32 %v24610_v53, %v7250_v59  ;;  %v7254_v11 = vadd.f32 %v7253_v5, %v24837_v51  ;;  %9185 = vmatprep.mubr.bf16.mxu1 %v8461_v4  ;;  %11328 = vmatprep.mubr.bf16.mxu0 %v8461_v4  ;;  %v25328_v53 = vld [vmem:[%s28682_s6 + $0x550] ss:$8 sps:$4 sm:$0xff]   ;;  %v8377_v4 = vrot.slane %v7922_v31, 1  ;;  %v8383_v5 = vrot.slane %v7926_v58, 1 }
 0x4a0   : > { %v7357_v26 = vmax.f32 %v7329_v48, 0.0  ;;  %v7333_v6 = vadd.f32 %v24615_v54, %v7252_v40  ;;  %9186 = vmatmul.mubr.bf16.gmra.mrb[148].mxu1 %v8460_v34  ;;  %11329 = vmatmul.mubr.bf16.gmra.mrb[36].mxu0 %v8460_v34  ;;  %v25335_v54 = vld [vmem:[%s28682_s6 + $0x564] ss:$8 sps:$4 sm:$0xff]   ;;  %v28753_v34 = vld [vmem:[#allocation8_spill] sm:$0xff]  ;;  %v8378_v40 = vrot.slane %v7924_v20, 1 }
 0x4a1   : > { %v7358_v10 = vmax.f32 %v7331_v61, 0.0  ;;  %v7335_v17 = vadd.f32 %v28751_v12, %v7254_v11  ;;  %9223 = vmatpush1.bf16.msra.mxu1 %v25308_v45  ;;  %11366 = vmatpush1.bf16.msra.mxu0 %v25057_v30  ;;  %v7936_v31 = vld [vmem:[#allocation3 + $0x98] sm:$0x1]  ;;  %v25467_v20 = vld [vmem:[%s28682_s6 + $0x5f4] ss:$8 sps:$4 sm:$0xff]  }
 0x4a2   : > { %7644 = vst [vmem:[#allocation2 + $0xe0] sm:$0xff] %v7357_v26  ;;  %v7359_v2 = vmax.f32 %v7333_v6, 0.0  ;;  %9224 = vmatprep.subr.bf16.mxu1 %v25317_v8  ;;  %11367 = vmatprep.subr.bf16.mxu0 %v25064_v28  ;;  %v8379_v6 = vsel %vm465_vm0, %v8377_v4, %v8378_v40  ;;  %v7929_v4 = vld [vmem:[#allocation3 + $0x60] sm:$0xfe] }
 0x4a3   : > { %7645 = vst [vmem:[#allocation2 + $0xe8] sm:$0xff] %v7358_v10  ;;  %v7360_v13 = vmax.f32 %v7335_v17, 0.0  ;;  %v7257_v24 = vpop.f32.mrb[24].mxu0  ;;  %v25390_v17 = vld [vmem:[%s28682_s6 + $0x590] ss:$8 sps:$4 sm:$0xff]  }
 0x4a4   : > { %7646 = vst [vmem:[#allocation2 + $0x100] sm:$0xff] %v7359_v2  ;;  %v7258_v30 = vadd.f32 %v7257_v24, %v24831_v16  ;;  %v7259_v63 = vpop.f32.mrb[25].mxu0  ;;  %v8466_v19 = vpack.c.bf16 %v7359_v2, %v7357_v26  ;;  %v28752_v16 = vld [vmem:[#allocation7_spill] sm:$0xff]  ;;  %v25411_v2 = vld [vmem:[%s28682_s6 + $0x5b4] ss:$8 sps:$4 sm:$0xff]  }
 0x4a5   : > { %7647 = vst [vmem:[#allocation2 + $0x108] sm:$0xff] %v7360_v13  ;;  %v7260_v23 = vadd.f32 %v7259_v63, %v24837_v51  ;;  %9225 = vmatpush1.bf16.msra.mxu1 %v25328_v53  ;;  %11368 = vmatpush1.bf16.msra.mxu0 %v25071_v37  ;;  %v8467_v28 = vpack.c.bf16 %v7360_v13, %v7358_v10  ;;  %v7261_v47 = vpop.f32.mrb[26].mxu0  ;;  %v25352_v51 = vld [vmem:[%s28682_s6 + $0x574] ss:$8 sps:$4 sm:$0xff]   ;;  %v7928_v37 = vld [vmem:[#allocation3 + $0x58] sm:$0x1] }
 0x4a6   : > { %v7339_v52 = vadd.f32 %v28752_v16, %v7258_v30  ;;  %9226 = vmatprep.subr.bf16.mxu1 %v25335_v54  ;;  %11369 = vmatprep.subr.bf16.mxu0 %v25078_v43  ;;  %v7262_v1 = vpop.f32.mrb[27].mxu0  ;;  %v25360_v43 = vld [vmem:[%s28682_s6 + $0x570] ss:$8 sps:$4 sm:$0xff]   ;;  %v8384_v61 = vrot.slane %v7928_v37, 1  ;;  %v25367_v26 = vld [vmem:[%s28682_s6 + $0x584] ss:$8 sps:$4 sm:$0xff]  }
 0x4a7   : > { %v7341_v59 = vadd.f32 %v28753_v34, %v7260_v23  ;;  %9195 = vmatprep.mubr.bf16.mxu1 %v8467_v28  ;;  %11338 = vmatprep.mubr.bf16.mxu0 %v8467_v28  ;;  %v7923_v13 = vld [vmem:[#allocation3 + $0x30] sm:$0x1]  ;;  %v7925_v24 = vld [vmem:[#allocation3 + $0x40] sm:$0xfe]  ;;  %v7930_v63 = vld [vmem:[#allocation3 + $0x68] sm:$0xfe] }
 0x4a8   : > { %v7361_v62 = vmax.f32 %v7339_v52, 0.0  ;;  %9196 = vmatmul.mubr.bf16.gmra.mrb[152].mxu1 %v8466_v19  ;;  %11339 = vmatmul.mubr.bf16.gmra.mrb[40].mxu0 %v8466_v19  ;;  %v7927_v30 = vld [vmem:[#allocation3 + $0x50] sm:$0x1]  ;;  %v25460_v19 = vld [vmem:[%s28682_s6 + $0x5e0] ss:$8 sps:$4 sm:$0xff]   ;;  %v8375_v28 = vrot.slane %v7923_v13, 1 }
 0x4a9   : > { %v7362_v48 = vmax.f32 %v7341_v59, 0.0  ;;  %9227 = vmatpush1.bf16.msra.mxu1 %v25344_v35  ;;  %11370 = vmatpush1.bf16.msra.mxu0 %v25085_v41  ;;  %v25374_v41 = vld [vmem:[%s28682_s6 + $0x580] ss:$8 sps:$4 sm:$0xff]   ;;  %v8380_v58 = vrot.slane %v7925_v24, 1  ;;  %v8389_v47 = vrot.slane %v7930_v63, 1  ;;  %v8396_v37 = vrot.slane %v7936_v31, 1 }
 0x4aa   : > { %7648 = vst [vmem:[#allocation2 + $0x120] sm:$0xff] %v7361_v62  ;;  %9228 = vmatprep.subr.bf16.mxu1 %v25352_v51  ;;  %11371 = vmatprep.subr.bf16.mxu0 %v25092_v57  ;;  %v8385_v57 = vsel %vm465_vm0, %v8383_v5, %v8384_v61  ;;  %v8472_v10 = vpack.c.bf16 %v7361_v62, %v7361_v62  ;;  %v28754_v1 = vld [vmem:[#allocation12_spill] sm:$0xff]  ;;  %v25481_v34 = vld [vmem:[%s28682_s6 + $0x4] ss:$8 sps:$4 sm:$0xff]  }
 0x4ab   : > { %7649 = vst [vmem:[#allocation2 + $0x128] sm:$0xff] %v7362_v48  ;;  %v8473_v11 = vpack.c.bf16 %v7362_v48, %v7362_v48  ;;  %v8451_v12 = vpack.c.bf16 %v8385_v57, %v8379_v6  ;;  %v7933_v48 = vld [vmem:[#allocation3 + $0x80] sm:$0xfe]  ;;  %v7935_v61 = vld [vmem:[#allocation3 + $0x90] sm:$0x1]  ;;  %v28755_v57 = vld [vmem:[#allocation13_spill] sm:$0xff] }
 0x4ac   : > { %v7940_v6 = vld [vmem:[#allocation3 + $0xb8] sm:$0x1]  ;;  %v28756_v24 = vld [vmem:[#allocation14_spill] sm:$0xff]  ;;  %v8392_v31 = vrot.slane %v7933_v48, 1  ;;  %v7943_v48 = vld [vmem:[#allocation3 + $0xd0] sm:$0x1] }
 0x4ad   : > { %9229 = vmatpush1.bf16.msra.mxu1 %v25360_v43  ;;  %11372 = vmatpush1.bf16.msra.mxu0 %v25099_v55  ;;  %v25383_v55 = vld [vmem:[%s28682_s6 + $0x594] ss:$8 sps:$4 sm:$0xff]  }
 0x4ae   : > { %9205 = vmatprep.mubr.bf16.mxu1 %v8473_v11  ;;  %11348 = vmatprep.mubr.bf16.mxu0 %v8473_v11  ;;  %v7938_v11 = vld [vmem:[#allocation3 + $0xa8] sm:$0xfe] }
 0x4af   : > { %9230 = vmatprep.subr.bf16.mxu1 %v25367_v26  ;;  %11373 = vmatprep.subr.bf16.mxu0 %v25106_v46  ;;  %v25395_v46 = vld [vmem:[%s28682_s6 + $0x5a4] ss:$8 sps:$4 sm:$0xff]  }
 0x4b0   : > { %9206 = vmatmul.mubr.bf16.gmra.mrb[160].mxu1 %v8472_v10  ;;  %11349 = vmatmul.mubr.bf16.gmra.mrb[44].mxu0 %v8472_v10  ;;  %v25492_v10 = vld [vmem:[%s28682_s6] ss:$8 sps:$4 sm:$0xff]  }
 0x4b1   : > { %9231 = vmatpush1.bf16.msra.mxu1 %v25374_v41  ;;  %11374 = vmatpush1.bf16.msra.mxu0 %v25113_v25  ;;  %v25404_v25 = vld [vmem:[%s28682_s6 + $0x5a0] ss:$8 sps:$4 sm:$0xff]  }
 0x4b2   : > { %9246 = vmatprep.mubr.bf16.mxu1 %v8451_v12  ;;  %11389 = vmatprep.mubr.bf16.mxu0 %v8451_v12  ;;  %v7942_v12 = vld [vmem:[#allocation3 + $0xc8] sm:$0xfe] }
 0x4b3   : > { %9232 = vmatprep.subr.bf16.mxu1 %v25383_v55  ;;  %11375 = vmatprep.subr.bf16.mxu0 %v25120_v15  ;;  %v25418_v15 = vld [vmem:[%s28682_s6 + $0x5b0] ss:$8 sps:$4 sm:$0xff]  }
 0x4b5   : > { %9233 = vmatpush1.bf16.msra.mxu1 %v25390_v17  ;;  %11376 = vmatpush1.bf16.msra.mxu0 %v25126_v27  ;;  %v25425_v27 = vld [vmem:[%s28682_s6 + $0x5c4] ss:$8 sps:$4 sm:$0xff]  }
 0x4b6   : > { %9234 = vmatprep.subr.bf16.mxu1 %v25395_v46  ;;  %11377 = vmatprep.subr.bf16.mxu0 %v25132_v29  ;;  %v25432_v29 = vld [vmem:[%s28682_s6 + $0x5c0] ss:$8 sps:$4 sm:$0xff]  }
 0x4b9   : > { %9235 = vmatpush1.bf16.msra.mxu1 %v25404_v25  ;;  %11378 = vmatpush1.bf16.msra.mxu0 %v25138_v36  ;;  %v25439_v36 = vld [vmem:[%s28682_s6 + $0x5d4] ss:$8 sps:$4 sm:$0xff]  }
 0x4ba   : > { %9236 = vmatprep.subr.bf16.mxu1 %v25411_v2  ;;  %11379 = vmatprep.subr.bf16.mxu0 %v25145_v39  ;;  %v25446_v39 = vld [vmem:[%s28682_s6 + $0x5d0] ss:$8 sps:$4 sm:$0xff]  }
 0x4bd   : > { %9237 = vmatpush1.bf16.msra.mxu1 %v25418_v15  ;;  %11380 = vmatpush1.bf16.msra.mxu0 %v25150_v22  ;;  %v25453_v22 = vld [vmem:[%s28682_s6 + $0x5e4] ss:$8 sps:$4 sm:$0xff]  }
 0x4be   : > { %9238 = vmatprep.subr.bf16.mxu1 %v25425_v27  ;;  %11381 = vmatprep.subr.bf16.mxu0 %v25157_v3  ;;  %v7921_v3 = vld [vmem:[#allocation3 + $0x20] sm:$0xfe] }
 0x4bf   : > { %v8374_v23 = vrot.slane %v7921_v3, 1  ;;  %v7944_v3 = vld [vmem:[#allocation3 + $0xd8] sm:$0x1] }
 0x4c1   : > { %9239 = vmatpush1.bf16.msra.mxu1 %v25432_v29  ;;  %11382 = vmatpush1.bf16.msra.mxu0 %v25162_v50  ;;  %v7932_v50 = vld [vmem:[#allocation3 + $0x78] sm:$0x1]  ;;  %v8376_v59 = vsel %vm465_vm0, %v8374_v23, %v8375_v28  ;;  %v8393_v23 = vrot.slane %v7935_v61, 1  ;;  %v8401_v28 = vrot.slane %v7938_v11, 1  ;;  %v7950_v61 = vld [vmem:[#allocation3 + $0x108] sm:$0xfe] }
 0x4c2   : > { %9240 = vmatprep.subr.bf16.mxu1 %v25439_v36  ;;  %11383 = vmatprep.subr.bf16.mxu0 %v25169_v32  ;;  %v7934_v32 = vld [vmem:[#allocation3 + $0x88] sm:$0xfe]  ;;  %v8390_v16 = vrot.slane %v7932_v50, 1  ;;  %v25499_v50 = vld [vmem:[%s28682_s6 + $0x14] ss:$8 sps:$4 sm:$0xff]  }
 0x4c3   : > { %v8395_v52 = vrot.slane %v7934_v32, 1  ;;  %v7952_v11 = vld [vmem:[#allocation3 + $0x118] sm:$0x1] }
 0x4c4   : > { %v8391_v40 = vsel %vm465_vm0, %v8389_v47, %v8390_v16  ;;  %v8408_v47 = vrot.slane %v7944_v3, 1  ;;  %v25505_v16 = vld [vmem:[%s28682_s6 + $0x10] ss:$8 sps:$4 sm:$0xff]   ;;  %v25531_v3 = vld [vmem:[%s28682_s6 + $0x34] ss:$8 sps:$4 sm:$0xff]  }
 0x4c5   : > { %9241 = vmatpush1.bf16.msra.mxu1 %v25446_v39  ;;  %11384 = vmatpush1.bf16.msra.mxu0 %v25174_v21  ;;  %v8381_v21 = vrot.slane %v7927_v30, 1  ;;  %v8397_v5 = vsel %vm465_vm0, %v8395_v52, %v8396_v37  ;;  %v8386_v30 = vrot.slane %v7929_v4, 1  ;;  %v25511_v52 = vld [vmem:[%s28682_s6 + $0x24] ss:$8 sps:$4 sm:$0xff]  }
 0x4c6   : > { %9242 = vmatprep.subr.bf16.mxu1 %v25453_v22  ;;  %11385 = vmatprep.subr.bf16.mxu0 %v25181_v9  ;;  %v25474_v9 = vld [vmem:[%s28682_s6 + $0x5f0] ss:$8 sps:$4 sm:$0xff]   ;;  %v8457_v63 = vpack.c.bf16 %v8397_v5, %v8391_v40  ;;  %v7941_v4 = vld [vmem:[#allocation3 + $0xc0] sm:$0xfe]  ;;  %v7946_v40 = vld [vmem:[#allocation3 + $0xe8] sm:$0xfe] }
 0x4c7   : > { %v8382_v62 = vsel %vm465_vm0, %v8380_v58, %v8381_v21  ;;  %v8402_v58 = vrot.slane %v7940_v6, 1  ;;  %v8407_v21 = vrot.slane %v7942_v12, 1  ;;  %v7948_v5 = vld [vmem:[#allocation3 + $0xf8] sm:$0x1] }
 0x4c8   : > { %v8450_v13 = vpack.c.bf16 %v8382_v62, %v8376_v59  ;;  %v7937_v59 = vld [vmem:[#allocation3 + $0xa0] sm:$0xfe]  ;;  %v7939_v62 = vld [vmem:[#allocation3 + $0xb0] sm:$0x1] }
 0x4c9   : > { %9243 = vmatpush1.bf16.msra.mxu1 %v25460_v19  ;;  %11386 = vmatpush1.bf16.msra.mxu0 %v25186_v56  ;;  %v7931_v56 = vld [vmem:[#allocation3 + $0x70] sm:$0x1] }
 0x4ca   : > { %9244 = vmatprep.subr.bf16.mxu1 %v25467_v20  ;;  %11387 = vmatprep.subr.bf16.mxu0 %v28754_v1  ;;  %v8387_v32 = vrot.slane %v7931_v56, 1  ;;  %v8394_v1 = vsel %vm465_vm0, %v8392_v31, %v8393_v23  ;;  %v8403_v56 = vsel %vm465_vm0, %v8401_v28, %v8402_v58  ;;  %v8420_v31 = vrot.slane %v7952_v11, 1  ;;  %v25543_v23 = vld [vmem:[%s28682_s6 + $0x44] ss:$8 sps:$4 sm:$0xff]  }
 0x4cc   : > { %v8388_v37 = vsel %vm465_vm0, %v8386_v30, %v8387_v32  ;;  %v8405_v30 = vrot.slane %v7943_v48, 1  ;;  %v8414_v32 = vrot.slane %v7948_v5, 1 }
 0x4cd   : > { %9245 = vmatpush1.bf16.msra.mxu1 %v25474_v9  ;;  %11388 = vmatpush1.bf16.msra.mxu0 %v28755_v57  ;;  %v8456_v6 = vpack.c.bf16 %v8394_v1, %v8388_v37  ;;  %v8398_v57 = vrot.slane %v7937_v59, 1  ;;  %v7947_v1 = vld [vmem:[#allocation3 + $0xf0] sm:$0x1] }
 0x4ce   : > { %9775 = vmatprep.subr.bf16.mxu1 %v25481_v34  ;;  %11438 = vmatprep.subr.bf16.mxu0 %v28756_v24  ;;  %v8404_v24 = vrot.slane %v7941_v4, 1  ;;  %v7951_v59 = vld [vmem:[#allocation3 + $0x110] sm:$0x1]  ;;  %v7956_v4 = vld [vmem:[#allocation3 + $0x138] sm:$0x1]  ;;  %v8411_v5 = vrot.slane %v7947_v1, 1 }
 0x4cf   : > { %v8417_v11 = vrot.slane %v7951_v59, 1 }
 0x4d0   : > { %9247 = vmatmul.mubr.bf16.vlgmr.msra.gmra.mrb[140].mxu1 %v8450_v13  ;;  %11390 = vmatmul.mubr.bf16.vlgmr.msra.gmra.mrb[28].mxu0 %v8450_v13  ;;  %v8399_v13 = vrot.slane %v7939_v62, 1  ;;  %v8406_v58 = vsel %vm465_vm0, %v8404_v24, %v8405_v30  ;;  %v25555_v62 = vld [vmem:[%s28682_s6 + $0x40] ss:$8 sps:$4 sm:$0xff]  }
 0x4d1   : > { %9256 = vmatprep.mubr.bf16.mxu1 %v8457_v63  ;;  %9776 = vmatpush1.bf16.msra.mxu1 %v25492_v10  ;;  %v7953_v30 = vld [vmem:[#allocation3 + $0x120] sm:$0xfe] }
 0x4d2   : > { %11399 = vmatprep.mubr.bf16.mxu0 %v8457_v63  ;;  %11439 = vmatpush1.bf16.msra.mxu0 %v25234_v33  ;;  %v8409_v33 = vsel %vm465_vm0, %v8407_v21, %v8408_v47  ;;  %v8413_v63 = vrot.slane %v7946_v40, 1  ;;  %v8400_v28 = vsel %vm465_vm0, %v8398_v57, %v8399_v13  ;;  %v7945_v21 = vld [vmem:[#allocation3 + $0xe0] sm:$0xfe]  ;;  %v25563_v40 = vld [vmem:[%s28682_s6 + $0x54] ss:$8 sps:$4 sm:$0xff]   ;;  %v8426_v57 = vrot.slane %v7956_v4, 1 }
 0x4d3   : > { %9777 = vmatprep.subr.bf16.mxu1 %v25499_v50  ;;  %11440 = vmatprep.subr.bf16.mxu0 %v25241_v60  ;;  %v25523_v60 = vld [vmem:[%s28682_s6 + $0x20] ss:$8 sps:$4 sm:$0xff]   ;;  %v8463_v12 = vpack.c.bf16 %v8409_v33, %v8403_v56  ;;  %v8462_v56 = vpack.c.bf16 %v8406_v58, %v8400_v28  ;;  %v8410_v33 = vrot.slane %v7945_v21, 1  ;;  %v25594_v28 = vld [vmem:[%s28682_s6 + $0x74] ss:$8 sps:$4 sm:$0xff]   ;;  %v8422_v58 = vrot.slane %v7953_v30, 1 }
 0x4d4   : > { %v8415_v47 = vsel %vm465_vm0, %v8413_v63, %v8414_v32  ;;  %v7955_v63 = vld [vmem:[#allocation3 + $0x130] sm:$0x1]  ;;  %v7957_v30 = vld [vmem:[#allocation2 + $0x20] sm:$0xfe] }
 0x4d5   : > { %9778 = vmatpush1.bf16.msra.mxu1 %v25505_v16  ;;  %v8423_v21 = vrot.slane %v7955_v63, 1  ;;  %v7959_v63 = vld [vmem:[#allocation2 + $0x30] sm:$0x1] }
 0x4d6   : > { %11441 = vmatpush1.bf16.msra.mxu0 %v25252_v0  ;;  %9779 = vmatprep.subr.bf16.mxu1 %v25511_v52  ;;  %v8419_v0 = vrot.slane %v7950_v61, 1 }
 0x4d7   : > { %11442 = vmatprep.subr.bf16.mxu0 %v25259_v42  ;;  %v25537_v42 = vld [vmem:[%s28682_s6 + $0x30] ss:$8 sps:$4 sm:$0xff]   ;;  %v8424_v59 = vsel %vm465_vm0, %v8422_v58, %v8423_v21 }
 0x4d8   : > { %9257 = vmatmul.mubr.bf16.gmra.mrb[144].mxu1 %v8456_v6  ;;  %11400 = vmatmul.mubr.bf16.gmra.mrb[32].mxu0 %v8456_v6  ;;  %v8421_v37 = vsel %vm465_vm0, %v8419_v0, %v8420_v31  ;;  %v7964_v0 = vld [vmem:[#allocation2 + $0x58] sm:$0x1] }
 0x4d9   : > { %9266 = vmatprep.mubr.bf16.mxu1 %v8463_v12  ;;  %9780 = vmatpush1.bf16.msra.mxu1 %v25523_v60  ;;  %v8469_v48 = vpack.c.bf16 %v8421_v37, %v8415_v47  ;;  %v7958_v47 = vld [vmem:[#allocation2 + $0x28] sm:$0xfe]  ;;  %v7960_v37 = vld [vmem:[#allocation2 + $0x38] sm:$0x1]  ;;  %v11204_v1 = vrot.slane %v7964_v0, 1 }
 0x4da   : > { %11409 = vmatprep.mubr.bf16.mxu0 %v8463_v12  ;;  %11443 = vmatpush1.bf16.msra.mxu0 %v25268_v14  ;;  %v7949_v14 = vld [vmem:[#allocation3 + $0x100] sm:$0xfe]  ;;  %v8412_v12 = vsel %vm465_vm0, %v8410_v33, %v8411_v5  ;;  %v11198_v4 = vrot.slane %v7960_v37, 1  ;;  %v7966_v0 = vld [vmem:[#allocation2 + $0x68] sm:$0xfe]  ;;  %v11195_v37 = vrot.slane %v7959_v63, 1 }
 0x4db   : > { %9781 = vmatprep.subr.bf16.mxu1 %v25531_v3  ;;  %11444 = vmatprep.subr.bf16.mxu0 %v25277_v7  ;;  %v7954_v7 = vld [vmem:[#allocation3 + $0x128] sm:$0xfe]  ;;  %v8416_v61 = vrot.slane %v7949_v14, 1  ;;  %v7967_v63 = vld [vmem:[#allocation2 + $0x70] sm:$0x1] }
 0x4dc   : > { %v8425_v6 = vrot.slane %v7954_v7, 1  ;;  %v25606_v14 = vld [vmem:[%s28682_s6 + $0x84] ss:$8 sps:$4 sm:$0xff]   ;;  %v11197_v7 = vrot.slane %v7958_v47, 1  ;;  %v11194_v47 = vrot.slane %v7957_v30, 1 }
 0x4dd   : > { %9782 = vmatpush1.bf16.msra.mxu1 %v25537_v42  ;;  %v8418_v13 = vsel %vm465_vm0, %v8416_v61, %v8417_v11  ;;  %v25628_v11 = vld [vmem:[%s28682_s6 + $0x94] ss:$8 sps:$4 sm:$0xff]   ;;  %v7965_v30 = vld [vmem:[#allocation2 + $0x60] sm:$0xfe] }
 0x4de   : > { %11445 = vmatpush1.bf16.msra.mxu0 %v25292_v44  ;;  %9783 = vmatprep.subr.bf16.mxu1 %v25543_v23  ;;  %v25569_v44 = vld [vmem:[%s28682_s6 + $0x50] ss:$8 sps:$4 sm:$0xff]   ;;  %v8427_v24 = vsel %vm465_vm0, %v8425_v6, %v8426_v57  ;;  %v8468_v32 = vpack.c.bf16 %v8418_v13, %v8412_v12  ;;  %v11199_v61 = vsel %vm465_vm0, %v11197_v7, %v11198_v4  ;;  %v25648_v57 = vld [vmem:[%s28682_s6 + $0xa0] ss:$8 sps:$4 sm:$0xff]  }
 0x4df   : > { %11446 = vmatprep.subr.bf16.mxu0 %v25299_v18  ;;  %v25575_v18 = vld [vmem:[%s28682_s6 + $0x64] ss:$8 sps:$4 sm:$0xff]   ;;  %v8475_v31 = vpack.c.bf16 %v8427_v24, %v8427_v24  ;;  %v7963_v13 = vld [vmem:[#allocation2 + $0x50] sm:$0x1] }
 0x4e0   : > { %9267 = vmatmul.mubr.bf16.gmra.mrb[148].mxu1 %v8462_v56  ;;  %11410 = vmatmul.mubr.bf16.gmra.mrb[36].mxu0 %v8462_v56  ;;  %v7780_v56 = vld [vmem:[#allocation3 + $0x28] sm:$0xff]  ;;  %v7961_v12 = vld [vmem:[#allocation2 + $0x40] sm:$0xfe] }
 0x4e1   : > { %9276 = vmatprep.mubr.bf16.mxu1 %v8469_v48  ;;  %9784 = vmatpush1.bf16.msra.mxu1 %v25555_v62  ;;  %v7970_v24 = vld [vmem:[#allocation2 + $0x88] sm:$0xfe] }
 0x4e2   : > { %11419 = vmatprep.mubr.bf16.mxu0 %v8469_v48  ;;  %11447 = vmatpush1.bf16.msra.mxu0 %v25308_v45  ;;  %v25586_v45 = vld [vmem:[%s28682_s6 + $0x60] ss:$8 sps:$4 sm:$0xff]   ;;  %v8474_v48 = vpack.c.bf16 %v8424_v59, %v8424_v59  ;;  %v11215_v58 = vrot.slane %v7970_v24, 1 }
 0x4e3   : > { %9785 = vmatprep.subr.bf16.mxu1 %v25563_v40  ;;  %11448 = vmatprep.subr.bf16.mxu0 %v25317_v8  ;;  %v7962_v8 = vld [vmem:[#allocation2 + $0x48] sm:$0xfe] }
 0x4e4   : > { %v7782_v4 = vld [vmem:[#allocation3 + $0x48] sm:$0xff] }
 0x4e5   : > { %9786 = vmatpush1.bf16.msra.mxu1 %v25569_v44 }
 0x4e6   : > { %11449 = vmatpush1.bf16.msra.mxu0 %v25328_v53  ;;  %9787 = vmatprep.subr.bf16.mxu1 %v25575_v18  ;;  %v25600_v53 = vld [vmem:[%s28682_s6 + $0x70] ss:$8 sps:$4 sm:$0xff]  }
 0x4e7   : > { %11450 = vmatprep.subr.bf16.mxu0 %v25335_v54  ;;  %v11203_v54 = vrot.slane %v7962_v8, 1  ;;  %v11201_v8 = vrot.slane %v7963_v13, 1 }
 0x4e8   : > { %9277 = vmatmul.mubr.bf16.gmra.mrb[152].mxu1 %v8468_v32  ;;  %11420 = vmatmul.mubr.bf16.gmra.mrb[40].mxu0 %v8468_v32  ;;  %v11200_v32 = vrot.slane %v7961_v12, 1  ;;  %v7980_v12 = vld [vmem:[#allocation2 + $0xd8] sm:$0x1] }
 0x4e9   : > { %9286 = vmatprep.mubr.bf16.mxu1 %v8475_v31  ;;  %9788 = vmatpush1.bf16.msra.mxu1 %v25586_v45  ;;  %v11205_v33 = vsel %vm465_vm0, %v11203_v54, %v11204_v1  ;;  %v7779_v54 = vld [vmem:[#allocation3 + $0x20] sm:$0xff]  ;;  %v11209_v1 = vrot.slane %v7966_v0, 1 }
 0x4ea   : > { %11429 = vmatprep.mubr.bf16.mxu0 %v8475_v31  ;;  %11451 = vmatpush1.bf16.msra.mxu0 %v25344_v35  ;;  %v25615_v35 = vld [vmem:[%s28682_s6 + $0x80] ss:$8 sps:$4 sm:$0xff]   ;;  %v11267_v6 = vpack.c.bf16 %v11205_v33, %v11199_v61  ;;  %v7968_v31 = vld [vmem:[#allocation2 + $0x78] sm:$0x1]  ;;  %v11202_v7 = vsel %vm465_vm0, %v11200_v32, %v11201_v8  ;;  %v11196_v61 = vsel %vm465_vm0, %v11194_v47, %v11195_v37  ;;  %v11206_v37 = vrot.slane %v7965_v30, 1 }
 0x4eb   : > { %9789 = vmatprep.subr.bf16.mxu1 %v25594_v28  ;;  %11452 = vmatprep.subr.bf16.mxu0 %v25352_v51  ;;  %v25621_v51 = vld [vmem:[#allocation2] sm:$0xff]  ;;  %v11210_v59 = vrot.slane %v7968_v31, 1  ;;  %v11266_v13 = vpack.c.bf16 %v11202_v7, %v11196_v61  ;;  %v7974_v31 = vld [vmem:[#allocation2 + $0xa8] sm:$0xfe]  ;;  %v25751_v47 = vld [vmem:[%s28682_s6 + $0x110] ss:$8 sps:$4 sm:$0xff]  }
 0x4ec   : > { %v8213_v5 = vpack.c.bf16 %v7780_v56, %v25621_v51  ;;  %v7784_v56 = vld [vmem:[#allocation3 + $0x68] sm:$0xff]  ;;  %v7969_v33 = vld [vmem:[#allocation2 + $0x80] sm:$0xfe]  ;;  %v7979_v61 = vld [vmem:[#allocation2 + $0xd0] sm:$0x1] }
 0x4ed   : > { %9790 = vmatpush1.bf16.msra.mxu1 %v25600_v53  ;;  %v8219_v24 = vpack.c.bf16 %v7784_v56, %v7782_v4  ;;  %v11212_v8 = vrot.slane %v7969_v33, 1  ;;  %v25758_v7 = vld [vmem:[%s28682_s6 + $0x124] ss:$8 sps:$4 sm:$0xff]   ;;  %v11221_v4 = vrot.slane %v7974_v31, 1 }
 0x4ee   : > { %11453 = vmatpush1.bf16.msra.mxu0 %v25360_v43  ;;  %9791 = vmatprep.subr.bf16.mxu1 %v25606_v14  ;;  %v25634_v43 = vld [vmem:[%s28682_s6 + $0x90] ss:$8 sps:$4 sm:$0xff]   ;;  %v7786_v33 = vld [vmem:[#allocation3 + $0x88] sm:$0xff] }
 0x4ef   : > { %11454 = vmatprep.subr.bf16.mxu0 %v25367_v26  ;;  %v25640_v26 = vld [vmem:[%s28682_s6 + $0xa4] ss:$8 sps:$4 sm:$0xff]  }
 0x4f0   : > { %9287 = vmatmul.mubr.bf16.gmra.mrb[164].mxu1 %v8474_v48  ;;  %11430 = vmatmul.mubr.bf16.gmra.mrb[48].mxu0 %v8474_v48  ;;  %v7971_v48 = vld [vmem:[#allocation2 + $0x90] sm:$0x1] }
 0x4f1   : > { %9792 = vmatpush1.bf16.msra.mxu1 %v25615_v35  ;;  %9807 = vmatprep.mubr.bf16.mxu1 %v8213_v5  ;;  %v8212_v5 = vpack.c.bf16 %v7779_v54, %v25621_v51  ;;  %v11213_v0 = vrot.slane %v7971_v48, 1  ;;  %v11207_v54 = vrot.slane %v7967_v63, 1  ;;  %v7788_v48 = vld [vmem:[#allocation3 + $0xa8] sm:$0xff] }
 0x4f2   : > { %11455 = vmatpush1.bf16.msra.mxu0 %v25374_v41  ;;  %11470 = vmatprep.mubr.bf16.mxu0 %v11267_v6  ;;  %v25655_v41 = vld [vmem:[%s28682_s6 + $0xb4] ss:$8 sps:$4 sm:$0xff]   ;;  %v7978_v6 = vld [vmem:[#allocation2 + $0xc8] sm:$0xfe]  ;;  %v8225_v30 = vpack.c.bf16 %v7788_v48, %v7786_v33 }
 0x4f3   : > { %9793 = vmatprep.subr.bf16.mxu1 %v25628_v11  ;;  %11456 = vmatprep.subr.bf16.mxu0 %v25383_v55  ;;  %v25662_v55 = vld [vmem:[%s28682_s6 + $0xb0] ss:$8 sps:$4 sm:$0xff]  }
 0x4f5   : > { %9794 = vmatpush1.bf16.msra.mxu1 %v25634_v43 }
 0x4f6   : > { %11457 = vmatpush1.bf16.msra.mxu0 %v25390_v17  ;;  %9795 = vmatprep.subr.bf16.mxu1 %v25640_v26  ;;  %v25669_v17 = vld [vmem:[%s28682_s6 + $0xc4] ss:$8 sps:$4 sm:$0xff]  }
 0x4f7   : > { %11458 = vmatprep.subr.bf16.mxu0 %v25395_v46  ;;  %v25676_v46 = vld [vmem:[%s28682_s6 + $0xc0] ss:$8 sps:$4 sm:$0xff]  }
 0x4f9   : > { %9796 = vmatpush1.bf16.msra.mxu1 %v25648_v57 }
 0x4fa   : > { %11459 = vmatpush1.bf16.msra.mxu0 %v25404_v25  ;;  %9797 = vmatprep.subr.bf16.mxu1 %v25655_v41  ;;  %v25683_v25 = vld [vmem:[%s28682_s6 + $0xd4] ss:$8 sps:$4 sm:$0xff]  }
 0x4fb   : > { %11460 = vmatprep.subr.bf16.mxu0 %v25411_v2  ;;  %v25690_v2 = vld [vmem:[%s28682_s6 + $0xd0] ss:$8 sps:$4 sm:$0xff]  }
 0x4fd   : > { %9798 = vmatpush1.bf16.msra.mxu1 %v25662_v55 }
 0x4fe   : > { %11461 = vmatpush1.bf16.msra.mxu0 %v25418_v15  ;;  %9799 = vmatprep.subr.bf16.mxu1 %v25669_v17  ;;  %v25697_v15 = vld [vmem:[%s28682_s6 + $0xe4] ss:$8 sps:$4 sm:$0xff]  }
 0x4ff   : > { %11462 = vmatprep.subr.bf16.mxu0 %v25425_v27  ;;  %v25704_v27 = vld [vmem:[%s28682_s6 + $0xe0] ss:$8 sps:$4 sm:$0xff]  }
 0x501   : > { %9800 = vmatpush1.bf16.msra.mxu1 %v25676_v46 }
 0x502   : > { %11463 = vmatpush1.bf16.msra.mxu0 %v25432_v29  ;;  %9801 = vmatprep.subr.bf16.mxu1 %v25683_v25  ;;  %v25711_v29 = vld [vmem:[%s28682_s6 + $0xf4] ss:$8 sps:$4 sm:$0xff]  }
 0x503   : > { %11464 = vmatprep.subr.bf16.mxu0 %v25439_v36  ;;  %v7972_v36 = vld [vmem:[#allocation2 + $0x98] sm:$0x1] }
 0x504   : > { %v11216_v21 = vrot.slane %v7972_v36, 1  ;;  %v11211_v36 = vsel %vm465_vm0, %v11209_v1, %v11210_v59  ;;  %v7781_v1 = vld [vmem:[#allocation3 + $0x40] sm:$0xff] }
 0x505   : > { %9802 = vmatpush1.bf16.msra.mxu1 %v25690_v2  ;;  %v7783_v59 = vld [vmem:[#allocation3 + $0x60] sm:$0xff] }
 0x506   : > { %11465 = vmatpush1.bf16.msra.mxu0 %v25446_v39  ;;  %9803 = vmatprep.subr.bf16.mxu1 %v25697_v15  ;;  %v25718_v39 = vld [vmem:[%s28682_s6 + $0xf0] ss:$8 sps:$4 sm:$0xff]  }
 0x507   : > { %11466 = vmatprep.subr.bf16.mxu0 %v25453_v22  ;;  %v25725_v22 = vld [vmem:[%s28682_s6 + $0x104] ss:$8 sps:$4 sm:$0xff]  }
 0x509   : > { %9804 = vmatpush1.bf16.msra.mxu1 %v25704_v27 }
 0x50a   : > { %11467 = vmatpush1.bf16.msra.mxu0 %v25460_v19  ;;  %9805 = vmatprep.subr.bf16.mxu1 %v25711_v29  ;;  %v11217_v19 = vsel %vm465_vm0, %v11215_v58, %v11216_v21  ;;  %v7976_v58 = vld [vmem:[#allocation2 + $0xb8] sm:$0x1]  ;;  %v11227_v21 = vrot.slane %v7978_v6, 1  ;;  %v8218_v6 = vpack.c.bf16 %v7783_v59, %v7781_v1 }
 0x50b   : > { %11468 = vmatprep.subr.bf16.mxu0 %v25467_v20  ;;  %v25736_v20 = vld [vmem:[%s28682_s6 + $0x100] ss:$8 sps:$4 sm:$0xff]   ;;  %v11269_v32 = vpack.c.bf16 %v11217_v19, %v11211_v36  ;;  %v11222_v56 = vrot.slane %v7976_v58, 1  ;;  %v11214_v19 = vsel %vm465_vm0, %v11212_v8, %v11213_v0  ;;  %v7975_v0 = vld [vmem:[#allocation2 + $0xb0] sm:$0x1] }
 0x50c   : > { %v7973_v8 = vld [vmem:[#allocation2 + $0xa0] sm:$0xfe]  ;;  %v25783_v1 = vld [vmem:[%s28682_s6 + $0x130] ss:$8 sps:$4 sm:$0xff]  }
 0x50d   : > { %9806 = vmatpush1.bf16.msra.mxu1 %v25718_v39  ;;  %v11223_v63 = vsel %vm465_vm0, %v11221_v4, %v11222_v56  ;;  %v11218_v59 = vrot.slane %v7973_v8, 1  ;;  %v11219_v4 = vrot.slane %v7975_v0, 1  ;;  %v7787_v56 = vld [vmem:[#allocation3 + $0xa0] sm:$0xff] }
 0x50e   : > { %11469 = vmatpush1.bf16.msra.mxu0 %v25474_v9  ;;  %9856 = vmatprep.subr.bf16.mxu1 %v25725_v22  ;;  %v25745_v9 = vld [vmem:[%s28682_s6 + $0x114] ss:$8 sps:$4 sm:$0xff]  }
 0x50f   : > { %11519 = vmatprep.subr.bf16.mxu0 %v25481_v34  ;;  %v11228_v34 = vrot.slane %v7980_v12, 1  ;;  %v25767_v12 = vld [vmem:[%s28682_s6 + $0x120] ss:$8 sps:$4 sm:$0xff]  }
 0x510   : > { %9808 = vmatmul.mubr.bf16.vlgmr.msra.gmra.mrb[140].mxu1 %v8212_v5 }
 0x511   : > { %11471 = vmatmul.mubr.bf16.vlgmr.msra.gmra.mrb[28].mxu0 %v11266_v13  ;;  %9817 = vmatprep.mubr.bf16.mxu1 %v8219_v24  ;;  %v11229_v5 = vsel %vm465_vm0, %v11227_v21, %v11228_v34  ;;  %v11208_v13 = vsel %vm465_vm0, %v11206_v37, %v11207_v54  ;;  %v7986_v24 = vld [vmem:[#allocation2 + $0x108] sm:$0xfe]  ;;  %v11225_v21 = vrot.slane %v7979_v61, 1  ;;  %v7984_v34 = vld [vmem:[#allocation2 + $0xf8] sm:$0x1] }
 0x512   : > { %9857 = vmatpush1.bf16.msra.mxu1 %v25736_v20  ;;  %11480 = vmatprep.mubr.bf16.mxu0 %v11269_v32  ;;  %v11268_v36 = vpack.c.bf16 %v11214_v19, %v11208_v13  ;;  %v25776_v32 = vld [vmem:[%s28682_s6 + $0x134] ss:$8 sps:$4 sm:$0xff]   ;;  %v11271_v31 = vpack.c.bf16 %v11229_v5, %v11223_v63  ;;  %v11239_v37 = vrot.slane %v7986_v24, 1  ;;  %v25790_v19 = vld [vmem:[%s28682_s6 + $0x144] ss:$8 sps:$4 sm:$0xff]   ;;  %v11234_v48 = vrot.slane %v7984_v34, 1 }
 0x513   : > { %11520 = vmatpush1.bf16.msra.mxu0 %v25492_v10  ;;  %9858 = vmatprep.subr.bf16.mxu1 %v25745_v9  ;;  %v7977_v10 = vld [vmem:[#allocation2 + $0xc0] sm:$0xfe]  ;;  %v7792_v61 = vld [vmem:[#allocation3 + $0xe8] sm:$0xff]  ;;  %v7987_v13 = vld [vmem:[#allocation2 + $0x110] sm:$0x1] }
 0x514   : > { %11521 = vmatprep.subr.bf16.mxu0 %v25499_v50  ;;  %v7988_v50 = vld [vmem:[#allocation2 + $0x118] sm:$0x1]  ;;  %v11224_v58 = vrot.slane %v7977_v10, 1  ;;  %v7790_v10 = vld [vmem:[#allocation3 + $0xc8] sm:$0xff] }
 0x515   : > { %v11240_v54 = vrot.slane %v7988_v50, 1  ;;  %v25799_v50 = vld [vmem:[%s28682_s6 + $0x140] ss:$8 sps:$4 sm:$0xff]   ;;  %v8231_v8 = vpack.c.bf16 %v7792_v61, %v7790_v10 }
 0x516   : > { %9859 = vmatpush1.bf16.msra.mxu1 %v25751_v47  ;;  %v11226_v5 = vsel %vm465_vm0, %v11224_v58, %v11225_v21  ;;  %v7981_v58 = vld [vmem:[#allocation2 + $0xe0] sm:$0xfe]  ;;  %v7983_v21 = vld [vmem:[#allocation2 + $0xf0] sm:$0x1] }
 0x517   : > { %11522 = vmatpush1.bf16.msra.mxu0 %v25505_v16  ;;  %9860 = vmatprep.subr.bf16.mxu1 %v25758_v7  ;;  %v7982_v16 = vld [vmem:[#allocation2 + $0xe8] sm:$0xfe]  ;;  %v7989_v61 = vld [vmem:[#allocation2 + $0x120] sm:$0xfe] }
 0x518   : > { %9818 = vmatmul.mubr.bf16.gmra.mrb[144].mxu1 %v8218_v6  ;;  %11523 = vmatprep.subr.bf16.mxu0 %v25511_v52  ;;  %v7785_v52 = vld [vmem:[#allocation3 + $0x80] sm:$0xff]  ;;  %v11233_v33 = vrot.slane %v7982_v16, 1  ;;  %v11241_v6 = vsel %vm465_vm0, %v11239_v37, %v11240_v54  ;;  %v11237_v37 = vrot.slane %v7987_v13, 1 }
 0x519   : > { %11481 = vmatmul.mubr.bf16.gmra.mrb[32].mxu0 %v11268_v36  ;;  %9827 = vmatprep.mubr.bf16.mxu1 %v8225_v30  ;;  %v8224_v24 = vpack.c.bf16 %v7787_v56, %v7785_v52  ;;  %v11220_v36 = vsel %vm465_vm0, %v11218_v59, %v11219_v4  ;;  %v7990_v30 = vld [vmem:[#allocation2 + $0x128] sm:$0xfe]  ;;  %v25815_v59 = vld [vmem:[%s28682_s6 + $0x150] ss:$8 sps:$4 sm:$0xff]   ;;  %v11230_v4 = vrot.slane %v7981_v58, 1  ;;  %v11231_v52 = vrot.slane %v7983_v21, 1 }
 0x51a   : > { %9861 = vmatpush1.bf16.msra.mxu1 %v25767_v12  ;;  %11490 = vmatprep.mubr.bf16.mxu0 %v11271_v31  ;;  %v11270_v63 = vpack.c.bf16 %v11226_v5, %v11220_v36  ;;  %v11235_v0 = vsel %vm465_vm0, %v11233_v33, %v11234_v48  ;;  %v25808_v31 = vld [vmem:[%s28682_s6 + $0x154] ss:$8 sps:$4 sm:$0xff]   ;;  %v7791_v56 = vld [vmem:[#allocation3 + $0xe0] sm:$0xff]  ;;  %v7794_v5 = vld [vmem:[#allocation3 + $0x108] sm:$0xff] }
 0x51b   : > { %11524 = vmatpush1.bf16.msra.mxu0 %v25523_v60  ;;  %9862 = vmatprep.subr.bf16.mxu1 %v25776_v32  ;;  %v7985_v60 = vld [vmem:[#allocation2 + $0x100] sm:$0xfe]  ;;  %v11273_v16 = vpack.c.bf16 %v11241_v6, %v11235_v0  ;;  %v7991_v6 = vld [vmem:[#allocation2 + $0x130] sm:$0x1]  ;;  %v11232_v13 = vsel %vm465_vm0, %v11230_v4, %v11231_v52  ;;  %v25839_v36 = vld [vmem:[%s28682_s6 + $0x174] ss:$8 sps:$4 sm:$0xff]  }
 0x51c   : > { %11525 = vmatprep.subr.bf16.mxu0 %v25531_v3  ;;  %v7992_v3 = vld [vmem:[#allocation2 + $0x138] sm:$0x1]  ;;  %v11236_v34 = vrot.slane %v7985_v60, 1  ;;  %v25822_v33 = vld [vmem:[%s28682_s6 + $0x164] ss:$8 sps:$4 sm:$0xff]  }
 0x51d   : > { %v11246_v54 = vrot.slane %v7992_v3, 1  ;;  %v25831_v60 = vld [vmem:[%s28682_s6 + $0x160] ss:$8 sps:$4 sm:$0xff]   ;;  %v11242_v3 = vrot.slane %v7989_v61, 1 }
 0x51e   : > { %9863 = vmatpush1.bf16.msra.mxu1 %v25783_v1  ;;  %v11238_v48 = vsel %vm465_vm0, %v11236_v34, %v11237_v37  ;;  %v7798_v58 = vld [vmem:[#allocation2 + $0x28] sm:$0xff]  ;;  %v7805_v61 = vld [vmem:[#allocation2 + $0xa0] sm:$0xff] }
 0x51f   : > { %11526 = vmatpush1.bf16.msra.mxu0 %v25537_v42  ;;  %9864 = vmatprep.subr.bf16.mxu1 %v25790_v19  ;;  %v11245_v42 = vrot.slane %v7990_v30, 1  ;;  %v8215_v34 = vpack.c.bf16 %v7798_v58, %v25621_v51  ;;  %v25883_v37 = vld [vmem:[%s28682_s6 + $0x1a4] ss:$8 sps:$4 sm:$0xff]  }
 0x520   : > { %9828 = vmatmul.mubr.bf16.gmra.mrb[148].mxu1 %v8224_v24  ;;  %11527 = vmatprep.subr.bf16.mxu0 %v25543_v23  ;;  %v7789_v23 = vld [vmem:[#allocation3 + $0xc0] sm:$0xff]  ;;  %v8237_v24 = vpack.c.bf16 %v7794_v5, %v7794_v5  ;;  %v7800_v4 = vld [vmem:[#allocation2 + $0x48] sm:$0xff] }
 0x521   : > { %11491 = vmatmul.mubr.bf16.gmra.mrb[36].mxu0 %v11270_v63  ;;  %9837 = vmatprep.mubr.bf16.mxu1 %v8231_v8  ;;  %v11247_v10 = vsel %vm465_vm0, %v11245_v42, %v11246_v54  ;;  %v11243_v63 = vrot.slane %v7991_v6, 1  ;;  %v7793_v8 = vld [vmem:[#allocation3 + $0x100] sm:$0xff]  ;;  %v7818_v58 = vld [vmem:[#allocation3 + $0x28] sm:$0xfe] }
 0x522   : > { %9865 = vmatpush1.bf16.msra.mxu1 %v25799_v50  ;;  %11500 = vmatprep.mubr.bf16.mxu0 %v11273_v16  ;;  %v11275_v30 = vpack.c.bf16 %v11247_v10, %v11247_v10  ;;  %v8236_v21 = vpack.c.bf16 %v7793_v8, %v7793_v8  ;;  %v7797_v42 = vld [vmem:[#allocation2 + $0x20] sm:$0xff]  ;;  %v7816_v8 = vld [vmem:[#allocation3 + $0x18] sm:$0x1] }
 0x523   : > { %11528 = vmatpush1.bf16.msra.mxu0 %v25555_v62  ;;  %9866 = vmatprep.subr.bf16.mxu1 %v25808_v31  ;;  %v8230_v62 = vpack.c.bf16 %v7791_v56, %v7789_v23  ;;  %v11244_v0 = vsel %vm465_vm0, %v11242_v3, %v11243_v63  ;;  %v8214_v54 = vpack.c.bf16 %v7797_v42, %v25621_v51  ;;  %v25989_v51 = vld [vmem:[%s28682_s6 + $0x210] ss:$8 sps:$4 sm:$0xff]   ;;  %v7806_v23 = vld [vmem:[#allocation2 + $0xa8] sm:$0xff]  ;;  %v7799_v56 = vld [vmem:[#allocation2 + $0x40] sm:$0xff] }
 0x524   : > { %11529 = vmatprep.subr.bf16.mxu0 %v25563_v40  ;;  %v11272_v40 = vpack.c.bf16 %v11238_v48, %v11232_v13  ;;  %v11274_v16 = vpack.c.bf16 %v11244_v0, %v11244_v0  ;;  %v26003_v5 = vld [vmem:[%s28682_s6 + $0x220] ss:$8 sps:$4 sm:$0xff]   ;;  %v26024_v6 = vld [vmem:[%s28682_s6 + $0x244] ss:$8 sps:$4 sm:$0xff]  }
 0x525   : > { %v26052_v3 = vld [vmem:[%s28682_s6 + $0x264] ss:$8 sps:$4 sm:$0xff]  }
 0x526   : > { %9867 = vmatpush1.bf16.msra.mxu1 %v25815_v59  ;;  %v7814_v63 = vld [vmem:[#allocation3 + $0x8] sm:$0xfe]  ;;  %v7807_v0 = vld [vmem:[#allocation2 + $0xc0] sm:$0xff] }
 0x527   : > { %11530 = vmatpush1.bf16.msra.mxu0 %v25569_v44  ;;  %9868 = vmatprep.subr.bf16.mxu1 %v25822_v33  ;;  %v25846_v44 = vld [vmem:[%s28682_s6 + $0x170] ss:$8 sps:$4 sm:$0xff]   ;;  %v8143_v42 = vrot.slane %v7814_v63, 1 }
 0x528   : > { %9838 = vmatmul.mubr.bf16.gmra.mrb[152].mxu1 %v8230_v62  ;;  %11531 = vmatprep.subr.bf16.mxu0 %v25575_v18  ;;  %v25853_v18 = vld [vmem:[%s28682_s6 + $0x184] ss:$8 sps:$4 sm:$0xff]  }
 0x529   : > { %11501 = vmatmul.mubr.bf16.gmra.mrb[40].mxu0 %v11272_v40  ;;  %9847 = vmatprep.mubr.bf16.mxu1 %v8237_v24  ;;  %v7803_v62 = vld [vmem:[#allocation2 + $0x80] sm:$0xff] }
 0x52a   : > { %9869 = vmatpush1.bf16.msra.mxu1 %v25831_v60  ;;  %11510 = vmatprep.mubr.bf16.mxu0 %v11275_v30  ;;  %v8226_v13 = vpack.c.bf16 %v7805_v61, %v7803_v62  ;;  %v26031_v40 = vld [vmem:[%s28682_s6 + $0x240] ss:$8 sps:$4 sm:$0xff]  }
 0x52b   : > { %11532 = vmatpush1.bf16.msra.mxu0 %v25586_v45  ;;  %9870 = vmatprep.subr.bf16.mxu1 %v25839_v36  ;;  %v25861_v45 = vld [vmem:[%s28682_s6 + $0x180] ss:$8 sps:$4 sm:$0xff]  }
 0x52c   : > { %11533 = vmatprep.subr.bf16.mxu0 %v25594_v28  ;;  %v25869_v28 = vld [vmem:[%s28682_s6 + $0x194] ss:$8 sps:$4 sm:$0xff]   ;;  %v7809_v30 = vld [vmem:[#allocation2 + $0xe0] sm:$0xff] }
 0x52e   : > { %9871 = vmatpush1.bf16.msra.mxu1 %v25846_v44 }
 0x52f   : > { %11534 = vmatpush1.bf16.msra.mxu0 %v25600_v53  ;;  %9872 = vmatprep.subr.bf16.mxu1 %v25853_v18  ;;  %v25876_v53 = vld [vmem:[%s28682_s6 + $0x190] ss:$8 sps:$4 sm:$0xff]  }
 0x530   : > { %9848 = vmatmul.mubr.bf16.gmra.mrb[168].mxu1 %v8236_v21  ;;  %11535 = vmatprep.subr.bf16.mxu0 %v25606_v14  ;;  %v25890_v14 = vld [vmem:[%s28682_s6 + $0x1a0] ss:$8 sps:$4 sm:$0xff]   ;;  %v7820_v21 = vld [vmem:[#allocation3 + $0x38] sm:$0x1] }
 0x531   : > { %11511 = vmatmul.mubr.bf16.gmra.mrb[52].mxu0 %v11274_v16  ;;  %9888 = vmatprep.mubr.bf16.mxu1 %v8215_v34  ;;  %v8232_v16 = vpack.c.bf16 %v7809_v30, %v7807_v0  ;;  %v7817_v30 = vld [vmem:[#allocation3 + $0x20] sm:$0xfe]  ;;  %v7822_v0 = vld [vmem:[#allocation3 + $0x48] sm:$0xfe] }
 0x532   : > { %9873 = vmatpush1.bf16.msra.mxu1 %v25861_v45  ;;  %11551 = vmatprep.mubr.bf16.mxu0 %v8215_v34 }
 0x533   : > { %11536 = vmatpush1.bf16.msra.mxu0 %v25615_v35  ;;  %9874 = vmatprep.subr.bf16.mxu1 %v25869_v28  ;;  %v25897_v35 = vld [vmem:[%s28682_s6 + $0x1b4] ss:$8 sps:$4 sm:$0xff]  }
 0x534   : > { %11537 = vmatprep.subr.bf16.mxu0 %v25628_v11  ;;  %v25904_v11 = vld [vmem:[%s28682_s6 + $0x1b0] ss:$8 sps:$4 sm:$0xff]  }
 0x536   : > { %9875 = vmatpush1.bf16.msra.mxu1 %v25876_v53 }
 0x537   : > { %11538 = vmatpush1.bf16.msra.mxu0 %v25634_v43  ;;  %9876 = vmatprep.subr.bf16.mxu1 %v25883_v37  ;;  %v25911_v43 = vld [vmem:[%s28682_s6 + $0x1c4] ss:$8 sps:$4 sm:$0xff]  }
 0x538   : > { %11539 = vmatprep.subr.bf16.mxu0 %v25640_v26  ;;  %v25918_v26 = vld [vmem:[%s28682_s6 + $0x1c0] ss:$8 sps:$4 sm:$0xff]  }
 0x53a   : > { %9877 = vmatpush1.bf16.msra.mxu1 %v25890_v14 }
 0x53b   : > { %11540 = vmatpush1.bf16.msra.mxu0 %v25648_v57  ;;  %9878 = vmatprep.subr.bf16.mxu1 %v25897_v35  ;;  %v25925_v57 = vld [vmem:[%s28682_s6 + $0x1d4] ss:$8 sps:$4 sm:$0xff]  }
 0x53c   : > { %11541 = vmatprep.subr.bf16.mxu0 %v25655_v41  ;;  %v25932_v41 = vld [vmem:[%s28682_s6 + $0x1d0] ss:$8 sps:$4 sm:$0xff]  }
 0x53e   : > { %9879 = vmatpush1.bf16.msra.mxu1 %v25904_v11 }
 0x53f   : > { %11542 = vmatpush1.bf16.msra.mxu0 %v25662_v55  ;;  %9880 = vmatprep.subr.bf16.mxu1 %v25911_v43  ;;  %v25939_v55 = vld [vmem:[%s28682_s6 + $0x1e4] ss:$8 sps:$4 sm:$0xff]  }
 0x540   : > { %11543 = vmatprep.subr.bf16.mxu0 %v25669_v17  ;;  %v25946_v17 = vld [vmem:[%s28682_s6 + $0x1e0] ss:$8 sps:$4 sm:$0xff]  }
 0x542   : > { %9881 = vmatpush1.bf16.msra.mxu1 %v25918_v26 }
 0x543   : > { %11544 = vmatpush1.bf16.msra.mxu0 %v25676_v46  ;;  %9882 = vmatprep.subr.bf16.mxu1 %v25925_v57  ;;  %v25953_v46 = vld [vmem:[%s28682_s6 + $0x1f4] ss:$8 sps:$4 sm:$0xff]  }
 0x544   : > { %11545 = vmatprep.subr.bf16.mxu0 %v25683_v25  ;;  %v25960_v25 = vld [vmem:[%s28682_s6 + $0x1f0] ss:$8 sps:$4 sm:$0xff]  }
 0x546   : > { %9883 = vmatpush1.bf16.msra.mxu1 %v25932_v41 }
 0x547   : > { %11546 = vmatpush1.bf16.msra.mxu0 %v25690_v2  ;;  %9884 = vmatprep.subr.bf16.mxu1 %v25939_v55  ;;  %v25967_v2 = vld [vmem:[%s28682_s6 + $0x204] ss:$8 sps:$4 sm:$0xff]  }
 0x548   : > { %11547 = vmatprep.subr.bf16.mxu0 %v25697_v15  ;;  %v7802_v15 = vld [vmem:[#allocation2 + $0x68] sm:$0xff] }
 0x549   : > { %v8221_v52 = vpack.c.bf16 %v7802_v15, %v7800_v4  ;;  %v8144_v15 = vrot.slane %v7816_v8, 1  ;;  %v8150_v4 = vrot.slane %v7820_v21, 1  ;;  %v26183_v21 = vld [vmem:[%s28682_s6 + $0x2e0] ss:$8 sps:$4 sm:$0xff]  }
 0x54a   : > { %9885 = vmatpush1.bf16.msra.mxu1 %v25946_v17 }
 0x54b   : > { %11548 = vmatpush1.bf16.msra.mxu0 %v25704_v27  ;;  %9886 = vmatprep.subr.bf16.mxu1 %v25953_v46  ;;  %v25976_v27 = vld [vmem:[%s28682_s6 + $0x200] ss:$8 sps:$4 sm:$0xff]  }
 0x54c   : > { %11549 = vmatprep.subr.bf16.mxu0 %v25711_v29  ;;  %v25983_v29 = vld [vmem:[%s28682_s6 + $0x214] ss:$8 sps:$4 sm:$0xff]  }
 0x54e   : > { %9887 = vmatpush1.bf16.msra.mxu1 %v25960_v25 }
 0x54f   : > { %11550 = vmatpush1.bf16.msra.mxu0 %v25718_v39  ;;  %9937 = vmatprep.subr.bf16.mxu1 %v25967_v2  ;;  %v7801_v39 = vld [vmem:[#allocation2 + $0x60] sm:$0xff] }
 0x550   : > { %11600 = vmatprep.subr.bf16.mxu0 %v25725_v22  ;;  %v25996_v22 = vld [vmem:[%s28682_s6 + $0x224] ss:$8 sps:$4 sm:$0xff]   ;;  %v8220_v48 = vpack.c.bf16 %v7801_v39, %v7799_v56  ;;  %v8145_v39 = vsel %vm465_vm0, %v8143_v42, %v8144_v15  ;;  %v8146_v15 = vrot.slane %v7817_v30, 1  ;;  %v7832_v30 = vld [vmem:[#allocation3 + $0x98] sm:$0x1] }
 0x551   : > { %9889 = vmatmul.mubr.bf16.vlgmr.msra.gmra.mrb[140].mxu1 %v8214_v54 }
 0x552   : > { %11552 = vmatmul.mubr.bf16.vlgmr.msra.gmra.mrb[28].mxu0 %v8214_v54  ;;  %9898 = vmatprep.mubr.bf16.mxu1 %v8221_v52  ;;  %v8149_v54 = vrot.slane %v7818_v58, 1  ;;  %v7824_v58 = vld [vmem:[#allocation3 + $0x58] sm:$0x1] }
 0x553   : > { %9938 = vmatpush1.bf16.msra.mxu1 %v25976_v27  ;;  %11561 = vmatprep.mubr.bf16.mxu0 %v8221_v52  ;;  %v7811_v52 = vld [vmem:[#allocation2 + $0x100] sm:$0xff] }
 0x554   : > { %11601 = vmatpush1.bf16.msra.mxu0 %v25736_v20  ;;  %9939 = vmatprep.subr.bf16.mxu1 %v25983_v29  ;;  %v7804_v20 = vld [vmem:[#allocation2 + $0x88] sm:$0xff]  ;;  %v8238_v56 = vpack.c.bf16 %v7811_v52, %v7811_v52  ;;  %v8156_v52 = vrot.slane %v7824_v58, 1 }
 0x555   : > { %11602 = vmatprep.subr.bf16.mxu0 %v25745_v9  ;;  %v8227_v10 = vpack.c.bf16 %v7806_v23, %v7804_v20  ;;  %v26010_v9 = vld [vmem:[%s28682_s6 + $0x234] ss:$8 sps:$4 sm:$0xff]   ;;  %v8151_v23 = vsel %vm465_vm0, %v8149_v54, %v8150_v4  ;;  %v26110_v20 = vld [vmem:[%s28682_s6 + $0x2a4] ss:$8 sps:$4 sm:$0xff]   ;;  %v8155_v4 = vrot.slane %v7822_v0, 1 }
 0x557   : > { %9940 = vmatpush1.bf16.msra.mxu1 %v25989_v51 }
 0x558   : > { %11603 = vmatpush1.bf16.msra.mxu0 %v25751_v47  ;;  %9941 = vmatprep.subr.bf16.mxu1 %v25996_v22  ;;  %v26017_v47 = vld [vmem:[%s28682_s6 + $0x230] ss:$8 sps:$4 sm:$0xff]  }
 0x559   : > { %9899 = vmatmul.mubr.bf16.gmra.mrb[144].mxu1 %v8220_v48  ;;  %11604 = vmatprep.subr.bf16.mxu0 %v25758_v7  ;;  %v7810_v7 = vld [vmem:[#allocation2 + $0xe8] sm:$0xff] }
 0x55a   : > { %11562 = vmatmul.mubr.bf16.gmra.mrb[32].mxu0 %v8220_v48  ;;  %9908 = vmatprep.mubr.bf16.mxu1 %v8227_v10  ;;  %v8217_v48 = vpack.c.bf16 %v8151_v23, %v8145_v39 }
 0x55b   : > { %9942 = vmatpush1.bf16.msra.mxu1 %v26003_v5  ;;  %11571 = vmatprep.mubr.bf16.mxu0 %v8227_v10  ;;  %v26159_v10 = vld [vmem:[%s28682_s6 + $0x2d0] ss:$8 sps:$4 sm:$0xff]  }
 0x55c   : > { %11605 = vmatpush1.bf16.msra.mxu0 %v25767_v12  ;;  %9943 = vmatprep.subr.bf16.mxu1 %v26010_v9  ;;  %v7808_v12 = vld [vmem:[#allocation2 + $0xc8] sm:$0xff] }
 0x55d   : > { %11606 = vmatprep.subr.bf16.mxu0 %v25776_v32  ;;  %v8233_v24 = vpack.c.bf16 %v7810_v7, %v7808_v12  ;;  %v26038_v32 = vld [vmem:[%s28682_s6 + $0x254] ss:$8 sps:$4 sm:$0xff]   ;;  %v7815_v12 = vld [vmem:[#allocation3 + $0x10] sm:$0x1] }
 0x55e   : > { %v8141_v42 = vrot.slane %v7815_v12, 1 }
 0x55f   : > { %9944 = vmatpush1.bf16.msra.mxu1 %v26017_v47 }
 0x560   : > { %11607 = vmatpush1.bf16.msra.mxu0 %v25783_v1  ;;  %9945 = vmatprep.subr.bf16.mxu1 %v26024_v6  ;;  %v26045_v1 = vld [vmem:[%s28682_s6 + $0x250] ss:$8 sps:$4 sm:$0xff]  }
 0x561   : > { %9909 = vmatmul.mubr.bf16.gmra.mrb[148].mxu1 %v8226_v13  ;;  %11608 = vmatprep.subr.bf16.mxu0 %v25790_v19  ;;  %v7812_v19 = vld [vmem:[#allocation2 + $0x108] sm:$0xff] }
 0x562   : > { %11572 = vmatmul.mubr.bf16.gmra.mrb[36].mxu0 %v8226_v13  ;;  %9918 = vmatprep.mubr.bf16.mxu1 %v8233_v24  ;;  %v8239_v34 = vpack.c.bf16 %v7812_v19, %v7812_v19  ;;  %v7813_v13 = vld [vmem:[#allocation3] sm:$0xfe]  ;;  %v7819_v19 = vld [vmem:[#allocation3 + $0x30] sm:$0x1] }
 0x563   : > { %9946 = vmatpush1.bf16.msra.mxu1 %v26031_v40  ;;  %11581 = vmatprep.mubr.bf16.mxu0 %v8233_v24  ;;  %v8147_v54 = vrot.slane %v7819_v19, 1  ;;  %v7834_v19 = vld [vmem:[#allocation3 + $0xa8] sm:$0xfe] }
 0x564   : > { %11609 = vmatpush1.bf16.msra.mxu0 %v25799_v50  ;;  %9947 = vmatprep.subr.bf16.mxu1 %v26038_v32  ;;  %v26059_v50 = vld [vmem:[%s28682_s6 + $0x260] ss:$8 sps:$4 sm:$0xff]  }
 0x565   : > { %11610 = vmatprep.subr.bf16.mxu0 %v25808_v31  ;;  %v26066_v31 = vld [vmem:[%s28682_s6 + $0x274] ss:$8 sps:$4 sm:$0xff]  }
 0x567   : > { %9948 = vmatpush1.bf16.msra.mxu1 %v26045_v1 }
 0x568   : > { %11611 = vmatpush1.bf16.msra.mxu0 %v25815_v59  ;;  %9949 = vmatprep.subr.bf16.mxu1 %v26052_v3  ;;  %v26073_v59 = vld [vmem:[%s28682_s6 + $0x270] ss:$8 sps:$4 sm:$0xff]  }
 0x569   : > { %9919 = vmatmul.mubr.bf16.gmra.mrb[152].mxu1 %v8232_v16  ;;  %11612 = vmatprep.subr.bf16.mxu0 %v25822_v33  ;;  %v26080_v33 = vld [vmem:[%s28682_s6 + $0x284] ss:$8 sps:$4 sm:$0xff]  }
 0x56a   : > { %11582 = vmatmul.mubr.bf16.gmra.mrb[40].mxu0 %v8232_v16  ;;  %9928 = vmatprep.mubr.bf16.mxu1 %v8239_v34  ;;  %v7826_v16 = vld [vmem:[#allocation3 + $0x68] sm:$0xfe] }
 0x56b   : > { %9950 = vmatpush1.bf16.msra.mxu1 %v26059_v50  ;;  %11591 = vmatprep.mubr.bf16.mxu0 %v8239_v34  ;;  %v8140_v34 = vrot.slane %v7813_v13, 1  ;;  %v8161_v39 = vrot.slane %v7826_v16, 1  ;;  %v8157_v13 = vsel %vm465_vm0, %v8155_v4, %v8156_v52  ;;  %v26223_v16 = vld [vmem:[%s28682_s6 + $0x614] ss:$8 sps:$4 sm:$0xff]  }
 0x56c   : > { %11613 = vmatpush1.bf16.msra.mxu0 %v25831_v60  ;;  %9951 = vmatprep.subr.bf16.mxu1 %v26066_v31  ;;  %v26089_v60 = vld [vmem:[%s28682_s6 + $0x280] ss:$8 sps:$4 sm:$0xff]  }
 0x56d   : > { %11614 = vmatprep.subr.bf16.mxu0 %v25839_v36  ;;  %v26096_v36 = vld [vmem:[%s28682_s6 + $0x294] ss:$8 sps:$4 sm:$0xff]  }
 0x56f   : > { %9952 = vmatpush1.bf16.msra.mxu1 %v26073_v59 }
 0x570   : > { %11615 = vmatpush1.bf16.msra.mxu0 %v25846_v44  ;;  %9953 = vmatprep.subr.bf16.mxu1 %v26080_v33  ;;  %v26103_v44 = vld [vmem:[%s28682_s6 + $0x290] ss:$8 sps:$4 sm:$0xff]  }
 0x571   : > { %9929 = vmatmul.mubr.bf16.gmra.mrb[172].mxu1 %v8238_v56  ;;  %11616 = vmatprep.subr.bf16.mxu0 %v25853_v18  ;;  %v26117_v18 = vld [vmem:[%s28682_s6 + $0x2a0] ss:$8 sps:$4 sm:$0xff]  }
 0x572   : > { %11592 = vmatmul.mubr.bf16.gmra.mrb[56].mxu0 %v8238_v56  ;;  %9969 = vmatprep.mubr.bf16.mxu1 %v8217_v48  ;;  %v8142_v56 = vsel %vm465_vm0, %v8140_v34, %v8141_v42 }
 0x573   : > { %9954 = vmatpush1.bf16.msra.mxu1 %v26089_v60  ;;  %11632 = vmatprep.mubr.bf16.mxu0 %v8217_v48  ;;  %v8148_v48 = vsel %vm465_vm0, %v8146_v15, %v8147_v54  ;;  %v8168_v15 = vrot.slane %v7832_v30, 1  ;;  %v8173_v54 = vrot.slane %v7834_v19, 1  ;;  %v26247_v19 = vld [vmem:[%s28682_s6 + $0x620] ss:$8 sps:$4 sm:$0xff]  }
 0x574   : > { %11617 = vmatpush1.bf16.msra.mxu0 %v25861_v45  ;;  %9955 = vmatprep.subr.bf16.mxu1 %v26096_v36  ;;  %v26124_v45 = vld [vmem:[%s28682_s6 + $0x2b4] ss:$8 sps:$4 sm:$0xff]  }
 0x575   : > { %11618 = vmatprep.subr.bf16.mxu0 %v25869_v28  ;;  %v26131_v28 = vld [vmem:[%s28682_s6 + $0x2b0] ss:$8 sps:$4 sm:$0xff]  }
 0x577   : > { %9956 = vmatpush1.bf16.msra.mxu1 %v26103_v44 }
 0x578   : > { %11619 = vmatpush1.bf16.msra.mxu0 %v25876_v53  ;;  %9957 = vmatprep.subr.bf16.mxu1 %v26110_v20  ;;  %v26138_v53 = vld [vmem:[%s28682_s6 + $0x2c4] ss:$8 sps:$4 sm:$0xff]  }
 0x579   : > { %11620 = vmatprep.subr.bf16.mxu0 %v25883_v37  ;;  %v26145_v37 = vld [vmem:[%s28682_s6 + $0x2c0] ss:$8 sps:$4 sm:$0xff]  }
 0x57b   : > { %9958 = vmatpush1.bf16.msra.mxu1 %v26117_v18 }
 0x57c   : > { %11621 = vmatpush1.bf16.msra.mxu0 %v25890_v14  ;;  %9959 = vmatprep.subr.bf16.mxu1 %v26124_v45  ;;  %v26152_v14 = vld [vmem:[%s28682_s6 + $0x2d4] ss:$8 sps:$4 sm:$0xff]  }
 0x57d   : > { %11622 = vmatprep.subr.bf16.mxu0 %v25897_v35 }
 0x57f   : > { %9960 = vmatpush1.bf16.msra.mxu1 %v26131_v28 }
 0x580   : > { %11623 = vmatpush1.bf16.msra.mxu0 %v25904_v11  ;;  %9961 = vmatprep.subr.bf16.mxu1 %v26138_v53 }
 0x581   : > { %11624 = vmatprep.subr.bf16.mxu0 %v25911_v43  ;;  %v26173_v43 = vld [vmem:[%s28682_s6 + $0x2e4] ss:$8 sps:$4 sm:$0xff]  }
 0x583   : > { %9962 = vmatpush1.bf16.msra.mxu1 %v26145_v37  ;;  %v9207_v35 = vpop.f32.mrb[160].mxu1  ;;  %v26161_v61 = vpop.f32.mrb[44].mxu0 }
 0x584   : > { %11625 = vmatpush1.bf16.msra.mxu0 %v25918_v26  ;;  %v26165_v11 = vadd.f32 %v9207_v35, %v25279_v38  ;;  %9963 = vmatprep.subr.bf16.mxu1 %v26152_v14  ;;  %v9209_v7 = vpop.f32.mrb[161].mxu1  ;;  %v26168_v62 = vpop.f32.mrb[45].mxu0  ;;  %v7821_v35 = vld [vmem:[#allocation3 + $0x40] sm:$0xfe] }
 0x585   : > { %11626 = vmatprep.subr.bf16.mxu0 %v25925_v57  ;;  %v26177_v24 = vadd.f32 %v9209_v7, %v25283_v49  ;;  %v9211_v26 = vpop.f32.mrb[162].mxu1  ;;  %v11354_v38 = vpop.f32.mrb[46].mxu0  ;;  %v7828_v57 = vld [vmem:[#allocation3 + $0x78] sm:$0x1]  ;;  %v26190_v49 = vld [vmem:[%s28682_s6 + $0x2f4] ss:$8 sps:$4 sm:$0xff]  }
 0x586   : > { %v9212_v63 = vpop.f32.mrb[163].mxu1  ;;  %v11355_v8 = vpop.f32.mrb[47].mxu0  ;;  %v8162_v23 = vrot.slane %v7828_v57, 1  ;;  %v7823_v7 = vld [vmem:[#allocation3 + $0x50] sm:$0x1]  ;;  %v8152_v0 = vrot.slane %v7821_v35, 1 }
 0x587   : > { %9964 = vmatpush1.bf16.msra.mxu1 %v26159_v10  ;;  %v7827_v26 = vld [vmem:[#allocation3 + $0x70] sm:$0x1]  ;;  %v7830_v38 = vld [vmem:[#allocation3 + $0x88] sm:$0xfe]  ;;  %v7836_v63 = vld [vmem:[#allocation3 + $0xb8] sm:$0x1] }
 0x588   : > { %11627 = vmatpush1.bf16.msra.mxu0 %v25932_v41  ;;  %9965 = vmatprep.subr.bf16.mxu1 %v26173_v43  ;;  %v26197_v41 = vld [vmem:[%s28682_s6 + $0x2f0] ss:$8 sps:$4 sm:$0xff]   ;;  %v8163_v12 = vsel %vm465_vm0, %v8161_v39, %v8162_v23  ;;  %v26216_v8 = vld [vmem:[%s28682_s6 + $0x600] ss:$8 sps:$4 sm:$0xff]   ;;  %v8153_v57 = vrot.slane %v7823_v7, 1  ;;  %v8167_v42 = vrot.slane %v7830_v38, 1 }
 0x589   : > { %11628 = vmatprep.subr.bf16.mxu0 %v25939_v55  ;;  %v26204_v55 = vld [vmem:[%s28682_s6 + $0x604] ss:$8 sps:$4 sm:$0xff]   ;;  %v8223_v58 = vpack.c.bf16 %v8163_v12, %v8157_v13  ;;  %v8174_v4 = vrot.slane %v7836_v63, 1  ;;  %v7835_v13 = vld [vmem:[#allocation3 + $0xb0] sm:$0x1] }
 0x58a   : > { %v8154_v52 = vsel %vm465_vm0, %v8152_v0, %v8153_v57  ;;  %v26238_v23 = vld [vmem:[%s28682_s6 + $0x624] ss:$8 sps:$4 sm:$0xff]   ;;  %v8169_v35 = vsel %vm465_vm0, %v8167_v42, %v8168_v15  ;;  %v7844_v38 = vld [vmem:[#allocation3 + $0xf8] sm:$0x1]  ;;  %v8171_v57 = vrot.slane %v7835_v13, 1 }
 0x58b   : > { %9966 = vmatpush1.bf16.msra.mxu1 %v26183_v21  ;;  %v8175_v7 = vsel %vm465_vm0, %v8173_v54, %v8174_v4  ;;  %v7838_v12 = vld [vmem:[#allocation3 + $0xc8] sm:$0xfe]  ;;  %v8186_v15 = vrot.slane %v7844_v38, 1 }
 0x58c   : > { %11629 = vmatpush1.bf16.msra.mxu0 %v25946_v17  ;;  %9967 = vmatprep.subr.bf16.mxu1 %v26190_v49  ;;  %v7825_v17 = vld [vmem:[#allocation3 + $0x60] sm:$0xfe] }
 0x58d   : > { %11630 = vmatprep.subr.bf16.mxu0 %v25953_v46  ;;  %v8216_v46 = vpack.c.bf16 %v8148_v48, %v8142_v56  ;;  %v8158_v34 = vrot.slane %v7825_v17, 1  ;;  %v7829_v56 = vld [vmem:[#allocation3 + $0x80] sm:$0xfe]  ;;  %v7831_v48 = vld [vmem:[#allocation3 + $0x90] sm:$0x1] }
 0x58e   : > { %v7840_v17 = vld [vmem:[#allocation3 + $0xd8] sm:$0x1]  ;;  %v8164_v63 = vrot.slane %v7829_v56, 1  ;;  %v8165_v0 = vrot.slane %v7831_v48, 1  ;;  %v26270_v4 = vld [vmem:[%s28682_s6 + $0x644] ss:$8 sps:$4 sm:$0xff]  }
 0x58f   : > { %9968 = vmatpush1.bf16.msra.mxu1 %v26197_v41  ;;  %v7839_v48 = vld [vmem:[#allocation3 + $0xd0] sm:$0x1] }
 0x590   : > { %11631 = vmatpush1.bf16.msra.mxu0 %v25960_v25  ;;  %10732 = vmatprep.subr.bf16.mxu1 %v26204_v55  ;;  %v8159_v25 = vrot.slane %v7827_v26, 1  ;;  %v7842_v26 = vld [vmem:[#allocation3 + $0xe8] sm:$0xfe]  ;;  %v8177_v38 = vrot.slane %v7839_v48, 1 }
 0x591   : > { %11681 = vmatprep.subr.bf16.mxu0 %v25967_v2  ;;  %v26229_v2 = vld [vmem:[%s28682_s6 + $0x610] ss:$8 sps:$4 sm:$0xff]   ;;  %v8185_v42 = vrot.slane %v7842_v26, 1  ;;  %v26286_v26 = vld [vmem:[%s28682_s6 + $0x654] ss:$8 sps:$4 sm:$0xff]  }
 0x592   : > { %9970 = vmatmul.mubr.bf16.vlgmr.msra.gmra.mrb[140].mxu1 %v8216_v46  ;;  %v8160_v39 = vsel %vm465_vm0, %v8158_v34, %v8159_v25  ;;  %v8179_v34 = vrot.slane %v7838_v12, 1  ;;  %v8180_v25 = vrot.slane %v7840_v17, 1  ;;  %v26279_v12 = vld [vmem:[%s28682_s6 + $0x640] ss:$8 sps:$4 sm:$0xff]  }
 0x593   : > { %11633 = vmatmul.mubr.bf16.vlgmr.msra.gmra.mrb[28].mxu0 %v8216_v46  ;;  %9979 = vmatprep.mubr.bf16.mxu1 %v8223_v58  ;;  %v8222_v30 = vpack.c.bf16 %v8160_v39, %v8154_v52  ;;  %v26254_v46 = vld [vmem:[%s28682_s6 + $0x634] ss:$8 sps:$4 sm:$0xff]   ;;  %v7837_v52 = vld [vmem:[#allocation3 + $0xc0] sm:$0xfe]  ;;  %v8187_v56 = vsel %vm465_vm0, %v8185_v42, %v8186_v15  ;;  %v7847_v42 = vld [vmem:[#allocation3 + $0x110] sm:$0x1] }
 0x594   : > { %10733 = vmatpush1.bf16.msra.mxu1 %v26216_v8  ;;  %11642 = vmatprep.mubr.bf16.mxu0 %v8223_v58  ;;  %v8181_v39 = vsel %vm465_vm0, %v8179_v34, %v8180_v25  ;;  %v8176_v17 = vrot.slane %v7837_v52, 1  ;;  %v7845_v25 = vld [vmem:[#allocation3 + $0x100] sm:$0xfe]  ;;  %v7850_v15 = vld [vmem:[#allocation2 + $0x8] sm:$0xfe] }
 0x595   : > { %11682 = vmatpush1.bf16.msra.mxu0 %v25976_v27  ;;  %10734 = vmatprep.subr.bf16.mxu1 %v26223_v16  ;;  %v7833_v27 = vld [vmem:[#allocation3 + $0xa0] sm:$0xfe]  ;;  %v7854_v52 = vld [vmem:[#allocation2 + $0x28] sm:$0xfe]  ;;  %v8188_v48 = vrot.slane %v7845_v25, 1 }
 0x596   : > { %11683 = vmatprep.subr.bf16.mxu0 %v25983_v29  ;;  %v8229_v29 = vpack.c.bf16 %v8175_v7, %v8169_v35  ;;  %v8170_v58 = vrot.slane %v7833_v27, 1  ;;  %v7843_v35 = vld [vmem:[#allocation3 + $0xf0] sm:$0x1]  ;;  %v7846_v7 = vld [vmem:[#allocation3 + $0x108] sm:$0xfe] }
 0x597   : > { %v7848_v27 = vld [vmem:[#allocation3 + $0x118] sm:$0x1] }
 0x598   : > { %10735 = vmatpush1.bf16.msra.mxu1 %v26229_v2  ;;  %v8172_v54 = vsel %vm465_vm0, %v8170_v58, %v8171_v57  ;;  %v8178_v58 = vsel %vm465_vm0, %v8176_v17, %v8177_v38  ;;  %v26302_v57 = vld [vmem:[%s28682_s6 + $0x664] ss:$8 sps:$4 sm:$0xff]  }
 0x599   : > { %11684 = vmatpush1.bf16.msra.mxu0 %v25989_v51  ;;  %10736 = vmatprep.subr.bf16.mxu1 %v26238_v23  ;;  %v26261_v51 = vld [vmem:[%s28682_s6 + $0x630] ss:$8 sps:$4 sm:$0xff]   ;;  %v26332_v17 = vld [vmem:[%s28682_s6 + $0x684] ss:$8 sps:$4 sm:$0xff]  }
 0x59a   : > { %9980 = vmatmul.mubr.bf16.gmra.mrb[144].mxu1 %v8222_v30  ;;  %11685 = vmatprep.subr.bf16.mxu0 %v25996_v22  ;;  %v8166_v22 = vsel %vm465_vm0, %v8164_v63, %v8165_v0  ;;  %v8183_v63 = vrot.slane %v7843_v35, 1  ;;  %v8192_v0 = vrot.slane %v7848_v27, 1  ;;  %v11079_v35 = vrot.slane %v7850_v15, 1  ;;  %v7997_v38 = vld [vmem:[#allocation3 + $0x68] sm:$0xff]  ;;  %v26417_v15 = vld [vmem:[%s28682_s6 + $0x6d0] ss:$8 sps:$4 sm:$0xff]  }
 0x59b   : > { %11643 = vmatmul.mubr.bf16.gmra.mrb[32].mxu0 %v8222_v30  ;;  %9989 = vmatprep.mubr.bf16.mxu1 %v8229_v29  ;;  %v8228_v13 = vpack.c.bf16 %v8172_v54, %v8166_v22  ;;  %v7852_v22 = vld [vmem:[#allocation2 + $0x18] sm:$0x1]  ;;  %v26310_v54 = vld [vmem:[%s28682_s6 + $0x660] ss:$8 sps:$4 sm:$0xff]   ;;  %v11085_v27 = vrot.slane %v7854_v52, 1 }
 0x59c   : > { %10737 = vmatpush1.bf16.msra.mxu1 %v26247_v19  ;;  %11652 = vmatprep.mubr.bf16.mxu0 %v8229_v29  ;;  %v8191_v29 = vrot.slane %v7846_v7, 1  ;;  %v11080_v7 = vrot.slane %v7852_v22, 1  ;;  %v26430_v52 = vld [vmem:[%s28682_s6 + $0x6e4] ss:$8 sps:$4 sm:$0xff]  }
 0x59d   : > { %11686 = vmatpush1.bf16.msra.mxu0 %v26003_v5  ;;  %10738 = vmatprep.subr.bf16.mxu1 %v26254_v46  ;;  %v7841_v5 = vld [vmem:[#allocation3 + $0xe0] sm:$0xfe] }
 0x59e   : > { %11687 = vmatprep.subr.bf16.mxu0 %v26010_v9  ;;  %v8235_v9 = vpack.c.bf16 %v8187_v56, %v8181_v39  ;;  %v8182_v30 = vrot.slane %v7841_v5, 1  ;;  %v8193_v34 = vsel %vm465_vm0, %v8191_v29, %v8192_v0  ;;  %v7856_v39 = vld [vmem:[#allocation2 + $0x38] sm:$0x1]  ;;  %v26317_v56 = vld [vmem:[%s28682_s6 + $0x674] ss:$8 sps:$4 sm:$0xff]   ;;  %v8189_v5 = vrot.slane %v7847_v42, 1 }
 0x59f   : > { %v26341_v29 = vld [vmem:[%s28682_s6 + $0x680] ss:$8 sps:$4 sm:$0xff]  }
 0x5a0   : > { %10739 = vmatpush1.bf16.msra.mxu1 %v26261_v51 }
 0x5a1   : > { %11688 = vmatpush1.bf16.msra.mxu0 %v26017_v47  ;;  %10740 = vmatprep.subr.bf16.mxu1 %v26270_v4  ;;  %v26293_v47 = vld [vmem:[%s28682_s6 + $0x650] ss:$8 sps:$4 sm:$0xff]  }
 0x5a2   : > { %9990 = vmatmul.mubr.bf16.gmra.mrb[148].mxu1 %v8228_v13  ;;  %11689 = vmatprep.subr.bf16.mxu0 %v26024_v6  ;;  %v8184_v6 = vsel %vm465_vm0, %v8182_v30, %v8183_v63  ;;  %v11081_v30 = vsel %vm465_vm0, %v11079_v35, %v11080_v7  ;;  %v7862_v35 = vld [vmem:[#allocation2 + $0x68] sm:$0xfe]  ;;  %v7864_v7 = vld [vmem:[#allocation2 + $0x78] sm:$0x1] }
 0x5a3   : > { %11653 = vmatmul.mubr.bf16.gmra.mrb[36].mxu0 %v8228_v13  ;;  %9999 = vmatprep.mubr.bf16.mxu1 %v8235_v9  ;;  %v11086_v13 = vrot.slane %v7856_v39, 1 }
 0x5a4   : > { %10741 = vmatpush1.bf16.msra.mxu1 %v26279_v12  ;;  %11662 = vmatprep.mubr.bf16.mxu0 %v8235_v9  ;;  %v7995_v9 = vld [vmem:[#allocation3 + $0x48] sm:$0xff] }
 0x5a5   : > { %11690 = vmatpush1.bf16.msra.mxu0 %v26031_v40  ;;  %10742 = vmatprep.subr.bf16.mxu1 %v26286_v26  ;;  %v8234_v40 = vpack.c.bf16 %v8184_v6, %v8178_v58  ;;  %v11087_v63 = vsel %vm465_vm0, %v11085_v27, %v11086_v13  ;;  %v10127_v0 = vpack.c.bf16 %v7997_v38, %v7995_v9  ;;  %v26362_v6 = vld [vmem:[%s28682_s6 + $0x6a4] ss:$8 sps:$4 sm:$0xff]  }
 0x5a6   : > { %11691 = vmatprep.subr.bf16.mxu0 %v26038_v32  ;;  %v8241_v32 = vpack.c.bf16 %v8193_v34, %v8193_v34  ;;  %v11149_v58 = vpack.c.bf16 %v11087_v63, %v11081_v30  ;;  %v7858_v38 = vld [vmem:[#allocation2 + $0x48] sm:$0xfe]  ;;  %v7860_v30 = vld [vmem:[#allocation2 + $0x58] sm:$0x1]  ;;  %v11097_v63 = vrot.slane %v7862_v35, 1 }
 0x5a8   : > { %10743 = vmatpush1.bf16.msra.mxu1 %v26293_v47 }
 0x5a9   : > { %11692 = vmatpush1.bf16.msra.mxu0 %v26045_v1  ;;  %10744 = vmatprep.subr.bf16.mxu1 %v26302_v57  ;;  %v26324_v1 = vld [vmem:[%s28682_s6 + $0x670] ss:$8 sps:$4 sm:$0xff]  }
 0x5aa   : > { %10000 = vmatmul.mubr.bf16.gmra.mrb[152].mxu1 %v8234_v40  ;;  %11693 = vmatprep.subr.bf16.mxu0 %v26052_v3  ;;  %v8190_v3 = vsel %vm465_vm0, %v8188_v48, %v8189_v5  ;;  %v7851_v48 = vld [vmem:[#allocation2 + $0x10] sm:$0x1] }
 0x5ab   : > { %11663 = vmatmul.mubr.bf16.gmra.mrb[40].mxu0 %v8234_v40  ;;  %10009 = vmatprep.mubr.bf16.mxu1 %v8241_v32  ;;  %v7855_v5 = vld [vmem:[#allocation2 + $0x30] sm:$0x1]  ;;  %v11077_v13 = vrot.slane %v7851_v48, 1  ;;  %v7870_v48 = vld [vmem:[#allocation2 + $0xa8] sm:$0xfe] }
 0x5ac   : > { %10745 = vmatpush1.bf16.msra.mxu1 %v26310_v54  ;;  %11672 = vmatprep.mubr.bf16.mxu0 %v8241_v32  ;;  %v11083_v9 = vrot.slane %v7855_v5, 1 }
 0x5ad   : > { %11694 = vmatpush1.bf16.msra.mxu0 %v26059_v50  ;;  %10746 = vmatprep.subr.bf16.mxu1 %v26317_v56  ;;  %v8240_v50 = vpack.c.bf16 %v8190_v3, %v8190_v3 }
 0x5ae   : > { %11695 = vmatprep.subr.bf16.mxu0 %v26066_v31  ;;  %v26348_v31 = vld [vmem:[%s28682_s6 + $0x694] ss:$8 sps:$4 sm:$0xff]  }
 0x5b0   : > { %10747 = vmatpush1.bf16.msra.mxu1 %v26324_v1 }
 0x5b1   : > { %11696 = vmatpush1.bf16.msra.mxu0 %v26073_v59  ;;  %10748 = vmatprep.subr.bf16.mxu1 %v26332_v17  ;;  %v26355_v59 = vld [vmem:[%s28682_s6 + $0x690] ss:$8 sps:$4 sm:$0xff]  }
 0x5b2   : > { %10010 = vmatmul.mubr.bf16.gmra.mrb[176].mxu1 %v8240_v50  ;;  %11697 = vmatprep.subr.bf16.mxu0 %v26080_v33  ;;  %v26369_v33 = vld [vmem:[%s28682_s6 + $0x6a0] ss:$8 sps:$4 sm:$0xff]  }
 0x5b3   : > { %11673 = vmatmul.mubr.bf16.gmra.mrb[60].mxu0 %v8240_v50  ;;  %10764 = vmatprep.mubr.bf16.mxu1 %v10127_v0  ;;  %v11098_v50 = vrot.slane %v7864_v7, 1  ;;  %v7994_v0 = vld [vmem:[#allocation3 + $0x40] sm:$0xff] }
 0x5b4   : > { %10749 = vmatpush1.bf16.msra.mxu1 %v26341_v29  ;;  %11713 = vmatprep.mubr.bf16.mxu0 %v11149_v58  ;;  %v7996_v58 = vld [vmem:[#allocation3 + $0x60] sm:$0xff] }
 0x5b5   : > { %11698 = vmatpush1.bf16.msra.mxu0 %v26089_v60  ;;  %10750 = vmatprep.subr.bf16.mxu1 %v26348_v31  ;;  %v26376_v60 = vld [vmem:[%s28682_s6 + $0x6b4] ss:$8 sps:$4 sm:$0xff]  }
 0x5b6   : > { %11699 = vmatprep.subr.bf16.mxu0 %v26096_v36  ;;  %v26383_v36 = vld [vmem:[%s28682_s6 + $0x6b0] ss:$8 sps:$4 sm:$0xff]  }
 0x5b8   : > { %10751 = vmatpush1.bf16.msra.mxu1 %v26355_v59 }
 0x5b9   : > { %11700 = vmatpush1.bf16.msra.mxu0 %v26103_v44  ;;  %10752 = vmatprep.subr.bf16.mxu1 %v26362_v6  ;;  %v26390_v44 = vld [vmem:[%s28682_s6 + $0x6c4] ss:$8 sps:$4 sm:$0xff]  }
 0x5ba   : > { %11701 = vmatprep.subr.bf16.mxu0 %v26110_v20  ;;  %v26397_v20 = vld [vmem:[%s28682_s6 + $0x6c0] ss:$8 sps:$4 sm:$0xff]  }
 0x5bc   : > { %10753 = vmatpush1.bf16.msra.mxu1 %v26369_v33 }
 0x5bd   : > { %11702 = vmatpush1.bf16.msra.mxu0 %v26117_v18  ;;  %10754 = vmatprep.subr.bf16.mxu1 %v26376_v60  ;;  %v26404_v18 = vld [vmem:[%s28682_s6 + $0x6d4] ss:$8 sps:$4 sm:$0xff]  }
 0x5be   : > { %11703 = vmatprep.subr.bf16.mxu0 %v26124_v45 }
 0x5c0   : > { %10755 = vmatpush1.bf16.msra.mxu1 %v26383_v36 }
 0x5c1   : > { %11704 = vmatpush1.bf16.msra.mxu0 %v26131_v28  ;;  %10756 = vmatprep.subr.bf16.mxu1 %v26390_v44 }
 0x5c2   : > { %11705 = vmatprep.subr.bf16.mxu0 %v26138_v53 }
 0x5c3   : > { %v9288_v34 = vpop.f32.mrb[164].mxu1  ;;  %v11431_v45 = vpop.f32.mrb[48].mxu0 }
 0x5c4   : > { %10757 = vmatpush1.bf16.msra.mxu1 %v26397_v20  ;;  %v26409_v25 = vadd.f32 %v9288_v34, %v26165_v11  ;;  %v26412_v42 = vadd.f32 %v11431_v45, %v26161_v61  ;;  %v9290_v28 = vpop.f32.mrb[165].mxu1  ;;  %v11433_v22 = vpop.f32.mrb[49].mxu0  ;;  %v11091_v34 = vrot.slane %v7858_v38, 1  ;;  %v11092_v45 = vrot.slane %v7860_v30, 1  ;;  %v7866_v30 = vld [vmem:[#allocation2 + $0x88] sm:$0xfe] }
 0x5c5   : > { %11706 = vmatpush1.bf16.msra.mxu0 %v26145_v37  ;;  %v26421_v53 = vadd.f32 %v9290_v28, %v26177_v24  ;;  %10758 = vmatprep.subr.bf16.mxu1 %v26404_v18  ;;  %v26425_v11 = vadd.f32 %v11433_v22, %v26168_v62  ;;  %v9292_v40 = vpop.f32.mrb[166].mxu1  ;;  %v11435_v61 = vpop.f32.mrb[50].mxu0  ;;  %v7849_v37 = vld [vmem:[#allocation2] sm:$0xfe] }
 0x5c6   : > { %11707 = vmatprep.subr.bf16.mxu0 %v26152_v14  ;;  %v9293_v39 = vpop.f32.mrb[167].mxu1  ;;  %v11436_v32 = vpop.f32.mrb[51].mxu0  ;;  %v26437_v62 = vld [vmem:[%s28682_s6 + $0x6e0] ss:$8 sps:$4 sm:$0xff]   ;;  %v26444_v14 = vld [vmem:[%s28682_s6 + $0x6f4] ss:$8 sps:$4 sm:$0xff]   ;;  %v11093_v7 = vsel %vm465_vm0, %v11091_v34, %v11092_v45 }
 0x5c7   : > { %v7853_v24 = vld [vmem:[#allocation2 + $0x20] sm:$0xfe]  ;;  %v11076_v27 = vrot.slane %v7849_v37, 1  ;;  %v7999_v40 = vld [vmem:[#allocation3 + $0x88] sm:$0xff]  ;;  %v7863_v32 = vld [vmem:[#allocation2 + $0x70] sm:$0x1]  ;;  %v10126_v37 = vpack.c.bf16 %v7996_v58, %v7994_v0 }
 0x5c8   : > { %10759 = vmatpush1.bf16.msra.mxu1 %v26417_v15  ;;  %v11082_v3 = vrot.slane %v7853_v24, 1  ;;  %v8001_v61 = vld [vmem:[#allocation3 + $0xa8] sm:$0xff]  ;;  %v7861_v39 = vld [vmem:[#allocation2 + $0x60] sm:$0xfe]  ;;  %v7872_v24 = vld [vmem:[#allocation2 + $0xb8] sm:$0x1] }
 0x5c9   : > { %11708 = vmatpush1.bf16.msra.mxu0 %v26159_v10  ;;  %10760 = vmatprep.subr.bf16.mxu1 %v26430_v52  ;;  %v26451_v10 = vld [vmem:[%s28682_s6 + $0x6f0] ss:$8 sps:$4 sm:$0xff]   ;;  %v11078_v28 = vsel %vm465_vm0, %v11076_v27, %v11077_v13  ;;  %v10133_v35 = vpack.c.bf16 %v8001_v61, %v7999_v40  ;;  %v7857_v27 = vld [vmem:[#allocation2 + $0x40] sm:$0xfe]  ;;  %v11095_v38 = vrot.slane %v7863_v32, 1  ;;  %v11103_v40 = vrot.slane %v7866_v30, 1 }
 0x5ca   : > { %11709 = vmatprep.subr.bf16.mxu0 %v26173_v43  ;;  %v26458_v43 = vld [vmem:[%s28682_s6 + $0x704] ss:$8 sps:$4 sm:$0xff]   ;;  %v11084_v22 = vsel %vm465_vm0, %v11082_v3, %v11083_v9  ;;  %v7859_v13 = vld [vmem:[#allocation2 + $0x50] sm:$0x1]  ;;  %v11094_v9 = vrot.slane %v7861_v39, 1  ;;  %v11088_v58 = vrot.slane %v7857_v27, 1 }
 0x5cb   : > { %v11148_v5 = vpack.c.bf16 %v11084_v22, %v11078_v28  ;;  %v26483_v0 = vld [vmem:[%s28682_s6 + $0x710] ss:$8 sps:$4 sm:$0xff]   ;;  %v11089_v34 = vrot.slane %v7859_v13, 1  ;;  %v7998_v45 = vld [vmem:[#allocation3 + $0x80] sm:$0xff]  ;;  %v8003_v39 = vld [vmem:[#allocation3 + $0xc8] sm:$0xff] }
 0x5cc   : > { %10761 = vmatpush1.bf16.msra.mxu1 %v26437_v62  ;;  %v8000_v28 = vld [vmem:[#allocation3 + $0xa0] sm:$0xff]  ;;  %v8005_v32 = vld [vmem:[#allocation3 + $0xe8] sm:$0xff]  ;;  %v7867_v30 = vld [vmem:[#allocation2 + $0x90] sm:$0x1] }
 0x5cd   : > { %11710 = vmatpush1.bf16.msra.mxu0 %v26183_v21  ;;  %10762 = vmatprep.subr.bf16.mxu1 %v26444_v14  ;;  %v11099_v21 = vsel %vm465_vm0, %v11097_v63, %v11098_v50  ;;  %v7868_v63 = vld [vmem:[#allocation2 + $0x98] sm:$0x1]  ;;  %v11109_v50 = vrot.slane %v7870_v48, 1  ;;  %v26490_v22 = vld [vmem:[%s28682_s6 + $0x724] ss:$8 sps:$4 sm:$0xff]   ;;  %v10139_v13 = vpack.c.bf16 %v8005_v32, %v8003_v39 }
 0x5ce   : > { %11711 = vmatprep.subr.bf16.mxu0 %v26190_v49  ;;  %v26469_v49 = vld [vmem:[%s28682_s6 + $0x700] ss:$8 sps:$4 sm:$0xff]   ;;  %v11151_v3 = vpack.c.bf16 %v11099_v21, %v11093_v7  ;;  %v11104_v61 = vrot.slane %v7868_v63, 1  ;;  %v11096_v21 = vsel %vm465_vm0, %v11094_v9, %v11095_v38  ;;  %v7871_v48 = vld [vmem:[#allocation2 + $0xb0] sm:$0x1] }
 0x5cf   : > { %v7878_v7 = vld [vmem:[#allocation2 + $0xe8] sm:$0xfe]  ;;  %v26508_v9 = vld [vmem:[%s28682_s6 + $0x734] ss:$8 sps:$4 sm:$0xff]   ;;  %v7865_v38 = vld [vmem:[#allocation2 + $0x80] sm:$0xfe] }
 0x5d0   : > { %10763 = vmatpush1.bf16.msra.mxu1 %v26451_v10  ;;  %v26522_v39 = vld [vmem:[%s28682_s6 + $0x744] ss:$8 sps:$4 sm:$0xff]  }
 0x5d1   : > { %11712 = vmatpush1.bf16.msra.mxu0 %v26197_v41  ;;  %10813 = vmatprep.subr.bf16.mxu1 %v26458_v43  ;;  %v26477_v41 = vld [vmem:[%s28682_s6 + $0x714] ss:$8 sps:$4 sm:$0xff]  }
 0x5d2   : > { %11880 = vmatprep.subr.bf16.mxu0 %v26204_v55  ;;  %v11110_v55 = vrot.slane %v7872_v24, 1  ;;  %v10132_v24 = vpack.c.bf16 %v8000_v28, %v7998_v45  ;;  %v26515_v28 = vld [vmem:[%s28682_s6 + $0x730] ss:$8 sps:$4 sm:$0xff]  }
 0x5d3   : > { %10765 = vmatmul.mubr.bf16.vlgmr.msra.gmra.mrb[140].mxu1 %v10126_v37 }
 0x5d4   : > { %11714 = vmatmul.mubr.bf16.vlgmr.msra.gmra.mrb[28].mxu0 %v11148_v5  ;;  %10774 = vmatprep.mubr.bf16.mxu1 %v10133_v35  ;;  %v11111_v37 = vsel %vm465_vm0, %v11109_v50, %v11110_v55  ;;  %v26499_v5 = vld [vmem:[%s28682_s6 + $0x720] ss:$8 sps:$4 sm:$0xff]   ;;  %v11090_v35 = vsel %vm465_vm0, %v11088_v58, %v11089_v34  ;;  %v11107_v55 = vrot.slane %v7871_v48, 1  ;;  %v7876_v58 = vld [vmem:[#allocation2 + $0xd8] sm:$0x1]  ;;  %v11121_v34 = vrot.slane %v7878_v7, 1 }
 0x5d5   : > { %10814 = vmatpush1.bf16.msra.mxu1 %v26469_v49  ;;  %11723 = vmatprep.mubr.bf16.mxu0 %v11151_v3  ;;  %v11150_v27 = vpack.c.bf16 %v11096_v21, %v11090_v35  ;;  %v11105_v3 = vsel %vm465_vm0, %v11103_v40, %v11104_v61  ;;  %v11100_v40 = vrot.slane %v7865_v38, 1  ;;  %v11101_v61 = vrot.slane %v7867_v30, 1  ;;  %v8004_v21 = vld [vmem:[#allocation3 + $0xe0] sm:$0xff]  ;;  %v8007_v48 = vld [vmem:[#allocation3 + $0x108] sm:$0xff]  ;;  %v7879_v7 = vld [vmem:[#allocation2 + $0xf0] sm:$0x1] }
 0x5d6   : > { %11881 = vmatpush1.bf16.msra.mxu0 %v26216_v8  ;;  %10815 = vmatprep.subr.bf16.mxu1 %v26477_v41  ;;  %v7869_v8 = vld [vmem:[#allocation2 + $0xa0] sm:$0xfe]  ;;  %v11153_v63 = vpack.c.bf16 %v11111_v37, %v11105_v3  ;;  %v11116_v37 = vrot.slane %v7876_v58, 1  ;;  %v7882_v3 = vld [vmem:[#allocation2 + $0x108] sm:$0xfe] }
 0x5d7   : > { %11882 = vmatprep.subr.bf16.mxu0 %v26223_v16  ;;  %v7880_v16 = vld [vmem:[#allocation2 + $0xf8] sm:$0x1]  ;;  %v11106_v50 = vrot.slane %v7869_v8, 1 }
 0x5d8   : > { %v11122_v45 = vrot.slane %v7880_v16, 1 }
 0x5d9   : > { %10816 = vmatpush1.bf16.msra.mxu1 %v26483_v0  ;;  %v11108_v8 = vsel %vm465_vm0, %v11106_v50, %v11107_v55  ;;  %v26540_v50 = vld [vmem:[%s28682_s6 + $0x754] ss:$8 sps:$4 sm:$0xff]   ;;  %v7873_v55 = vld [vmem:[#allocation2 + $0xc0] sm:$0xfe] }
 0x5da   : > { %11883 = vmatpush1.bf16.msra.mxu0 %v26229_v2  ;;  %10817 = vmatprep.subr.bf16.mxu1 %v26490_v22  ;;  %v7874_v2 = vld [vmem:[#allocation2 + $0xc8] sm:$0xfe]  ;;  %v11123_v35 = vsel %vm465_vm0, %v11121_v34, %v11122_v45  ;;  %v11119_v45 = vrot.slane %v7879_v7, 1 }
 0x5db   : > { %10775 = vmatmul.mubr.bf16.gmra.mrb[144].mxu1 %v10132_v24  ;;  %11884 = vmatprep.subr.bf16.mxu0 %v26238_v23  ;;  %v8002_v23 = vld [vmem:[#allocation3 + $0xc0] sm:$0xff]  ;;  %v11115_v32 = vrot.slane %v7874_v2, 1  ;;  %v8009_v24 = vld [vmem:[#allocation3 + $0x128] sm:$0xff]  ;;  %v7875_v2 = vld [vmem:[#allocation2 + $0xd0] sm:$0x1] }
 0x5dc   : > { %11724 = vmatmul.mubr.bf16.gmra.mrb[32].mxu0 %v11150_v27  ;;  %10784 = vmatprep.mubr.bf16.mxu1 %v10139_v13  ;;  %v10138_v16 = vpack.c.bf16 %v8004_v21, %v8002_v23  ;;  %v26531_v27 = vld [vmem:[%s28682_s6 + $0x740] ss:$8 sps:$4 sm:$0xff]   ;;  %v11102_v13 = vsel %vm465_vm0, %v11100_v40, %v11101_v61  ;;  %v10145_v30 = vpack.c.bf16 %v8009_v24, %v8007_v48  ;;  %v26547_v61 = vld [vmem:[%s28682_s6 + $0x750] ss:$8 sps:$4 sm:$0xff]   ;;  %v11112_v23 = vrot.slane %v7873_v55, 1 }
 0x5dd   : > { %10818 = vmatpush1.bf16.msra.mxu1 %v26499_v5  ;;  %11733 = vmatprep.mubr.bf16.mxu0 %v11153_v63  ;;  %v11152_v38 = vpack.c.bf16 %v11108_v8, %v11102_v13  ;;  %v11117_v63 = vsel %vm465_vm0, %v11115_v32, %v11116_v37  ;;  %v11113_v21 = vrot.slane %v7875_v2, 1  ;;  %v8008_v32 = vld [vmem:[#allocation3 + $0x120] sm:$0xff]  ;;  %v8016_v55 = vld [vmem:[#allocation2 + $0x68] sm:$0xff] }
 0x5de   : > { %11885 = vmatpush1.bf16.msra.mxu0 %v26247_v19  ;;  %10819 = vmatprep.subr.bf16.mxu1 %v26508_v9  ;;  %v7877_v19 = vld [vmem:[#allocation2 + $0xe0] sm:$0xfe]  ;;  %v11155_v58 = vpack.c.bf16 %v11123_v35, %v11117_v63 }
 0x5df   : > { %11886 = vmatprep.subr.bf16.mxu0 %v26254_v46  ;;  %v7884_v46 = vld [vmem:[#allocation2 + $0x118] sm:$0x1]  ;;  %v11118_v34 = vrot.slane %v7877_v19, 1  ;;  %v26554_v37 = vld [vmem:[%s28682_s6 + $0x764] ss:$8 sps:$4 sm:$0xff]   ;;  %v11114_v13 = vsel %vm465_vm0, %v11112_v23, %v11113_v21 }
 0x5e0   : > { %v11128_v40 = vrot.slane %v7884_v46, 1  ;;  %v21288_v24 = vld [vmem:[#allocation2] sm:$0xff] }
 0x5e1   : > { %10820 = vmatpush1.bf16.msra.mxu1 %v26515_v28  ;;  %v11120_v8 = vsel %vm465_vm0, %v11118_v34, %v11119_v45  ;;  %v26559_v35 = vpack.c.bf16 %v21288_v24, %v21288_v24  ;;  %v7881_v19 = vld [vmem:[#allocation2 + $0x100] sm:$0xfe] }
 0x5e2   : > { %11887 = vmatpush1.bf16.msra.mxu0 %v26261_v51  ;;  %10821 = vmatprep.subr.bf16.mxu1 %v26522_v39  ;;  %v11127_v51 = vrot.slane %v7882_v3, 1  ;;  %v26573_v3 = vld [vmem:[%s28682_s6 + $0x774] ss:$8 sps:$4 sm:$0xff]   ;;  %v26596_v2 = vld [vmem:[%s28682_s6 + $0x780] ss:$8 sps:$4 sm:$0xff]  }
 0x5e3   : > { %10785 = vmatmul.mubr.bf16.gmra.mrb[148].mxu1 %v10138_v16  ;;  %11888 = vmatprep.subr.bf16.mxu0 %v26270_v4  ;;  %v8006_v4 = vld [vmem:[#allocation3 + $0x100] sm:$0xff] }
 0x5e4   : > { %11734 = vmatmul.mubr.bf16.gmra.mrb[36].mxu0 %v11152_v38  ;;  %10794 = vmatprep.mubr.bf16.mxu1 %v10145_v30  ;;  %v11129_v48 = vsel %vm465_vm0, %v11127_v51, %v11128_v40  ;;  %v10144_v7 = vpack.c.bf16 %v8008_v32, %v8006_v4  ;;  %v26565_v16 = vld [vmem:[%s28682_s6 + $0x760] ss:$8 sps:$4 sm:$0xff]   ;;  %v11124_v38 = vrot.slane %v7881_v19, 1  ;;  %v26618_v45 = vld [vmem:[%s28682_s6 + $0x7a4] ss:$8 sps:$4 sm:$0xff]  }
 0x5e5   : > { %10822 = vmatpush1.bf16.msra.mxu1 %v26531_v27  ;;  %11743 = vmatprep.mubr.bf16.mxu0 %v11155_v58  ;;  %v11157_v46 = vpack.c.bf16 %v11129_v48, %v11129_v48  ;;  %v26676_v4 = vld [vmem:[%s28682_s6 + $0x7d0] ss:$8 sps:$4 sm:$0xff]   ;;  %v8015_v24 = vld [vmem:[#allocation2 + $0x60] sm:$0xff] }
 0x5e6   : > { %11889 = vmatpush1.bf16.msra.mxu0 %v26279_v12  ;;  %10823 = vmatprep.subr.bf16.mxu1 %v26540_v50  ;;  %v7883_v12 = vld [vmem:[#allocation2 + $0x110] sm:$0x1]  ;;  %v8013_v19 = vld [vmem:[#allocation2 + $0x40] sm:$0xff] }
 0x5e7   : > { %11890 = vmatprep.subr.bf16.mxu0 %v26286_v26  ;;  %v11154_v26 = vpack.c.bf16 %v11120_v8, %v11114_v13  ;;  %v11125_v30 = vrot.slane %v7883_v12, 1  ;;  %v10128_v12 = vpack.c.bf16 %v8015_v24, %v8013_v19  ;;  %v8038_v24 = vld [vmem:[#allocation3 + $0x78] sm:$0x1] }
 0x5e9   : > { %10824 = vmatpush1.bf16.msra.mxu1 %v26547_v61  ;;  %v11126_v63 = vsel %vm465_vm0, %v11124_v38, %v11125_v30  ;;  %v8017_v38 = vld [vmem:[#allocation2 + $0x80] sm:$0xff] }
 0x5ea   : > { %11891 = vmatpush1.bf16.msra.mxu0 %v26293_v47  ;;  %10825 = vmatprep.subr.bf16.mxu1 %v26554_v37  ;;  %v26581_v47 = vld [vmem:[%s28682_s6 + $0x770] ss:$8 sps:$4 sm:$0xff]   ;;  %v11156_v58 = vpack.c.bf16 %v11126_v63, %v11126_v63  ;;  %v26749_v63 = vld [vmem:[%s28682_s6 + $0x820] ss:$8 sps:$4 sm:$0xff]  }
 0x5eb   : > { %10795 = vmatmul.mubr.bf16.gmra.mrb[152].mxu1 %v10144_v7  ;;  %11892 = vmatprep.subr.bf16.mxu0 %v26302_v57  ;;  %v26588_v57 = vld [vmem:[%s28682_s6 + $0x784] ss:$8 sps:$4 sm:$0xff]  }
 0x5ec   : > { %11744 = vmatmul.mubr.bf16.gmra.mrb[40].mxu0 %v11154_v26  ;;  %10804 = vmatprep.mubr.bf16.mxu1 %v26559_v35  ;;  %v8018_v7 = vld [vmem:[#allocation2 + $0x88] sm:$0xff] }
 0x5ed   : > { %10826 = vmatpush1.bf16.msra.mxu1 %v26565_v16  ;;  %11753 = vmatprep.mubr.bf16.mxu0 %v11157_v46  ;;  %v26742_v26 = vld [vmem:[%s28682_s6 + $0x824] ss:$8 sps:$4 sm:$0xff]  }
 0x5ee   : > { %11893 = vmatpush1.bf16.msra.mxu0 %v26310_v54  ;;  %10827 = vmatprep.subr.bf16.mxu1 %v26573_v3  ;;  %v8014_v54 = vld [vmem:[#allocation2 + $0x48] sm:$0xff] }
 0x5ef   : > { %11894 = vmatprep.subr.bf16.mxu0 %v26317_v56  ;;  %v10129_v34 = vpack.c.bf16 %v8016_v55, %v8014_v54  ;;  %v26603_v56 = vld [vmem:[%s28682_s6 + $0x794] ss:$8 sps:$4 sm:$0xff]   ;;  %v8024_v46 = vld [vmem:[#allocation2 + $0xe8] sm:$0xff]  ;;  %v8023_v54 = vld [vmem:[#allocation2 + $0xe0] sm:$0xff] }
 0x5f1   : > { %10828 = vmatpush1.bf16.msra.mxu1 %v26581_v47 }
 0x5f2   : > { %11895 = vmatpush1.bf16.msra.mxu0 %v26324_v1  ;;  %10829 = vmatprep.subr.bf16.mxu1 %v26588_v57  ;;  %v26611_v1 = vld [vmem:[%s28682_s6 + $0x790] ss:$8 sps:$4 sm:$0xff]  }
 0x5f3   : > { %10805 = vmatmul.mubr.bf16.gmra.mrb[180].mxu1 %v26559_v35  ;;  %11896 = vmatprep.subr.bf16.mxu0 %v26332_v17  ;;  %v26625_v17 = vld [vmem:[%s28682_s6 + $0x7a0] ss:$8 sps:$4 sm:$0xff]  }
 0x5f4   : > { %11754 = vmatmul.mubr.bf16.gmra.mrb[64].mxu0 %v11156_v58  ;;  %10845 = vmatprep.mubr.bf16.mxu1 %v10129_v34  ;;  %v26770_v58 = vld [vmem:[%s28682_s6 + $0x844] ss:$8 sps:$4 sm:$0xff]  }
 0x5f5   : > { %10830 = vmatpush1.bf16.msra.mxu1 %v26596_v2  ;;  %11912 = vmatprep.mubr.bf16.mxu0 %v10129_v34  ;;  %v8021_v34 = vld [vmem:[#allocation2 + $0xc0] sm:$0xff] }
 0x5f6   : > { %11897 = vmatpush1.bf16.msra.mxu0 %v26341_v29  ;;  %10831 = vmatprep.subr.bf16.mxu1 %v26603_v56  ;;  %v26632_v29 = vld [vmem:[%s28682_s6 + $0x7b4] ss:$8 sps:$4 sm:$0xff]  }
 0x5f7   : > { %11898 = vmatprep.subr.bf16.mxu0 %v26348_v31  ;;  %v26639_v31 = vld [vmem:[%s28682_s6 + $0x7b0] ss:$8 sps:$4 sm:$0xff]  }
 0x5f9   : > { %10832 = vmatpush1.bf16.msra.mxu1 %v26611_v1 }
 0x5fa   : > { %11899 = vmatpush1.bf16.msra.mxu0 %v26355_v59  ;;  %10833 = vmatprep.subr.bf16.mxu1 %v26618_v45  ;;  %v26646_v59 = vld [vmem:[%s28682_s6 + $0x7c4] ss:$8 sps:$4 sm:$0xff]  }
 0x5fb   : > { %11900 = vmatprep.subr.bf16.mxu0 %v26362_v6  ;;  %v26653_v6 = vld [vmem:[%s28682_s6 + $0x7c0] ss:$8 sps:$4 sm:$0xff]  }
 0x5fd   : > { %10834 = vmatpush1.bf16.msra.mxu1 %v26625_v17 }
 0x5fe   : > { %11901 = vmatpush1.bf16.msra.mxu0 %v26369_v33  ;;  %10835 = vmatprep.subr.bf16.mxu1 %v26632_v29  ;;  %v26660_v33 = vld [vmem:[%s28682_s6 + $0x7d4] ss:$8 sps:$4 sm:$0xff]  }
 0x5ff   : > { %11902 = vmatprep.subr.bf16.mxu0 %v26376_v60 }
 0x601   : > { %10836 = vmatpush1.bf16.msra.mxu1 %v26639_v31 }
 0x602   : > { %11903 = vmatpush1.bf16.msra.mxu0 %v26383_v36  ;;  %10837 = vmatprep.subr.bf16.mxu1 %v26646_v59 }
 0x603   : > { %11904 = vmatprep.subr.bf16.mxu0 %v26390_v44  ;;  %v9849_v51 = vpop.f32.mrb[168].mxu1 }
 0x604   : > { %v26664_v60 = vadd.f32 %v9849_v51, %v26409_v25  ;;  %v11512_v40 = vpop.f32.mrb[52].mxu0  ;;  %v9851_v23 = vpop.f32.mrb[169].mxu1  ;;  %v10140_v51 = vpack.c.bf16 %v8023_v54, %v8021_v34 }
 0x605   : > { %10838 = vmatpush1.bf16.msra.mxu1 %v26653_v6  ;;  %v26668_v21 = vadd.f32 %v11512_v40, %v26412_v42  ;;  %v26671_v36 = vadd.f32 %v9851_v23, %v26421_v53  ;;  %v11514_v44 = vpop.f32.mrb[53].mxu0  ;;  %v9853_v32 = vpop.f32.mrb[170].mxu1  ;;  %v26686_v53 = vld [vmem:[%s28682_s6 + $0x7e4] ss:$8 sps:$4 sm:$0xff]   ;;  %v26777_v40 = vld [vmem:[%s28682_s6 + $0x840] ss:$8 sps:$4 sm:$0xff]  }
 0x606   : > { %11905 = vmatpush1.bf16.msra.mxu0 %v26397_v20  ;;  %10839 = vmatprep.subr.bf16.mxu1 %v26660_v33  ;;  %v26681_v25 = vadd.f32 %v11514_v44, %v26425_v11  ;;  %v11516_v8 = vpop.f32.mrb[54].mxu0  ;;  %v9854_v42 = vpop.f32.mrb[171].mxu1  ;;  %v26693_v20 = vld [vmem:[%s28682_s6 + $0x7e0] ss:$8 sps:$4 sm:$0xff]   ;;  %v26700_v11 = vld [vmem:[%s28682_s6 + $0x7f4] ss:$8 sps:$4 sm:$0xff]  }
 0x607   : > { %11906 = vmatprep.subr.bf16.mxu0 %v26404_v18  ;;  %v11517_v48 = vpop.f32.mrb[55].mxu0  ;;  %v26707_v18 = vld [vmem:[%s28682_s6 + $0x7f0] ss:$8 sps:$4 sm:$0xff]   ;;  %v8027_v44 = vld [vmem:[#allocation2 + $0x120] sm:$0xff] }
 0x608   : > { %v26798_v32 = vld [vmem:[%s28682_s6 + $0x864] ss:$8 sps:$4 sm:$0xff]   ;;  %v8034_v8 = vld [vmem:[#allocation3 + $0x58] sm:$0x1] }
 0x609   : > { %10840 = vmatpush1.bf16.msra.mxu1 %v26676_v4  ;;  %v8025_v42 = vld [vmem:[#allocation2 + $0x100] sm:$0xff]  ;;  %v8036_v48 = vld [vmem:[#allocation3 + $0x68] sm:$0xfe] }
 0x60a   : > { %11907 = vmatpush1.bf16.msra.mxu0 %v26417_v15  ;;  %10841 = vmatprep.subr.bf16.mxu1 %v26686_v53  ;;  %v26714_v15 = vld [vmem:[%s28682_s6 + $0x804] ss:$8 sps:$4 sm:$0xff]  }
 0x60b   : > { %11908 = vmatprep.subr.bf16.mxu0 %v26430_v52  ;;  %v8020_v52 = vld [vmem:[#allocation2 + $0xa8] sm:$0xff] }
 0x60c   : > { %v10135_v13 = vpack.c.bf16 %v8020_v52, %v8018_v7  ;;  %v10146_v52 = vpack.c.bf16 %v8027_v44, %v8025_v42  ;;  %v10063_v7 = vrot.slane %v8036_v48, 1  ;;  %v8033_v44 = vld [vmem:[#allocation3 + $0x50] sm:$0x1]  ;;  %v8042_v42 = vld [vmem:[#allocation3 + $0x98] sm:$0x1] }
 0x60d   : > { %10842 = vmatpush1.bf16.msra.mxu1 %v26693_v20  ;;  %v8044_v48 = vld [vmem:[#allocation3 + $0xa8] sm:$0xfe] }
 0x60e   : > { %11909 = vmatpush1.bf16.msra.mxu0 %v26437_v62  ;;  %10843 = vmatprep.subr.bf16.mxu1 %v26700_v11  ;;  %v26722_v62 = vld [vmem:[%s28682_s6 + $0x800] ss:$8 sps:$4 sm:$0xff]  }
 0x60f   : > { %11910 = vmatprep.subr.bf16.mxu0 %v26444_v14  ;;  %v26729_v14 = vld [vmem:[%s28682_s6 + $0x814] ss:$8 sps:$4 sm:$0xff]  }
 0x611   : > { %10844 = vmatpush1.bf16.msra.mxu1 %v26707_v18 }
 0x612   : > { %11911 = vmatpush1.bf16.msra.mxu0 %v26451_v10  ;;  %10894 = vmatprep.subr.bf16.mxu1 %v26714_v15  ;;  %v26735_v10 = vld [vmem:[%s28682_s6 + $0x810] ss:$8 sps:$4 sm:$0xff]  }
 0x613   : > { %11961 = vmatprep.subr.bf16.mxu0 %v26458_v43  ;;  %v8019_v43 = vld [vmem:[#allocation2 + $0xa0] sm:$0xff] }
 0x614   : > { %10846 = vmatmul.mubr.bf16.vlgmr.msra.gmra.mrb[140].mxu1 %v10128_v12  ;;  %v10134_v30 = vpack.c.bf16 %v8019_v43, %v8017_v38  ;;  %v26837_v38 = vld [vmem:[%s28682_s6 + $0x880] ss:$8 sps:$4 sm:$0xff]  }
 0x615   : > { %11913 = vmatmul.mubr.bf16.vlgmr.msra.gmra.mrb[28].mxu0 %v10128_v12  ;;  %10855 = vmatprep.mubr.bf16.mxu1 %v10135_v13  ;;  %v10058_v12 = vrot.slane %v8034_v8, 1  ;;  %v8037_v8 = vld [vmem:[#allocation3 + $0x70] sm:$0x1] }
 0x616   : > { %10895 = vmatpush1.bf16.msra.mxu1 %v26722_v62  ;;  %11922 = vmatprep.mubr.bf16.mxu0 %v10135_v13  ;;  %v10064_v13 = vrot.slane %v8038_v24, 1  ;;  %v8046_v24 = vld [vmem:[#allocation3 + $0xb8] sm:$0x1] }
 0x617   : > { %11962 = vmatpush1.bf16.msra.mxu0 %v26469_v49  ;;  %10896 = vmatprep.subr.bf16.mxu1 %v26729_v14  ;;  %v8022_v49 = vld [vmem:[#allocation2 + $0xc8] sm:$0xff] }
 0x618   : > { %11963 = vmatprep.subr.bf16.mxu0 %v26477_v41  ;;  %v10141_v55 = vpack.c.bf16 %v8024_v46, %v8022_v49  ;;  %v26756_v41 = vld [vmem:[%s28682_s6 + $0x834] ss:$8 sps:$4 sm:$0xff]   ;;  %v10065_v46 = vsel %vm465_vm0, %v10063_v7, %v10064_v13  ;;  %v10061_v7 = vrot.slane %v8037_v8, 1 }
 0x61a   : > { %10897 = vmatpush1.bf16.msra.mxu1 %v26735_v10 }
 0x61b   : > { %11964 = vmatpush1.bf16.msra.mxu0 %v26483_v0  ;;  %10898 = vmatprep.subr.bf16.mxu1 %v26742_v26  ;;  %v26763_v0 = vld [vmem:[%s28682_s6 + $0x830] ss:$8 sps:$4 sm:$0xff]  }
 0x61c   : > { %10856 = vmatmul.mubr.bf16.gmra.mrb[144].mxu1 %v10134_v30  ;;  %11965 = vmatprep.subr.bf16.mxu0 %v26490_v22  ;;  %v8028_v22 = vld [vmem:[#allocation2 + $0x128] sm:$0xff] }
 0x61d   : > { %11923 = vmatmul.mubr.bf16.gmra.mrb[32].mxu0 %v10134_v30  ;;  %10865 = vmatprep.mubr.bf16.mxu1 %v10141_v55  ;;  %v26860_v30 = vld [vmem:[%s28682_s6 + $0x8a4] ss:$8 sps:$4 sm:$0xff]  }
 0x61e   : > { %10899 = vmatpush1.bf16.msra.mxu1 %v26749_v63  ;;  %11932 = vmatprep.mubr.bf16.mxu0 %v10141_v55 }
 0x61f   : > { %11966 = vmatpush1.bf16.msra.mxu0 %v26499_v5  ;;  %10900 = vmatprep.subr.bf16.mxu1 %v26756_v41  ;;  %v8026_v5 = vld [vmem:[#allocation2 + $0x108] sm:$0xff] }
 0x620   : > { %11967 = vmatprep.subr.bf16.mxu0 %v26508_v9  ;;  %v10147_v23 = vpack.c.bf16 %v8028_v22, %v8026_v5  ;;  %v26784_v9 = vld [vmem:[%s28682_s6 + $0x854] ss:$8 sps:$4 sm:$0xff]   ;;  %v26918_v22 = vld [vmem:[%s28682_s6 + $0x8d0] ss:$8 sps:$4 sm:$0xff]   ;;  %v8031_v5 = vld [vmem:[#allocation3 + $0x40] sm:$0xfe] }
 0x622   : > { %10901 = vmatpush1.bf16.msra.mxu1 %v26763_v0 }
 0x623   : > { %11968 = vmatpush1.bf16.msra.mxu0 %v26515_v28  ;;  %10902 = vmatprep.subr.bf16.mxu1 %v26770_v58  ;;  %v26791_v28 = vld [vmem:[%s28682_s6 + $0x850] ss:$8 sps:$4 sm:$0xff]  }
 0x624   : > { %10866 = vmatmul.mubr.bf16.gmra.mrb[148].mxu1 %v10140_v51  ;;  %11969 = vmatprep.subr.bf16.mxu0 %v26522_v39  ;;  %v8032_v39 = vld [vmem:[#allocation3 + $0x48] sm:$0xfe] }
 0x625   : > { %11933 = vmatmul.mubr.bf16.gmra.mrb[36].mxu0 %v10140_v51  ;;  %10875 = vmatprep.mubr.bf16.mxu1 %v10147_v23  ;;  %v10057_v19 = vrot.slane %v8032_v39, 1  ;;  %v8035_v39 = vld [vmem:[#allocation3 + $0x60] sm:$0xfe] }
 0x626   : > { %10903 = vmatpush1.bf16.msra.mxu1 %v26777_v40  ;;  %11942 = vmatprep.mubr.bf16.mxu0 %v10147_v23 }
 0x627   : > { %11970 = vmatpush1.bf16.msra.mxu0 %v26531_v27  ;;  %10904 = vmatprep.subr.bf16.mxu1 %v26784_v9  ;;  %v26805_v27 = vld [vmem:[%s28682_s6 + $0x860] ss:$8 sps:$4 sm:$0xff]   ;;  %v10059_v43 = vsel %vm465_vm0, %v10057_v19, %v10058_v12  ;;  %v10055_v19 = vrot.slane %v8033_v44, 1  ;;  %v10060_v12 = vrot.slane %v8035_v39, 1  ;;  %v8054_v39 = vld [vmem:[#allocation3 + $0xf8] sm:$0x1] }
 0x628   : > { %11971 = vmatprep.subr.bf16.mxu0 %v26540_v50  ;;  %v26812_v50 = vld [vmem:[%s28682_s6 + $0x874] ss:$8 sps:$4 sm:$0xff]   ;;  %v8052_v44 = vld [vmem:[#allocation3 + $0xe8] sm:$0xfe] }
 0x62a   : > { %10905 = vmatpush1.bf16.msra.mxu1 %v26791_v28 }
 0x62b   : > { %11972 = vmatpush1.bf16.msra.mxu0 %v26547_v61  ;;  %10906 = vmatprep.subr.bf16.mxu1 %v26798_v32  ;;  %v26820_v61 = vld [vmem:[%s28682_s6 + $0x870] ss:$8 sps:$4 sm:$0xff]  }
 0x62c   : > { %10876 = vmatmul.mubr.bf16.gmra.mrb[152].mxu1 %v10146_v52  ;;  %11973 = vmatprep.subr.bf16.mxu0 %v26554_v37  ;;  %v26828_v37 = vld [vmem:[%s28682_s6 + $0x884] ss:$8 sps:$4 sm:$0xff]  }
 0x62d   : > { %11943 = vmatmul.mubr.bf16.gmra.mrb[40].mxu0 %v10146_v52  ;;  %10885 = vmatprep.mubr.bf16.mxu1 %v26559_v35  ;;  %v10054_v52 = vrot.slane %v8031_v5, 1  ;;  %v8048_v5 = vld [vmem:[#allocation3 + $0xc8] sm:$0xfe] }
 0x62e   : > { %10907 = vmatpush1.bf16.msra.mxu1 %v26805_v27  ;;  %11952 = vmatprep.mubr.bf16.mxu0 %v26559_v35 }
 0x62f   : > { %11974 = vmatpush1.bf16.msra.mxu0 %v26565_v16  ;;  %10908 = vmatprep.subr.bf16.mxu1 %v26812_v50  ;;  %v10131_v16 = vpack.c.bf16 %v10065_v46, %v10059_v43  ;;  %v10070_v43 = vrot.slane %v8042_v42, 1  ;;  %v10075_v46 = vrot.slane %v8044_v48, 1 }
 0x630   : > { %11975 = vmatprep.subr.bf16.mxu0 %v26573_v3  ;;  %v26844_v3 = vld [vmem:[%s28682_s6 + $0x894] ss:$8 sps:$4 sm:$0xff]  }
 0x632   : > { %10909 = vmatpush1.bf16.msra.mxu1 %v26820_v61 }
 0x633   : > { %11976 = vmatpush1.bf16.msra.mxu0 %v26581_v47  ;;  %10910 = vmatprep.subr.bf16.mxu1 %v26828_v37  ;;  %v26853_v47 = vld [vmem:[%s28682_s6 + $0x890] ss:$8 sps:$4 sm:$0xff]  }
 0x634   : > { %10886 = vmatmul.mubr.bf16.gmra.mrb[184].mxu1 %v26559_v35  ;;  %11977 = vmatprep.subr.bf16.mxu0 %v26588_v57  ;;  %v26874_v57 = vld [vmem:[%s28682_s6 + $0x8b4] ss:$8 sps:$4 sm:$0xff]  }
 0x635   : > { %11953 = vmatmul.mubr.bf16.gmra.mrb[68].mxu0 %v26559_v35  ;;  %10926 = vmatprep.mubr.bf16.mxu1 %v10131_v16  ;;  %v26867_v35 = vld [vmem:[%s28682_s6 + $0x8a0] ss:$8 sps:$4 sm:$0xff]  }
 0x636   : > { %10911 = vmatpush1.bf16.msra.mxu1 %v26837_v38  ;;  %11993 = vmatprep.mubr.bf16.mxu0 %v10131_v16  ;;  %v10076_v16 = vrot.slane %v8046_v24, 1 }
 0x637   : > { %11978 = vmatpush1.bf16.msra.mxu0 %v26596_v2  ;;  %10912 = vmatprep.subr.bf16.mxu1 %v26844_v3  ;;  %v26881_v2 = vld [vmem:[%s28682_s6 + $0x8b0] ss:$8 sps:$4 sm:$0xff]  }
 0x638   : > { %11979 = vmatprep.subr.bf16.mxu0 %v26603_v56  ;;  %v26888_v56 = vld [vmem:[%s28682_s6 + $0x8c4] ss:$8 sps:$4 sm:$0xff]  }
 0x63a   : > { %10913 = vmatpush1.bf16.msra.mxu1 %v26853_v47 }
 0x63b   : > { %11980 = vmatpush1.bf16.msra.mxu0 %v26611_v1  ;;  %10914 = vmatprep.subr.bf16.mxu1 %v26860_v30  ;;  %v26895_v1 = vld [vmem:[%s28682_s6 + $0x8c0] ss:$8 sps:$4 sm:$0xff]  }
 0x63c   : > { %11981 = vmatprep.subr.bf16.mxu0 %v26618_v45  ;;  %v26902_v45 = vld [vmem:[%s28682_s6 + $0x8d4] ss:$8 sps:$4 sm:$0xff]  }
 0x63e   : > { %10915 = vmatpush1.bf16.msra.mxu1 %v26867_v35 }
 0x63f   : > { %11982 = vmatpush1.bf16.msra.mxu0 %v26625_v17  ;;  %10916 = vmatprep.subr.bf16.mxu1 %v26874_v57 }
 0x640   : > { %11983 = vmatprep.subr.bf16.mxu0 %v26632_v29 }
 0x642   : > { %10917 = vmatpush1.bf16.msra.mxu1 %v26881_v2 }
 0x643   : > { %11984 = vmatpush1.bf16.msra.mxu0 %v26639_v31  ;;  %10918 = vmatprep.subr.bf16.mxu1 %v26888_v56 }
 0x644   : > { %11985 = vmatprep.subr.bf16.mxu0 %v26646_v59  ;;  %v9930_v17 = vpop.f32.mrb[172].mxu1 }
 0x645   : > { %v26906_v29 = vadd.f32 %v9930_v17, %v26664_v60  ;;  %v11593_v49 = vpop.f32.mrb[56].mxu0  ;;  %v9932_v55 = vpop.f32.mrb[173].mxu1  ;;  %v10056_v17 = vsel %vm465_vm0, %v10054_v52, %v10055_v19  ;;  %v20645_v52 = vld [vmem:[%s28684_s8 + $0x480] ss:$12 sps:$4 sm:$0xff]   ;;  %v10081_v19 = vrot.slane %v8048_v5, 1 }
 0x646   : > { %10919 = vmatpush1.bf16.msra.mxu1 %v26895_v1  ;;  %v26910_v54 = vadd.f32 %v11593_v49, %v26668_v21  ;;  %v26913_v31 = vadd.f32 %v9932_v55, %v26671_v36  ;;  %v11595_v59 = vpop.f32.mrb[57].mxu0  ;;  %v9934_v34 = vpop.f32.mrb[174].mxu1  ;;  %v26928_v36 = vld [vmem:[%s28682_s6 + $0x8e4] ss:$8 sps:$4 sm:$0xff]   ;;  %v10062_v49 = vsel %vm465_vm0, %v10060_v12, %v10061_v7  ;;  %v10087_v7 = vrot.slane %v8052_v44, 1 }
 0x647   : > { %11986 = vmatpush1.bf16.msra.mxu0 %v26653_v6  ;;  %10920 = vmatprep.subr.bf16.mxu1 %v26902_v45  ;;  %v26923_v60 = vadd.f32 %v11595_v59, %v26681_v25  ;;  %v11597_v51 = vpop.f32.mrb[58].mxu0  ;;  %v9935_v21 = vpop.f32.mrb[175].mxu1  ;;  %v8040_v6 = vld [vmem:[#allocation3 + $0x88] sm:$0xfe]  ;;  %v8039_v55 = vld [vmem:[#allocation3 + $0x80] sm:$0xfe] }
 0x648   : > { %11987 = vmatprep.subr.bf16.mxu0 %v26660_v33  ;;  %v11598_v23 = vpop.f32.mrb[59].mxu0  ;;  %v26935_v25 = vld [vmem:[%s28682_s6 + $0x8e0] ss:$8 sps:$4 sm:$0xff]   ;;  %v26942_v33 = vld [vmem:[%s28682_s6 + $0x8f4] ss:$8 sps:$4 sm:$0xff]   ;;  %v10069_v13 = vrot.slane %v8040_v6, 1  ;;  %v10077_v51 = vsel %vm465_vm0, %v10075_v46, %v10076_v16 }
 0x649   : > { %v8041_v59 = vld [vmem:[#allocation3 + $0x90] sm:$0x1]  ;;  %v8043_v21 = vld [vmem:[#allocation3 + $0xa0] sm:$0xfe]  ;;  %v8050_v23 = vld [vmem:[#allocation3 + $0xd8] sm:$0x1] }
 0x64a   : > { %10921 = vmatpush1.bf16.msra.mxu1 %v26918_v22  ;;  %v10071_v34 = vsel %vm465_vm0, %v10069_v13, %v10070_v43  ;;  %v10066_v8 = vrot.slane %v8039_v55, 1  ;;  %v10067_v42 = vrot.slane %v8041_v59, 1  ;;  %v10072_v48 = vrot.slane %v8043_v21, 1  ;;  %v8047_v46 = vld [vmem:[#allocation3 + $0xc0] sm:$0xfe] }
 0x64b   : > { %11988 = vmatpush1.bf16.msra.mxu0 %v26676_v4  ;;  %10922 = vmatprep.subr.bf16.mxu1 %v26928_v36  ;;  %v26949_v4 = vld [vmem:[%s28682_s6 + $0x8f0] ss:$8 sps:$4 sm:$0xff]   ;;  %v10137_v6 = vpack.c.bf16 %v10077_v51, %v10071_v34  ;;  %v10082_v12 = vrot.slane %v8050_v23, 1  ;;  %v10088_v13 = vrot.slane %v8054_v39, 1  ;;  %v8051_v55 = vld [vmem:[#allocation3 + $0xe0] sm:$0xfe] }
 0x64c   : > { %11989 = vmatprep.subr.bf16.mxu0 %v26686_v53  ;;  %v20647_v53 = vld [vmem:[%s28684_s8 + $0x484] ss:$12 sps:$4 sm:$0xff]   ;;  %v8060_v34 = vld [vmem:[#allocation3 + $0x128] sm:$0xfe]  ;;  %v8062_v51 = vld [vmem:[#allocation3 + $0x138] sm:$0x1] }
 0x64d   : > { %v8049_v16 = vld [vmem:[#allocation3 + $0xd0] sm:$0x1]  ;;  %v10084_v44 = vrot.slane %v8051_v55, 1  ;;  %v8063_v55 = vld [vmem:[#allocation3 + $0x140] sm:$0xfe] }
 0x64e   : > { %10923 = vmatpush1.bf16.msra.mxu1 %v26935_v25  ;;  %v8053_v59 = vld [vmem:[#allocation3 + $0xf0] sm:$0x1]  ;;  %v10079_v23 = vrot.slane %v8049_v16, 1 }
 0x64f   : > { %11990 = vmatpush1.bf16.msra.mxu0 %v26693_v20  ;;  %10924 = vmatprep.subr.bf16.mxu1 %v26942_v33  ;;  %v8045_v20 = vld [vmem:[#allocation3 + $0xb0] sm:$0x1]  ;;  %v10085_v39 = vrot.slane %v8053_v59, 1 }
 0x650   : > { %11991 = vmatprep.subr.bf16.mxu0 %v26700_v11  ;;  %v10130_v11 = vpack.c.bf16 %v10062_v49, %v10056_v17  ;;  %v10073_v24 = vrot.slane %v8045_v20, 1  ;;  %v10083_v17 = vsel %vm465_vm0, %v10081_v19, %v10082_v12  ;;  %v10089_v49 = vsel %vm465_vm0, %v10087_v7, %v10088_v13  ;;  %v8057_v7 = vld [vmem:[#allocation3 + $0x110] sm:$0x1]  ;;  %v8059_v13 = vld [vmem:[#allocation3 + $0x120] sm:$0xfe] }
 0x651   : > { %v10078_v20 = vrot.slane %v8047_v46, 1  ;;  %v10143_v5 = vpack.c.bf16 %v10089_v49, %v10083_v17  ;;  %v10091_v16 = vrot.slane %v8057_v7, 1 }
 0x652   : > { %10925 = vmatpush1.bf16.msra.mxu1 %v26949_v4  ;;  %v10074_v43 = vsel %vm465_vm0, %v10072_v48, %v10073_v24  ;;  %v8055_v48 = vld [vmem:[#allocation3 + $0x100] sm:$0xfe]  ;;  %v8064_v24 = vld [vmem:[#allocation3 + $0x148] sm:$0xfe] }
 0x653   : > { %11992 = vmatpush1.bf16.msra.mxu0 %v26707_v18  ;;  %13666 = vmatprep.subr.bf16.mxu1 %v20647_v53  ;;  %v20650_v18 = vld [vmem:[%s28684_s8 + $0x49c] ss:$12 sps:$4 sm:$0xff]   ;;  %v20648_v53 = vld [vmem:[%s28684_s8 + $0x498] ss:$12 sps:$4 sm:$0xff]  }
 0x654   : > { %12042 = vmatprep.subr.bf16.mxu0 %v26714_v15  ;;  %v10068_v15 = vsel %vm465_vm0, %v10066_v8, %v10067_v42  ;;  %v10100_v42 = vrot.slane %v8062_v51, 1 }
 0x655   : > { %10927 = vmatmul.mubr.bf16.vlgmr.msra.gmra.mrb[140].mxu1 %v10130_v11  ;;  %v10136_v21 = vpack.c.bf16 %v10074_v43, %v10068_v15  ;;  %v10105_v43 = vrot.slane %v8064_v24, 1  ;;  %v20654_v24 = vld [vmem:[%s28684_s8 + $0x4c8] ss:$12 sps:$4 sm:$0xff]  }
 0x656   : > { %11994 = vmatmul.mubr.bf16.vlgmr.msra.gmra.mrb[28].mxu0 %v10130_v11  ;;  %10936 = vmatprep.mubr.bf16.mxu1 %v10137_v6 }
 0x657   : > { %12003 = vmatprep.mubr.bf16.mxu0 %v10137_v6  ;;  %12043 = vmatpush1.bf16.msra.mxu0 %v26722_v62  ;;  %v8056_v62 = vld [vmem:[#allocation3 + $0x108] sm:$0xfe]  ;;  %v10099_v6 = vrot.slane %v8060_v34, 1 }
 0x658   : > { %12044 = vmatprep.subr.bf16.mxu0 %v26729_v14  ;;  %13667 = vmatpush1.bf16.msra.mxu1 %v20645_v52  ;;  %v8058_v14 = vld [vmem:[#allocation3 + $0x118] sm:$0x1]  ;;  %v10093_v11 = vrot.slane %v8056_v62, 1 }
 0x659   : > { %13668 = vmatprep.subr.bf16.mxu1 %v20650_v18  ;;  %v10094_v8 = vrot.slane %v8058_v14, 1  ;;  %v8066_v52 = vld [vmem:[#allocation3 + $0x158] sm:$0x1]  ;;  %v10101_v12 = vsel %vm465_vm0, %v10099_v6, %v10100_v42  ;;  %v8061_v18 = vld [vmem:[#allocation3 + $0x130] sm:$0x1]  ;;  %v10102_v14 = vrot.slane %v8063_v55, 1 }
 0x65a   : > { %v10097_v17 = vrot.slane %v8061_v18, 1  ;;  %v8080_v42 = vld [vmem:[#allocation2 + $0xa8] sm:$0xfe]  ;;  %v8086_v55 = vld [vmem:[#allocation2 + $0xd8] sm:$0x1] }
 0x65b   : > { %12045 = vmatpush1.bf16.msra.mxu0 %v26735_v10  ;;  %v10080_v10 = vsel %vm465_vm0, %v10078_v20, %v10079_v23  ;;  %v10095_v19 = vsel %vm465_vm0, %v10093_v11, %v10094_v8  ;;  %v8074_v20 = vld [vmem:[#allocation2 + $0x78] sm:$0x1]  ;;  %v11819_v7 = vrot.slane %v8080_v42, 1 }
 0x65c   : > { %12046 = vmatprep.subr.bf16.mxu0 %v26742_v26  ;;  %13669 = vmatpush1.bf16.msra.mxu1 %v20648_v53  ;;  %v10086_v26 = vsel %vm465_vm0, %v10084_v44, %v10085_v39  ;;  %v10149_v46 = vpack.c.bf16 %v10101_v12, %v10095_v19  ;;  %v10096_v53 = vrot.slane %v8059_v13, 1  ;;  %v11808_v44 = vrot.slane %v8074_v20, 1  ;;  %v8076_v12 = vld [vmem:[#allocation2 + $0x88] sm:$0xfe] }
 0x65d   : > { %10937 = vmatmul.mubr.bf16.gmra.mrb[144].mxu1 %v10136_v21  ;;  %v10142_v15 = vpack.c.bf16 %v10086_v26, %v10080_v10  ;;  %v8082_v10 = vld [vmem:[#allocation2 + $0xb8] sm:$0x1]  ;;  %v8067_v26 = vld [vmem:[#allocation2 + $0x40] sm:$0xfe] }
 0x65e   : > { %12004 = vmatmul.mubr.bf16.gmra.mrb[32].mxu0 %v10136_v21  ;;  %10946 = vmatprep.mubr.bf16.mxu1 %v10143_v5  ;;  %v8072_v21 = vld [vmem:[#allocation2 + $0x68] sm:$0xfe]  ;;  %v11820_v13 = vrot.slane %v8082_v10, 1 }
 0x65f   : > { %12013 = vmatprep.mubr.bf16.mxu0 %v10143_v5  ;;  %12047 = vmatpush1.bf16.msra.mxu0 %v26749_v63  ;;  %v10090_v63 = vrot.slane %v8055_v48, 1  ;;  %v8070_v5 = vld [vmem:[#allocation2 + $0x58] sm:$0x1]  ;;  %v11807_v23 = vrot.slane %v8072_v21, 1 }
 0x660   : > { %12048 = vmatprep.subr.bf16.mxu0 %v26756_v41  ;;  %v10106_v41 = vrot.slane %v8066_v52, 1  ;;  %v11802_v39 = vrot.slane %v8070_v5, 1  ;;  %v8078_v48 = vld [vmem:[#allocation2 + $0x98] sm:$0x1]  ;;  %v8084_v5 = vld [vmem:[#allocation2 + $0xc8] sm:$0xfe] }
 0x661   : > { %v10092_v59 = vsel %vm465_vm0, %v10090_v63, %v10091_v16  ;;  %v11809_v8 = vsel %vm465_vm0, %v11807_v23, %v11808_v44  ;;  %v11814_v63 = vrot.slane %v8078_v48, 1  ;;  %v8077_v16 = vld [vmem:[#allocation2 + $0x90] sm:$0x1]  ;;  %v8092_v48 = vld [vmem:[#allocation2 + $0x108] sm:$0xfe] }
 0x662   : > { %v10107_v49 = vsel %vm465_vm0, %v10105_v43, %v10106_v41  ;;  %v20657_v43 = vld [vmem:[%s28684_s8 + $0x4e0] ss:$12 sps:$4 sm:$0xff]   ;;  %v20672_v41 = vld [vmem:[%s28684_s8 + $0x548] ss:$12 sps:$4 sm:$0xff]  }
 0x663   : > { %12049 = vmatpush1.bf16.msra.mxu0 %v26763_v0  ;;  %v8065_v0 = vld [vmem:[#allocation3 + $0x150] sm:$0x1]  ;;  %v10155_v62 = vpack.c.bf16 %v10107_v49, %v10107_v49 }
 0x664   : > { %12050 = vmatprep.subr.bf16.mxu0 %v26770_v58  ;;  %v10098_v58 = vsel %vm465_vm0, %v10096_v53, %v10097_v17  ;;  %v10103_v34 = vrot.slane %v8065_v0, 1  ;;  %v8079_v53 = vld [vmem:[#allocation2 + $0xa0] sm:$0xfe]  ;;  %v8081_v17 = vld [vmem:[#allocation2 + $0xb0] sm:$0x1] }
 0x665   : > { %10947 = vmatmul.mubr.bf16.gmra.mrb[148].mxu1 %v10142_v15  ;;  %v10148_v51 = vpack.c.bf16 %v10098_v58, %v10092_v59  ;;  %v8088_v0 = vld [vmem:[#allocation2 + $0xe8] sm:$0xfe]  ;;  %v8090_v59 = vld [vmem:[#allocation2 + $0xf8] sm:$0x1]  ;;  %v11816_v20 = vrot.slane %v8079_v53, 1 }
 0x666   : > { %12014 = vmatmul.mubr.bf16.gmra.mrb[36].mxu0 %v10142_v15  ;;  %10956 = vmatprep.mubr.bf16.mxu1 %v10149_v46  ;;  %v11813_v15 = vrot.slane %v8076_v12, 1  ;;  %v20673_v58 = vld [vmem:[%s28684_s8 + $0x488] ss:$12 sps:$4 sm:$0xff]   ;;  %v11831_v23 = vrot.slane %v8088_v0, 1  ;;  %v11832_v44 = vrot.slane %v8090_v59, 1 }
 0x667   : > { %12023 = vmatprep.mubr.bf16.mxu0 %v10149_v46  ;;  %12051 = vmatpush1.bf16.msra.mxu0 %v26777_v40  ;;  %v8068_v40 = vld [vmem:[#allocation2 + $0x48] sm:$0xfe]  ;;  %v20674_v59 = vld [vmem:[%s28684_s8 + $0x558] ss:$12 sps:$4 sm:$0xff]  }
 0x668   : > { %12052 = vmatprep.subr.bf16.mxu0 %v26784_v9  ;;  %v10104_v9 = vsel %vm465_vm0, %v10102_v14, %v10103_v34  ;;  %v11815_v14 = vsel %vm465_vm0, %v11813_v15, %v11814_v63  ;;  %v8075_v34 = vld [vmem:[#allocation2 + $0x80] sm:$0xfe]  ;;  %v8100_v15 = vld [vmem:[#allocation2 + $0x148] sm:$0xfe]  ;;  %v8102_v63 = vld [vmem:[#allocation2 + $0x158] sm:$0x1] }
 0x669   : > { %v10154_v11 = vpack.c.bf16 %v10104_v9, %v10104_v9  ;;  %v20665_v9 = vld [vmem:[%s28684_s8 + $0x514] ss:$12 sps:$4 sm:$0xff]   ;;  %v11850_v0 = vrot.slane %v8102_v63, 1 }
 0x66a   : > { %v20712_v63 = vld [vmem:[%s28684_s8 + $0x848] ss:$12 sps:$4 sm:$0xff]  }
 0x66b   : > { %12053 = vmatpush1.bf16.msra.mxu0 %v26791_v28  ;;  %v11801_v28 = vrot.slane %v8068_v40, 1  ;;  %v11817_v40 = vrot.slane %v8081_v17, 1 }
 0x66c   : > { %12054 = vmatprep.subr.bf16.mxu0 %v26798_v32 }
 0x66d   : > { %10957 = vmatmul.mubr.bf16.gmra.mrb[152].mxu1 %v10148_v51  ;;  %v11803_v32 = vsel %vm465_vm0, %v11801_v28, %v11802_v39  ;;  %v11810_v28 = vrot.slane %v8075_v34, 1  ;;  %v11811_v39 = vrot.slane %v8077_v16, 1  ;;  %v8093_v16 = vld [vmem:[#allocation2 + $0x110] sm:$0x1] }
 0x66e   : > { %12024 = vmatmul.mubr.bf16.gmra.mrb[40].mxu0 %v10148_v51  ;;  %10966 = vmatprep.mubr.bf16.mxu1 %v10155_v62  ;;  %v11871_v6 = vpack.c.bf16 %v11809_v8, %v11803_v32  ;;  %v20660_v51 = vld [vmem:[%s28684_s8 + $0x4f8] ss:$12 sps:$4 sm:$0xff]   ;;  %v11825_v8 = vrot.slane %v8084_v5, 1  ;;  %v11826_v32 = vrot.slane %v8086_v55, 1  ;;  %v11849_v55 = vrot.slane %v8100_v15, 1 }
 0x66f   : > { %12055 = vmatpush1.bf16.msra.mxu0 %v26805_v27  ;;  %12033 = vmatprep.mubr.bf16.mxu0 %v10155_v62 }
 0x670   : > { %12056 = vmatprep.subr.bf16.mxu0 %v26812_v50 }
 0x673   : > { %12057 = vmatpush1.bf16.msra.mxu0 %v26820_v61 }
 0x674   : > { %12058 = vmatprep.subr.bf16.mxu0 %v26828_v37 }
 0x675   : > { %10967 = vmatmul.mubr.bf16.gmra.mrb[188].mxu1 %v10154_v11 }
 0x676   : > { %12034 = vmatmul.mubr.bf16.gmra.mrb[72].mxu0 %v10154_v11  ;;  %v20678_v11 = vld [vmem:[%s28684_s8 + $0x4a0] ss:$12 sps:$4 sm:$0xff]  }
 0x677   : > { %12059 = vmatpush1.bf16.msra.mxu0 %v26837_v38  ;;  %12074 = vmatprep.mubr.bf16.mxu0 %v11871_v6  ;;  %v20663_v6 = vld [vmem:[%s28684_s8 + $0x510] ss:$12 sps:$4 sm:$0xff]  }
 0x678   : > { %12060 = vmatprep.subr.bf16.mxu0 %v26844_v3 }
 0x67b   : > { %12061 = vmatpush1.bf16.msra.mxu0 %v26853_v47 }
 0x67c   : > { %12062 = vmatprep.subr.bf16.mxu0 %v26860_v30 }
 0x67f   : > { %12063 = vmatpush1.bf16.msra.mxu0 %v26867_v35 }
 0x680   : > { %12064 = vmatprep.subr.bf16.mxu0 %v26874_v57 }
 0x683   : > { %12065 = vmatpush1.bf16.msra.mxu0 %v26881_v2 }
 0x684   : > { %12066 = vmatprep.subr.bf16.mxu0 %v26888_v56 }
 0x685   : > { %v10011_v27 = vpop.f32.mrb[176].mxu1 }
 0x686   : > { %v27012_v50 = vadd.f32 %v10011_v27, %v26906_v29  ;;  %v11674_v61 = vpop.f32.mrb[60].mxu0  ;;  %v10013_v37 = vpop.f32.mrb[177].mxu1  ;;  %v20653_v29 = vld [vmem:[%s28684_s8 + $0x4b4] ss:$12 sps:$4 sm:$0xff]   ;;  %v11818_v27 = vsel %vm465_vm0, %v11816_v20, %v11817_v40  ;;  %v8101_v20 = vld [vmem:[#allocation2 + $0x150] sm:$0x1] }
 0x687   : > { %12067 = vmatpush1.bf16.msra.mxu0 %v26895_v1  ;;  %v27016_v38 = vadd.f32 %v11674_v61, %v26910_v54  ;;  %v27019_v3 = vadd.f32 %v10013_v37, %v26913_v31  ;;  %v11676_v47 = vpop.f32.mrb[61].mxu0  ;;  %v10015_v30 = vpop.f32.mrb[178].mxu1  ;;  %v20651_v1 = vld [vmem:[%s28684_s8 + $0x4b0] ss:$12 sps:$4 sm:$0xff]   ;;  %v8071_v54 = vld [vmem:[#allocation2 + $0x60] sm:$0xfe]  ;;  %13670 = vmatprep.subr.bf16.mxu1 %v20653_v29  ;;  %v11833_v37 = vsel %vm465_vm0, %v11831_v23, %v11832_v44 }
 0x688   : > { %v27022_v35 = vadd.f32 %v11676_v47, %v26923_v60  ;;  %12068 = vmatprep.subr.bf16.mxu0 %v26902_v45  ;;  %v11678_v57 = vpop.f32.mrb[62].mxu0  ;;  %v10016_v2 = vpop.f32.mrb[179].mxu1  ;;  %v8073_v31 = vld [vmem:[#allocation2 + $0x70] sm:$0x1]  ;;  %v20656_v60 = vld [vmem:[%s28684_s8 + $0x4cc] ss:$12 sps:$4 sm:$0xff]   ;;  %13671 = vmatpush1.bf16.msra.mxu1 %v20651_v1 }
 0x689   : > { %v11679_v56 = vpop.f32.mrb[63].mxu0  ;;  %v8069_v45 = vld [vmem:[#allocation2 + $0x50] sm:$0x1]  ;;  %v11804_v52 = vrot.slane %v8071_v54, 1  ;;  %v11805_v19 = vrot.slane %v8073_v31, 1  ;;  %13672 = vmatprep.subr.bf16.mxu1 %v20656_v60  ;;  %v11812_v57 = vsel %vm465_vm0, %v11810_v28, %v11811_v39  ;;  %v11827_v54 = vsel %vm465_vm0, %v11825_v8, %v11826_v32 }
 0x68a   : > { %v11799_v18 = vrot.slane %v8069_v45, 1  ;;  %v20668_v61 = vld [vmem:[%s28684_s8 + $0x52c] ss:$12 sps:$4 sm:$0xff]   ;;  %v8087_v47 = vld [vmem:[#allocation2 + $0xe0] sm:$0xfe]  ;;  %v11872_v29 = vpack.c.bf16 %v11818_v27, %v11812_v57  ;;  %v11875_v42 = vpack.c.bf16 %v11833_v37, %v11827_v54  ;;  %v11847_v44 = vrot.slane %v8101_v20, 1 }
 0x68b   : > { %12069 = vmatpush1.bf16.msra.mxu0 %v26918_v22  ;;  %v20659_v22 = vld [vmem:[%s28684_s8 + $0x4e4] ss:$12 sps:$4 sm:$0xff]   ;;  %v11806_v46 = vsel %vm465_vm0, %v11804_v52, %v11805_v19  ;;  %v8096_v56 = vld [vmem:[#allocation2 + $0x128] sm:$0xfe]  ;;  %v8098_v1 = vld [vmem:[#allocation2 + $0x138] sm:$0x1] }
 0x68c   : > { %12070 = vmatprep.subr.bf16.mxu0 %v26928_v36  ;;  %v11798_v36 = vrot.slane %v8067_v26, 1  ;;  %13673 = vmatpush1.bf16.msra.mxu1 %v20654_v24  ;;  %v8089_v30 = vld [vmem:[#allocation2 + $0xf0] sm:$0x1]  ;;  %v8083_v31 = vld [vmem:[#allocation2 + $0xc0] sm:$0xfe]  ;;  %v11828_v10 = vrot.slane %v8087_v47, 1 }
 0x68d   : > { %13674 = vmatprep.subr.bf16.mxu1 %v20659_v22  ;;  %v8085_v2 = vld [vmem:[#allocation2 + $0xd0] sm:$0x1]  ;;  %v8094_v60 = vld [vmem:[#allocation2 + $0x118] sm:$0x1]  ;;  %v20666_v45 = vld [vmem:[%s28684_s8 + $0x528] ss:$12 sps:$4 sm:$0xff]  }
 0x68e   : > { %v11800_v49 = vsel %vm465_vm0, %v11798_v36, %v11799_v18  ;;  %v11829_v26 = vrot.slane %v8089_v30, 1  ;;  %v20671_v24 = vld [vmem:[%s28684_s8 + $0x544] ss:$12 sps:$4 sm:$0xff]   ;;  %v11843_v52 = vrot.slane %v8096_v56, 1  ;;  %v11844_v19 = vrot.slane %v8098_v1, 1 }
 0x68f   : > { %12071 = vmatpush1.bf16.msra.mxu0 %v26935_v25  ;;  %v20662_v25 = vld [vmem:[%s28684_s8 + $0x4fc] ss:$12 sps:$4 sm:$0xff]   ;;  %v11870_v62 = vpack.c.bf16 %v11806_v46, %v11800_v49  ;;  %v11822_v12 = vrot.slane %v8083_v31, 1  ;;  %v11823_v22 = vrot.slane %v8085_v2, 1  ;;  %v20669_v36 = vld [vmem:[%s28684_s8 + $0x540] ss:$12 sps:$4 sm:$0xff]  }
 0x690   : > { %12072 = vmatprep.subr.bf16.mxu0 %v26942_v33  ;;  %v11821_v33 = vsel %vm465_vm0, %v11819_v7, %v11820_v13  ;;  %13675 = vmatpush1.bf16.msra.mxu1 %v20657_v43  ;;  %v11837_v7 = vrot.slane %v8092_v48, 1  ;;  %v11838_v13 = vrot.slane %v8094_v60, 1  ;;  %v11830_v18 = vsel %vm465_vm0, %v11828_v10, %v11829_v26  ;;  %v20676_v43 = vld [vmem:[%s28684_s8 + $0x55c] ss:$12 sps:$4 sm:$0xff]   ;;  %v8095_v46 = vld [vmem:[#allocation2 + $0x120] sm:$0xfe] }
 0x691   : > { %v11873_v21 = vpack.c.bf16 %v11821_v33, %v11815_v14  ;;  %13676 = vmatprep.subr.bf16.mxu1 %v20662_v25  ;;  %v8097_v25 = vld [vmem:[#allocation2 + $0x130] sm:$0x1]  ;;  %v11824_v33 = vsel %vm465_vm0, %v11822_v12, %v11823_v22  ;;  %v8091_v49 = vld [vmem:[#allocation2 + $0x100] sm:$0xfe]  ;;  %v20686_v27 = vld [vmem:[%s28684_s8 + $0x58c] ss:$12 sps:$4 sm:$0xff]  }
 0x692   : > { %v11874_v53 = vpack.c.bf16 %v11830_v18, %v11824_v33  ;;  %v11839_v17 = vsel %vm465_vm0, %v11837_v7, %v11838_v13  ;;  %v11841_v14 = vrot.slane %v8097_v25, 1  ;;  %v11834_v34 = vrot.slane %v8091_v49, 1  ;;  %v20681_v8 = vld [vmem:[%s28684_s8 + $0x574] ss:$12 sps:$4 sm:$0xff]   ;;  %v20682_v32 = vld [vmem:[%s28684_s8 + $0x578] ss:$12 sps:$4 sm:$0xff]  }
 0x693   : > { %12073 = vmatpush1.bf16.msra.mxu0 %v26949_v4  ;;  %v20677_v4 = vld [vmem:[%s28684_s8 + $0x560] ss:$12 sps:$4 sm:$0xff]   ;;  %v20684_v47 = vld [vmem:[%s28684_s8 + $0x588] ss:$12 sps:$4 sm:$0xff]   ;;  %v20688_v30 = vld [vmem:[%s28684_s8 + $0x4d0] ss:$12 sps:$4 sm:$0xff]  }
 0x694   : > { %18415 = vmatprep.subr.bf16.mxu0 %v20672_v41  ;;  %13677 = vmatpush1.bf16.msra.mxu1 %v20660_v51  ;;  %v11845_v41 = vsel %vm465_vm0, %v11843_v52, %v11844_v19  ;;  %v11835_v51 = vrot.slane %v8093_v16, 1  ;;  %v20689_v57 = vld [vmem:[%s28684_s8 + $0x5a0] ss:$12 sps:$4 sm:$0xff]   ;;  %v20691_v2 = vld [vmem:[%s28684_s8 + $0x5a4] ss:$12 sps:$4 sm:$0xff]  }
 0x695   : > { %13678 = vmatprep.subr.bf16.mxu1 %v20665_v9  ;;  %v20692_v56 = vld [vmem:[%s28684_s8 + $0x5a8] ss:$12 sps:$4 sm:$0xff]   ;;  %v20697_v54 = vld [vmem:[%s28684_s8 + $0x5c0] ss:$12 sps:$4 sm:$0xff]   ;;  %v20694_v31 = vld [vmem:[%s28684_s8 + $0x5b8] ss:$12 sps:$4 sm:$0xff]  }
 0x696   : > { %12075 = vmatmul.mubr.bf16.vlgmr.msra.gmra.mrb[28].mxu0 %v11870_v62  ;;  %v11840_v62 = vrot.slane %v8095_v46, 1  ;;  %v11836_v5 = vsel %vm465_vm0, %v11834_v34, %v11835_v51  ;;  %v20693_v1 = vld [vmem:[%s28684_s8 + $0x4e8] ss:$12 sps:$4 sm:$0xff]   ;;  %v20698_v60 = vld [vmem:[%s28684_s8 + $0x500] ss:$12 sps:$4 sm:$0xff]  }
 0x697   : > { %12084 = vmatprep.mubr.bf16.mxu0 %v11873_v21  ;;  %18416 = vmatpush3.bf16.msra.mxu0 %v20673_v58  ;;  %v11877_v58 = vpack.c.bf16 %v11845_v41, %v11839_v17  ;;  %v8099_v21 = vld [vmem:[#allocation2 + $0x140] sm:$0xfe]  ;;  %v20706_v48 = vld [vmem:[%s28684_s8 + $0x5ec] ss:$12 sps:$4 sm:$0xff]   ;;  %v20704_v52 = vld [vmem:[%s28684_s8 + $0x5e8] ss:$12 sps:$4 sm:$0xff]  }
 0x698   : > { %18417 = vmatprep.subr.bf16.mxu0 %v20677_v4  ;;  %13679 = vmatpush1.bf16.msra.mxu1 %v20663_v6  ;;  %v11851_v4 = vsel %vm465_vm0, %v11849_v55, %v11850_v0  ;;  %v11842_v40 = vsel %vm465_vm0, %v11840_v62, %v11841_v14  ;;  %v11846_v23 = vrot.slane %v8099_v21, 1  ;;  %v20683_v6 = vld [vmem:[%s28684_s8 + $0x4b8] ss:$12 sps:$4 sm:$0xff]   ;;  %v20708_v19 = vld [vmem:[%s28684_s8 + $0x530] ss:$12 sps:$4 sm:$0xff]   ;;  %v28758_v34 = vld [vmem:[#allocation11_spill] sm:$0xff] }
 0x699   : > { %13680 = vmatprep.subr.bf16.mxu1 %v20668_v61  ;;  %v11879_v9 = vpack.c.bf16 %v11851_v4, %v11851_v4  ;;  %v11876_v28 = vpack.c.bf16 %v11842_v40, %v11836_v5  ;;  %v20687_v61 = vld [vmem:[%s28684_s8 + $0x590] ss:$12 sps:$4 sm:$0xff]   ;;  %v20702_v10 = vld [vmem:[%s28684_s8 + $0x5d8] ss:$12 sps:$4 sm:$0xff]  }
 0x69a   : > { %v11848_v39 = vsel %vm465_vm0, %v11846_v23, %v11847_v44  ;;  %v20703_v26 = vld [vmem:[%s28684_s8 + $0x518] ss:$12 sps:$4 sm:$0xff]  }
 0x69b   : > { %18418 = vmatpush3.bf16.msra.mxu0 %v20678_v11  ;;  %v20679_v11 = vld [vmem:[%s28684_s8 + $0x570] ss:$12 sps:$4 sm:$0xff]   ;;  %v11878_v37 = vpack.c.bf16 %v11848_v39, %v11848_v39  ;;  %v28757_v62 = vld [vmem:[#allocation10_spill] sm:$0xff] }
 0x69c   : > { %13681 = vmatpush1.bf16.msra.mxu1 %v20666_v45  ;;  %18419 = vmatprep.subr.bf16.mxu0 %v20682_v32  ;;  %v20699_v45 = vld [vmem:[%s28684_s8 + $0x5d0] ss:$12 sps:$4 sm:$0xff]  }
 0x69d   : > { %13682 = vmatprep.subr.bf16.mxu1 %v20671_v24  ;;  %v20707_v24 = vld [vmem:[%s28684_s8 + $0x5f0] ss:$12 sps:$4 sm:$0xff]  }
 0x69e   : > { %12085 = vmatmul.mubr.bf16.gmra.mrb[32].mxu0 %v11872_v29  ;;  %v20696_v29 = vld [vmem:[%s28684_s8 + $0x5bc] ss:$12 sps:$4 sm:$0xff]   ;;  %v20711_v13 = vld [vmem:[%s28684_s8 + $0x604] ss:$12 sps:$4 sm:$0xff]  }
 0x69f   : > { %12094 = vmatprep.mubr.bf16.mxu0 %v11875_v42  ;;  %18420 = vmatpush3.bf16.msra.mxu0 %v20683_v6  ;;  %v20701_v42 = vld [vmem:[%s28684_s8 + $0x5d4] ss:$12 sps:$4 sm:$0xff]  }
 0x6a0   : > { %13683 = vmatpush1.bf16.msra.mxu1 %v20669_v36  ;;  %18421 = vmatprep.subr.bf16.mxu0 %v20687_v61 }
 0x6a1   : > { %13684 = vmatprep.subr.bf16.mxu1 %v20676_v43 }
 0x6a3   : > { %18422 = vmatpush3.bf16.msra.mxu0 %v20688_v30 }
 0x6a4   : > { %13685 = vmatpush1.bf16.msra.mxu1 %v20674_v59  ;;  %18423 = vmatprep.subr.bf16.mxu0 %v20692_v56 }
 0x6a5   : > { %13686 = vmatprep.subr.bf16.mxu1 %v20681_v8 }
 0x6a6   : > { %12095 = vmatmul.mubr.bf16.gmra.mrb[36].mxu0 %v11874_v53 }
 0x6a7   : > { %12104 = vmatprep.mubr.bf16.mxu0 %v11877_v58  ;;  %18424 = vmatpush3.bf16.msra.mxu0 %v20693_v1  ;;  %v8103_v58 = vld [vmem:[%s28683_s7] sm:$0x3] }
 0x6a8   : > { %13687 = vmatpush1.bf16.msra.mxu1 %v20679_v11  ;;  %18425 = vmatprep.subr.bf16.mxu0 %v20697_v54  ;;  %v27202_v14 = vrot.slane %v8103_v58, %v28757_v62  ;;  %v27205_v51 = vrot.slane %v8103_v58, %v28758_v34  ;;  %v20727_v58 = vld [vmem:[%s28684_s8 + $0x890] ss:$12 sps:$4 sm:$0xff]  }
 0x6a9   : > { %13688 = vmatprep.subr.bf16.mxu1 %v20686_v27 }
 0x6ab   : > { %18426 = vmatpush3.bf16.msra.mxu0 %v20698_v60 }
 0x6ac   : > { %13689 = vmatpush1.bf16.msra.mxu1 %v20684_v47  ;;  %18427 = vmatprep.subr.bf16.mxu0 %v20702_v10  ;;  %v20713_v10 = vld [vmem:[%s28684_s8 + $0x788] ss:$12 sps:$4 sm:$0xff]  }
 0x6ad   : > { %13690 = vmatprep.subr.bf16.mxu1 %v20691_v2 }
 0x6ae   : > { %12105 = vmatmul.mubr.bf16.gmra.mrb[40].mxu0 %v11876_v28 }
 0x6af   : > { %12114 = vmatprep.mubr.bf16.mxu0 %v11879_v9  ;;  %18428 = vmatpush3.bf16.msra.mxu0 %v20703_v26 }
 0x6b0   : > { %13691 = vmatpush1.bf16.msra.mxu1 %v20689_v57  ;;  %18429 = vmatprep.subr.bf16.mxu0 %v20707_v24  ;;  %v20716_v24 = vld [vmem:[%s28684_s8 + $0x61c] ss:$12 sps:$4 sm:$0xff]  }
 0x6b1   : > { %13692 = vmatprep.subr.bf16.mxu1 %v20696_v29 }
 0x6b3   : > { %18430 = vmatpush3.bf16.msra.mxu0 %v20708_v19 }
 0x6b4   : > { %13693 = vmatpush1.bf16.msra.mxu1 %v20694_v31  ;;  %18471 = vmatprep.subr.bf16.mxu0 %v20712_v63  ;;  %v20714_v63 = vld [vmem:[%s28684_s8 + $0x618] ss:$12 sps:$4 sm:$0xff]  }
 0x6b5   : > { %13694 = vmatprep.subr.bf16.mxu1 %v20701_v42  ;;  %v20709_v42 = vld [vmem:[%s28684_s8 + $0x600] ss:$12 sps:$4 sm:$0xff]  }
 0x6b6   : > { %12115 = vmatmul.mubr.bf16.gmra.mrb[76].mxu0 %v11878_v37 }
 0x6b8   : > { %13695 = vmatpush1.bf16.msra.mxu1 %v20699_v45 }
 0x6b9   : > { %13696 = vmatprep.subr.bf16.mxu1 %v20706_v48 }
 0x6bc   : > { %13697 = vmatpush1.bf16.msra.mxu1 %v20704_v52  ;;  %v20717_v52 = vld [vmem:[%s28684_s8 + $0x860] ss:$12 sps:$4 sm:$0xff]  }
 0x6bd   : > { %13719 = vmatprep.subr.bf16.mxu1 %v20711_v13 }
 0x6c6   : > { %v10806_v12 = vpop.f32.mrb[180].mxu1 }
 0x6c7   : > { %v11755_v22 = vpop.f32.mrb[64].mxu0  ;;  %v10808_v7 = vpop.f32.mrb[181].mxu1 }
 0x6c8   : > { %v27182_v36 = vadd.f32 %v11755_v22, %v27016_v38  ;;  %v11757_v18 = vpop.f32.mrb[65].mxu0  ;;  %v10810_v15 = vpop.f32.mrb[182].mxu1 }
 0x6c9   : > { %v27188_v43 = vadd.f32 %v11757_v18, %v27022_v35  ;;  %v11759_v41 = vpop.f32.mrb[66].mxu0  ;;  %v10811_v46 = vpop.f32.mrb[183].mxu1 }
 0x6ca   : > { %v11760_v25 = vpop.f32.mrb[67].mxu0  ;;  %v20718_v41 = vld [vmem:[%s28684_s8 + $0x7a0] ss:$12 sps:$4 sm:$0xff]  }
 0x6cb   : > { %v20721_v25 = vld [vmem:[%s28684_s8 + $0x634] ss:$12 sps:$4 sm:$0xff]  }
 0x707   : > { %v10887_v33 = vpop.f32.mrb[184].mxu1 }
 0x708   : > { %v27190_v16 = vadd.f32 %v10887_v33, %v10806_v12  ;;  %v10889_v53 = vpop.f32.mrb[185].mxu1  ;;  %v27192_v38 = vpop.f32.mrb[68].mxu0  ;;  %v20722_v33 = vld [vmem:[%s28684_s8 + $0x878] ss:$12 sps:$4 sm:$0xff]  }
 0x709   : > { %v27194_v17 = vadd.f32 %v10889_v53, %v10808_v7  ;;  %v10891_v49 = vpop.f32.mrb[186].mxu1  ;;  %v27196_v55 = vpop.f32.mrb[69].mxu0 }
 0x70a   : > { %v10892_v0 = vpop.f32.mrb[187].mxu1  ;;  %v11958_v59 = vpop.f32.mrb[70].mxu0  ;;  %v20719_v49 = vld [vmem:[%s28684_s8 + $0x630] ss:$12 sps:$4 sm:$0xff]  }
 0x70b   : > { %v11959_v35 = vpop.f32.mrb[71].mxu0  ;;  %v20723_v0 = vld [vmem:[%s28684_s8 + $0x7b8] ss:$12 sps:$4 sm:$0xff]  }
 0x70c   : > { %v20726_v35 = vld [vmem:[%s28684_s8 + $0x64c] ss:$12 sps:$4 sm:$0xff]  }
 0x728   : > { %v10928_v4 = vpop.f32.mrb[140].mxu1 }
 0x729   : > { %v11004_v21 = vadd.f32 %v27202_v14, %v10928_v4  ;;  %v10930_v20 = vpop.f32.mrb[141].mxu1 }
 0x72a   : > { %v11005_v40 = vadd.f32 %v27205_v51, %v10930_v20  ;;  %v10932_v5 = vpop.f32.mrb[142].mxu1 }
 0x72b   : > { %v11022_v9 = vmax.f32 %v11004_v21, 0.0  ;;  %v11006_v23 = vadd.f32 %v27202_v14, %v10932_v5  ;;  %v10934_v44 = vpop.f32.mrb[143].mxu1 }
 0x72c   : > { %v11023_v28 = vmax.f32 %v11005_v40, 0.0  ;;  %v11007_v39 = vadd.f32 %v27205_v51, %v10934_v44  ;;  %v12350_v40 = vld [vmem:[#allocation4 + $0x78] sm:$0x1] }
 0x72d   : > { %12257 = vst [vmem:[#allocation4] sm:$0xff] %v11022_v9  ;;  %v11024_v11 = vmax.f32 %v11006_v23, 0.0  ;;  %v20724_v23 = vld [vmem:[%s28684_s8 + $0x648] ss:$12 sps:$4 sm:$0xff]  }
 0x72e   : > { %12258 = vst [vmem:[#allocation4 + $0x8] sm:$0xff] %v11023_v28  ;;  %v11025_v8 = vmax.f32 %v11007_v39, 0.0 }
 0x72f   : > { %12259 = vst [vmem:[#allocation4 + $0x20] sm:$0xff] %v11024_v11 }
 0x730   : > { %12260 = vst [vmem:[#allocation4 + $0x28] sm:$0xff] %v11025_v8  ;;  %v10938_v32 = vpop.f32.mrb[144].mxu1 }
 0x731   : > { %v27212_v6 = vadd.f32 %v27202_v14, %v10938_v32  ;;  %v10940_v27 = vpop.f32.mrb[145].mxu1 }
 0x732   : > { %v11009_v61 = vadd.f32 %v27205_v51, %v10940_v27  ;;  %v10942_v37 = vpop.f32.mrb[146].mxu1 }
 0x733   : > { %v11026_v47 = vmax.f32 %v27212_v6, 0.0  ;;  %v11010_v30 = vadd.f32 %v27202_v14, %v10942_v37  ;;  %v10944_v57 = vpop.f32.mrb[147].mxu1  ;;  %v20797_v6 = vld [vmem:[%s28684_s8 + $0x260] ss:$12 sps:$4 sm:$0xff]  }
 0x734   : > { %v11027_v2 = vmax.f32 %v11009_v61, 0.0  ;;  %v11011_v56 = vadd.f32 %v27205_v51, %v10944_v57  ;;  %v20728_v61 = vld [vmem:[%s28684_s8 + $0x7d0] ss:$12 sps:$4 sm:$0xff]  }
 0x735   : > { %12261 = vst [vmem:[#allocation4 + $0x40] sm:$0xff] %v11026_v47  ;;  %v11028_v1 = vmax.f32 %v11010_v30, 0.0  ;;  %v12672_v30 = vrot.slane %v12350_v40, 1 }
 0x736   : > { %12262 = vst [vmem:[#allocation4 + $0x48] sm:$0xff] %v11027_v2  ;;  %v11029_v29 = vmax.f32 %v11011_v56, 0.0  ;;  %v27220_v54 = vpack.c.bf16 %v11027_v2, %v11023_v28  ;;  %v20731_v2 = vld [vmem:[%s28684_s8 + $0x664] ss:$12 sps:$4 sm:$0xff]   ;;  %v20732_v56 = vld [vmem:[%s28684_s8 + $0x8a8] ss:$12 sps:$4 sm:$0xff]  }
 0x737   : > { %12263 = vst [vmem:[#allocation4 + $0x60] sm:$0xff] %v11028_v1  ;;  %v12694_v31 = vpack.c.bf16 %v11028_v1, %v11024_v11  ;;  %v12344_v11 = vld [vmem:[#allocation4 + $0x28] sm:$0xfe] }
 0x738   : > { %12264 = vst [vmem:[#allocation4 + $0x68] sm:$0xff] %v11029_v29  ;;  %v10948_v60 = vpop.f32.mrb[148].mxu1  ;;  %v12695_v45 = vpack.c.bf16 %v11029_v29, %v11025_v8  ;;  %v12346_v8 = vld [vmem:[#allocation4 + $0x38] sm:$0x1] }
 0x739   : > { %v27229_v26 = vadd.f32 %v27202_v14, %v10948_v60  ;;  %v10950_v48 = vpop.f32.mrb[149].mxu1  ;;  %v12666_v60 = vrot.slane %v12346_v8, 1 }
 0x73a   : > { %v27238_v19 = vadd.f32 %v27205_v51, %v10950_v48  ;;  %v10952_v12 = vpop.f32.mrb[150].mxu1  ;;  %13698 = vmatprep.mubr.bf16.mxu1 %v12695_v45  ;;  %13857 = vmatprep.mubr.bf16.mxu0 %v12695_v45  ;;  %v20729_v48 = vld [vmem:[%s28684_s8 + $0x660] ss:$12 sps:$4 sm:$0xff]  }
 0x73b   : > { %v11030_v22 = vmax.f32 %v27229_v26, 0.0  ;;  %v11014_v7 = vadd.f32 %v27202_v14, %v10952_v12  ;;  %v10954_v13 = vpop.f32.mrb[151].mxu1  ;;  %13699 = vmatmul.mubr.bf16.vlgmr.msra.gmra.mrb[192].mxu1 %v12694_v31  ;;  %13858 = vmatmul.mubr.bf16.vlgmr.msra.gmra.mrb[80].mxu0 %v12694_v31  ;;  %v12665_v31 = vrot.slane %v12344_v11, 1  ;;  %v12345_v11 = vld [vmem:[#allocation4 + $0x30] sm:$0x1] }
 0x73c   : > { %v11031_v18 = vmax.f32 %v27238_v19, 0.0  ;;  %v11015_v15 = vadd.f32 %v27205_v51, %v10954_v13  ;;  %13720 = vmatpush1.bf16.msra.mxu1 %v20709_v42  ;;  %18472 = vmatpush3.bf16.msra.mxu0 %v20713_v10 }
 0x73d   : > { %12265 = vst [vmem:[#allocation4 + $0x80] sm:$0xff] %v11030_v22  ;;  %v11032_v46 = vmax.f32 %v11014_v7, 0.0  ;;  %13721 = vmatprep.subr.bf16.mxu1 %v20716_v24  ;;  %18473 = vmatprep.subr.bf16.mxu0 %v20717_v52  ;;  %v20733_v24 = vld [vmem:[%s28684_s8 + $0x7e8] ss:$12 sps:$4 sm:$0xff]  }
 0x73e   : > { %12266 = vst [vmem:[#allocation4 + $0x88] sm:$0xff] %v11031_v18  ;;  %v11033_v53 = vmax.f32 %v11015_v15, 0.0  ;;  %v20736_v7 = vld [vmem:[%s28684_s8 + $0x67c] ss:$12 sps:$4 sm:$0xff]   ;;  %v12347_v40 = vld [vmem:[#allocation4 + $0x60] sm:$0xfe] }
 0x73f   : > { %12267 = vst [vmem:[#allocation4 + $0xa0] sm:$0xff] %v11032_v46  ;;  %v12348_v20 = vld [vmem:[#allocation4 + $0x68] sm:$0xfe]  ;;  %v12668_v8 = vrot.slane %v12347_v40, 1  ;;  %v20767_v40 = vld [vmem:[%s28684_s8 + $0x110] ss:$12 sps:$4 sm:$0xff]  }
 0x740   : > { %12268 = vst [vmem:[#allocation4 + $0xa8] sm:$0xff] %v11033_v53  ;;  %v10958_v59 = vpop.f32.mrb[152].mxu1  ;;  %13722 = vmatpush1.bf16.msra.mxu1 %v20714_v63  ;;  %18474 = vmatpush3.bf16.msra.mxu0 %v20718_v41  ;;  %v12671_v37 = vrot.slane %v12348_v20, 1  ;;  %v12667_v63 = vsel %vm465_vm0, %v12665_v31, %v12666_v60  ;;  %v20746_v20 = vld [vmem:[%s28684_s8 + $0x6ac] ss:$12 sps:$4 sm:$0xff]  }
 0x741   : > { %v11016_v4 = vadd.f32 %v27202_v14, %v10958_v59  ;;  %v10960_v21 = vpop.f32.mrb[153].mxu1  ;;  %13723 = vmatprep.subr.bf16.mxu1 %v20721_v25  ;;  %18475 = vmatprep.subr.bf16.mxu0 %v20722_v33  ;;  %v20742_v59 = vld [vmem:[%s28684_s8 + $0x8d8] ss:$12 sps:$4 sm:$0xff]   ;;  %v20752_v60 = vld [vmem:[%s28684_s8 + $0xc8] ss:$12 sps:$4 sm:$0xff]  }
 0x742   : > { %v11017_v5 = vadd.f32 %v27205_v51, %v10960_v21  ;;  %v10962_v9 = vpop.f32.mrb[154].mxu1  ;;  %v12673_v52 = vsel %vm465_vm0, %v12671_v37, %v12672_v30  ;;  %v20751_v31 = vld [vmem:[%s28684_s8 + $0x6c4] ss:$12 sps:$4 sm:$0xff]  }
 0x743   : > { %v11034_v44 = vmax.f32 %v11016_v4, 0.0  ;;  %v11018_v28 = vadd.f32 %v27202_v14, %v10962_v9  ;;  %v10964_v39 = vpop.f32.mrb[155].mxu1  ;;  %v20743_v4 = vld [vmem:[%s28684_s8 + $0x818] ss:$12 sps:$4 sm:$0xff]  }
 0x744   : > { %v11035_v32 = vmax.f32 %v11017_v5, 0.0  ;;  %v11019_v27 = vadd.f32 %v27205_v51, %v10964_v39  ;;  %13724 = vmatpush1.bf16.msra.mxu1 %v20719_v49  ;;  %18476 = vmatpush3.bf16.msra.mxu0 %v20723_v0  ;;  %v20734_v49 = vld [vmem:[%s28684_s8 + $0x678] ss:$12 sps:$4 sm:$0xff]   ;;  %v12349_v5 = vld [vmem:[#allocation4 + $0x70] sm:$0x1] }
 0x745   : > { %12269 = vst [vmem:[#allocation4 + $0xc0] sm:$0xff] %v11034_v44  ;;  %v11036_v57 = vmax.f32 %v11018_v28, 0.0  ;;  %13725 = vmatprep.subr.bf16.mxu1 %v20726_v35  ;;  %18477 = vmatprep.subr.bf16.mxu0 %v20727_v58  ;;  %v27284_v1 = vpack.c.bf16 %v11034_v44, %v11030_v22  ;;  %v20739_v58 = vld [vmem:[%s28684_s8 + $0x690] ss:$12 sps:$4 sm:$0xff]   ;;  %v12358_v44 = vld [vmem:[#allocation4 + $0xf8] sm:$0x1] }
 0x746   : > { %12270 = vst [vmem:[#allocation4 + $0xc8] sm:$0xff] %v11035_v32  ;;  %v11037_v29 = vmax.f32 %v11019_v27, 0.0  ;;  %v27286_v45 = vpack.c.bf16 %v11035_v32, %v11031_v18  ;;  %v20747_v28 = vld [vmem:[%s28684_s8 + $0x8f0] ss:$12 sps:$4 sm:$0xff]   ;;  %v12343_v39 = vld [vmem:[#allocation4 + $0x20] sm:$0xfe] }
 0x747   : > { %12271 = vst [vmem:[#allocation4 + $0xe0] sm:$0xff] %v11036_v57  ;;  %v12700_v42 = vpack.c.bf16 %v11036_v57, %v11032_v46  ;;  %v12669_v32 = vrot.slane %v12349_v5, 1  ;;  %v12352_v27 = vld [vmem:[#allocation4 + $0xa8] sm:$0xfe]  ;;  %v12684_v30 = vrot.slane %v12358_v44, 1 }
 0x748   : > { %12272 = vst [vmem:[#allocation4 + $0xe8] sm:$0xff] %v11037_v29  ;;  %v10968_v10 = vpop.f32.mrb[188].mxu1  ;;  %13726 = vmatpush1.bf16.msra.mxu1 %v20724_v23  ;;  %18478 = vmatpush3.bf16.msra.mxu0 %v20728_v61  ;;  %v12701_v26 = vpack.c.bf16 %v11037_v29, %v11033_v53  ;;  %v12354_v61 = vld [vmem:[#allocation4 + $0xb8] sm:$0x1]  ;;  %v20744_v57 = vld [vmem:[%s28684_s8 + $0x6a8] ss:$12 sps:$4 sm:$0xff]  }
 0x749   : > { %v10969_v19 = vadd.f32 %v10968_v10, %v27190_v16  ;;  %v12035_v12 = vpop.f32.mrb[72].mxu0  ;;  %v10970_v22 = vpop.f32.mrb[189].mxu1  ;;  %13727 = vmatprep.subr.bf16.mxu1 %v20731_v2  ;;  %18479 = vmatprep.subr.bf16.mxu0 %v20732_v56  ;;  %v20737_v16 = vld [vmem:[%s28684_s8 + $0x8c0] ss:$12 sps:$4 sm:$0xff]   ;;  %v20748_v2 = vld [vmem:[%s28684_s8 + $0x830] ss:$12 sps:$4 sm:$0xff]  }
 0x74a   : > { %v27300_v13 = vadd.f32 %v12035_v12, %v27192_v38  ;;  %v10971_v18 = vadd.f32 %v10970_v22, %v27194_v17  ;;  %v12037_v15 = vpop.f32.mrb[73].mxu0  ;;  %13708 = vmatprep.mubr.bf16.mxu1 %v12701_v26  ;;  %13865 = vmatprep.mubr.bf16.mxu0 %v12701_v26  ;;  %v10972_v41 = vpop.f32.mrb[190].mxu1  ;;  %v27311_v38 = vpack.c.bf16 %v12673_v52, %v12667_v63  ;;  %v12662_v56 = vrot.slane %v12343_v39, 1  ;;  %v12357_v52 = vld [vmem:[#allocation4 + $0xf0] sm:$0x1] }
 0x74b   : > { %v10991_v46 = vadd.f32 %v10969_v19, %v27012_v50  ;;  %v27309_v25 = vadd.f32 %v12037_v15, %v27196_v55  ;;  %13709 = vmatmul.mubr.bf16.gmra.mrb[196].mxu1 %v12700_v42  ;;  %13866 = vmatmul.mubr.bf16.gmra.mrb[84].mxu0 %v12700_v42  ;;  %v12039_v17 = vpop.f32.mrb[74].mxu0  ;;  %v10973_v33 = vpop.f32.mrb[191].mxu1  ;;  %v20738_v50 = vld [vmem:[%s28684_s8 + $0x800] ss:$12 sps:$4 sm:$0xff]   ;;  %v12663_v29 = vrot.slane %v12345_v11, 1  ;;  %v12677_v42 = vrot.slane %v12352_v27, 1 }
 0x74c   : > { %v10992_v53 = vadd.f32 %v10971_v18, %v27019_v3  ;;  %13728 = vmatpush1.bf16.msra.mxu1 %v20729_v48  ;;  %18480 = vmatpush3.bf16.msra.mxu0 %v20733_v24  ;;  %v12040_v55 = vpop.f32.mrb[75].mxu0  ;;  %v20741_v3 = vld [vmem:[%s28684_s8 + $0x694] ss:$12 sps:$4 sm:$0xff]   ;;  %v12678_v10 = vrot.slane %v12354_v61, 1  ;;  %v12670_v26 = vsel %vm465_vm0, %v12668_v8, %v12669_v32  ;;  %v20756_v15 = vld [vmem:[%s28684_s8 + $0x6dc] ss:$12 sps:$4 sm:$0xff]  }
 0x74d   : > { %v11020_v0 = vadd.f32 %v27202_v14, %v10991_v46  ;;  %13955 = vmatprep.mubr.bf16.mxu0 %v27311_v38  ;;  %13729 = vmatprep.subr.bf16.mxu1 %v20736_v7  ;;  %v20749_v19 = vld [vmem:[%s28684_s8 + $0x6c0] ss:$12 sps:$4 sm:$0xff]   ;;  %v12664_v12 = vsel %vm465_vm0, %v12662_v56, %v12663_v29  ;;  %v20753_v22 = vld [vmem:[%s28684_s8 + $0x8] ss:$12 sps:$4 sm:$0xff]   ;;  %v12681_v33 = vrot.slane %v12357_v52, 1 }
 0x74e   : > { %v11021_v35 = vadd.f32 %v27205_v51, %v10992_v53  ;;  %18481 = vmatprep.subr.bf16.mxu0 %v20737_v16  ;;  %v12355_v24 = vld [vmem:[#allocation4 + $0xe0] sm:$0xfe]  ;;  %v27362_v7 = vpack.c.bf16 %v12670_v26, %v12664_v12  ;;  %v12679_v18 = vsel %vm465_vm0, %v12677_v42, %v12678_v10  ;;  %v12353_v16 = vld [vmem:[#allocation4 + $0xb0] sm:$0x1]  ;;  %v20764_v5 = vld [vmem:[%s28684_s8 + $0x708] ss:$12 sps:$4 sm:$0xff]  }
 0x74f   : > { %v11038_v21 = vmax.f32 %v11020_v0, 0.0  ;;  %v12356_v23 = vld [vmem:[#allocation4 + $0xe8] sm:$0xfe]  ;;  %v12351_v63 = vld [vmem:[#allocation4 + $0xa0] sm:$0xfe]  ;;  %v12680_v17 = vrot.slane %v12355_v24, 1 }
 0x750   : > { %v11039_v9 = vmax.f32 %v11021_v35, 0.0  ;;  %13730 = vmatpush1.bf16.msra.mxu1 %v20734_v49  ;;  %18482 = vmatpush3.bf16.msra.mxu0 %v20738_v50  ;;  %v12683_v37 = vrot.slane %v12356_v23, 1  ;;  %v20757_v46 = vld [vmem:[%s28684_s8 + $0xe0] ss:$12 sps:$4 sm:$0xff]   ;;  %v20754_v53 = vld [vmem:[%s28684_s8 + $0x6d8] ss:$12 sps:$4 sm:$0xff]  }
 0x751   : > { %12273 = vst [vmem:[#allocation4 + $0x100] sm:$0xff] %v11038_v21  ;;  %13731 = vmatprep.subr.bf16.mxu1 %v20741_v3  ;;  %18483 = vmatprep.subr.bf16.mxu0 %v20742_v59  ;;  %v12674_v49 = vrot.slane %v12351_v63, 1  ;;  %v12675_v50 = vrot.slane %v12353_v16, 1  ;;  %v20758_v55 = vld [vmem:[%s28684_s8 + $0x20] ss:$12 sps:$4 sm:$0xff]   ;;  %v12682_v3 = vsel %vm465_vm0, %v12680_v17, %v12681_v33 }
 0x752   : > { %12274 = vst [vmem:[#allocation4 + $0x108] sm:$0xff] %v11039_v9  ;;  %v12685_v48 = vsel %vm465_vm0, %v12683_v37, %v12684_v30  ;;  %v20761_v0 = vld [vmem:[%s28684_s8 + $0x6f4] ss:$12 sps:$4 sm:$0xff]   ;;  %v20762_v59 = vld [vmem:[%s28684_s8 + $0xf8] ss:$12 sps:$4 sm:$0xff]  }
 0x753   : > { %v27368_v41 = vpack.c.bf16 %v12685_v48, %v12679_v18  ;;  %v20759_v35 = vld [vmem:[%s28684_s8 + $0x6f0] ss:$12 sps:$4 sm:$0xff]   ;;  %v20763_v21 = vld [vmem:[%s28684_s8 + $0x38] ss:$12 sps:$4 sm:$0xff]   ;;  %v20772_v44 = vld [vmem:[%s28684_s8 + $0x128] ss:$12 sps:$4 sm:$0xff]  }
 0x754   : > { %13732 = vmatpush1.bf16.msra.mxu1 %v20739_v58  ;;  %18484 = vmatpush3.bf16.msra.mxu0 %v20743_v4  ;;  %v12676_v58 = vsel %vm465_vm0, %v12674_v49, %v12675_v50  ;;  %v20768_v9 = vld [vmem:[%s28684_s8 + $0x50] ss:$12 sps:$4 sm:$0xff]   ;;  %v20773_v11 = vld [vmem:[%s28684_s8 + $0x68] ss:$12 sps:$4 sm:$0xff]   ;;  %v20777_v61 = vld [vmem:[%s28684_s8 + $0x140] ss:$12 sps:$4 sm:$0xff]  }
 0x755   : > { %13733 = vmatprep.subr.bf16.mxu1 %v20746_v20  ;;  %18485 = vmatprep.subr.bf16.mxu0 %v20747_v28  ;;  %v27392_v4 = vpack.c.bf16 %v12682_v3, %v12676_v58  ;;  %v20766_v20 = vld [vmem:[%s28684_s8 + $0x70c] ss:$12 sps:$4 sm:$0xff]   ;;  %v20771_v23 = vld [vmem:[%s28684_s8 + $0x724] ss:$12 sps:$4 sm:$0xff]   ;;  %v20776_v8 = vld [vmem:[%s28684_s8 + $0x73c] ss:$12 sps:$4 sm:$0xff]  }
 0x756   : > { %v20769_v28 = vld [vmem:[%s28684_s8 + $0x720] ss:$12 sps:$4 sm:$0xff]   ;;  %v20774_v29 = vld [vmem:[%s28684_s8 + $0x738] ss:$12 sps:$4 sm:$0xff]   ;;  %v20779_v52 = vld [vmem:[%s28684_s8 + $0x750] ss:$12 sps:$4 sm:$0xff]  }
 0x757   : > { %v20778_v42 = vld [vmem:[%s28684_s8 + $0x80] ss:$12 sps:$4 sm:$0xff]   ;;  %v20782_v48 = vld [vmem:[%s28684_s8 + $0x158] ss:$12 sps:$4 sm:$0xff]   ;;  %v20787_v63 = vld [vmem:[%s28684_s8 + $0x170] ss:$12 sps:$4 sm:$0xff]  }
 0x758   : > { %13734 = vmatpush1.bf16.msra.mxu1 %v20744_v57  ;;  %18486 = vmatpush3.bf16.msra.mxu0 %v20748_v2  ;;  %v20781_v10 = vld [vmem:[%s28684_s8 + $0x754] ss:$12 sps:$4 sm:$0xff]   ;;  %v20783_v12 = vld [vmem:[%s28684_s8 + $0x98] ss:$12 sps:$4 sm:$0xff]  }
 0x759   : > { %13735 = vmatprep.subr.bf16.mxu1 %v20751_v31  ;;  %18499 = vmatprep.subr.bf16.mxu0 %v20752_v60  ;;  %v20784_v49 = vld [vmem:[%s28684_s8 + $0x768] ss:$12 sps:$4 sm:$0xff]   ;;  %v20791_v3 = vld [vmem:[%s28684_s8 + $0x784] ss:$12 sps:$4 sm:$0xff]  }
 0x75b   : > { %13956 = vmatmul.mubr.bf16.vlgmr.msra.gmra.mrb[88].mxu0 %v27362_v7 }
 0x75c   : > { %13736 = vmatpush1.bf16.msra.mxu1 %v20749_v19  ;;  %13963 = vmatprep.mubr.bf16.mxu0 %v27368_v41 }
 0x75d   : > { %18500 = vmatpush3.bf16.msra.mxu0 %v20753_v22  ;;  %13737 = vmatprep.subr.bf16.mxu1 %v20756_v15  ;;  %v20786_v22 = vld [vmem:[%s28684_s8 + $0x76c] ss:$12 sps:$4 sm:$0xff]  }
 0x75e   : > { %18501 = vmatprep.subr.bf16.mxu0 %v20757_v46 }
 0x760   : > { %13738 = vmatpush1.bf16.msra.mxu1 %v20754_v53 }
 0x761   : > { %18502 = vmatpush3.bf16.msra.mxu0 %v20758_v55  ;;  %13739 = vmatprep.subr.bf16.mxu1 %v20761_v0  ;;  %v20788_v0 = vld [vmem:[%s28684_s8 + $0xb0] ss:$12 sps:$4 sm:$0xff]  }
 0x762   : > { %18503 = vmatprep.subr.bf16.mxu0 %v20762_v59 }
 0x763   : > { %13964 = vmatmul.mubr.bf16.gmra.mrb[92].mxu0 %v27392_v4 }
 0x764   : > { %13740 = vmatpush1.bf16.msra.mxu1 %v20759_v35  ;;  %14931 = vmatprep.mubr.bf16.mxu0 %v27220_v54  ;;  %v20792_v35 = vld [vmem:[%s28684_s8 + $0x248] ss:$12 sps:$4 sm:$0xff]  }
 0x765   : > { %18504 = vmatpush3.bf16.msra.mxu0 %v20763_v21  ;;  %13741 = vmatprep.subr.bf16.mxu1 %v20766_v20  ;;  %v12293_v20 = vld [vmem:[#allocation4] sm:$0xff] }
 0x766   : > { %18505 = vmatprep.subr.bf16.mxu0 %v20767_v40 }
 0x768   : > { %13742 = vmatpush1.bf16.msra.mxu1 %v20764_v5 }
 0x769   : > { %v12076_v39 = vpop.f32.mrb[28].mxu0  ;;  %18506 = vmatpush3.bf16.msra.mxu0 %v20768_v9  ;;  %13743 = vmatprep.subr.bf16.mxu1 %v20771_v23 }
 0x76a   : > { %v12141_v32 = vadd.f32 %v12076_v39, %v27202_v14  ;;  %v12078_v27 = vpop.f32.mrb[29].mxu0  ;;  %18507 = vmatprep.subr.bf16.mxu0 %v20772_v44  ;;  %v20789_v44 = vld [vmem:[%s28684_s8 + $0x780] ss:$12 sps:$4 sm:$0xff]  }
 0x76b   : > { %v12142_v37 = vadd.f32 %v12078_v27, %v27205_v51  ;;  %v12080_v30 = vpop.f32.mrb[30].mxu0 }
 0x76c   : > { %v12159_v57 = vmax.f32 %v12141_v32, 0.0  ;;  %v12143_v2 = vadd.f32 %v12080_v30, %v27202_v14  ;;  %v12082_v56 = vpop.f32.mrb[31].mxu0  ;;  %13744 = vmatpush1.bf16.msra.mxu1 %v20769_v28  ;;  %v20796_v32 = vld [vmem:[%s28684_s8 + $0x79c] ss:$12 sps:$4 sm:$0xff]  }
 0x76d   : > { %v12160_v31 = vmax.f32 %v12142_v37, 0.0  ;;  %v12144_v60 = vadd.f32 %v12082_v56, %v27205_v51  ;;  %18508 = vmatpush3.bf16.msra.mxu0 %v20773_v11  ;;  %13745 = vmatprep.subr.bf16.mxu1 %v20776_v8  ;;  %v27487_v11 = vpack.c.bf16 %v11026_v47, %v12293_v20  ;;  %v20793_v8 = vld [vmem:[%s28684_s8 + $0x188] ss:$12 sps:$4 sm:$0xff]   ;;  %v20794_v56 = vld [vmem:[%s28684_s8 + $0x798] ss:$12 sps:$4 sm:$0xff]  }
 0x76e   : > { %v12161_v26 = vmax.f32 %v12143_v2, 0.0  ;;  %18509 = vmatprep.subr.bf16.mxu0 %v20777_v61 }
 0x76f   : > { %v12162_v24 = vmax.f32 %v12144_v60, 0.0  ;;  %v20801_v60 = vld [vmem:[%s28684_s8 + $0x7b4] ss:$12 sps:$4 sm:$0xff]  }
 0x770   : > { %13746 = vmatpush1.bf16.msra.mxu1 %v20774_v29 }
 0x771   : > { %v12086_v19 = vpop.f32.mrb[32].mxu0  ;;  %18510 = vmatpush3.bf16.msra.mxu0 %v20778_v42  ;;  %13747 = vmatprep.subr.bf16.mxu1 %v20781_v10  ;;  %v20802_v10 = vld [vmem:[%s28684_s8 + $0x278] ss:$12 sps:$4 sm:$0xff]  }
 0x772   : > { %v12145_v18 = vadd.f32 %v12086_v19, %v27202_v14  ;;  %v12088_v15 = vpop.f32.mrb[33].mxu0  ;;  %18511 = vmatprep.subr.bf16.mxu0 %v20782_v48  ;;  %v20799_v48 = vld [vmem:[%s28684_s8 + $0x7b0] ss:$12 sps:$4 sm:$0xff]   ;;  %v20803_v19 = vld [vmem:[%s28684_s8 + $0x1b8] ss:$12 sps:$4 sm:$0xff]  }
 0x773   : > { %v12146_v16 = vadd.f32 %v12088_v15, %v27205_v51  ;;  %v12090_v46 = vpop.f32.mrb[34].mxu0  ;;  %v20807_v15 = vld [vmem:[%s28684_s8 + $0x290] ss:$12 sps:$4 sm:$0xff]  }
 0x774   : > { %v12163_v17 = vmax.f32 %v12145_v18, 0.0  ;;  %v12147_v33 = vadd.f32 %v12090_v46, %v27202_v14  ;;  %v12092_v53 = vpop.f32.mrb[35].mxu0  ;;  %13748 = vmatpush1.bf16.msra.mxu1 %v20779_v52 }
 0x775   : > { %v12164_v50 = vmax.f32 %v12146_v16, 0.0  ;;  %v12148_v55 = vadd.f32 %v12092_v53, %v27205_v51  ;;  %18512 = vmatpush3.bf16.msra.mxu0 %v20783_v12  ;;  %13749 = vmatprep.subr.bf16.mxu1 %v20786_v22  ;;  %v20806_v12 = vld [vmem:[%s28684_s8 + $0x7cc] ss:$12 sps:$4 sm:$0xff]   ;;  %v20804_v53 = vld [vmem:[%s28684_s8 + $0x7c8] ss:$12 sps:$4 sm:$0xff]  }
 0x776   : > { %12279 = vst [vmem:[#allocation5 + $0x40] sm:$0xff] %v12163_v17  ;;  %v12165_v59 = vmax.f32 %v12147_v33, 0.0  ;;  %18513 = vmatprep.subr.bf16.mxu0 %v20787_v63  ;;  %v27473_v58 = vpack.c.bf16 %v12163_v17, %v12159_v57 }
 0x777   : > { %12280 = vst [vmem:[#allocation5 + $0x48] sm:$0xff] %v12164_v50  ;;  %v12166_v21 = vmax.f32 %v12148_v55, 0.0  ;;  %v27475_v40 = vpack.c.bf16 %v12164_v50, %v12160_v31  ;;  %v20798_v31 = vld [vmem:[%s28684_s8 + $0x1a0] ss:$12 sps:$4 sm:$0xff]   ;;  %v20808_v50 = vld [vmem:[%s28684_s8 + $0x1d0] ss:$12 sps:$4 sm:$0xff]  }
 0x778   : > { %13750 = vmatpush1.bf16.msra.mxu1 %v20784_v49  ;;  %v27477_v5 = vpack.c.bf16 %v12165_v59, %v12161_v26  ;;  %v20811_v55 = vld [vmem:[%s28684_s8 + $0x7e4] ss:$12 sps:$4 sm:$0xff]   ;;  %v20812_v59 = vld [vmem:[%s28684_s8 + $0x2a8] ss:$12 sps:$4 sm:$0xff]  }
 0x779   : > { %v12096_v9 = vpop.f32.mrb[36].mxu0  ;;  %18514 = vmatpush3.bf16.msra.mxu0 %v20788_v0  ;;  %v27479_v23 = vpack.c.bf16 %v12166_v21, %v12162_v24  ;;  %13772 = vmatprep.subr.bf16.mxu1 %v20791_v3 }
 0x77a   : > { %v12149_v28 = vadd.f32 %v12096_v9, %v27202_v14  ;;  %v12098_v39 = vpop.f32.mrb[37].mxu0  ;;  %18527 = vmatprep.subr.bf16.mxu0 %v20792_v35 }
 0x77b   : > { %v12150_v27 = vadd.f32 %v12098_v39, %v27205_v51  ;;  %v12100_v61 = vpop.f32.mrb[38].mxu0  ;;  %13751 = vmatprep.mubr.bf16.mxu1 %v27479_v23 }
 0x77c   : > { %v12167_v47 = vmax.f32 %v12149_v28, 0.0  ;;  %v12151_v37 = vadd.f32 %v12100_v61, %v27202_v14  ;;  %v12102_v30 = vpop.f32.mrb[39].mxu0  ;;  %14932 = vmatmul.mubr.bf16.vlgmr.msra.gmra.mrb[96].mxu0 %v27487_v11  ;;  %13752 = vmatmul.mubr.bf16.vlgmr.msra.gmra.mrb[192].mxu1 %v27477_v5 }
 0x77d   : > { %v12168_v57 = vmax.f32 %v12150_v27, 0.0  ;;  %v12152_v2 = vadd.f32 %v12102_v30, %v27205_v51  ;;  %13773 = vmatpush1.bf16.msra.mxu1 %v20789_v44  ;;  %14939 = vmatprep.mubr.bf16.mxu0 %v27286_v45  ;;  %v20809_v44 = vld [vmem:[%s28684_s8 + $0x7e0] ss:$12 sps:$4 sm:$0xff]  }
 0x77e   : > { %12283 = vst [vmem:[#allocation5 + $0x80] sm:$0xff] %v12167_v47  ;;  %v12169_v29 = vmax.f32 %v12151_v37, 0.0  ;;  %18528 = vmatpush3.bf16.msra.mxu0 %v20793_v8  ;;  %13774 = vmatprep.subr.bf16.mxu1 %v20796_v32  ;;  %v20813_v8 = vld [vmem:[%s28684_s8 + $0x1e8] ss:$12 sps:$4 sm:$0xff]  }
 0x77f   : > { %12284 = vst [vmem:[#allocation5 + $0x88] sm:$0xff] %v12168_v57  ;;  %v12170_v42 = vmax.f32 %v12152_v2, 0.0  ;;  %18529 = vmatprep.subr.bf16.mxu0 %v20797_v6  ;;  %v20816_v32 = vld [vmem:[%s28684_s8 + $0x7fc] ss:$12 sps:$4 sm:$0xff]  }
 0x781   : > { %v12106_v26 = vpop.f32.mrb[40].mxu0  ;;  %13775 = vmatpush1.bf16.msra.mxu1 %v20794_v56 }
 0x782   : > { %v12153_v24 = vadd.f32 %v12106_v26, %v27202_v14  ;;  %v12108_v52 = vpop.f32.mrb[41].mxu0  ;;  %18530 = vmatpush3.bf16.msra.mxu0 %v20798_v31  ;;  %13776 = vmatprep.subr.bf16.mxu1 %v20801_v60  ;;  %v20827_v31 = vld [vmem:[%s28684_s8 + $0x2f0] ss:$12 sps:$4 sm:$0xff]   ;;  %v20824_v60 = vld [vmem:[%s28684_s8 + $0x828] ss:$12 sps:$4 sm:$0xff]  }
 0x783   : > { %v12154_v22 = vadd.f32 %v12108_v52, %v27205_v51  ;;  %v12110_v18 = vpop.f32.mrb[42].mxu0  ;;  %18531 = vmatprep.subr.bf16.mxu0 %v20802_v10  ;;  %v20831_v10 = vld [vmem:[%s28684_s8 + $0x844] ss:$12 sps:$4 sm:$0xff]   ;;  %v20832_v26 = vld [vmem:[%s28684_s8 + $0x3c8] ss:$12 sps:$4 sm:$0xff]  }
 0x784   : > { %v12171_v63 = vmax.f32 %v12153_v24, 0.0  ;;  %v12155_v16 = vadd.f32 %v12110_v18, %v27202_v14  ;;  %v12112_v46 = vpop.f32.mrb[43].mxu0  ;;  %14940 = vmatmul.mubr.bf16.gmra.mrb[100].mxu0 %v27284_v1  ;;  %v20833_v24 = vld [vmem:[%s28684_s8 + $0x308] ss:$12 sps:$4 sm:$0xff]  }
 0x785   : > { %v12172_v17 = vmax.f32 %v12154_v22, 0.0  ;;  %v12156_v33 = vadd.f32 %v12112_v46, %v27205_v51  ;;  %13777 = vmatpush1.bf16.msra.mxu1 %v20799_v48  ;;  %14980 = vmatprep.mubr.bf16.mxu0 %v27475_v40  ;;  %v20829_v48 = vld [vmem:[%s28684_s8 + $0x840] ss:$12 sps:$4 sm:$0xff]  }
 0x786   : > { %12287 = vst [vmem:[#allocation5 + $0xc0] sm:$0xff] %v12171_v63  ;;  %v12173_v49 = vmax.f32 %v12155_v16, 0.0  ;;  %18532 = vmatpush3.bf16.msra.mxu0 %v20803_v19  ;;  %13778 = vmatprep.subr.bf16.mxu1 %v20806_v12  ;;  %v27544_v0 = vpack.c.bf16 %v12171_v63, %v12167_v47  ;;  %v12314_v52 = vld [vmem:[#allocation4 + $0x48] sm:$0xfe]  ;;  %v12316_v19 = vld [vmem:[#allocation4 + $0x58] sm:$0x1] }
 0x787   : > { %12288 = vst [vmem:[#allocation5 + $0xc8] sm:$0xff] %v12172_v17  ;;  %v12174_v3 = vmax.f32 %v12156_v33, 0.0  ;;  %18533 = vmatprep.subr.bf16.mxu0 %v20807_v15  ;;  %v27549_v35 = vpack.c.bf16 %v12172_v17, %v12168_v57  ;;  %v20836_v12 = vld [vmem:[%s28684_s8 + $0x85c] ss:$12 sps:$4 sm:$0xff]   ;;  %v20837_v22 = vld [vmem:[%s28684_s8 + $0x3e0] ss:$12 sps:$4 sm:$0xff]  }
 0x788   : > { %v27551_v21 = vpack.c.bf16 %v12173_v49, %v12169_v29  ;;  %v20823_v29 = vld [vmem:[%s28684_s8 + $0x218] ss:$12 sps:$4 sm:$0xff]   ;;  %v12310_v18 = vld [vmem:[#allocation4 + $0x8] sm:$0xfe]  ;;  %v12419_v16 = vrot.slane %v12314_v52, 1  ;;  %v12420_v46 = vrot.slane %v12316_v19, 1 }
 0x789   : > { %v12116_v20 = vpop.f32.mrb[76].mxu0  ;;  %13779 = vmatpush1.bf16.msra.mxu1 %v20804_v53  ;;  %v27553_v9 = vpack.c.bf16 %v12174_v3, %v12170_v42  ;;  %v20828_v42 = vld [vmem:[%s28684_s8 + $0x230] ss:$12 sps:$4 sm:$0xff]   ;;  %v12312_v15 = vld [vmem:[#allocation4 + $0x18] sm:$0x1]  ;;  %v12413_v49 = vrot.slane %v12310_v18, 1 }
 0x78a   : > { %v12117_v28 = vadd.f32 %v12116_v20, %v27300_v13  ;;  %v12118_v39 = vpop.f32.mrb[77].mxu0  ;;  %18534 = vmatpush3.bf16.msra.mxu0 %v20808_v50  ;;  %13780 = vmatprep.subr.bf16.mxu1 %v20811_v55  ;;  %v20817_v13 = vld [vmem:[%s28684_s8 + $0x2c0] ss:$12 sps:$4 sm:$0xff]   ;;  %v20834_v63 = vld [vmem:[%s28684_s8 + $0x858] ss:$12 sps:$4 sm:$0xff]   ;;  %v12414_v50 = vrot.slane %v12312_v15, 1  ;;  %v12421_v3 = vsel %vm465_vm0, %v12419_v16, %v12420_v46 }
 0x78b   : > { %v12119_v27 = vadd.f32 %v12118_v39, %v27309_v25  ;;  %13761 = vmatprep.mubr.bf16.mxu1 %v27553_v9  ;;  %18535 = vmatprep.subr.bf16.mxu0 %v20812_v59  ;;  %v12120_v61 = vpop.f32.mrb[78].mxu0  ;;  %v20814_v25 = vld [vmem:[%s28684_s8 + $0x7f8] ss:$12 sps:$4 sm:$0xff]   ;;  %v20838_v17 = vld [vmem:[%s28684_s8 + $0x320] ss:$12 sps:$4 sm:$0xff]  }
 0x78c   : > { %v12139_v6 = vadd.f32 %v12117_v28, %v27182_v36  ;;  %13762 = vmatmul.mubr.bf16.gmra.mrb[196].mxu1 %v27551_v21  ;;  %v12121_v37 = vpop.f32.mrb[79].mxu0  ;;  %v20818_v36 = vld [vmem:[%s28684_s8 + $0x200] ss:$12 sps:$4 sm:$0xff]   ;;  %v20842_v53 = vld [vmem:[%s28684_s8 + $0x3f8] ss:$12 sps:$4 sm:$0xff]   ;;  %v12415_v20 = vsel %vm465_vm0, %v12413_v49, %v12414_v50 }
 0x78d   : > { %v12140_v47 = vadd.f32 %v12119_v27, %v27188_v43  ;;  %13781 = vmatpush1.bf16.msra.mxu1 %v20809_v44  ;;  %13804 = vmatprep.mubr.bf16.mxu1 %v27311_v38  ;;  %v20821_v43 = vld [vmem:[%s28684_s8 + $0x814] ss:$12 sps:$4 sm:$0xff]   ;;  %v20822_v38 = vld [vmem:[%s28684_s8 + $0x2d8] ss:$12 sps:$4 sm:$0xff]   ;;  %v20839_v55 = vld [vmem:[%s28684_s8 + $0x870] ss:$12 sps:$4 sm:$0xff]   ;;  %v27652_v39 = vpack.c.bf16 %v12421_v3, %v12415_v20 }
 0x78e   : > { %v12157_v30 = vadd.f32 %v12139_v6, %v27202_v14  ;;  %18536 = vmatpush3.bf16.msra.mxu0 %v20813_v8  ;;  %13782 = vmatprep.subr.bf16.mxu1 %v20816_v32  ;;  %v20819_v14 = vld [vmem:[%s28684_s8 + $0x810] ss:$12 sps:$4 sm:$0xff]   ;;  %v20841_v33 = vld [vmem:[%s28684_s8 + $0x874] ss:$12 sps:$4 sm:$0xff]   ;;  %v20843_v59 = vld [vmem:[%s28684_s8 + $0x338] ss:$12 sps:$4 sm:$0xff]  }
 0x78f   : > { %v12158_v57 = vadd.f32 %v12140_v47, %v27205_v51  ;;  %18537 = vmatprep.subr.bf16.mxu0 %v20817_v13  ;;  %v20826_v51 = vld [vmem:[%s28684_s8 + $0x82c] ss:$12 sps:$4 sm:$0xff]   ;;  %v20847_v28 = vld [vmem:[%s28684_s8 + $0x410] ss:$12 sps:$4 sm:$0xff]   ;;  %v20844_v8 = vld [vmem:[%s28684_s8 + $0x888] ss:$12 sps:$4 sm:$0xff]  }
 0x790   : > { %v12175_v2 = vmax.f32 %v12157_v30, 0.0  ;;  %v20846_v44 = vld [vmem:[%s28684_s8 + $0x88c] ss:$12 sps:$4 sm:$0xff]   ;;  %v20848_v32 = vld [vmem:[%s28684_s8 + $0x350] ss:$12 sps:$4 sm:$0xff]  }
 0x791   : > { %v12176_v56 = vmax.f32 %v12158_v57, 0.0  ;;  %13783 = vmatpush1.bf16.msra.mxu1 %v20814_v25  ;;  %v20851_v27 = vld [vmem:[%s28684_s8 + $0x8a4] ss:$12 sps:$4 sm:$0xff]   ;;  %v20852_v13 = vld [vmem:[%s28684_s8 + $0x428] ss:$12 sps:$4 sm:$0xff]  }
 0x792   : > { %12291 = vst [vmem:[#allocation5 + $0x100] sm:$0xff] %v12175_v2  ;;  %18538 = vmatpush3.bf16.msra.mxu0 %v20818_v36  ;;  %13784 = vmatprep.subr.bf16.mxu1 %v20821_v43  ;;  %v20849_v61 = vld [vmem:[%s28684_s8 + $0x8a0] ss:$12 sps:$4 sm:$0xff]   ;;  %v20853_v6 = vld [vmem:[%s28684_s8 + $0x368] ss:$12 sps:$4 sm:$0xff]  }
 0x793   : > { %12292 = vst [vmem:[#allocation5 + $0x108] sm:$0xff] %v12176_v56  ;;  %18539 = vmatprep.subr.bf16.mxu0 %v20822_v38  ;;  %v20856_v47 = vld [vmem:[%s28684_s8 + $0x8bc] ss:$12 sps:$4 sm:$0xff]   ;;  %v20857_v25 = vld [vmem:[%s28684_s8 + $0x440] ss:$12 sps:$4 sm:$0xff]  }
 0x794   : > { %v20854_v37 = vld [vmem:[%s28684_s8 + $0x8b8] ss:$12 sps:$4 sm:$0xff]   ;;  %v20858_v30 = vld [vmem:[%s28684_s8 + $0x380] ss:$12 sps:$4 sm:$0xff]   ;;  %v12315_v57 = vld [vmem:[#allocation4 + $0x50] sm:$0x1] }
 0x795   : > { %13785 = vmatpush1.bf16.msra.mxu1 %v20819_v14  ;;  %v20861_v36 = vld [vmem:[%s28684_s8 + $0x8d4] ss:$12 sps:$4 sm:$0xff]   ;;  %v20862_v43 = vld [vmem:[%s28684_s8 + $0x458] ss:$12 sps:$4 sm:$0xff]   ;;  %v20859_v38 = vld [vmem:[%s28684_s8 + $0x8d0] ss:$12 sps:$4 sm:$0xff]  }
 0x796   : > { %18540 = vmatpush3.bf16.msra.mxu0 %v20823_v29  ;;  %13786 = vmatprep.subr.bf16.mxu1 %v20826_v51  ;;  %v12313_v2 = vld [vmem:[#allocation4 + $0x40] sm:$0xfe]  ;;  %v12324_v56 = vld [vmem:[#allocation4 + $0xd8] sm:$0x1]  ;;  %v12322_v51 = vld [vmem:[#allocation4 + $0xc8] sm:$0xfe] }
 0x797   : > { %18541 = vmatprep.subr.bf16.mxu0 %v20827_v31  ;;  %v20863_v14 = vld [vmem:[%s28684_s8 + $0x398] ss:$12 sps:$4 sm:$0xff]   ;;  %v20867_v31 = vld [vmem:[%s28684_s8 + $0x470] ss:$12 sps:$4 sm:$0xff]   ;;  %v20864_v52 = vld [vmem:[%s28684_s8 + $0x8e8] ss:$12 sps:$4 sm:$0xff]  }
 0x798   : > { %v20866_v29 = vld [vmem:[%s28684_s8 + $0x8ec] ss:$12 sps:$4 sm:$0xff]   ;;  %v12431_v19 = vrot.slane %v12322_v51, 1  ;;  %v20869_v18 = vld [vmem:[%s28684_s8 + $0x6c8] ss:$12 sps:$4 sm:$0xff]  }
 0x799   : > { %13787 = vmatpush1.bf16.msra.mxu1 %v20824_v60  ;;  %v12309_v60 = vld [vmem:[#allocation4] sm:$0xfe]  ;;  %v20870_v16 = vld [vmem:[%s28684_s8 + $0x9c8] ss:$12 sps:$4 sm:$0xff]   ;;  %v12323_v50 = vld [vmem:[#allocation4 + $0xd0] sm:$0x1] }
 0x79a   : > { %18542 = vmatpush3.bf16.msra.mxu0 %v20828_v42  ;;  %13788 = vmatprep.subr.bf16.mxu1 %v20831_v10  ;;  %v12311_v42 = vld [vmem:[#allocation4 + $0x10] sm:$0x1]  ;;  %v12416_v10 = vrot.slane %v12313_v2, 1  ;;  %v12410_v15 = vrot.slane %v12309_v60, 1  ;;  %v12321_v49 = vld [vmem:[#allocation4 + $0xc0] sm:$0xfe] }
 0x79b   : > { %18555 = vmatprep.subr.bf16.mxu0 %v20832_v26  ;;  %v12417_v26 = vrot.slane %v12315_v57, 1  ;;  %v20871_v3 = vld [vmem:[%s28684_s8 + $0x608] ss:$12 sps:$4 sm:$0xff]   ;;  %v20883_v60 = vld [vmem:[%s28684_s8 + $0x650] ss:$12 sps:$4 sm:$0xff]  }
 0x79d   : > { %14981 = vmatmul.mubr.bf16.vlgmr.msra.gmra.mrb[104].mxu0 %v27473_v58  ;;  %13789 = vmatpush1.bf16.msra.mxu1 %v20829_v48  ;;  %v12318_v48 = vld [vmem:[#allocation4 + $0x88] sm:$0xfe] }
 0x79e   : > { %14988 = vmatprep.mubr.bf16.mxu0 %v27549_v35  ;;  %18556 = vmatpush3.bf16.msra.mxu0 %v20833_v24  ;;  %v12320_v24 = vld [vmem:[#allocation4 + $0x98] sm:$0x1]  ;;  %v12425_v46 = vrot.slane %v12318_v48, 1  ;;  %v20889_v48 = vld [vmem:[%s28684_s8 + $0x740] ss:$12 sps:$4 sm:$0xff]  }
 0x79f   : > { %13790 = vmatprep.subr.bf16.mxu1 %v20836_v12  ;;  %18557 = vmatprep.subr.bf16.mxu0 %v20837_v22  ;;  %v12432_v12 = vrot.slane %v12324_v56, 1  ;;  %v20868_v22 = vld [vmem:[%s28684_s8 + $0x3b0] ss:$12 sps:$4 sm:$0xff]   ;;  %v20880_v56 = vld [vmem:[%s28684_s8 + $0x938] ss:$12 sps:$4 sm:$0xff]  }
 0x7a1   : > { %13791 = vmatpush1.bf16.msra.mxu1 %v20834_v63  ;;  %v12411_v63 = vrot.slane %v12311_v42, 1  ;;  %v20885_v42 = vld [vmem:[%s28684_s8 + $0x728] ss:$12 sps:$4 sm:$0xff]  }
 0x7a2   : > { %18558 = vmatpush3.bf16.msra.mxu0 %v20838_v17  ;;  %13792 = vmatprep.subr.bf16.mxu1 %v20841_v33  ;;  %v12426_v17 = vrot.slane %v12320_v24, 1  ;;  %v12418_v33 = vsel %vm465_vm0, %v12416_v10, %v12417_v26  ;;  %v20887_v10 = vld [vmem:[%s28684_s8 + $0x668] ss:$12 sps:$4 sm:$0xff]   ;;  %v20890_v24 = vld [vmem:[%s28684_s8 + $0xa40] ss:$12 sps:$4 sm:$0xff]  }
 0x7a3   : > { %18559 = vmatprep.subr.bf16.mxu0 %v20842_v53  ;;  %v12433_v53 = vsel %vm465_vm0, %v12431_v19, %v12432_v12  ;;  %v20888_v26 = vld [vmem:[%s28684_s8 + $0x968] ss:$12 sps:$4 sm:$0xff]   ;;  %v20892_v19 = vld [vmem:[%s28684_s8 + $0x980] ss:$12 sps:$4 sm:$0xff]   ;;  %v20893_v12 = vld [vmem:[%s28684_s8 + $0x758] ss:$12 sps:$4 sm:$0xff]  }
 0x7a5   : > { %14989 = vmatmul.mubr.bf16.gmra.mrb[108].mxu0 %v27544_v0  ;;  %13793 = vmatpush1.bf16.msra.mxu1 %v20839_v55  ;;  %v12412_v55 = vsel %vm465_vm0, %v12410_v15, %v12411_v63  ;;  %v20896_v15 = vld [vmem:[%s28684_s8 + $0x998] ss:$12 sps:$4 sm:$0xff]   ;;  %v20897_v63 = vld [vmem:[%s28684_s8 + $0x770] ss:$12 sps:$4 sm:$0xff]  }
 0x7a6   : > { %18560 = vmatpush3.bf16.msra.mxu0 %v20843_v59  ;;  %15029 = vmatprep.mubr.bf16.mxu0 %v27652_v39  ;;  %v12319_v59 = vld [vmem:[#allocation4 + $0x90] sm:$0x1]  ;;  %v27722_v20 = vpack.c.bf16 %v12418_v33, %v12412_v55  ;;  %v20901_v55 = vld [vmem:[%s28684_s8] ss:$12 sps:$4 sm:$0xff]  }
 0x7a7   : > { %13794 = vmatprep.subr.bf16.mxu1 %v20846_v44  ;;  %18561 = vmatprep.subr.bf16.mxu0 %v20847_v28  ;;  %v12427_v44 = vsel %vm465_vm0, %v12425_v46, %v12426_v17  ;;  %v20872_v28 = vld [vmem:[%s28684_s8 + $0x908] ss:$12 sps:$4 sm:$0xff]   ;;  %v20899_v46 = vld [vmem:[%s28684_s8 + $0x6b0] ss:$12 sps:$4 sm:$0xff]  }
 0x7a8   : > { %v20900_v17 = vld [vmem:[%s28684_s8 + $0x9b0] ss:$12 sps:$4 sm:$0xff]  }
 0x7a9   : > { %13795 = vmatpush1.bf16.msra.mxu1 %v20844_v8  ;;  %v20873_v8 = vld [vmem:[%s28684_s8 + $0x6e0] ss:$12 sps:$4 sm:$0xff]   ;;  %v20903_v33 = vld [vmem:[%s28684_s8 + $0x4] ss:$12 sps:$4 sm:$0xff]  }
 0x7aa   : > { %18562 = vmatpush3.bf16.msra.mxu0 %v20848_v32  ;;  %13796 = vmatprep.subr.bf16.mxu1 %v20851_v27  ;;  %v12317_v32 = vld [vmem:[#allocation4 + $0x80] sm:$0xfe]  ;;  %v27732_v27 = vpack.c.bf16 %v12433_v53, %v12427_v44  ;;  %v20904_v53 = vld [vmem:[%s28684_s8 + $0xb48] ss:$12 sps:$4 sm:$0xff]  }
 0x7ab   : > { %18563 = vmatprep.subr.bf16.mxu0 %v20852_v13  ;;  %v20874_v13 = vld [vmem:[%s28684_s8 + $0x9e0] ss:$12 sps:$4 sm:$0xff]  }
 0x7ac   : > { %v12365_v44 = vld [vmem:[#allocation4 + $0xc8] sm:$0xff] }
 0x7ad   : > { %13797 = vmatpush1.bf16.msra.mxu1 %v20849_v61  ;;  %v12428_v61 = vrot.slane %v12321_v49, 1  ;;  %v12362_v49 = vld [vmem:[#allocation4 + $0x80] sm:$0xff] }
 0x7ae   : > { %18564 = vmatpush3.bf16.msra.mxu0 %v20853_v6  ;;  %13798 = vmatprep.subr.bf16.mxu1 %v20856_v47  ;;  %v12429_v6 = vrot.slane %v12323_v50, 1  ;;  %v20875_v47 = vld [vmem:[%s28684_s8 + $0x620] ss:$12 sps:$4 sm:$0xff]  }
 0x7af   : > { %18565 = vmatprep.subr.bf16.mxu0 %v20857_v25  ;;  %v12423_v25 = vrot.slane %v12319_v59, 1  ;;  %v12367_v50 = vld [vmem:[#allocation4 + $0x108] sm:$0xff] }
 0x7b1   : > { %13799 = vmatpush1.bf16.msra.mxu1 %v20854_v37  ;;  %v20876_v37 = vld [vmem:[%s28684_s8 + $0x920] ss:$12 sps:$4 sm:$0xff]  }
 0x7b2   : > { %18566 = vmatpush3.bf16.msra.mxu0 %v20858_v30  ;;  %13800 = vmatprep.subr.bf16.mxu1 %v20861_v36  ;;  %v20877_v30 = vld [vmem:[%s28684_s8 + $0x6f8] ss:$12 sps:$4 sm:$0xff]  }
 0x7b3   : > { %18567 = vmatprep.subr.bf16.mxu0 %v20862_v43  ;;  %v20878_v36 = vld [vmem:[%s28684_s8 + $0x9f8] ss:$12 sps:$4 sm:$0xff]   ;;  %v12363_v43 = vld [vmem:[#allocation4 + $0x88] sm:$0xff] }
 0x7b5   : > { %13801 = vmatpush1.bf16.msra.mxu1 %v20859_v38  ;;  %v20879_v38 = vld [vmem:[%s28684_s8 + $0x638] ss:$12 sps:$4 sm:$0xff]  }
 0x7b6   : > { %18568 = vmatpush3.bf16.msra.mxu0 %v20863_v14  ;;  %13802 = vmatprep.subr.bf16.mxu1 %v20866_v29  ;;  %v12361_v14 = vld [vmem:[#allocation4 + $0x48] sm:$0xff]  ;;  %v20881_v29 = vld [vmem:[%s28684_s8 + $0x710] ss:$12 sps:$4 sm:$0xff]  }
 0x7b7   : > { %18569 = vmatprep.subr.bf16.mxu0 %v20867_v31  ;;  %v27766_v51 = vpack.c.bf16 %v12363_v43, %v12361_v14  ;;  %v20882_v31 = vld [vmem:[%s28684_s8 + $0xa10] ss:$12 sps:$4 sm:$0xff]   ;;  %v20918_v43 = vld [vmem:[%s28684_s8 + $0x4c] ss:$12 sps:$4 sm:$0xff]  }
 0x7b8   : > { %v20923_v14 = vld [vmem:[%s28684_s8 + $0x64] ss:$12 sps:$4 sm:$0xff]  }
 0x7b9   : > { %13803 = vmatpush1.bf16.msra.mxu1 %v20864_v52  ;;  %v20891_v52 = vld [vmem:[%s28684_s8 + $0x680] ss:$12 sps:$4 sm:$0xff]  }
 0x7ba   : > { %18570 = vmatpush3.bf16.msra.mxu0 %v20868_v22  ;;  %18443 = vmatprep.subr.bf16.mxu1 %v20869_v18  ;;  %v20894_v22 = vld [vmem:[%s28684_s8 + $0xa58] ss:$12 sps:$4 sm:$0xff]  }
 0x7bb   : > { %18583 = vmatprep.subr.bf16.mxu0 %v20870_v16  ;;  %v20895_v18 = vld [vmem:[%s28684_s8 + $0x698] ss:$12 sps:$4 sm:$0xff]   ;;  %v20898_v16 = vld [vmem:[%s28684_s8 + $0xa70] ss:$12 sps:$4 sm:$0xff]  }
 0x7bc   : > { %13805 = vmatmul.mubr.bf16.vlgmr.msra.gmra.mrb[192].mxu1 %v27362_v7  ;;  %v12422_v7 = vrot.slane %v12317_v32, 1  ;;  %v27846_v32 = vpack.c.bf16 %v12367_v50, %v12365_v44  ;;  %v20949_v44 = vld [vmem:[%s28684_s8 + $0xce0] ss:$12 sps:$4 sm:$0xff]  }
 0x7bd   : > { %15030 = vmatmul.mubr.bf16.vlgmr.msra.gmra.mrb[112].mxu0 %v27722_v20  ;;  %13814 = vmatprep.mubr.bf16.mxu1 %v27368_v41  ;;  %v12430_v41 = vsel %vm465_vm0, %v12428_v61, %v12429_v6  ;;  %v20906_v61 = vld [vmem:[%s28684_s8 + $0x18] ss:$12 sps:$4 sm:$0xff]   ;;  %v20913_v6 = vld [vmem:[%s28684_s8 + $0x34] ss:$12 sps:$4 sm:$0xff]  }
 0x7be   : > { %18444 = vmatpush3.bf16.msra.mxu1 %v20871_v3  ;;  %15037 = vmatprep.mubr.bf16.mxu0 %v27732_v27  ;;  %v12424_v57 = vsel %vm465_vm0, %v12422_v7, %v12423_v25  ;;  %v12360_v3 = vld [vmem:[#allocation4 + $0x40] sm:$0xff]  ;;  %v12372_v7 = vld [vmem:[#allocation5 + $0x88] sm:$0xff]  ;;  %v20911_v25 = vld [vmem:[%s28684_s8 + $0x30] ss:$12 sps:$4 sm:$0xff]  }
 0x7bf   : > { %18584 = vmatpush3.bf16.msra.mxu0 %v20872_v28  ;;  %18445 = vmatprep.subr.bf16.mxu1 %v20873_v8  ;;  %v27757_v2 = vpack.c.bf16 %v12430_v41, %v12424_v57  ;;  %v27837_v59 = vpack.c.bf16 %v12362_v49, %v12360_v3  ;;  %v20905_v28 = vld [vmem:[%s28684_s8 + $0xa88] ss:$12 sps:$4 sm:$0xff]   ;;  %v20915_v41 = vld [vmem:[%s28684_s8 + $0xab8] ss:$12 sps:$4 sm:$0xff]  }
 0x7c0   : > { %18585 = vmatprep.subr.bf16.mxu0 %v20874_v13  ;;  %v20908_v8 = vld [vmem:[%s28684_s8 + $0x1c] ss:$12 sps:$4 sm:$0xff]   ;;  %v20909_v13 = vld [vmem:[%s28684_s8 + $0xb60] ss:$12 sps:$4 sm:$0xff]  }
 0x7c1   : > { %v12382_v49 = vld [vmem:[#allocation4 + $0x88] sm:$0xfe] }
 0x7c2   : > { %18446 = vmatpush3.bf16.msra.mxu1 %v20875_v47  ;;  %v12366_v47 = vld [vmem:[#allocation4 + $0x100] sm:$0xff]  ;;  %v20948_v3 = vld [vmem:[%s28684_s8 + $0xdc] ss:$12 sps:$4 sm:$0xff]  }
 0x7c3   : > { %18586 = vmatpush3.bf16.msra.mxu0 %v20876_v37  ;;  %18447 = vmatprep.subr.bf16.mxu1 %v20877_v30  ;;  %v12364_v37 = vld [vmem:[#allocation4 + $0xc0] sm:$0xff] }
 0x7c4   : > { %13815 = vmatmul.mubr.bf16.gmra.mrb[196].mxu1 %v27392_v4  ;;  %18587 = vmatprep.subr.bf16.mxu0 %v20878_v36  ;;  %v20884_v4 = vld [vmem:[%s28684_s8 + $0x950] ss:$12 sps:$4 sm:$0xff]   ;;  %v27869_v30 = vpack.c.bf16 %v12366_v47, %v12364_v37  ;;  %v12370_v36 = vld [vmem:[#allocation5 + $0x48] sm:$0xff] }
 0x7c5   : > { %15038 = vmatmul.mubr.bf16.gmra.mrb[116].mxu0 %v27757_v2  ;;  %13906 = vmatprep.mubr.bf16.mxu1 %v27479_v23  ;;  %v20886_v23 = vld [vmem:[%s28684_s8 + $0xa28] ss:$12 sps:$4 sm:$0xff]   ;;  %v27878_v57 = vpack.c.bf16 %v12372_v7, %v12370_v36  ;;  %v20950_v47 = vld [vmem:[%s28684_s8 + $0xc20] ss:$12 sps:$4 sm:$0xff]   ;;  %v20954_v7 = vld [vmem:[%s28684_s8 + $0xcf8] ss:$12 sps:$4 sm:$0xff]  }
 0x7c6   : > { %18448 = vmatpush3.bf16.msra.mxu1 %v20879_v38  ;;  %16257 = vmatprep.mubr.bf16.mxu0 %v27766_v51  ;;  %v20919_v38 = vld [vmem:[%s28684_s8 + $0xb90] ss:$12 sps:$4 sm:$0xff]  }
 0x7c7   : > { %18588 = vmatpush3.bf16.msra.mxu0 %v20880_v56  ;;  %18449 = vmatprep.subr.bf16.mxu1 %v20881_v29  ;;  %v20916_v56 = vld [vmem:[%s28684_s8 + $0x48] ss:$12 sps:$4 sm:$0xff]   ;;  %v20921_v29 = vld [vmem:[%s28684_s8 + $0x60] ss:$12 sps:$4 sm:$0xff]   ;;  %v20951_v36 = vld [vmem:[%s28684_s8 + $0xf0] ss:$12 sps:$4 sm:$0xff]  }
 0x7c8   : > { %18589 = vmatprep.subr.bf16.mxu0 %v20882_v31  ;;  %v20925_v31 = vld [vmem:[%s28684_s8 + $0xae8] ss:$12 sps:$4 sm:$0xff]  }
 0x7ca   : > { %18450 = vmatpush3.bf16.msra.mxu1 %v20883_v60  ;;  %v20928_v60 = vld [vmem:[%s28684_s8 + $0x7c] ss:$12 sps:$4 sm:$0xff]  }
 0x7cb   : > { %18590 = vmatpush3.bf16.msra.mxu0 %v20884_v4  ;;  %18451 = vmatprep.subr.bf16.mxu1 %v20885_v42  ;;  %v20929_v4 = vld [vmem:[%s28684_s8 + $0xbc0] ss:$12 sps:$4 sm:$0xff]   ;;  %v20926_v42 = vld [vmem:[%s28684_s8 + $0x78] ss:$12 sps:$4 sm:$0xff]  }
 0x7cc   : > { %18591 = vmatprep.subr.bf16.mxu0 %v20886_v23  ;;  %v20930_v23 = vld [vmem:[%s28684_s8 + $0xb00] ss:$12 sps:$4 sm:$0xff]  }
 0x7ce   : > { %18452 = vmatpush3.bf16.msra.mxu1 %v20887_v10  ;;  %v20933_v10 = vld [vmem:[%s28684_s8 + $0x94] ss:$12 sps:$4 sm:$0xff]  }
 0x7cf   : > { %18592 = vmatpush3.bf16.msra.mxu0 %v20888_v26  ;;  %18453 = vmatprep.subr.bf16.mxu1 %v20889_v48  ;;  %v20934_v26 = vld [vmem:[%s28684_s8 + $0xbd8] ss:$12 sps:$4 sm:$0xff]   ;;  %v20931_v48 = vld [vmem:[%s28684_s8 + $0x90] ss:$12 sps:$4 sm:$0xff]  }
 0x7d0   : > { %18593 = vmatprep.subr.bf16.mxu0 %v20890_v24  ;;  %v20935_v24 = vld [vmem:[%s28684_s8 + $0xb18] ss:$12 sps:$4 sm:$0xff]  }
 0x7d2   : > { %18454 = vmatpush3.bf16.msra.mxu1 %v20891_v52  ;;  %v20938_v52 = vld [vmem:[%s28684_s8 + $0xac] ss:$12 sps:$4 sm:$0xff]  }
 0x7d3   : > { %18594 = vmatpush3.bf16.msra.mxu0 %v20892_v19  ;;  %18455 = vmatprep.subr.bf16.mxu1 %v20893_v12  ;;  %v20939_v19 = vld [vmem:[%s28684_s8 + $0xbf0] ss:$12 sps:$4 sm:$0xff]   ;;  %v20936_v12 = vld [vmem:[%s28684_s8 + $0xa8] ss:$12 sps:$4 sm:$0xff]  }
 0x7d4   : > { %18595 = vmatprep.subr.bf16.mxu0 %v20894_v22  ;;  %v20940_v22 = vld [vmem:[%s28684_s8 + $0xb30] ss:$12 sps:$4 sm:$0xff]  }
 0x7d6   : > { %18456 = vmatpush3.bf16.msra.mxu1 %v20895_v18  ;;  %v20943_v18 = vld [vmem:[%s28684_s8 + $0xc4] ss:$12 sps:$4 sm:$0xff]  }
 0x7d7   : > { %18596 = vmatpush3.bf16.msra.mxu0 %v20896_v15  ;;  %18457 = vmatprep.subr.bf16.mxu1 %v20897_v63  ;;  %v20944_v15 = vld [vmem:[%s28684_s8 + $0xcc8] ss:$12 sps:$4 sm:$0xff]   ;;  %v12371_v63 = vld [vmem:[#allocation5 + $0x80] sm:$0xff] }
 0x7d8   : > { %18597 = vmatprep.subr.bf16.mxu0 %v20898_v16  ;;  %v20941_v16 = vld [vmem:[%s28684_s8 + $0xc0] ss:$12 sps:$4 sm:$0xff]  }
 0x7da   : > { %18458 = vmatpush3.bf16.msra.mxu1 %v20899_v46  ;;  %v12376_v46 = vld [vmem:[#allocation5 + $0x108] sm:$0xff] }
 0x7db   : > { %18598 = vmatpush3.bf16.msra.mxu0 %v20900_v17  ;;  %14740 = vmatprep.subr.bf16.mxu1 %v20903_v33  ;;  %v12384_v17 = vld [vmem:[#allocation4 + $0x98] sm:$0x1]  ;;  %v12369_v33 = vld [vmem:[#allocation5 + $0x40] sm:$0xff] }
 0x7dc   : > { %18611 = vmatprep.subr.bf16.mxu0 %v20904_v53  ;;  %v20945_v53 = vld [vmem:[%s28684_s8 + $0xc08] ss:$12 sps:$4 sm:$0xff]   ;;  %v27952_v50 = vpack.c.bf16 %v12371_v63, %v12369_v33  ;;  %v12383_v33 = vld [vmem:[#allocation4 + $0x90] sm:$0x1] }
 0x7dd   : > { %13907 = vmatmul.mubr.bf16.vlgmr.msra.gmra.mrb[200].mxu1 %v27477_v5  ;;  %v20910_v5 = vld [vmem:[%s28684_s8 + $0xaa0] ss:$12 sps:$4 sm:$0xff]  }
 0x7de   : > { %16258 = vmatmul.mubr.bf16.vlgmr.msra.gmra.mrb[120].mxu0 %v27837_v59  ;;  %13914 = vmatprep.mubr.bf16.mxu1 %v27553_v9  ;;  %v20914_v9 = vld [vmem:[%s28684_s8 + $0xb78] ss:$12 sps:$4 sm:$0xff]   ;;  %v20973_v63 = vld [vmem:[%s28684_s8 + $0x154] ss:$12 sps:$4 sm:$0xff]  }
 0x7df   : > { %14741 = vmatpush1.bf16.msra.mxu1 %v20901_v55  ;;  %16265 = vmatprep.mubr.bf16.mxu0 %v27846_v32  ;;  %v12374_v55 = vld [vmem:[#allocation5 + $0xc8] sm:$0xff] }
 0x7e0   : > { %18612 = vmatpush3.bf16.msra.mxu0 %v20905_v28  ;;  %14742 = vmatprep.subr.bf16.mxu1 %v20908_v8  ;;  %v27960_v28 = vpack.c.bf16 %v12376_v46, %v12374_v55  ;;  %v12378_v8 = vld [vmem:[#allocation4 + $0x48] sm:$0xfe]  ;;  %v20974_v46 = vld [vmem:[%s28684_s8 + $0xd58] ss:$12 sps:$4 sm:$0xff]  }
 0x7e1   : > { %18613 = vmatprep.subr.bf16.mxu0 %v20909_v13  ;;  %v12380_v13 = vld [vmem:[#allocation4 + $0x58] sm:$0x1] }
 0x7e2   : > { %v15066_v37 = vrot.slane %v12380_v13, 1  ;;  %v12392_v55 = vld [vmem:[#allocation4 + $0x118] sm:$0x1]  ;;  %v20979_v13 = vld [vmem:[%s28684_s8 + $0xd70] ss:$12 sps:$4 sm:$0xff]  }
 0x7e3   : > { %14743 = vmatpush1.bf16.msra.mxu1 %v20906_v61  ;;  %v20946_v61 = vld [vmem:[%s28684_s8 + $0xd8] ss:$12 sps:$4 sm:$0xff]  }
 0x7e4   : > { %18614 = vmatpush3.bf16.msra.mxu0 %v20910_v5  ;;  %14744 = vmatprep.subr.bf16.mxu1 %v20913_v6  ;;  %v15071_v5 = vrot.slane %v12382_v49, 1  ;;  %v15072_v6 = vrot.slane %v12384_v17, 1  ;;  %v12381_v49 = vld [vmem:[#allocation4 + $0x80] sm:$0xfe] }
 0x7e5   : > { %13915 = vmatmul.mubr.bf16.gmra.mrb[204].mxu1 %v27551_v21  ;;  %18615 = vmatprep.subr.bf16.mxu0 %v20914_v9  ;;  %v20920_v21 = vld [vmem:[%s28684_s8 + $0xad0] ss:$12 sps:$4 sm:$0xff]   ;;  %v20953_v9 = vld [vmem:[%s28684_s8 + $0xf4] ss:$12 sps:$4 sm:$0xff]  }
 0x7e6   : > { %16266 = vmatmul.mubr.bf16.gmra.mrb[124].mxu0 %v27869_v30  ;;  %14772 = vmatprep.mubr.bf16.mxu1 %v27220_v54  ;;  %v20924_v54 = vld [vmem:[%s28684_s8 + $0xba8] ss:$12 sps:$4 sm:$0xff]  }
 0x7e7   : > { %14745 = vmatpush1.bf16.msra.mxu1 %v20911_v25  ;;  %16306 = vmatprep.mubr.bf16.mxu0 %v27878_v57  ;;  %v15065_v25 = vrot.slane %v12378_v8, 1  ;;  %v12390_v8 = vld [vmem:[#allocation4 + $0x108] sm:$0xfe] }
 0x7e8   : > { %18616 = vmatpush3.bf16.msra.mxu0 %v20915_v41  ;;  %14746 = vmatprep.subr.bf16.mxu1 %v20918_v43  ;;  %v12375_v41 = vld [vmem:[#allocation5 + $0x100] sm:$0xff]  ;;  %v15073_v43 = vsel %vm465_vm0, %v15071_v5, %v15072_v6  ;;  %v12379_v5 = vld [vmem:[#allocation4 + $0x50] sm:$0x1]  ;;  %v15068_v6 = vrot.slane %v12381_v49, 1 }
 0x7e9   : > { %18617 = vmatprep.subr.bf16.mxu0 %v20919_v38  ;;  %v12373_v38 = vld [vmem:[#allocation5 + $0xc0] sm:$0xff] }
 0x7eb   : > { %14747 = vmatpush1.bf16.msra.mxu1 %v20916_v56  ;;  %v20955_v56 = vld [vmem:[%s28684_s8 + $0xc38] ss:$12 sps:$4 sm:$0xff]  }
 0x7ec   : > { %18618 = vmatpush3.bf16.msra.mxu0 %v20920_v21  ;;  %14748 = vmatprep.subr.bf16.mxu1 %v20923_v14  ;;  %v27983_v21 = vpack.c.bf16 %v12375_v41, %v12373_v38  ;;  %v15067_v14 = vsel %vm465_vm0, %v15065_v25, %v15066_v37  ;;  %v20976_v25 = vld [vmem:[%s28684_s8 + $0x168] ss:$12 sps:$4 sm:$0xff]   ;;  %v15083_v37 = vrot.slane %v12390_v8, 1  ;;  %v15084_v41 = vrot.slane %v12392_v55, 1  ;;  %v20987_v8 = vld [vmem:[%s28684_s8 + $0x1b0] ss:$12 sps:$4 sm:$0xff]  }
 0x7ed   : > { %18619 = vmatprep.subr.bf16.mxu0 %v20924_v54  ;;  %v20958_v54 = vld [vmem:[%s28684_s8 + $0x10c] ss:$12 sps:$4 sm:$0xff]  }
 0x7ef   : > { %14749 = vmatpush1.bf16.msra.mxu1 %v20921_v29  ;;  %v20959_v29 = vld [vmem:[%s28684_s8 + $0xd10] ss:$12 sps:$4 sm:$0xff]  }
 0x7f0   : > { %18620 = vmatpush3.bf16.msra.mxu0 %v20925_v31  ;;  %14750 = vmatprep.subr.bf16.mxu1 %v20928_v60  ;;  %v27992_v31 = vpack.c.bf16 %v15073_v43, %v15067_v14  ;;  %v20956_v60 = vld [vmem:[%s28684_s8 + $0x108] ss:$12 sps:$4 sm:$0xff]   ;;  %v20983_v43 = vld [vmem:[%s28684_s8 + $0x184] ss:$12 sps:$4 sm:$0xff]  }
 0x7f1   : > { %18621 = vmatprep.subr.bf16.mxu0 %v20929_v4  ;;  %v20960_v4 = vld [vmem:[%s28684_s8 + $0xc50] ss:$12 sps:$4 sm:$0xff]  }
 0x7f3   : > { %14751 = vmatpush1.bf16.msra.mxu1 %v20926_v42  ;;  %v20963_v42 = vld [vmem:[%s28684_s8 + $0x124] ss:$12 sps:$4 sm:$0xff]  }
 0x7f4   : > { %18622 = vmatpush3.bf16.msra.mxu0 %v20930_v23  ;;  %14752 = vmatprep.subr.bf16.mxu1 %v20933_v10  ;;  %v20964_v23 = vld [vmem:[%s28684_s8 + $0xd28] ss:$12 sps:$4 sm:$0xff]   ;;  %v20961_v10 = vld [vmem:[%s28684_s8 + $0x120] ss:$12 sps:$4 sm:$0xff]  }
 0x7f5   : > { %18623 = vmatprep.subr.bf16.mxu0 %v20934_v26  ;;  %v20965_v26 = vld [vmem:[%s28684_s8 + $0xc68] ss:$12 sps:$4 sm:$0xff]  }
 0x7f7   : > { %14753 = vmatpush1.bf16.msra.mxu1 %v20931_v48  ;;  %v20968_v48 = vld [vmem:[%s28684_s8 + $0x13c] ss:$12 sps:$4 sm:$0xff]  }
 0x7f8   : > { %18624 = vmatpush3.bf16.msra.mxu0 %v20935_v24  ;;  %14754 = vmatprep.subr.bf16.mxu1 %v20938_v52  ;;  %v20969_v24 = vld [vmem:[%s28684_s8 + $0xd40] ss:$12 sps:$4 sm:$0xff]  }
 0x7f9   : > { %18625 = vmatprep.subr.bf16.mxu0 %v20939_v19  ;;  %v20966_v19 = vld [vmem:[%s28684_s8 + $0x138] ss:$12 sps:$4 sm:$0xff]  }
 0x7fb   : > { %14755 = vmatpush1.bf16.msra.mxu1 %v20936_v12 }
 0x7fc   : > { %18626 = vmatpush3.bf16.msra.mxu0 %v20940_v22  ;;  %14756 = vmatprep.subr.bf16.mxu1 %v20943_v18  ;;  %v20970_v18 = vld [vmem:[%s28684_s8 + $0xc80] ss:$12 sps:$4 sm:$0xff]  }
 0x7fd   : > { %18639 = vmatprep.subr.bf16.mxu0 %v20944_v15 }
 0x7ff   : > { %16307 = vmatmul.mubr.bf16.vlgmr.msra.gmra.mrb[128].mxu0 %v27952_v50  ;;  %14757 = vmatpush1.bf16.msra.mxu1 %v20941_v16 }
 0x800   : > { %16314 = vmatprep.mubr.bf16.mxu0 %v27960_v28  ;;  %18640 = vmatpush3.bf16.msra.mxu0 %v20945_v53  ;;  %v20971_v53 = vld [vmem:[%s28684_s8 + $0x150] ss:$12 sps:$4 sm:$0xff]  }
 0x801   : > { %14758 = vmatprep.subr.bf16.mxu1 %v20948_v3  ;;  %18641 = vmatprep.subr.bf16.mxu0 %v20949_v44  ;;  %v20975_v3 = vld [vmem:[%s28684_s8 + $0xc98] ss:$12 sps:$4 sm:$0xff]  }
 0x802   : > { %v20978_v44 = vld [vmem:[%s28684_s8 + $0x16c] ss:$12 sps:$4 sm:$0xff]  }
 0x803   : > { %14759 = vmatpush1.bf16.msra.mxu1 %v20946_v61  ;;  %v12377_v61 = vld [vmem:[#allocation4 + $0x40] sm:$0xfe] }
 0x804   : > { %18642 = vmatpush3.bf16.msra.mxu0 %v20950_v47  ;;  %14760 = vmatprep.subr.bf16.mxu1 %v20953_v9  ;;  %v15069_v47 = vrot.slane %v12383_v33, 1  ;;  %v12386_v9 = vld [vmem:[#allocation4 + $0xc8] sm:$0xfe]  ;;  %v15062_v38 = vrot.slane %v12377_v61, 1 }
 0x805   : > { %18643 = vmatprep.subr.bf16.mxu0 %v20954_v7  ;;  %v12388_v7 = vld [vmem:[#allocation4 + $0xd8] sm:$0x1]  ;;  %v15077_v14 = vrot.slane %v12386_v9, 1  ;;  %v20993_v9 = vld [vmem:[%s28684_s8 + $0x1e0] ss:$12 sps:$4 sm:$0xff]  }
 0x807   : > { %16315 = vmatmul.mubr.bf16.gmra.mrb[132].mxu0 %v27983_v21  ;;  %14761 = vmatpush1.bf16.msra.mxu1 %v20951_v36  ;;  %v20980_v36 = vld [vmem:[%s28684_s8 + $0xcb0] ss:$12 sps:$4 sm:$0xff]  }
 0x808   : > { %18644 = vmatpush3.bf16.msra.mxu0 %v20955_v56  ;;  %16355 = vmatprep.mubr.bf16.mxu0 %v27992_v31  ;;  %v15063_v56 = vrot.slane %v12379_v5, 1  ;;  %v20992_v5 = vld [vmem:[%s28684_s8 + $0x1cc] ss:$12 sps:$4 sm:$0xff]  }
 0x809   : > { %14762 = vmatprep.subr.bf16.mxu1 %v20958_v54  ;;  %18645 = vmatprep.subr.bf16.mxu0 %v20959_v29  ;;  %v15078_v54 = vrot.slane %v12388_v7, 1  ;;  %v15070_v29 = vsel %vm465_vm0, %v15068_v6, %v15069_v47  ;;  %v20990_v6 = vld [vmem:[%s28684_s8 + $0x1c8] ss:$12 sps:$4 sm:$0xff]   ;;  %v20995_v47 = vld [vmem:[%s28684_s8 + $0x1e4] ss:$12 sps:$4 sm:$0xff]  }
 0x80b   : > { %14763 = vmatpush1.bf16.msra.mxu1 %v20956_v60  ;;  %v15085_v60 = vsel %vm465_vm0, %v15083_v37, %v15084_v41  ;;  %v20996_v37 = vld [vmem:[%s28684_s8 + $0x1f8] ss:$12 sps:$4 sm:$0xff]  }
 0x80c   : > { %18646 = vmatpush3.bf16.msra.mxu0 %v20960_v4  ;;  %14764 = vmatprep.subr.bf16.mxu1 %v20963_v42  ;;  %v12389_v4 = vld [vmem:[#allocation4 + $0x100] sm:$0xfe]  ;;  %v12391_v42 = vld [vmem:[#allocation4 + $0x110] sm:$0x1] }
 0x80d   : > { %18647 = vmatprep.subr.bf16.mxu0 %v20964_v23  ;;  %v20981_v23 = vld [vmem:[%s28684_s8 + $0x180] ss:$12 sps:$4 sm:$0xff]  }
 0x80e   : > { %v18431_v52 = vpop.f32.mrb[80].mxu0 }
 0x80f   : > { %14765 = vmatpush1.bf16.msra.mxu1 %v20961_v10  ;;  %v18432_v12 = vpop.f32.mrb[81].mxu0  ;;  %v15064_v10 = vsel %vm465_vm0, %v15062_v38, %v15063_v56  ;;  %v20999_v56 = vld [vmem:[%s28684_s8 + $0x210] ss:$12 sps:$4 sm:$0xff]  }
 0x810   : > { %18648 = vmatpush3.bf16.msra.mxu0 %v20965_v26  ;;  %14766 = vmatprep.subr.bf16.mxu1 %v20968_v48  ;;  %v28023_v22 = vadd.f32 %v18432_v12, %v18431_v52  ;;  %v18434_v15 = vpop.f32.mrb[82].mxu0  ;;  %v28063_v26 = vpack.c.bf16 %v15070_v29, %v15064_v10  ;;  %v15079_v48 = vsel %vm465_vm0, %v15077_v14, %v15078_v54  ;;  %v12385_v52 = vld [vmem:[#allocation4 + $0xc0] sm:$0xfe]  ;;  %v21004_v14 = vld [vmem:[%s28684_s8 + $0x22c] ss:$12 sps:$4 sm:$0xff]  }
 0x811   : > { %18649 = vmatprep.subr.bf16.mxu0 %v20969_v24  ;;  %v18435_v16 = vpop.f32.mrb[83].mxu0  ;;  %v20986_v24 = vld [vmem:[%s28684_s8 + $0x19c] ss:$12 sps:$4 sm:$0xff]   ;;  %v28070_v12 = vpack.c.bf16 %v15085_v60, %v15079_v48  ;;  %v21007_v10 = vld [vmem:[%s28684_s8 + $0x244] ss:$12 sps:$4 sm:$0xff]  }
 0x812   : > { %v28034_v17 = vadd.f32 %v18435_v16, %v18434_v15  ;;  %v15080_v15 = vrot.slane %v12389_v4, 1  ;;  %v21002_v4 = vld [vmem:[%s28684_s8 + $0x228] ss:$12 sps:$4 sm:$0xff]  }
 0x813   : > { %14767 = vmatpush1.bf16.msra.mxu1 %v20966_v19  ;;  %v12387_v19 = vld [vmem:[#allocation4 + $0xd0] sm:$0x1] }
 0x814   : > { %18650 = vmatpush3.bf16.msra.mxu0 %v20970_v18  ;;  %14768 = vmatprep.subr.bf16.mxu1 %v20973_v63  ;;  %v15081_v63 = vrot.slane %v12391_v42, 1  ;;  %v15075_v49 = vrot.slane %v12387_v19, 1  ;;  %v21008_v19 = vld [vmem:[%s28684_s8 + $0x258] ss:$12 sps:$4 sm:$0xff]  }
 0x815   : > { %18651 = vmatprep.subr.bf16.mxu0 %v20974_v46  ;;  %v20984_v46 = vld [vmem:[%s28684_s8 + $0x198] ss:$12 sps:$4 sm:$0xff]  }
 0x817   : > { %14769 = vmatpush1.bf16.msra.mxu1 %v20971_v53  ;;  %v15074_v53 = vrot.slane %v12385_v52, 1  ;;  %v21010_v52 = vld [vmem:[%s28684_s8 + $0x25c] ss:$12 sps:$4 sm:$0xff]  }
 0x818   : > { %18652 = vmatpush3.bf16.msra.mxu0 %v20975_v3  ;;  %14770 = vmatprep.subr.bf16.mxu1 %v20978_v44  ;;  %v20989_v3 = vld [vmem:[%s28684_s8 + $0x1b4] ss:$12 sps:$4 sm:$0xff]   ;;  %v15082_v44 = vsel %vm465_vm0, %v15080_v15, %v15081_v63  ;;  %v21011_v15 = vld [vmem:[%s28684_s8 + $0x270] ss:$12 sps:$4 sm:$0xff]   ;;  %v21016_v63 = vld [vmem:[%s28684_s8 + $0x28c] ss:$12 sps:$4 sm:$0xff]  }
 0x819   : > { %18653 = vmatprep.subr.bf16.mxu0 %v20979_v13  ;;  %v15076_v13 = vsel %vm465_vm0, %v15074_v53, %v15075_v49  ;;  %v21022_v53 = vld [vmem:[%s28684_s8 + $0x2bc] ss:$12 sps:$4 sm:$0xff]  }
 0x81a   : > { %v28090_v61 = vpack.c.bf16 %v15082_v44, %v15076_v13  ;;  %v21025_v13 = vld [vmem:[%s28684_s8 + $0x2d4] ss:$12 sps:$4 sm:$0xff]  }
 0x81b   : > { %14771 = vmatpush1.bf16.msra.mxu1 %v20976_v25 }
 0x81c   : > { %18654 = vmatpush3.bf16.msra.mxu0 %v20980_v36  ;;  %14793 = vmatprep.subr.bf16.mxu1 %v20983_v43  ;;  %v21001_v43 = vld [vmem:[%s28684_s8 + $0x214] ss:$12 sps:$4 sm:$0xff]  }
 0x81e   : > { %14773 = vmatmul.mubr.bf16.vlgmr.msra.gmra.mrb[192].mxu1 %v27487_v11  ;;  %v18437_v18 = vpop.f32.mrb[84].mxu0 }
 0x81f   : > { %16356 = vmatmul.mubr.bf16.vlgmr.msra.gmra.mrb[136].mxu0 %v28063_v26  ;;  %14782 = vmatprep.mubr.bf16.mxu1 %v27286_v45  ;;  %v18438_v16 = vpop.f32.mrb[85].mxu0 }
 0x820   : > { %14794 = vmatpush1.bf16.msra.mxu1 %v20981_v23  ;;  %16363 = vmatprep.mubr.bf16.mxu0 %v28070_v12  ;;  %v28078_v33 = vadd.f32 %v18438_v16, %v18437_v18  ;;  %v18440_v11 = vpop.f32.mrb[86].mxu0  ;;  %v21013_v18 = vld [vmem:[%s28684_s8 + $0x274] ss:$12 sps:$4 sm:$0xff]  }
 0x821   : > { %14795 = vmatprep.subr.bf16.mxu1 %v20986_v24  ;;  %v18441_v55 = vpop.f32.mrb[87].mxu0  ;;  %v21005_v24 = vld [vmem:[%s28684_s8 + $0x240] ss:$12 sps:$4 sm:$0xff]   ;;  %v21014_v16 = vld [vmem:[%s28684_s8 + $0x288] ss:$12 sps:$4 sm:$0xff]  }
 0x822   : > { %v28083_v45 = vadd.f32 %v18441_v55, %v18440_v11  ;;  %v21017_v11 = vld [vmem:[%s28684_s8 + $0x2a0] ss:$12 sps:$4 sm:$0xff]   ;;  %v21020_v55 = vld [vmem:[%s28684_s8 + $0x2b8] ss:$12 sps:$4 sm:$0xff]  }
 0x824   : > { %14796 = vmatpush1.bf16.msra.mxu1 %v20984_v46  ;;  %v21019_v46 = vld [vmem:[%s28684_s8 + $0x2a4] ss:$12 sps:$4 sm:$0xff]  }
 0x825   : > { %14797 = vmatprep.subr.bf16.mxu1 %v20989_v3 }
 0x826   : > { %14783 = vmatmul.mubr.bf16.gmra.mrb[196].mxu1 %v27284_v1  ;;  %v20998_v1 = vld [vmem:[%s28684_s8 + $0x1fc] ss:$12 sps:$4 sm:$0xff]  }
 0x827   : > { %16364 = vmatmul.mubr.bf16.gmra.mrb[140].mxu0 %v28090_v61  ;;  %14825 = vmatprep.mubr.bf16.mxu1 %v27475_v40 }
 0x828   : > { %14798 = vmatpush1.bf16.msra.mxu1 %v20987_v8 }
 0x829   : > { %14799 = vmatprep.subr.bf16.mxu1 %v20992_v5 }
 0x82c   : > { %14800 = vmatpush1.bf16.msra.mxu1 %v20990_v6 }
 0x82d   : > { %14801 = vmatprep.subr.bf16.mxu1 %v20995_v47  ;;  %v21023_v47 = vld [vmem:[%s28684_s8 + $0x2d0] ss:$12 sps:$4 sm:$0xff]  }
 0x82e   : > { %v18487_v40 = vpop.f32.mrb[88].mxu0 }
 0x82f   : > { %v18488_v7 = vpop.f32.mrb[89].mxu0 }
 0x830   : > { %14802 = vmatpush1.bf16.msra.mxu1 %v20993_v9  ;;  %v28110_v25 = vadd.f32 %v18488_v7, %v18487_v40  ;;  %v18490_v41 = vpop.f32.mrb[90].mxu0  ;;  %v21028_v9 = vld [vmem:[%s28684_s8 + $0x2ec] ss:$12 sps:$4 sm:$0xff]   ;;  %v21026_v40 = vld [vmem:[%s28684_s8 + $0x2e8] ss:$12 sps:$4 sm:$0xff]  }
 0x831   : > { %14803 = vmatprep.subr.bf16.mxu1 %v20998_v1  ;;  %v18491_v36 = vpop.f32.mrb[91].mxu0 }
 0x832   : > { %v28118_v38 = vadd.f32 %v18491_v36, %v18490_v41  ;;  %v21031_v36 = vld [vmem:[%s28684_s8 + $0x304] ss:$12 sps:$4 sm:$0xff]  }
 0x834   : > { %14804 = vmatpush1.bf16.msra.mxu1 %v20996_v37 }
 0x835   : > { %14805 = vmatprep.subr.bf16.mxu1 %v21001_v43 }
 0x836   : > { %v18493_v54 = vpop.f32.mrb[92].mxu0 }
 0x837   : > { %v18494_v29 = vpop.f32.mrb[93].mxu0 }
 0x838   : > { %14806 = vmatpush1.bf16.msra.mxu1 %v20999_v56  ;;  %v28126_v60 = vadd.f32 %v18494_v29, %v18493_v54  ;;  %v18496_v42 = vpop.f32.mrb[94].mxu0  ;;  %v21034_v54 = vld [vmem:[%s28684_s8 + $0x31c] ss:$12 sps:$4 sm:$0xff]   ;;  %v21032_v29 = vld [vmem:[%s28684_s8 + $0x318] ss:$12 sps:$4 sm:$0xff]  }
 0x839   : > { %14807 = vmatprep.subr.bf16.mxu1 %v21004_v14  ;;  %v18497_v23 = vpop.f32.mrb[95].mxu0  ;;  %v21029_v14 = vld [vmem:[%s28684_s8 + $0x300] ss:$12 sps:$4 sm:$0xff]  }
 0x83a   : > { %v28134_v48 = vadd.f32 %v18497_v23, %v18496_v42  ;;  %v21035_v42 = vld [vmem:[%s28684_s8 + $0x330] ss:$12 sps:$4 sm:$0xff]  }
 0x83b   : > { %v21043_v23 = vld [vmem:[%s28684_s8 + $0x364] ss:$12 sps:$4 sm:$0xff]  }
 0x83c   : > { %14808 = vmatpush1.bf16.msra.mxu1 %v21002_v4  ;;  %v21037_v4 = vld [vmem:[%s28684_s8 + $0x334] ss:$12 sps:$4 sm:$0xff]  }
 0x83d   : > { %14809 = vmatprep.subr.bf16.mxu1 %v21007_v10  ;;  %v21041_v10 = vld [vmem:[%s28684_s8 + $0x360] ss:$12 sps:$4 sm:$0xff]  }
 0x840   : > { %14810 = vmatpush1.bf16.msra.mxu1 %v21005_v24  ;;  %v21044_v24 = vld [vmem:[%s28684_s8 + $0x378] ss:$12 sps:$4 sm:$0xff]  }
 0x841   : > { %14811 = vmatprep.subr.bf16.mxu1 %v21010_v52 }
 0x844   : > { %14812 = vmatpush1.bf16.msra.mxu1 %v21008_v19  ;;  %v21049_v19 = vld [vmem:[%s28684_s8 + $0x394] ss:$12 sps:$4 sm:$0xff]  }
 0x845   : > { %14813 = vmatprep.subr.bf16.mxu1 %v21013_v18 }
 0x848   : > { %14814 = vmatpush1.bf16.msra.mxu1 %v21011_v15 }
 0x849   : > { %14815 = vmatprep.subr.bf16.mxu1 %v21016_v63 }
 0x84c   : > { %14816 = vmatpush1.bf16.msra.mxu1 %v21014_v16 }
 0x84d   : > { %14817 = vmatprep.subr.bf16.mxu1 %v21019_v46  ;;  %v21047_v46 = vld [vmem:[%s28684_s8 + $0x390] ss:$12 sps:$4 sm:$0xff]  }
 0x84f   : > { %v18515_v49 = vpop.f32.mrb[96].mxu0 }
 0x850   : > { %14818 = vmatpush1.bf16.msra.mxu1 %v21017_v11  ;;  %v18516_v3 = vpop.f32.mrb[97].mxu0  ;;  %v21052_v11 = vld [vmem:[%s28684_s8 + $0x3ac] ss:$12 sps:$4 sm:$0xff]  }
 0x851   : > { %14819 = vmatprep.subr.bf16.mxu1 %v21022_v53  ;;  %v28169_v44 = vadd.f32 %v18516_v3, %v18515_v49  ;;  %v18518_v8 = vpop.f32.mrb[98].mxu0  ;;  %v21050_v49 = vld [vmem:[%s28684_s8 + $0x3a8] ss:$12 sps:$4 sm:$0xff]   ;;  %v21055_v3 = vld [vmem:[%s28684_s8 + $0x3c4] ss:$12 sps:$4 sm:$0xff]  }
 0x852   : > { %v18519_v5 = vpop.f32.mrb[99].mxu0 }
 0x853   : > { %v28174_v6 = vadd.f32 %v18519_v5, %v18518_v8 }
 0x854   : > { %14820 = vmatpush1.bf16.msra.mxu1 %v21020_v55 }
 0x855   : > { %14821 = vmatprep.subr.bf16.mxu1 %v21025_v13 }
 0x857   : > { %v18521_v1 = vpop.f32.mrb[100].mxu0 }
 0x858   : > { %14822 = vmatpush1.bf16.msra.mxu1 %v21023_v47  ;;  %v18522_v7 = vpop.f32.mrb[101].mxu0 }
 0x859   : > { %14823 = vmatprep.subr.bf16.mxu1 %v21028_v9  ;;  %v28185_v37 = vadd.f32 %v18522_v7, %v18521_v1  ;;  %v18524_v41 = vpop.f32.mrb[102].mxu0  ;;  %v21053_v9 = vld [vmem:[%s28684_s8 + $0x3c0] ss:$12 sps:$4 sm:$0xff]   ;;  %v21058_v1 = vld [vmem:[%s28684_s8 + $0x3dc] ss:$12 sps:$4 sm:$0xff]  }
 0x85a   : > { %v18525_v43 = vpop.f32.mrb[103].mxu0  ;;  %v21061_v7 = vld [vmem:[%s28684_s8 + $0x3f4] ss:$12 sps:$4 sm:$0xff]  }
 0x85b   : > { %v28190_v56 = vadd.f32 %v18525_v43, %v18524_v41  ;;  %v21059_v41 = vld [vmem:[%s28684_s8 + $0x3f0] ss:$12 sps:$4 sm:$0xff]   ;;  %v21062_v43 = vld [vmem:[%s28684_s8 + $0x408] ss:$12 sps:$4 sm:$0xff]  }
 0x85c   : > { %14824 = vmatpush1.bf16.msra.mxu1 %v21026_v40  ;;  %v21056_v40 = vld [vmem:[%s28684_s8 + $0x3d8] ss:$12 sps:$4 sm:$0xff]  }
 0x85d   : > { %14846 = vmatprep.subr.bf16.mxu1 %v21031_v36  ;;  %v21064_v36 = vld [vmem:[%s28684_s8 + $0x40c] ss:$12 sps:$4 sm:$0xff]  }
 0x85f   : > { %14826 = vmatmul.mubr.bf16.vlgmr.msra.gmra.mrb[192].mxu1 %v27473_v58  ;;  %v21040_v58 = vld [vmem:[%s28684_s8 + $0x34c] ss:$12 sps:$4 sm:$0xff]  }
 0x860   : > { %14835 = vmatprep.mubr.bf16.mxu1 %v27549_v35  ;;  %14847 = vmatpush1.bf16.msra.mxu1 %v21029_v14  ;;  %v21038_v35 = vld [vmem:[%s28684_s8 + $0x348] ss:$12 sps:$4 sm:$0xff]   ;;  %v21067_v14 = vld [vmem:[%s28684_s8 + $0x424] ss:$12 sps:$4 sm:$0xff]  }
 0x861   : > { %14848 = vmatprep.subr.bf16.mxu1 %v21034_v54  ;;  %v21065_v54 = vld [vmem:[%s28684_s8 + $0x420] ss:$12 sps:$4 sm:$0xff]  }
 0x864   : > { %14849 = vmatpush1.bf16.msra.mxu1 %v21032_v29  ;;  %v21070_v29 = vld [vmem:[%s28684_s8 + $0x43c] ss:$12 sps:$4 sm:$0xff]  }
 0x865   : > { %14850 = vmatprep.subr.bf16.mxu1 %v21037_v4 }
 0x867   : > { %14836 = vmatmul.mubr.bf16.gmra.mrb[196].mxu1 %v27544_v0  ;;  %v21046_v0 = vld [vmem:[%s28684_s8 + $0x37c] ss:$12 sps:$4 sm:$0xff]  }
 0x868   : > { %14851 = vmatpush1.bf16.msra.mxu1 %v21035_v42  ;;  %14878 = vmatprep.mubr.bf16.mxu1 %v27652_v39  ;;  %v21068_v42 = vld [vmem:[%s28684_s8 + $0x438] ss:$12 sps:$4 sm:$0xff]  }
 0x869   : > { %14852 = vmatprep.subr.bf16.mxu1 %v21040_v58 }
 0x86c   : > { %14853 = vmatpush1.bf16.msra.mxu1 %v21038_v35  ;;  %v21073_v35 = vld [vmem:[%s28684_s8 + $0x454] ss:$12 sps:$4 sm:$0xff]  }
 0x86d   : > { %14854 = vmatprep.subr.bf16.mxu1 %v21043_v23 }
 0x870   : > { %14855 = vmatpush1.bf16.msra.mxu1 %v21041_v10  ;;  %v18543_v39 = vpop.f32.mrb[104].mxu0 }
 0x871   : > { %14856 = vmatprep.subr.bf16.mxu1 %v21046_v0  ;;  %v18544_v52 = vpop.f32.mrb[105].mxu0 }
 0x872   : > { %v28232_v18 = vadd.f32 %v18544_v52, %v18543_v39  ;;  %v18546_v15 = vpop.f32.mrb[106].mxu0  ;;  %v21076_v52 = vld [vmem:[%s28684_s8 + $0x46c] ss:$12 sps:$4 sm:$0xff]  }
 0x873   : > { %v18547_v63 = vpop.f32.mrb[107].mxu0 }
 0x874   : > { %14857 = vmatpush1.bf16.msra.mxu1 %v21044_v24  ;;  %v28234_v16 = vadd.f32 %v18547_v63, %v18546_v15  ;;  %v21071_v24 = vld [vmem:[%s28684_s8 + $0x450] ss:$12 sps:$4 sm:$0xff]   ;;  %v21074_v15 = vld [vmem:[%s28684_s8 + $0x468] ss:$12 sps:$4 sm:$0xff]  }
 0x875   : > { %14858 = vmatprep.subr.bf16.mxu1 %v21049_v19 }
 0x878   : > { %14859 = vmatpush1.bf16.msra.mxu1 %v21047_v46  ;;  %v18549_v53 = vpop.f32.mrb[108].mxu0  ;;  %v21079_v46 = vld [vmem:[%s28684_s8 + $0x904] ss:$12 sps:$4 sm:$0xff]  }
 0x879   : > { %14860 = vmatprep.subr.bf16.mxu1 %v21052_v11  ;;  %v18550_v55 = vpop.f32.mrb[109].mxu0 }
 0x87a   : > { %v28248_v8 = vadd.f32 %v18550_v55, %v18549_v53  ;;  %v18552_v13 = vpop.f32.mrb[110].mxu0 }
 0x87b   : > { %v18553_v5 = vpop.f32.mrb[111].mxu0 }
 0x87c   : > { %14861 = vmatpush1.bf16.msra.mxu1 %v21050_v49  ;;  %v28250_v47 = vadd.f32 %v18553_v5, %v18552_v13  ;;  %v21082_v13 = vld [vmem:[%s28684_s8 + $0x91c] ss:$12 sps:$4 sm:$0xff]   ;;  %v21080_v5 = vld [vmem:[%s28684_s8 + $0x918] ss:$12 sps:$4 sm:$0xff]  }
 0x87d   : > { %14862 = vmatprep.subr.bf16.mxu1 %v21055_v3  ;;  %v21077_v3 = vld [vmem:[%s28684_s8 + $0x900] ss:$12 sps:$4 sm:$0xff]  }
 0x880   : > { %14863 = vmatpush1.bf16.msra.mxu1 %v21053_v9  ;;  %v21085_v9 = vld [vmem:[%s28684_s8 + $0x934] ss:$12 sps:$4 sm:$0xff]  }
 0x881   : > { %14864 = vmatprep.subr.bf16.mxu1 %v21058_v1  ;;  %v21083_v1 = vld [vmem:[%s28684_s8 + $0x930] ss:$12 sps:$4 sm:$0xff]  }
 0x884   : > { %14865 = vmatpush1.bf16.msra.mxu1 %v21056_v40  ;;  %v21091_v40 = vld [vmem:[%s28684_s8 + $0x964] ss:$12 sps:$4 sm:$0xff]  }
 0x885   : > { %14866 = vmatprep.subr.bf16.mxu1 %v21061_v7  ;;  %v21089_v7 = vld [vmem:[%s28684_s8 + $0x960] ss:$12 sps:$4 sm:$0xff]  }
 0x888   : > { %14867 = vmatpush1.bf16.msra.mxu1 %v21059_v41  ;;  %v21092_v41 = vld [vmem:[%s28684_s8 + $0x978] ss:$12 sps:$4 sm:$0xff]  }
 0x889   : > { %14868 = vmatprep.subr.bf16.mxu1 %v21064_v36 }
 0x88c   : > { %14869 = vmatpush1.bf16.msra.mxu1 %v21062_v43 }
 0x88d   : > { %14870 = vmatprep.subr.bf16.mxu1 %v21067_v14  ;;  %v21097_v14 = vld [vmem:[%s28684_s8 + $0x994] ss:$12 sps:$4 sm:$0xff]  }
 0x890   : > { %14871 = vmatpush1.bf16.msra.mxu1 %v21065_v54  ;;  %v18571_v4 = vpop.f32.mrb[112].mxu0 }
 0x891   : > { %14872 = vmatprep.subr.bf16.mxu1 %v21070_v29  ;;  %v18572_v58 = vpop.f32.mrb[113].mxu0 }
 0x892   : > { %v28288_v23 = vadd.f32 %v18572_v58, %v18571_v4  ;;  %v18574_v10 = vpop.f32.mrb[114].mxu0 }
 0x893   : > { %v18575_v0 = vpop.f32.mrb[115].mxu0 }
 0x894   : > { %14873 = vmatpush1.bf16.msra.mxu1 %v21068_v42  ;;  %v28290_v39 = vadd.f32 %v18575_v0, %v18574_v10 }
 0x895   : > { %14874 = vmatprep.subr.bf16.mxu1 %v21073_v35 }
 0x898   : > { %14875 = vmatpush1.bf16.msra.mxu1 %v21071_v24  ;;  %v18577_v19 = vpop.f32.mrb[116].mxu0 }
 0x899   : > { %14876 = vmatprep.subr.bf16.mxu1 %v21076_v52  ;;  %v18578_v63 = vpop.f32.mrb[117].mxu0  ;;  %v21095_v52 = vld [vmem:[%s28684_s8 + $0x990] ss:$12 sps:$4 sm:$0xff]  }
 0x89a   : > { %v28304_v11 = vadd.f32 %v18578_v63, %v18577_v19  ;;  %v18580_v53 = vpop.f32.mrb[118].mxu0 }
 0x89b   : > { %v18581_v49 = vpop.f32.mrb[119].mxu0 }
 0x89c   : > { %14877 = vmatpush1.bf16.msra.mxu1 %v21074_v15  ;;  %v28306_v55 = vadd.f32 %v18581_v49, %v18580_v53  ;;  %v21100_v15 = vld [vmem:[%s28684_s8 + $0x9ac] ss:$12 sps:$4 sm:$0xff]  }
 0x89d   : > { %16066 = vmatprep.subr.bf16.mxu1 %v21079_v46 }
 0x89f   : > { %14879 = vmatmul.mubr.bf16.vlgmr.msra.gmra.mrb[192].mxu1 %v27722_v20  ;;  %v21088_v20 = vld [vmem:[%s28684_s8 + $0x94c] ss:$12 sps:$4 sm:$0xff]  }
 0x8a0   : > { %14888 = vmatprep.mubr.bf16.mxu1 %v27732_v27  ;;  %16067 = vmatpush1.bf16.msra.mxu1 %v21077_v3  ;;  %v21086_v27 = vld [vmem:[%s28684_s8 + $0x948] ss:$12 sps:$4 sm:$0xff]  }
 0x8a1   : > { %16068 = vmatprep.subr.bf16.mxu1 %v21082_v13  ;;  %v21098_v3 = vld [vmem:[%s28684_s8 + $0x9a8] ss:$12 sps:$4 sm:$0xff]  }
 0x8a4   : > { %16069 = vmatpush1.bf16.msra.mxu1 %v21080_v5 }
 0x8a5   : > { %16070 = vmatprep.subr.bf16.mxu1 %v21085_v9  ;;  %v21103_v9 = vld [vmem:[%s28684_s8 + $0x9c4] ss:$12 sps:$4 sm:$0xff]  }
 0x8a7   : > { %14889 = vmatmul.mubr.bf16.gmra.mrb[196].mxu1 %v27757_v2  ;;  %v21094_v2 = vld [vmem:[%s28684_s8 + $0x97c] ss:$12 sps:$4 sm:$0xff]  }
 0x8a8   : > { %16071 = vmatpush1.bf16.msra.mxu1 %v21083_v1  ;;  %16098 = vmatprep.mubr.bf16.mxu1 %v27766_v51 }
 0x8a9   : > { %16072 = vmatprep.subr.bf16.mxu1 %v21088_v20 }
 0x8ac   : > { %16073 = vmatpush1.bf16.msra.mxu1 %v21086_v27 }
 0x8ad   : > { %16074 = vmatprep.subr.bf16.mxu1 %v21091_v40 }
 0x8b0   : > { %16075 = vmatpush1.bf16.msra.mxu1 %v21089_v7  ;;  %v18459_v51 = vpop.f32.mrb[200].mxu1 }
 0x8b1   : > { %v18599_v36 = vpop.f32.mrb[120].mxu0  ;;  %v18460_v43 = vpop.f32.mrb[201].mxu1  ;;  %16076 = vmatprep.subr.bf16.mxu1 %v21094_v2 }
 0x8b2   : > { %v18461_v54 = vadd.f32 %v18460_v43, %v18459_v51  ;;  %v18600_v29 = vpop.f32.mrb[121].mxu0  ;;  %v18462_v4 = vpop.f32.mrb[202].mxu1 }
 0x8b3   : > { %v28348_v42 = vadd.f32 %v18600_v29, %v18599_v36  ;;  %v18602_v58 = vpop.f32.mrb[122].mxu0  ;;  %v18463_v35 = vpop.f32.mrb[203].mxu1 }
 0x8b4   : > { %v13909_v10 = vadd.f32 %v18461_v54, %v28023_v22  ;;  %16077 = vmatpush1.bf16.msra.mxu1 %v21092_v41  ;;  %v18464_v0 = vadd.f32 %v18463_v35, %v18462_v4  ;;  %v18603_v24 = vpop.f32.mrb[123].mxu0  ;;  %v21101_v41 = vld [vmem:[%s28684_s8 + $0x9c0] ss:$12 sps:$4 sm:$0xff]  }
 0x8b5   : > { %v28354_v19 = vadd.f32 %v18603_v24, %v18602_v58  ;;  %16078 = vmatprep.subr.bf16.mxu1 %v21097_v14  ;;  %v21109_v4 = vld [vmem:[%s28684_s8 + $0x9f4] ss:$12 sps:$4 sm:$0xff]   ;;  %v21112_v58 = vld [vmem:[%s28684_s8 + $0xa0c] ss:$12 sps:$4 sm:$0xff]  }
 0x8b6   : > { %v13958_v63 = vadd.f32 %v28110_v25, %v13909_v10  ;;  %v13912_v46 = vadd.f32 %v18464_v0, %v28034_v17  ;;  %v21121_v10 = vld [vmem:[%s28684_s8 + $0xa54] ss:$12 sps:$4 sm:$0xff]  }
 0x8b8   : > { %v14934_v22 = vadd.f32 %v28169_v44, %v13958_v63  ;;  %v13961_v53 = vadd.f32 %v28118_v38, %v13912_v46  ;;  %16079 = vmatpush1.bf16.msra.mxu1 %v21095_v52  ;;  %v18465_v49 = vpop.f32.mrb[204].mxu1  ;;  %v21119_v63 = vld [vmem:[%s28684_s8 + $0xa50] ss:$12 sps:$4 sm:$0xff]  }
 0x8b9   : > { %v18605_v13 = vpop.f32.mrb[124].mxu0  ;;  %v18466_v5 = vpop.f32.mrb[205].mxu1  ;;  %16080 = vmatprep.subr.bf16.mxu1 %v21100_v15 }
 0x8ba   : > { %v14937_v25 = vadd.f32 %v28174_v6, %v13961_v53  ;;  %v18467_v17 = vadd.f32 %v18466_v5, %v18465_v49  ;;  %v18606_v1 = vpop.f32.mrb[125].mxu0  ;;  %v18468_v44 = vpop.f32.mrb[206].mxu1  ;;  %v14983_v38 = vadd.f32 %v28232_v18, %v14934_v22  ;;  %v21106_v18 = vld [vmem:[%s28684_s8 + $0x9dc] ss:$12 sps:$4 sm:$0xff]   ;;  %v21124_v22 = vld [vmem:[%s28684_s8 + $0xa6c] ss:$12 sps:$4 sm:$0xff]  }
 0x8bb   : > { %v28371_v20 = vadd.f32 %v18606_v1, %v18605_v13  ;;  %v18608_v27 = vpop.f32.mrb[126].mxu0  ;;  %v18469_v40 = vpop.f32.mrb[207].mxu1  ;;  %v21122_v13 = vld [vmem:[%s28684_s8 + $0xa68] ss:$12 sps:$4 sm:$0xff]   ;;  %v21127_v5 = vld [vmem:[%s28684_s8 + $0xa84] ss:$12 sps:$4 sm:$0xff]  }
 0x8bc   : > { %v13917_v7 = vadd.f32 %v18467_v17, %v28078_v33  ;;  %16081 = vmatpush1.bf16.msra.mxu1 %v21098_v3  ;;  %v18470_v2 = vadd.f32 %v18469_v40, %v18468_v44  ;;  %v18609_v51 = vpop.f32.mrb[127].mxu0  ;;  %v28378_v6 = vadd.f32 %v28288_v23, %v14983_v38  ;;  %v14986_v36 = vadd.f32 %v28234_v16, %v14937_v25  ;;  %v21104_v16 = vld [vmem:[%s28684_s8 + $0x9d8] ss:$12 sps:$4 sm:$0xff]   ;;  %v21130_v44 = vld [vmem:[%s28684_s8 + $0xa9c] ss:$12 sps:$4 sm:$0xff]  }
 0x8bd   : > { %v18610_v43 = vadd.f32 %v18609_v51, %v18608_v27  ;;  %16082 = vmatprep.subr.bf16.mxu1 %v21103_v9  ;;  %v21139_v51 = vld [vmem:[%s28684_s8 + $0xae4] ss:$12 sps:$4 sm:$0xff]  }
 0x8be   : > { %v13966_v33 = vadd.f32 %v28126_v60, %v13917_v7  ;;  %v13920_v14 = vadd.f32 %v18470_v2, %v28083_v45  ;;  %v28387_v54 = vadd.f32 %v28290_v39, %v14986_v36  ;;  %v21128_v7 = vld [vmem:[%s28684_s8 + $0xa98] ss:$12 sps:$4 sm:$0xff]   ;;  %v21133_v2 = vld [vmem:[%s28684_s8 + $0xab4] ss:$12 sps:$4 sm:$0xff]  }
 0x8bf   : > { %v21145_v36 = vld [vmem:[%s28684_s8 + $0xb14] ss:$12 sps:$4 sm:$0xff]  }
 0x8c0   : > { %v14942_v29 = vadd.f32 %v28185_v37, %v13966_v33  ;;  %v13969_v23 = vadd.f32 %v28134_v48, %v13920_v14  ;;  %16083 = vmatpush1.bf16.msra.mxu1 %v21101_v41  ;;  %v21107_v37 = vld [vmem:[%s28684_s8 + $0x9f0] ss:$12 sps:$4 sm:$0xff]   ;;  %v21137_v41 = vld [vmem:[%s28684_s8 + $0xae0] ss:$12 sps:$4 sm:$0xff]  }
 0x8c1   : > { %16084 = vmatprep.subr.bf16.mxu1 %v21106_v18  ;;  %v28488_v18 = vld [vmem:[%s28685_s9] sm:$0x7] }
 0x8c2   : > { %v14945_v60 = vadd.f32 %v28190_v56, %v13969_v23  ;;  %v14991_v45 = vadd.f32 %v28248_v8, %v14942_v29  ;;  %v21110_v56 = vld [vmem:[%s28684_s8 + $0xa08] ss:$12 sps:$4 sm:$0xff]   ;;  %v21115_v8 = vld [vmem:[%s28684_s8 + $0xa24] ss:$12 sps:$4 sm:$0xff]  }
 0x8c3   : > { %v21143_v23 = vld [vmem:[%s28684_s8 + $0xb10] ss:$12 sps:$4 sm:$0xff]  }
 0x8c4   : > { %16085 = vmatpush1.bf16.msra.mxu1 %v21104_v16  ;;  %v28403_v48 = vadd.f32 %v28304_v11, %v14991_v45  ;;  %v14994_v39 = vadd.f32 %v28250_v47, %v14945_v60  ;;  %v21113_v47 = vld [vmem:[%s28684_s8 + $0xa20] ss:$12 sps:$4 sm:$0xff]   ;;  %v21118_v11 = vld [vmem:[%s28684_s8 + $0xa3c] ss:$12 sps:$4 sm:$0xff]  }
 0x8c5   : > { %16086 = vmatprep.subr.bf16.mxu1 %v21109_v4  ;;  %v21148_v4 = vld [vmem:[%s28684_s8 + $0xb2c] ss:$12 sps:$4 sm:$0xff]   ;;  %v28759_v45 = vld [vmem:[#allocation6_spill] sm:$0xff] }
 0x8c6   : > { %v28410_v35 = vadd.f32 %v28306_v55, %v14994_v39  ;;  %v21116_v55 = vld [vmem:[%s28684_s8 + $0xa38] ss:$12 sps:$4 sm:$0xff]  }
 0x8c8   : > { %16087 = vmatpush1.bf16.msra.mxu1 %v21107_v37  ;;  %v28760_v37 = vsub.s32 2, %v28759_v45  ;;  %v21199_v45 = vld [vmem:[%s28684_s8 + $0xcc4] ss:$12 sps:$4 sm:$0xff]  }
 0x8c9   : > { %16088 = vmatprep.subr.bf16.mxu1 %v21112_v58 }
 0x8ca   : > { %v16396_v39 = vrot.slane %v28488_v18, %v28760_v37  ;;  %v21197_v37 = vld [vmem:[%s28684_s8 + $0xcc0] ss:$12 sps:$4 sm:$0xff]  }
 0x8cc   : > { %16089 = vmatpush1.bf16.msra.mxu1 %v21110_v56 }
 0x8cd   : > { %16090 = vmatprep.subr.bf16.mxu1 %v21115_v8 }
 0x8d0   : > { %16091 = vmatpush1.bf16.msra.mxu1 %v21113_v47  ;;  %v21146_v47 = vld [vmem:[%s28684_s8 + $0xb28] ss:$12 sps:$4 sm:$0xff]  }
 0x8d1   : > { %16092 = vmatprep.subr.bf16.mxu1 %v21118_v11  ;;  %v21151_v11 = vld [vmem:[%s28684_s8 + $0xb44] ss:$12 sps:$4 sm:$0xff]  }
 0x8d2   : > { %v18627_v0 = vpop.f32.mrb[128].mxu0 }
 0x8d3   : > { %v18628_v24 = vpop.f32.mrb[129].mxu0 }
 0x8d4   : > { %v18629_v52 = vadd.f32 %v18628_v24, %v18627_v0  ;;  %16093 = vmatpush1.bf16.msra.mxu1 %v21116_v55  ;;  %v18630_v15 = vpop.f32.mrb[130].mxu0 }
 0x8d5   : > { %v18631_v46 = vpop.f32.mrb[131].mxu0  ;;  %16094 = vmatprep.subr.bf16.mxu1 %v21121_v10 }
 0x8d6   : > { %v16309_v53 = vadd.f32 %v18629_v52, %v28348_v42  ;;  %v18632_v49 = vadd.f32 %v18631_v46, %v18630_v15  ;;  %v21125_v42 = vld [vmem:[%s28684_s8 + $0xa80] ss:$12 sps:$4 sm:$0xff]  }
 0x8d7   : > { %v21149_v46 = vld [vmem:[%s28684_s8 + $0xb40] ss:$12 sps:$4 sm:$0xff]  }
 0x8d8   : > { %v16312_v3 = vadd.f32 %v18632_v49, %v28354_v19  ;;  %16095 = vmatpush1.bf16.msra.mxu1 %v21119_v63 }
 0x8d9   : > { %16096 = vmatprep.subr.bf16.mxu1 %v21124_v22 }
 0x8da   : > { %v18633_v9 = vpop.f32.mrb[132].mxu0 }
 0x8db   : > { %v18634_v25 = vpop.f32.mrb[133].mxu0 }
 0x8dc   : > { %v18635_v17 = vadd.f32 %v18634_v25, %v18633_v9  ;;  %16097 = vmatpush1.bf16.msra.mxu1 %v21122_v13  ;;  %v18636_v1 = vpop.f32.mrb[134].mxu0  ;;  %v21152_v9 = vld [vmem:[%s28684_s8 + $0xb58] ss:$12 sps:$4 sm:$0xff]   ;;  %v21157_v25 = vld [vmem:[%s28684_s8 + $0xb74] ss:$12 sps:$4 sm:$0xff]  }
 0x8dd   : > { %v18637_v19 = vpop.f32.mrb[135].mxu0  ;;  %16119 = vmatprep.subr.bf16.mxu1 %v21127_v5 }
 0x8de   : > { %v16317_v38 = vadd.f32 %v18635_v17, %v28371_v20  ;;  %v18638_v27 = vadd.f32 %v18637_v19, %v18636_v1  ;;  %v21131_v20 = vld [vmem:[%s28684_s8 + $0xab0] ss:$12 sps:$4 sm:$0xff]  }
 0x8df   : > { %16099 = vmatmul.mubr.bf16.vlgmr.msra.gmra.mrb[192].mxu1 %v27837_v59  ;;  %v21136_v59 = vld [vmem:[%s28684_s8 + $0xacc] ss:$12 sps:$4 sm:$0xff]  }
 0x8e0   : > { %v16320_v40 = vadd.f32 %v18638_v27, %v18610_v43  ;;  %16108 = vmatprep.mubr.bf16.mxu1 %v27846_v32  ;;  %16120 = vmatpush1.bf16.msra.mxu1 %v21125_v42  ;;  %v21134_v32 = vld [vmem:[%s28684_s8 + $0xac8] ss:$12 sps:$4 sm:$0xff]   ;;  %v21163_v27 = vld [vmem:[%s28684_s8 + $0xba4] ss:$12 sps:$4 sm:$0xff]  }
 0x8e1   : > { %16121 = vmatprep.subr.bf16.mxu1 %v21130_v44  ;;  %v21160_v44 = vld [vmem:[%s28684_s8 + $0xb8c] ss:$12 sps:$4 sm:$0xff]  }
 0x8e4   : > { %16122 = vmatpush1.bf16.msra.mxu1 %v21128_v7  ;;  %v21166_v7 = vld [vmem:[%s28684_s8 + $0xbbc] ss:$12 sps:$4 sm:$0xff]  }
 0x8e5   : > { %16123 = vmatprep.subr.bf16.mxu1 %v21133_v2  ;;  %v21164_v2 = vld [vmem:[%s28684_s8 + $0xbb8] ss:$12 sps:$4 sm:$0xff]  }
 0x8e7   : > { %16109 = vmatmul.mubr.bf16.gmra.mrb[196].mxu1 %v27869_v30  ;;  %v21142_v30 = vld [vmem:[%s28684_s8 + $0xafc] ss:$12 sps:$4 sm:$0xff]  }
 0x8e8   : > { %16124 = vmatpush1.bf16.msra.mxu1 %v21131_v20  ;;  %16151 = vmatprep.mubr.bf16.mxu1 %v27878_v57  ;;  %v21140_v57 = vld [vmem:[%s28684_s8 + $0xaf8] ss:$12 sps:$4 sm:$0xff]   ;;  %v21169_v20 = vld [vmem:[%s28684_s8 + $0xbd4] ss:$12 sps:$4 sm:$0xff]  }
 0x8e9   : > { %16125 = vmatprep.subr.bf16.mxu1 %v21136_v59  ;;  %v21167_v59 = vld [vmem:[%s28684_s8 + $0xbd0] ss:$12 sps:$4 sm:$0xff]  }
 0x8ec   : > { %16126 = vmatpush1.bf16.msra.mxu1 %v21134_v32  ;;  %v21172_v32 = vld [vmem:[%s28684_s8 + $0xbec] ss:$12 sps:$4 sm:$0xff]  }
 0x8ed   : > { %16127 = vmatprep.subr.bf16.mxu1 %v21139_v51  ;;  %v21170_v51 = vld [vmem:[%s28684_s8 + $0xbe8] ss:$12 sps:$4 sm:$0xff]  }
 0x8f0   : > { %16128 = vmatpush1.bf16.msra.mxu1 %v21137_v41  ;;  %v21175_v41 = vld [vmem:[%s28684_s8 + $0xc04] ss:$12 sps:$4 sm:$0xff]  }
 0x8f1   : > { %16129 = vmatprep.subr.bf16.mxu1 %v21142_v30  ;;  %v21173_v30 = vld [vmem:[%s28684_s8 + $0xc00] ss:$12 sps:$4 sm:$0xff]  }
 0x8f2   : > { %v18655_v43 = vpop.f32.mrb[136].mxu0 }
 0x8f3   : > { %v18656_v33 = vpop.f32.mrb[137].mxu0 }
 0x8f4   : > { %v18657_v14 = vadd.f32 %v18656_v33, %v18655_v43  ;;  %16130 = vmatpush1.bf16.msra.mxu1 %v21140_v57  ;;  %v18658_v29 = vpop.f32.mrb[138].mxu0  ;;  %v21178_v57 = vld [vmem:[%s28684_s8 + $0xc1c] ss:$12 sps:$4 sm:$0xff]   ;;  %v21181_v43 = vld [vmem:[%s28684_s8 + $0xc34] ss:$12 sps:$4 sm:$0xff]  }
 0x8f5   : > { %v18659_v16 = vpop.f32.mrb[139].mxu0  ;;  %16131 = vmatprep.subr.bf16.mxu1 %v21145_v36  ;;  %v21176_v36 = vld [vmem:[%s28684_s8 + $0xc18] ss:$12 sps:$4 sm:$0xff]   ;;  %v21179_v33 = vld [vmem:[%s28684_s8 + $0xc30] ss:$12 sps:$4 sm:$0xff]  }
 0x8f6   : > { %v16358_v60 = vadd.f32 %v18657_v14, %v16309_v53  ;;  %v18660_v58 = vadd.f32 %v18659_v16, %v18658_v29  ;;  %v21154_v53 = vld [vmem:[%s28684_s8 + $0xb5c] ss:$12 sps:$4 sm:$0xff]   ;;  %v21187_v14 = vld [vmem:[%s28684_s8 + $0xc64] ss:$12 sps:$4 sm:$0xff]   ;;  %v21185_v29 = vld [vmem:[%s28684_s8 + $0xc60] ss:$12 sps:$4 sm:$0xff]  }
 0x8f7   : > { %v21191_v16 = vld [vmem:[%s28684_s8 + $0xc90] ss:$12 sps:$4 sm:$0xff]  }
 0x8f8   : > { %v16374_v56 = vadd.f32 %v16358_v60, %v28378_v6  ;;  %v16361_v8 = vadd.f32 %v18660_v58, %v16312_v3  ;;  %16132 = vmatpush1.bf16.msra.mxu1 %v21143_v23  ;;  %v21193_v23 = vld [vmem:[%s28684_s8 + $0xc94] ss:$12 sps:$4 sm:$0xff]   ;;  %v21200_v58 = vld [vmem:[%s28684_s8 + $0xcd8] ss:$12 sps:$4 sm:$0xff]  }
 0x8f9   : > { %16133 = vmatprep.subr.bf16.mxu1 %v21148_v4  ;;  %v21196_v4 = vld [vmem:[%s28684_s8 + $0xcac] ss:$12 sps:$4 sm:$0xff]   ;;  %v21194_v60 = vld [vmem:[%s28684_s8 + $0xca8] ss:$12 sps:$4 sm:$0xff]  }
 0x8fa   : > { %v16402_v55 = vadd.f32 %v16396_v39, %v16374_v56  ;;  %v16377_v10 = vadd.f32 %v16361_v8, %v28387_v54  ;;  %v18661_v0 = vpop.f32.mrb[140].mxu0  ;;  %v21205_v56 = vld [vmem:[%s28684_s8 + $0xcf4] ss:$12 sps:$4 sm:$0xff]   ;;  %v21203_v8 = vld [vmem:[%s28684_s8 + $0xcf0] ss:$12 sps:$4 sm:$0xff]  }
 0x8fb   : > { %v18662_v24 = vpop.f32.mrb[141].mxu0 }
 0x8fc   : > { %v16414_v52 = vmax.f32 %v16402_v55, 0.0  ;;  %v16405_v6 = vadd.f32 %v16396_v39, %v16377_v10  ;;  %v18663_v15 = vadd.f32 %v18662_v24, %v18661_v0  ;;  %16134 = vmatpush1.bf16.msra.mxu1 %v21146_v47  ;;  %v18664_v63 = vpop.f32.mrb[142].mxu0  ;;  %v21208_v47 = vld [vmem:[%s28684_s8 + $0xd0c] ss:$12 sps:$4 sm:$0xff]   ;;  %v21211_v55 = vld [vmem:[%s28684_s8 + $0xd24] ss:$12 sps:$4 sm:$0xff]  }
 0x8fd   : > { %v18665_v22 = vpop.f32.mrb[143].mxu0  ;;  %16135 = vmatprep.subr.bf16.mxu1 %v21151_v11  ;;  %v21206_v11 = vld [vmem:[%s28684_s8 + $0xd08] ss:$12 sps:$4 sm:$0xff]   ;;  %v21209_v10 = vld [vmem:[%s28684_s8 + $0xd20] ss:$12 sps:$4 sm:$0xff]  }
 0x8fe   : > { %16432 = vst [vmem:[%s22893_s24 + $0x40] sm:$0xff] %v16414_v52  ;;  %v16417_v54 = vmax.f32 %v16405_v6, 0.0  ;;  %v16366_v49 = vadd.f32 %v18663_v15, %v16317_v38  ;;  %v18666_v3 = vadd.f32 %v18665_v22, %v18664_v63  ;;  %v21214_v0 = vld [vmem:[%s28684_s8 + $0xd3c] ss:$12 sps:$4 sm:$0xff]   ;;  %v21212_v24 = vld [vmem:[%s28684_s8 + $0xd38] ss:$12 sps:$4 sm:$0xff]   ;;  %v16392_v22 = vrot.slane %v28488_v18, %v28758_v34 }
 0x8ff   : > { %v21217_v52 = vld [vmem:[%s28684_s8 + $0xd54] ss:$12 sps:$4 sm:$0xff]   ;;  %v21215_v6 = vld [vmem:[%s28684_s8 + $0xd50] ss:$12 sps:$4 sm:$0xff]   ;;  %v21220_v15 = vld [vmem:[%s28684_s8 + $0xd6c] ss:$12 sps:$4 sm:$0xff]  }
 0x900   : > { %16441 = vst [vmem:[%s22893_s24 + $0x88] sm:$0xff] %v16417_v54  ;;  %v16380_v13 = vadd.f32 %v16366_v49, %v28403_v48  ;;  %v16369_v5 = vadd.f32 %v18666_v3, %v16320_v40  ;;  %16136 = vmatpush1.bf16.msra.mxu1 %v21149_v46  ;;  %v21155_v48 = vld [vmem:[%s28684_s8 + $0xb70] ss:$12 sps:$4 sm:$0xff]   ;;  %v21161_v40 = vld [vmem:[%s28684_s8 + $0xba0] ss:$12 sps:$4 sm:$0xff]   ;;  %v16388_v46 = vrot.slane %v28488_v18, %v28757_v62 }
 0x901   : > { %16137 = vmatprep.subr.bf16.mxu1 %v21154_v53  ;;  %v21218_v63 = vld [vmem:[%s28684_s8 + $0xd68] ss:$12 sps:$4 sm:$0xff]  }
 0x902   : > { %v16408_v17 = vadd.f32 %v16396_v39, %v16380_v13  ;;  %v16383_v1 = vadd.f32 %v16369_v5, %v28410_v35  ;;  %v21158_v35 = vld [vmem:[%s28684_s8 + $0xb88] ss:$12 sps:$4 sm:$0xff]  }
 0x904   : > { %v16420_v42 = vmax.f32 %v16408_v17, 0.0  ;;  %v16411_v19 = vadd.f32 %v16396_v39, %v16383_v1  ;;  %16138 = vmatpush1.bf16.msra.mxu1 %v21152_v9  ;;  %v21202_v39 = vld [vmem:[%s28684_s8 + $0xcdc] ss:$12 sps:$4 sm:$0xff]  }
 0x905   : > { %16139 = vmatprep.subr.bf16.mxu1 %v21157_v25 }
 0x906   : > { %16450 = vst [vmem:[%s22893_s24 + $0xd0] sm:$0xff] %v16420_v42  ;;  %v16423_v38 = vmax.f32 %v16411_v19, 0.0 }
 0x908   : > { %16459 = vst [vmem:[%s22893_s24 + $0x118] sm:$0xff] %v16423_v38  ;;  %16140 = vmatpush1.bf16.msra.mxu1 %v21155_v48 }
 0x909   : > { %16141 = vmatprep.subr.bf16.mxu1 %v21160_v44 }
 0x90c   : > { %16142 = vmatpush1.bf16.msra.mxu1 %v21158_v35 }
 0x90d   : > { %16143 = vmatprep.subr.bf16.mxu1 %v21163_v27 }
 0x910   : > { %16144 = vmatpush1.bf16.msra.mxu1 %v21161_v40 }
 0x911   : > { %16145 = vmatprep.subr.bf16.mxu1 %v21166_v7 }
 0x914   : > { %16146 = vmatpush1.bf16.msra.mxu1 %v21164_v2 }
 0x915   : > { %16147 = vmatprep.subr.bf16.mxu1 %v21169_v20 }
 0x918   : > { %16148 = vmatpush1.bf16.msra.mxu1 %v21167_v59 }
 0x919   : > { %16149 = vmatprep.subr.bf16.mxu1 %v21172_v32 }
 0x91c   : > { %16150 = vmatpush1.bf16.msra.mxu1 %v21170_v51 }
 0x91d   : > { %16172 = vmatprep.subr.bf16.mxu1 %v21175_v41 }
 0x91f   : > { %16152 = vmatmul.mubr.bf16.vlgmr.msra.gmra.mrb[192].mxu1 %v27952_v50  ;;  %v21184_v50 = vld [vmem:[%s28684_s8 + $0xc4c] ss:$12 sps:$4 sm:$0xff]  }
 0x920   : > { %16161 = vmatprep.mubr.bf16.mxu1 %v27960_v28  ;;  %16173 = vmatpush1.bf16.msra.mxu1 %v21173_v30  ;;  %v21182_v28 = vld [vmem:[%s28684_s8 + $0xc48] ss:$12 sps:$4 sm:$0xff]  }
 0x921   : > { %16174 = vmatprep.subr.bf16.mxu1 %v21178_v57 }
 0x924   : > { %16175 = vmatpush1.bf16.msra.mxu1 %v21176_v36 }
 0x925   : > { %16176 = vmatprep.subr.bf16.mxu1 %v21181_v43 }
 0x927   : > { %16162 = vmatmul.mubr.bf16.gmra.mrb[196].mxu1 %v27983_v21  ;;  %v21190_v21 = vld [vmem:[%s28684_s8 + $0xc7c] ss:$12 sps:$4 sm:$0xff]  }
 0x928   : > { %16177 = vmatpush1.bf16.msra.mxu1 %v21179_v33  ;;  %16204 = vmatprep.mubr.bf16.mxu1 %v27992_v31  ;;  %v21188_v31 = vld [vmem:[%s28684_s8 + $0xc78] ss:$12 sps:$4 sm:$0xff]  }
 0x929   : > { %16178 = vmatprep.subr.bf16.mxu1 %v21184_v50 }
 0x92c   : > { %16179 = vmatpush1.bf16.msra.mxu1 %v21182_v28 }
 0x92d   : > { %16180 = vmatprep.subr.bf16.mxu1 %v21187_v14 }
 0x930   : > { %16181 = vmatpush1.bf16.msra.mxu1 %v21185_v29 }
 0x931   : > { %16182 = vmatprep.subr.bf16.mxu1 %v21190_v21 }
 0x934   : > { %16183 = vmatpush1.bf16.msra.mxu1 %v21188_v31 }
 0x935   : > { %16184 = vmatprep.subr.bf16.mxu1 %v21193_v23 }
 0x938   : > { %16185 = vmatpush1.bf16.msra.mxu1 %v21191_v16 }
 0x939   : > { %16186 = vmatprep.subr.bf16.mxu1 %v21196_v4 }
 0x93c   : > { %16187 = vmatpush1.bf16.msra.mxu1 %v21194_v60 }
 0x93d   : > { %16188 = vmatprep.subr.bf16.mxu1 %v21199_v45 }
 0x940   : > { %16189 = vmatpush1.bf16.msra.mxu1 %v21197_v37 }
 0x941   : > { %16190 = vmatprep.subr.bf16.mxu1 %v21202_v39 }
 0x944   : > { %16191 = vmatpush1.bf16.msra.mxu1 %v21200_v58 }
 0x945   : > { %16192 = vmatprep.subr.bf16.mxu1 %v21205_v56 }
 0x948   : > { %16193 = vmatpush1.bf16.msra.mxu1 %v21203_v8 }
 0x949   : > { %16194 = vmatprep.subr.bf16.mxu1 %v21208_v47 }
 0x94c   : > { %16195 = vmatpush1.bf16.msra.mxu1 %v21206_v11 }
 0x94d   : > { %16196 = vmatprep.subr.bf16.mxu1 %v21211_v55 }
 0x950   : > { %16197 = vmatpush1.bf16.msra.mxu1 %v21209_v10 }
 0x951   : > { %16198 = vmatprep.subr.bf16.mxu1 %v21214_v0 }
 0x954   : > { %16199 = vmatpush1.bf16.msra.mxu1 %v21212_v24 }
 0x955   : > { %16200 = vmatprep.subr.bf16.mxu1 %v21217_v52 }
 0x958   : > { %16201 = vmatpush1.bf16.msra.mxu1 %v21215_v6 }
 0x959   : > { %16202 = vmatprep.subr.bf16.mxu1 %v21220_v15 }
 0x95c   : > { %16203 = vmatpush1.bf16.msra.mxu1 %v21218_v63 }
 0x95f   : > { %16205 = vmatmul.mubr.bf16.vlgmr.msra.gmra.mrb[192].mxu1 %v28063_v26 }
 0x960   : > { %16214 = vmatprep.mubr.bf16.mxu1 %v28070_v12 }
 0x967   : > { %16215 = vmatmul.mubr.bf16.gmra.mrb[196].mxu1 %v28090_v61 }
 0xa32   : > { %v16206_v53 = vpop.f32.mrb[192].mxu1 }
 0xa33   : > { %v16400_v54 = vadd.f32 %v16388_v46, %v16206_v53  ;;  %v16208_v49 = vpop.f32.mrb[193].mxu1 }
 0xa34   : > { %v16401_v3 = vadd.f32 %v16392_v22, %v16208_v49  ;;  %v16210_v13 = vpop.f32.mrb[194].mxu1 }
 0xa35   : > { %v16412_v5 = vmax.f32 %v16400_v54, 0.0  ;;  %v16403_v26 = vadd.f32 %v16388_v46, %v16210_v13  ;;  %v16212_v9 = vpop.f32.mrb[195].mxu1 }
 0xa36   : > { %v16413_v12 = vmax.f32 %v16401_v3, 0.0  ;;  %v16404_v25 = vadd.f32 %v16392_v22, %v16212_v9 }
 0xa37   : > { %16430 = vst [vmem:[%s22893_s24 + $0x30] sm:$0xff] %v16412_v5  ;;  %v16415_v61 = vmax.f32 %v16403_v26, 0.0 }
 0xa38   : > { %16431 = vst [vmem:[%s22893_s24 + $0x38] sm:$0xff] %v16413_v12  ;;  %v16416_v62 = vmax.f32 %v16404_v25, 0.0 }
 0xa39   : > { %16439 = vst [vmem:[%s22893_s24 + $0x78] sm:$0xff] %v16415_v61 }
 0xa3a   : > { %16440 = vst [vmem:[%s22893_s24 + $0x80] sm:$0xff] %v16416_v62  ;;  %v16216_v34 = vpop.f32.mrb[196].mxu1 }
 0xa3b   : > { %v16406_v18 = vadd.f32 %v16388_v46, %v16216_v34  ;;  %v16218_v17 = vpop.f32.mrb[197].mxu1 }
 0xa3c   : > { %v16407_v1 = vadd.f32 %v16392_v22, %v16218_v17  ;;  %v16220_v42 = vpop.f32.mrb[198].mxu1 }
 0xa3d   : > { %v16418_v19 = vmax.f32 %v16406_v18, 0.0  ;;  %v16409_v48 = vadd.f32 %v16388_v46, %v16220_v42  ;;  %v16222_v44 = vpop.f32.mrb[199].mxu1 }
 0xa3e   : > { %v16419_v38 = vmax.f32 %v16407_v1, 0.0  ;;  %v16410_v35 = vadd.f32 %v16392_v22, %v16222_v44 }
 0xa3f   : > { %16448 = vst [vmem:[%s22893_s24 + $0xc0] sm:$0xff] %v16418_v19  ;;  %v16421_v27 = vmax.f32 %v16409_v48, 0.0 }
 0xa40   : > { %16449 = vst [vmem:[%s22893_s24 + $0xc8] sm:$0xff] %v16419_v38  ;;  %v16422_v40 = vmax.f32 %v16410_v35, 0.0 }
 0xa41   : > { %16457 = vst [vmem:[%s22893_s24 + $0x108] sm:$0xff] %v16421_v27 }
 0xa42   : > { %16458 = vst [vmem:[%s22893_s24 + $0x110] sm:$0xff] %v16422_v40 }
 0xa43 PF: > { %s20_s13 = sadd.s32 1, %s21295_s13  }
 0xa44   : > { %p17_p4 = scmp.ge.s32.totalorder %s20_s13, 4  }
 0xa46   :  { %19 = sbr.rel (!%p17_p4) target bundleno = 1 (0x1), region = 105 }

</bundles_post_ra>
